<compile_context>
chip_gen: v5e
topology: v5e:2x2
jax: 0.10.0
libtpu: 0.0.40
codegen_flags: <defaults>
</compile_context>

<pallas_src>
import jax
import jax.numpy as jnp
from jax.experimental import pallas as pl
from jax.experimental.pallas import tpu as pltpu


# -----------------------------------------------------------------------------
# Constants
# -----------------------------------------------------------------------------
D_FMAPS = [16, 32, 128, 256, 512, 1024]
LATENT_DIM = 128
NGF = 64
NUM_CHANNELS = 3
AUX_CLASSES = 8  # TODO(synk): true class count of auxclassifier not given.

_VMEM_LIMIT = 32 * 1024 * 1024


def _round_up(x, m):
    return ((x + m - 1) // m) * m


def _apply_act(r, act):
    if act == "relu":
        return jnp.maximum(r, 0.0)
    if act == "leaky":
        return jnp.where(r > 0.0, r, 0.3 * r)
    if act == "tanh":
        return jnp.tanh(r)
    return r


# -----------------------------------------------------------------------------
# Pallas tiled matmul kernels (bf16 operands, f32 accumulation, fused act)
# -----------------------------------------------------------------------------
def _mm_kernel_single(act):
    """Single k-step: write output directly, no accumulator scratch."""
    def kernel(a_ref, b_ref, o_ref):
        r = jnp.dot(a_ref[...], b_ref[...], preferred_element_type=jnp.float32)
        o_ref[...] = _apply_act(r, act).astype(o_ref.dtype)
    return kernel


def _mm_kernel_multi(act):
    """Multi k-step: accumulate in f32 VMEM scratch, activate in epilogue."""
    def kernel(a_ref, b_ref, o_ref, acc_ref):
        @pl.when(pl.program_id(2) == 0)
        def _():
            acc_ref[...] = jnp.zeros_like(acc_ref)

        acc_ref[...] += jnp.dot(
            a_ref[...], b_ref[...], preferred_element_type=jnp.float32
        )

        @pl.when(pl.program_id(2) == pl.num_programs(2) - 1)
        def _():
            o_ref[...] = _apply_act(acc_ref[...], act).astype(o_ref.dtype)
    return kernel


def _pallas_matmul(a, b, act):
    """a: (M, K), b: (K, N) -> (M, N) f32 with fused activation."""
    M, K = a.shape
    _, N = b.shape
    a = a.astype(jnp.bfloat16)
    b = b.astype(jnp.bfloat16)

    # tile selection (bf16-friendly: M to multiples of 16, K/N to 128)
    Mp = _round_up(M, 16)
    tm = Mp if Mp <= 256 else 256
    Mp = _round_up(M, tm)

    Np = _round_up(N, 128)
    tn = Np if Np <= 256 else 256
    Np = _round_up(N, tn)

    Kp = _round_up(K, 128)
    tk = Kp if Kp <= 2048 else 2048
    Kp = _round_up(K, tk)

    a_p = a if (Mp == M and Kp == K) else jnp.pad(a, ((0, Mp - M), (0, Kp - K)))
    b_p = b if (Kp == K and Np == N) else jnp.pad(b, ((0, Kp - K), (0, Np - N)))

    nk = Kp // tk
    if nk == 1:
        out = pl.pallas_call(
            _mm_kernel_single(act),
            out_shape=jax.ShapeDtypeStruct((Mp, Np), jnp.float32),
            grid_spec=pltpu.PrefetchScalarGridSpec(
                num_scalar_prefetch=0,
                grid=(Mp // tm, Np // tn),
                in_specs=[
                    pl.BlockSpec((tm, Kp), lambda i, j: (i, 0)),
                    pl.BlockSpec((Kp, tn), lambda i, j: (0, j)),
                ],
                out_specs=pl.BlockSpec((tm, tn), lambda i, j: (i, j)),
            ),
            compiler_params=pltpu.CompilerParams(
                dimension_semantics=("parallel", "parallel"),
                vmem_limit_bytes=_VMEM_LIMIT,
            ),
        )(a_p, b_p)
    else:
        out = pl.pallas_call(
            _mm_kernel_multi(act),
            out_shape=jax.ShapeDtypeStruct((Mp, Np), jnp.float32),
            grid_spec=pltpu.PrefetchScalarGridSpec(
                num_scalar_prefetch=0,
                grid=(Mp // tm, Np // tn, nk),
                in_specs=[
                    pl.BlockSpec((tm, tk), lambda i, j, k: (i, k)),
                    pl.BlockSpec((tk, tn), lambda i, j, k: (k, j)),
                ],
                out_specs=pl.BlockSpec((tm, tn), lambda i, j, k: (i, j)),
                scratch_shapes=[pltpu.VMEM((tm, tn), jnp.float32)],
            ),
            compiler_params=pltpu.CompilerParams(
                dimension_semantics=("parallel", "parallel", "arbitrary"),
                vmem_limit_bytes=_VMEM_LIMIT,
            ),
        )(a_p, b_p)

    if Mp == M and Np == N:
        return out
    return out[:M, :N]


def matmul(a, b, act="none"):
    """Routing wrapper: Pallas for the heavy matmuls, jnp.dot for tiny ones,
    transposed Pallas for skinny-N / tall-M (keeps the big dim lane-dense)."""
    M, K = a.shape
    K2, N = b.shape
    assert K == K2
    if N < 64 and M >= 256:
        # out = (W^T @ A^T)^T : pads N only to the 8/16-sublane boundary
        return matmul(b.T, a.T, act=act).T
    heavy = (M >= 8) and (N >= 128) and (K >= 128) and (M * N * K >= (1 << 22))
    if not heavy:
        r = jnp.dot(a.astype(jnp.float32), b.astype(jnp.float32),
                    preferred_element_type=jnp.float32)
        return _apply_act(r, act)
    return _pallas_matmul(a, b, act)


# -----------------------------------------------------------------------------
# Conv wrappers (im2col / sub-pixel glue in plain JAX, matmul routed above)
# -----------------------------------------------------------------------------
def conv1d(x, w, stride, pad, act):
    """x: (B, Cin, L), w: (Cout, Cin, K) -> (B, Cout, Lout)."""
    B, C, L = x.shape
    Cout, _, K = w.shape
    xp = jnp.pad(x, ((0, 0), (0, 0), (pad, pad)))
    Lp = L + 2 * pad
    Lout = (Lp - K) // stride + 1
    cols = [xp[:, :, k: k + stride * (Lout - 1) + 1: stride] for k in range(K)]
    patches = jnp.stack(cols, axis=2)                        # (B, C, K, Lout)
    A = patches.transpose(0, 3, 1, 2).reshape(B * Lout, C * K)
    Wm = w.transpose(1, 2, 0).reshape(C * K, Cout)
    out = matmul(A, Wm, act)
    return out.reshape(B, Lout, Cout).transpose(0, 2, 1)


def _subpixel_im2col(x):
    """x: (B, C, H, W) -> A: (B*(H+1)*(W+1), C*4) of 2x2 patches over pad-1 input."""
    B, C, H, W = x.shape
    xp = jnp.pad(x, ((0, 0), (0, 0), (1, 1), (1, 1)))
    pats = [xp[:, :, r: r + H + 1, s: s + W + 1] for r in (0, 1) for s in (0, 1)]
    P = jnp.stack(pats, axis=2)                              # (B, C, 4, H+1, W+1)
    return P.transpose(0, 3, 4, 1, 2).reshape(B * (H + 1) * (W + 1), C * 4)


def deconv_subpixel(x, wm, cout, act):
    """ConvTranspose2d(K=4, stride=2, pad=1, bias=False) via sub-pixel decomposition.

    x: (B, Cin, H, W); wm: packed (Cin*4, 4*Cout) -> out (B, Cout, 2H, 2W)."""
    B, C, H, W = x.shape
    A = _subpixel_im2col(x)                                  # (B*(H+1)*(W+1), C*4)
    # Activation applied in the matmul epilogue; the few boundary positions
    # that are sliced away below see it too, which is harmless (elementwise).
    R = matmul(A, wm, act=act)                               # (rows, 4*Cout)
    R = R.reshape(B, H + 1, W + 1, 4, cout)
    ee = R[:, :H, :W, 0]
    eo = R[:, :H, 1:, 1]
    oe = R[:, 1:, :W, 2]
    oo = R[:, 1:, 1:, 3]
    row_e = jnp.stack([ee, eo], axis=3).reshape(B, H, 2 * W, cout)
    row_o = jnp.stack([oe, oo], axis=3).reshape(B, H, 2 * W, cout)
    out = jnp.stack([row_e, row_o], axis=2).reshape(B, 2 * H, 2 * W, cout)
    return out.transpose(0, 3, 1, 2)                         # NCHW


# -----------------------------------------------------------------------------
# Parameter construction (deterministic, synthetic) + weight pre-packing
# -----------------------------------------------------------------------------
def _spectral_normalize(w, n_iter=5):
    # TODO(synk): custom SpectralNorm wrappers typically power-iterate on
    # w.view(shape[0], -1); torch.nn.utils.spectral_norm would use dim=1 for
    # ConvTranspose2d.  dim 0 is used here (SpectralNorm is not in the spec).
    wm = w.reshape(w.shape[0], -1)
    u = jnp.ones((wm.shape[0],), jnp.float32) / jnp.sqrt(float(wm.shape[0]))
    v = None
    for _ in range(n_iter):
        v = wm.T @ u
        v = v / (jnp.linalg.norm(v) + 1e-12)
        u = wm @ v
        u = u / (jnp.linalg.norm(u) + 1e-12)
    sigma = u @ (wm @ v)
    return w / (sigma + 1e-12)


def _pack_subpixel_weight(w):
    """w: ConvTranspose2d weight (Cin, Cout, 4, 4) -> (Cin*4, 4*Cout) sub-pixel matmul weight."""
    cin, cout = w.shape[0], w.shape[1]
    taps = [jnp.array([3, 1]), jnp.array([2, 0])]   # even / odd parity kernel taps
    cols = []
    for a in range(2):          # output row parity
        for b in range(2):      # output col parity
            kw = jnp.take(jnp.take(w, taps[a], axis=2), taps[b], axis=3)  # (Cin,Cout,2,2)
            cols.append(kw.transpose(0, 2, 3, 1).reshape(cin * 4, cout))
    return jnp.concatenate(cols, axis=1)            # (Cin*4, 4*Cout)


def init_params(key, image_size, audio_samples):
    assert image_size == 64, "this script instantiates the image_size==64 branch"
    params = {}
    k = key

    def nxt():
        nonlocal k
        k, sub = jax.random.split(k)
        return sub

    # audio embedding: SEGAN-style 1-D conv stack (kernel 15, stride 4, pad 7)
    chans = [1] + D_FMAPS
    params["audio_convs"] = [
        0.05 * jax.random.normal(nxt(), (chans[i + 1], chans[i], 15), jnp.float32)
        for i in range(len(D_FMAPS))
    ]
    L = audio_samples
    for _ in D_FMAPS:
        L = ((L + 2 * 7) - 15) // 4 + 1
    params["audio_fc_w"] = 0.05 * jax.random.normal(
        nxt(), (D_FMAPS[-1] * L, LATENT_DIM), jnp.float32)
    params["audio_fc_b"] = jnp.zeros((LATENT_DIM,), jnp.float32)

    # aux classifier
    params["aux_w"] = 0.05 * jax.random.normal(
        nxt(), (LATENT_DIM, AUX_CLASSES), jnp.float32)
    params["aux_b"] = jnp.zeros((AUX_CLASSES,), jnp.float32)

    # netG (image_size == 64): spectral-normed ConvTranspose2d weights,
    # pre-packed into their matmul layouts (bf16 for the Pallas-routed layers).
    deconv_io = [(LATENT_DIM, NGF * 8), (NGF * 8, NGF * 4), (NGF * 4, NGF * 2),
                 (NGF * 2, NGF), (NGF, NUM_CHANNELS)]
    ws = [_spectral_normalize(
        0.05 * jax.random.normal(nxt(), (cin, cout, 4, 4), jnp.float32))
        for cin, cout in deconv_io]
    # layer 0: 1x1 input, stride 1, pad 0  ->  plain (Cin, Cout*16) matmul
    params["deconv0_w"] = ws[0].reshape(LATENT_DIM, NGF * 8 * 16)
    # layers 1..4: stride-2 sub-pixel packed weights, bf16 for the MXU
    params["deconv_sub_w"] = [
        _pack_subpixel_weight(w).astype(jnp.bfloat16) for w in ws[1:]
    ]
    return params


_DECONV_SUB_COUT = [NGF * 4, NGF * 2, NGF, NUM_CHANNELS]
_DECONV_SUB_ACT = ["relu", "relu", "relu", "tanh"]


# -----------------------------------------------------------------------------
# Forward pass (mirrors generator.forward; Dropout is identity in eval mode)
# -----------------------------------------------------------------------------
def generator_forward(params, raw_wav):
    B = raw_wav.shape[0]
    x = raw_wav[:, None, :]                                  # (B, 1, audio_samples)

    # audio_embedding (Discriminator): conv1d stack with LeakyReLU(0.3)
    for w in params["audio_convs"]:
        x = conv1d(x, w, stride=4, pad=7, act="leaky")
    flat = x.reshape(B, -1)
    y = matmul(flat, params["audio_fc_w"]) + params["audio_fc_b"]

    # aux classifier -> softmax scores
    logits = matmul(y, params["aux_w"]) + params["aux_b"]
    softmax_scores = jax.nn.softmax(logits, axis=-1)

    # z_vector = y.unsqueeze(2).unsqueeze(3)
    z_vector = y[:, :, None, None]                           # (B, 128, 1, 1)

    # netG: first deconv (1x1 -> 4x4) is a plain matmul; rest are sub-pixel
    out = matmul(y, params["deconv0_w"], act="relu").reshape(B, NGF * 8, 4, 4)
    for wm, cout, act in zip(params["deconv_sub_w"], _DECONV_SUB_COUT, _DECONV_SUB_ACT):
        out = deconv_subpixel(out, wm, cout, act)

    return out, z_vector, softmax_scores


# -----------------------------------------------------------------------------
if __name__ == "__main__":
    key = jax.random.PRNGKey(0)
    image_size = 64
    audio_samples = 1024
    batch = 2

    params = init_params(key, image_size, audio_samples)
    raw_wav = jax.random.normal(
        jax.random.fold_in(key, 999), (batch, audio_samples), jnp.float32)

    fwd = jax.jit(generator_forward)
    output, z_vector, softmax_scores = fwd(params, raw_wav)
    jax.block_until_ready((output, z_vector, softmax_scores))

    assert output.shape == (batch, NUM_CHANNELS, image_size, image_size), output.shape
    assert z_vector.shape == (batch, LATENT_DIM, 1, 1), z_vector.shape
    assert softmax_scores.shape == (batch, AUX_CLASSES), softmax_scores.shape
    assert bool(jnp.all(jnp.isfinite(output)))
    print("KERNEL_OK")
</pallas_src>

<mosaic_0001>
module attributes {stable_mosaic.version = 11 : i64} {
  func.func @kernel(%arg0: i32, %arg1: i32, %arg2: memref<64x2048xbf16, #tpu.memory_space<vmem>>, %arg3: memref<2048x256xbf16, #tpu.memory_space<vmem>>, %arg4: memref<64x256xf32, #tpu.memory_space<vmem>>) attributes {dimension_semantics = [#tpu.dimension_semantics<parallel>, #tpu.dimension_semantics<parallel>], iteration_bounds = array<i64: 1, 4>, scalar_prefetch = 0 : i64, scratch_operands = 0 : i64, tpu.core_type = #tpu.core_type<tc>, window_params = [{transform_indices = @transform_0, window_bounds = array<i64: 64, 2048>}, {transform_indices = @transform_1, window_bounds = array<i64: 2048, 256>}, {transform_indices = @transform_2, window_bounds = array<i64: 64, 256>}]} {
    %c0 = arith.constant 0 : index
    %c0_0 = arith.constant 0 : index
    %0 = vector.load %arg2[%c0, %c0_0] : memref<64x2048xbf16, #tpu.memory_space<vmem>>, vector<64x2048xbf16>
    %c0_1 = arith.constant 0 : index
    %c0_2 = arith.constant 0 : index
    %1 = vector.load %arg3[%c0_1, %c0_2] : memref<2048x256xbf16, #tpu.memory_space<vmem>>, vector<2048x256xbf16>
    %cst = arith.constant dense<0.000000e+00> : vector<64x256xf32>
    %2 = tpu.matmul %0, %1, %cst {dimension_numbers = #tpu.dot_dimension_numbers<[1], [0], [0], [1], [0, 0, 1, 1], [], []>} : vector<64x2048xbf16>, vector<2048x256xbf16>, vector<64x256xf32> -> vector<64x256xf32>
    %cst_3 = arith.constant 0.000000e+00 : f32
    %3 = vector.broadcast %cst_3 : f32 to vector<64x256xf32>
    %4 = arith.maximumf %2, %3 : vector<64x256xf32>
    %c0_4 = arith.constant 0 : index
    %c0_5 = arith.constant 0 : index
    %5 = vector.load %arg4[%c0_4, %c0_5] : memref<64x256xf32, #tpu.memory_space<vmem>>, vector<64x256xf32>
    tpu.vector_store %arg4[%c0_4, %c0_5], %4 {strides = array<i32>} : memref<64x256xf32, #tpu.memory_space<vmem>>, vector<64x256xf32>,
    return
  }
  func.func @transform_0(%arg0: i32, %arg1: i32) -> (i32, i32) {
    %c0_i32 = arith.constant 0 : i32
    %c0_i32_0 = arith.constant 0 : i32
    return %arg0, %c0_i32 : i32, i32
  }
  func.func @transform_1(%arg0: i32, %arg1: i32) -> (i32, i32) {
    %c0_i32 = arith.constant 0 : i32
    %c0_i32_0 = arith.constant 0 : i32
    return %c0_i32, %arg1 : i32, i32
  }
  func.func @transform_2(%arg0: i32, %arg1: i32) -> (i32, i32) {
    %c0_i32 = arith.constant 0 : i32
    return %arg0, %arg1 : i32, i32
  }
}

module attributes {stable_mosaic.version = 11 : i64} {
  func.func @kernel(%arg0: i32, %arg1: i32, %arg2: memref<176x1024xbf16, #tpu.memory_space<vmem>>, %arg3: memref<1024x256xbf16, #tpu.memory_space<vmem>>, %arg4: memref<176x256xf32, #tpu.memory_space<vmem>>) attributes {dimension_semantics = [#tpu.dimension_semantics<parallel>, #tpu.dimension_semantics<parallel>], iteration_bounds = array<i64: 1, 2>, scalar_prefetch = 0 : i64, scratch_operands = 0 : i64, tpu.core_type = #tpu.core_type<tc>, window_params = [{transform_indices = @transform_0, window_bounds = array<i64: 176, 1024>}, {transform_indices = @transform_1, window_bounds = array<i64: 1024, 256>}, {transform_indices = @transform_2, window_bounds = array<i64: 176, 256>}]} {
    %c0 = arith.constant 0 : index
    %c0_0 = arith.constant 0 : index
    %0 = vector.load %arg2[%c0, %c0_0] : memref<176x1024xbf16, #tpu.memory_space<vmem>>, vector<176x1024xbf16>
    %c0_1 = arith.constant 0 : index
    %c0_2 = arith.constant 0 : index
    %1 = vector.load %arg3[%c0_1, %c0_2] : memref<1024x256xbf16, #tpu.memory_space<vmem>>, vector<1024x256xbf16>
    %cst = arith.constant dense<0.000000e+00> : vector<176x256xf32>
    %2 = tpu.matmul %0, %1, %cst {dimension_numbers = #tpu.dot_dimension_numbers<[1], [0], [0], [1], [0, 0, 1, 1], [], []>} : vector<176x1024xbf16>, vector<1024x256xbf16>, vector<176x256xf32> -> vector<176x256xf32>
    %cst_3 = arith.constant 0.000000e+00 : f32
    %3 = vector.broadcast %cst_3 : f32 to vector<176x256xf32>
    %4 = arith.maximumf %2, %3 : vector<176x256xf32>
    %c0_4 = arith.constant 0 : index
    %c0_5 = arith.constant 0 : index
    %5 = vector.load %arg4[%c0_4, %c0_5] : memref<176x256xf32, #tpu.memory_space<vmem>>, vector<176x256xf32>
    tpu.vector_store %arg4[%c0_4, %c0_5], %4 {strides = array<i32>} : memref<176x256xf32, #tpu.memory_space<vmem>>, vector<176x256xf32>,
    return
  }
  func.func @transform_0(%arg0: i32, %arg1: i32) -> (i32, i32) {
    %c0_i32 = arith.constant 0 : i32
    %c0_i32_0 = arith.constant 0 : i32
    return %arg0, %c0_i32 : i32, i32
  }
  func.func @transform_1(%arg0: i32, %arg1: i32) -> (i32, i32) {
    %c0_i32 = arith.constant 0 : i32
    %c0_i32_0 = arith.constant 0 : i32
    return %c0_i32, %arg1 : i32, i32
  }
  func.func @transform_2(%arg0: i32, %arg1: i32) -> (i32, i32) {
    %c0_i32 = arith.constant 0 : i32
    return %arg0, %arg1 : i32, i32
  }
}

module attributes {stable_mosaic.version = 11 : i64} {
  func.func @kernel(%arg0: i32, %arg1: i32, %arg2: memref<256x512xbf16, #tpu.memory_space<vmem>>, %arg3: memref<512x256xbf16, #tpu.memory_space<vmem>>, %arg4: memref<256x256xf32, #tpu.memory_space<vmem>>) attributes {dimension_semantics = [#tpu.dimension_semantics<parallel>, #tpu.dimension_semantics<parallel>], iteration_bounds = array<i64: 3, 1>, scalar_prefetch = 0 : i64, scratch_operands = 0 : i64, tpu.core_type = #tpu.core_type<tc>, window_params = [{transform_indices = @transform_0, window_bounds = array<i64: 256, 512>}, {transform_indices = @transform_1, window_bounds = array<i64: 512, 256>}, {transform_indices = @transform_2, window_bounds = array<i64: 256, 256>}]} {
    %c0 = arith.constant 0 : index
    %c0_0 = arith.constant 0 : index
    %0 = vector.load %arg2[%c0, %c0_0] : memref<256x512xbf16, #tpu.memory_space<vmem>>, vector<256x512xbf16>
    %c0_1 = arith.constant 0 : index
    %c0_2 = arith.constant 0 : index
    %1 = vector.load %arg3[%c0_1, %c0_2] : memref<512x256xbf16, #tpu.memory_space<vmem>>, vector<512x256xbf16>
    %cst = arith.constant dense<0.000000e+00> : vector<256x256xf32>
    %2 = tpu.matmul %0, %1, %cst {dimension_numbers = #tpu.dot_dimension_numbers<[1], [0], [0], [1], [0, 0, 1, 1], [], []>} : vector<256x512xbf16>, vector<512x256xbf16>, vector<256x256xf32> -> vector<256x256xf32>
    %cst_3 = arith.constant 0.000000e+00 : f32
    %3 = vector.broadcast %cst_3 : f32 to vector<256x256xf32>
    %4 = arith.maximumf %2, %3 : vector<256x256xf32>
    %c0_4 = arith.constant 0 : index
    %c0_5 = arith.constant 0 : index
    %5 = vector.load %arg4[%c0_4, %c0_5] : memref<256x256xf32, #tpu.memory_space<vmem>>, vector<256x256xf32>
    tpu.vector_store %arg4[%c0_4, %c0_5], %4 {strides = array<i32>} : memref<256x256xf32, #tpu.memory_space<vmem>>, vector<256x256xf32>,
    return
  }
  func.func @transform_0(%arg0: i32, %arg1: i32) -> (i32, i32) {
    %c0_i32 = arith.constant 0 : i32
    %c0_i32_0 = arith.constant 0 : i32
    return %arg0, %c0_i32 : i32, i32
  }
  func.func @transform_1(%arg0: i32, %arg1: i32) -> (i32, i32) {
    %c0_i32 = arith.constant 0 : i32
    %c0_i32_0 = arith.constant 0 : i32
    return %c0_i32, %arg1 : i32, i32
  }
  func.func @transform_2(%arg0: i32, %arg1: i32) -> (i32, i32) {
    %c0_i32 = arith.constant 0 : i32
    return %arg0, %arg1 : i32, i32
  }
}

module attributes {stable_mosaic.version = 11 : i64} {
  func.func @kernel(%arg0: i32, %arg1: i32, %arg2: memref<16x256xbf16, #tpu.memory_space<vmem>>, %arg3: memref<256x256xbf16, #tpu.memory_space<vmem>>, %arg4: memref<16x256xf32, #tpu.memory_space<vmem>>) attributes {dimension_semantics = [#tpu.dimension_semantics<parallel>, #tpu.dimension_semantics<parallel>], iteration_bounds = array<i64: 1, 9>, scalar_prefetch = 0 : i64, scratch_operands = 0 : i64, tpu.core_type = #tpu.core_type<tc>, window_params = [{transform_indices = @transform_0, window_bounds = array<i64: 16, 256>}, {transform_indices = @transform_1, window_bounds = array<i64: 256, 256>}, {transform_indices = @transform_2, window_bounds = array<i64: 16, 256>}]} {
    %c0 = arith.constant 0 : index
    %c0_0 = arith.constant 0 : index
    %0 = vector.load %arg2[%c0, %c0_0] : memref<16x256xbf16, #tpu.memory_space<vmem>>, vector<16x256xbf16>
    %c0_1 = arith.constant 0 : index
    %c0_2 = arith.constant 0 : index
    %1 = vector.load %arg3[%c0_1, %c0_2] : memref<256x256xbf16, #tpu.memory_space<vmem>>, vector<256x256xbf16>
    %cst = arith.constant dense<0.000000e+00> : vector<16x256xf32>
    %2 = tpu.matmul %0, %1, %cst {dimension_numbers = #tpu.dot_dimension_numbers<[1], [0], [0], [1], [0, 0, 1, 1], [], []>} : vector<16x256xbf16>, vector<256x256xbf16>, vector<16x256xf32> -> vector<16x256xf32>
    %3 = math.tanh %2 : vector<16x256xf32>
    %c0_3 = arith.constant 0 : index
    %c0_4 = arith.constant 0 : index
    %4 = vector.load %arg4[%c0_3, %c0_4] : memref<16x256xf32, #tpu.memory_space<vmem>>, vector<16x256xf32>
    tpu.vector_store %arg4[%c0_3, %c0_4], %3 {strides = array<i32>} : memref<16x256xf32, #tpu.memory_space<vmem>>, vector<16x256xf32>,
    return
  }
  func.func @transform_0(%arg0: i32, %arg1: i32) -> (i32, i32) {
    %c0_i32 = arith.constant 0 : i32
    %c0_i32_0 = arith.constant 0 : i32
    return %arg0, %c0_i32 : i32, i32
  }
  func.func @transform_1(%arg0: i32, %arg1: i32) -> (i32, i32) {
    %c0_i32 = arith.constant 0 : i32
    %c0_i32_0 = arith.constant 0 : i32
    return %c0_i32, %arg1 : i32, i32
  }
  func.func @transform_2(%arg0: i32, %arg1: i32) -> (i32, i32) {
    %c0_i32 = arith.constant 0 : i32
    return %arg0, %arg1 : i32, i32
  }
}

</mosaic_0001>

<bundles_post_ra>
// kernel: generator_forward.4
= control target key start
LH: loop header
LB: loop body
LE: loop exit
PB: predicated region body
PF: predicated region fallthrough
CT: control target
= control target key end

     0   :  { %s7041_s9 = smov 0   ;;  %s7043_s10 = smov 0   ;;  %s9055_s0 = inlined_call_operand.vmem [shape: bf16[64,2048], index: 0, kind: input, shape index: {}]   ;;  %s9056_s1 = inlined_call_operand.vmem [shape: bf16[2048,1024], index: 1, kind: input, shape index: {}]   ;;  %s9057_s2 = inlined_call_operand.vmem [shape: f32[64,1024], index: 2, kind: output, shape index: {}]  }
   0x1   :  { %s7045_s11 = smov 0   ;;  %s7047_s12 = smov 0  }
   0x2   :  { %s7049_s13 = smov 0  }
   0x3 LB: > { %s21_s14 = sadd.s32 1, %s7020_s12  ;;  %s5328_s15 = sadd.s32 4294967295, %s7024_s13   ;;  %s7024_s13 = sphi %s7049_s13, %s12_s13   ;;  %s7020_s12 = sphi %s7047_s12, %s9167_s12   ;;  %s7016_s11 = sphi %s7045_s11, %s9166_s11   ;;  %s7012_s10 = sphi %s7043_s10, %s9165_s10   ;;  %s7008_s9 = sphi %s7041_s9, %s9164_s9  }
   0x4   : > { %p22_p0 = scmp.ge.s32.totalorder %s21_s14, 4  ;;  %p64_p1 = scmp.ne.s32.totalorder %s7012_s10, %s7008_s9 }
   0x5   : > { %p65_p2 = scmp.eq.s32.totalorder %s7024_s13, 0  ;;  %p96_p4 = scmp.eq.s32.totalorder %s5328_s15, 3 }
   0x6   : > { %s9169_s14 = smov (%p22_p0, %s21_s14), 0  ;;  %s57_s17 = sadd.s32 1, %s7012_s10 }
   0x7   : > { %p66_p3 = por %p65_p2, %p64_p1  ;;  %s54_s16 = ssub.s32 %s7020_s12, %s9169_s14 }
   0x8   : > { %p55_p5 = scmp.eq.s32.totalorder %s54_s16, 0  ;;  %p7076_p6 = por %p96_p4, %p64_p1 }
   0x9   : > { %p5332_p7 = scmp.ge.s32.totalorder %s7024_s13, 4 }
   0xa   : > { %s7081_s19 = scalar_select %p55_p5, %s7012_s10, %s57_s17  }
   0xb   : > { %128 = sbr.rel (%p5332_p7) target bundleno = 276 (0x114), region = 20 }
  0x10   : > { %131 = sbr.rel (!%p66_p3) target bundleno = 276 (0x114), region = 24  ;;  %s133_s20 = sand.u32 (%p66_p3), 1, %s7012_s10  }
  0x11   : > { %s6624_s21 = sshll.u32 (%p66_p3), %s7020_s12, 3  ;;  %s5333_s22 = sshll.u32 (%p66_p3), %s133_s20, 11 }
  0x12   : > { %s7089_s25 = scalar_lea.vmem (%p66_p3), %s9056_s1, %s6624_s21  ;;  %s7094_s26 = scalar_lea.vmem (%p66_p3), [#allocation2], %s5333_s22 }
  0x13   : > { %v678_v0 = vld [vmem:[%s7089_s25] sm:$0xff] (%p66_p3) }
  0x14   : > { %v680_v1 = vld [vmem:[%s7089_s25 + $0x20] sm:$0xff] (%p66_p3)  ;;  %679 = vst [vmem:[%s7094_s26] sm:$0xff] (%p66_p3), %v678_v0 }
  0x15   : > { %v682_v2 = vld [vmem:[%s7089_s25 + $0x40] sm:$0xff]  ;;  %681 = vst [vmem:[%s7094_s26 + $0x8] sm:$0xff] %v680_v1 }
  0x16   : > { %v684_v3 = vld [vmem:[%s7089_s25 + $0x60] sm:$0xff]  ;;  %683 = vst [vmem:[%s7094_s26 + $0x10] sm:$0xff] %v682_v2 }
  0x17   : > { %v686_v4 = vld [vmem:[%s7089_s25 + $0x80] sm:$0xff]  ;;  %685 = vst [vmem:[%s7094_s26 + $0x18] sm:$0xff] %v684_v3 }
  0x18   : > { %v688_v5 = vld [vmem:[%s7089_s25 + $0xa0] sm:$0xff]  ;;  %687 = vst [vmem:[%s7094_s26 + $0x20] sm:$0xff] %v686_v4 }
  0x19   : > { %v690_v6 = vld [vmem:[%s7089_s25 + $0xc0] sm:$0xff]  ;;  %689 = vst [vmem:[%s7094_s26 + $0x28] sm:$0xff] %v688_v5 }
  0x1a   : > { %v692_v7 = vld [vmem:[%s7089_s25 + $0xe0] sm:$0xff]  ;;  %691 = vst [vmem:[%s7094_s26 + $0x30] sm:$0xff] %v690_v6 }
  0x1b   : > { %v694_v8 = vld [vmem:[%s7089_s25 + $0x100] sm:$0xff]  ;;  %693 = vst [vmem:[%s7094_s26 + $0x38] sm:$0xff] %v692_v7 }
  0x1c   : > { %v696_v9 = vld [vmem:[%s7089_s25 + $0x120] sm:$0xff]  ;;  %695 = vst [vmem:[%s7094_s26 + $0x40] sm:$0xff] %v694_v8 }
  0x1d   : > { %v698_v10 = vld [vmem:[%s7089_s25 + $0x140] sm:$0xff]  ;;  %697 = vst [vmem:[%s7094_s26 + $0x48] sm:$0xff] %v696_v9 }
  0x1e   : > { %v700_v11 = vld [vmem:[%s7089_s25 + $0x160] sm:$0xff]  ;;  %699 = vst [vmem:[%s7094_s26 + $0x50] sm:$0xff] %v698_v10 }
  0x1f   : > { %v702_v12 = vld [vmem:[%s7089_s25 + $0x180] sm:$0xff]  ;;  %701 = vst [vmem:[%s7094_s26 + $0x58] sm:$0xff] %v700_v11 }
  0x20   : > { %v704_v13 = vld [vmem:[%s7089_s25 + $0x1a0] sm:$0xff]  ;;  %703 = vst [vmem:[%s7094_s26 + $0x60] sm:$0xff] %v702_v12 }
  0x21   : > { %v706_v14 = vld [vmem:[%s7089_s25 + $0x1c0] sm:$0xff]  ;;  %705 = vst [vmem:[%s7094_s26 + $0x68] sm:$0xff] %v704_v13 }
  0x22   : > { %v708_v15 = vld [vmem:[%s7089_s25 + $0x1e0] sm:$0xff]  ;;  %707 = vst [vmem:[%s7094_s26 + $0x70] sm:$0xff] %v706_v14 }
  0x23   : > { %v710_v16 = vld [vmem:[%s7089_s25 + $0x200] sm:$0xff]  ;;  %709 = vst [vmem:[%s7094_s26 + $0x78] sm:$0xff] %v708_v15 }
  0x24   : > { %v712_v17 = vld [vmem:[%s7089_s25 + $0x220] sm:$0xff]  ;;  %711 = vst [vmem:[%s7094_s26 + $0x80] sm:$0xff] %v710_v16 }
  0x25   : > { %v714_v18 = vld [vmem:[%s7089_s25 + $0x240] sm:$0xff]  ;;  %713 = vst [vmem:[%s7094_s26 + $0x88] sm:$0xff] %v712_v17 }
  0x26   : > { %v716_v19 = vld [vmem:[%s7089_s25 + $0x260] sm:$0xff]  ;;  %715 = vst [vmem:[%s7094_s26 + $0x90] sm:$0xff] %v714_v18 }
  0x27   : > { %v718_v20 = vld [vmem:[%s7089_s25 + $0x280] sm:$0xff]  ;;  %717 = vst [vmem:[%s7094_s26 + $0x98] sm:$0xff] %v716_v19 }
  0x28   : > { %v720_v21 = vld [vmem:[%s7089_s25 + $0x2a0] sm:$0xff]  ;;  %719 = vst [vmem:[%s7094_s26 + $0xa0] sm:$0xff] %v718_v20 }
  0x29   : > { %v722_v22 = vld [vmem:[%s7089_s25 + $0x2c0] sm:$0xff]  ;;  %721 = vst [vmem:[%s7094_s26 + $0xa8] sm:$0xff] %v720_v21 }
  0x2a   : > { %v724_v23 = vld [vmem:[%s7089_s25 + $0x2e0] sm:$0xff]  ;;  %723 = vst [vmem:[%s7094_s26 + $0xb0] sm:$0xff] %v722_v22 }
  0x2b   : > { %v726_v24 = vld [vmem:[%s7089_s25 + $0x300] sm:$0xff]  ;;  %725 = vst [vmem:[%s7094_s26 + $0xb8] sm:$0xff] %v724_v23 }
  0x2c   : > { %v728_v25 = vld [vmem:[%s7089_s25 + $0x320] sm:$0xff]  ;;  %727 = vst [vmem:[%s7094_s26 + $0xc0] sm:$0xff] %v726_v24 }
  0x2d   : > { %v730_v26 = vld [vmem:[%s7089_s25 + $0x340] sm:$0xff]  ;;  %729 = vst [vmem:[%s7094_s26 + $0xc8] sm:$0xff] %v728_v25 }
  0x2e   : > { %v732_v27 = vld [vmem:[%s7089_s25 + $0x360] sm:$0xff]  ;;  %731 = vst [vmem:[%s7094_s26 + $0xd0] sm:$0xff] %v730_v26 }
  0x2f   : > { %v734_v28 = vld [vmem:[%s7089_s25 + $0x380] sm:$0xff]  ;;  %733 = vst [vmem:[%s7094_s26 + $0xd8] sm:$0xff] %v732_v27 }
  0x30   : > { %v736_v29 = vld [vmem:[%s7089_s25 + $0x3a0] sm:$0xff]  ;;  %735 = vst [vmem:[%s7094_s26 + $0xe0] sm:$0xff] %v734_v28 }
  0x31   : > { %v738_v30 = vld [vmem:[%s7089_s25 + $0x3c0] sm:$0xff]  ;;  %737 = vst [vmem:[%s7094_s26 + $0xe8] sm:$0xff] %v736_v29 }
  0x32   : > { %v740_v31 = vld [vmem:[%s7089_s25 + $0x3e0] sm:$0xff]  ;;  %739 = vst [vmem:[%s7094_s26 + $0xf0] sm:$0xff] %v738_v30 }
  0x33   : > { %v742_v32 = vld [vmem:[%s7089_s25 + $0x400] sm:$0xff]  ;;  %741 = vst [vmem:[%s7094_s26 + $0xf8] sm:$0xff] %v740_v31 }
  0x34   : > { %v744_v33 = vld [vmem:[%s7089_s25 + $0x420] sm:$0xff]  ;;  %743 = vst [vmem:[%s7094_s26 + $0x100] sm:$0xff] %v742_v32 }
  0x35   : > { %v746_v34 = vld [vmem:[%s7089_s25 + $0x440] sm:$0xff]  ;;  %745 = vst [vmem:[%s7094_s26 + $0x108] sm:$0xff] %v744_v33 }
  0x36   : > { %v748_v35 = vld [vmem:[%s7089_s25 + $0x460] sm:$0xff]  ;;  %747 = vst [vmem:[%s7094_s26 + $0x110] sm:$0xff] %v746_v34 }
  0x37   : > { %v750_v36 = vld [vmem:[%s7089_s25 + $0x480] sm:$0xff]  ;;  %749 = vst [vmem:[%s7094_s26 + $0x118] sm:$0xff] %v748_v35 }
  0x38   : > { %v752_v37 = vld [vmem:[%s7089_s25 + $0x4a0] sm:$0xff]  ;;  %751 = vst [vmem:[%s7094_s26 + $0x120] sm:$0xff] %v750_v36 }
  0x39   : > { %v754_v38 = vld [vmem:[%s7089_s25 + $0x4c0] sm:$0xff]  ;;  %753 = vst [vmem:[%s7094_s26 + $0x128] sm:$0xff] %v752_v37 }
  0x3a   : > { %v756_v39 = vld [vmem:[%s7089_s25 + $0x4e0] sm:$0xff]  ;;  %755 = vst [vmem:[%s7094_s26 + $0x130] sm:$0xff] %v754_v38 }
  0x3b   : > { %v758_v40 = vld [vmem:[%s7089_s25 + $0x500] sm:$0xff]  ;;  %757 = vst [vmem:[%s7094_s26 + $0x138] sm:$0xff] %v756_v39 }
  0x3c   : > { %v760_v41 = vld [vmem:[%s7089_s25 + $0x520] sm:$0xff]  ;;  %759 = vst [vmem:[%s7094_s26 + $0x140] sm:$0xff] %v758_v40 }
  0x3d   : > { %v762_v42 = vld [vmem:[%s7089_s25 + $0x540] sm:$0xff]  ;;  %761 = vst [vmem:[%s7094_s26 + $0x148] sm:$0xff] %v760_v41 }
  0x3e   : > { %v764_v43 = vld [vmem:[%s7089_s25 + $0x560] sm:$0xff]  ;;  %763 = vst [vmem:[%s7094_s26 + $0x150] sm:$0xff] %v762_v42 }
  0x3f   : > { %v766_v44 = vld [vmem:[%s7089_s25 + $0x580] sm:$0xff]  ;;  %765 = vst [vmem:[%s7094_s26 + $0x158] sm:$0xff] %v764_v43 }
  0x40   : > { %v768_v45 = vld [vmem:[%s7089_s25 + $0x5a0] sm:$0xff]  ;;  %767 = vst [vmem:[%s7094_s26 + $0x160] sm:$0xff] %v766_v44 }
  0x41   : > { %v770_v46 = vld [vmem:[%s7089_s25 + $0x5c0] sm:$0xff]  ;;  %769 = vst [vmem:[%s7094_s26 + $0x168] sm:$0xff] %v768_v45 }
  0x42   : > { %v772_v47 = vld [vmem:[%s7089_s25 + $0x5e0] sm:$0xff]  ;;  %771 = vst [vmem:[%s7094_s26 + $0x170] sm:$0xff] %v770_v46 }
  0x43   : > { %v774_v48 = vld [vmem:[%s7089_s25 + $0x600] sm:$0xff]  ;;  %773 = vst [vmem:[%s7094_s26 + $0x178] sm:$0xff] %v772_v47 }
  0x44   : > { %v776_v49 = vld [vmem:[%s7089_s25 + $0x620] sm:$0xff]  ;;  %775 = vst [vmem:[%s7094_s26 + $0x180] sm:$0xff] %v774_v48 }
  0x45   : > { %v778_v50 = vld [vmem:[%s7089_s25 + $0x640] sm:$0xff]  ;;  %777 = vst [vmem:[%s7094_s26 + $0x188] sm:$0xff] %v776_v49 }
  0x46   : > { %v780_v51 = vld [vmem:[%s7089_s25 + $0x660] sm:$0xff]  ;;  %779 = vst [vmem:[%s7094_s26 + $0x190] sm:$0xff] %v778_v50 }
  0x47   : > { %v782_v52 = vld [vmem:[%s7089_s25 + $0x680] sm:$0xff]  ;;  %781 = vst [vmem:[%s7094_s26 + $0x198] sm:$0xff] %v780_v51 }
  0x48   : > { %v784_v53 = vld [vmem:[%s7089_s25 + $0x6a0] sm:$0xff]  ;;  %783 = vst [vmem:[%s7094_s26 + $0x1a0] sm:$0xff] %v782_v52 }
  0x49   : > { %v786_v54 = vld [vmem:[%s7089_s25 + $0x6c0] sm:$0xff]  ;;  %785 = vst [vmem:[%s7094_s26 + $0x1a8] sm:$0xff] %v784_v53 }
  0x4a   : > { %v788_v55 = vld [vmem:[%s7089_s25 + $0x6e0] sm:$0xff]  ;;  %787 = vst [vmem:[%s7094_s26 + $0x1b0] sm:$0xff] %v786_v54 }
  0x4b   : > { %v790_v56 = vld [vmem:[%s7089_s25 + $0x700] sm:$0xff]  ;;  %789 = vst [vmem:[%s7094_s26 + $0x1b8] sm:$0xff] %v788_v55 }
  0x4c   : > { %v792_v57 = vld [vmem:[%s7089_s25 + $0x720] sm:$0xff]  ;;  %791 = vst [vmem:[%s7094_s26 + $0x1c0] sm:$0xff] %v790_v56 }
  0x4d   : > { %v794_v58 = vld [vmem:[%s7089_s25 + $0x740] sm:$0xff]  ;;  %793 = vst [vmem:[%s7094_s26 + $0x1c8] sm:$0xff] %v792_v57 }
  0x4e   : > { %v796_v59 = vld [vmem:[%s7089_s25 + $0x760] sm:$0xff]  ;;  %795 = vst [vmem:[%s7094_s26 + $0x1d0] sm:$0xff] %v794_v58 }
  0x4f   : > { %v798_v60 = vld [vmem:[%s7089_s25 + $0x780] sm:$0xff]  ;;  %797 = vst [vmem:[%s7094_s26 + $0x1d8] sm:$0xff] %v796_v59 }
  0x50   : > { %v800_v61 = vld [vmem:[%s7089_s25 + $0x7a0] sm:$0xff]  ;;  %799 = vst [vmem:[%s7094_s26 + $0x1e0] sm:$0xff] %v798_v60 }
  0x51   : > { %v802_v62 = vld [vmem:[%s7089_s25 + $0x7c0] sm:$0xff]  ;;  %801 = vst [vmem:[%s7094_s26 + $0x1e8] sm:$0xff] %v800_v61 }
  0x52   : > { %v804_v63 = vld [vmem:[%s7089_s25 + $0x7e0] sm:$0xff]  ;;  %803 = vst [vmem:[%s7094_s26 + $0x1f0] sm:$0xff] %v802_v62 }
  0x53   : > { %v806_v0 = vld [vmem:[%s7089_s25 + $0x800] sm:$0xff]  ;;  %805 = vst [vmem:[%s7094_s26 + $0x1f8] sm:$0xff] %v804_v63 }
  0x54   : > { %v808_v1 = vld [vmem:[%s7089_s25 + $0x820] sm:$0xff]  ;;  %807 = vst [vmem:[%s7094_s26 + $0x200] sm:$0xff] %v806_v0 }
  0x55   : > { %v810_v2 = vld [vmem:[%s7089_s25 + $0x840] sm:$0xff]  ;;  %809 = vst [vmem:[%s7094_s26 + $0x208] sm:$0xff] %v808_v1 }
  0x56   : > { %v812_v3 = vld [vmem:[%s7089_s25 + $0x860] sm:$0xff]  ;;  %811 = vst [vmem:[%s7094_s26 + $0x210] sm:$0xff] %v810_v2 }
  0x57   : > { %v814_v4 = vld [vmem:[%s7089_s25 + $0x880] sm:$0xff]  ;;  %813 = vst [vmem:[%s7094_s26 + $0x218] sm:$0xff] %v812_v3 }
  0x58   : > { %v816_v5 = vld [vmem:[%s7089_s25 + $0x8a0] sm:$0xff]  ;;  %815 = vst [vmem:[%s7094_s26 + $0x220] sm:$0xff] %v814_v4 }
  0x59   : > { %v818_v6 = vld [vmem:[%s7089_s25 + $0x8c0] sm:$0xff]  ;;  %817 = vst [vmem:[%s7094_s26 + $0x228] sm:$0xff] %v816_v5 }
  0x5a   : > { %v820_v7 = vld [vmem:[%s7089_s25 + $0x8e0] sm:$0xff]  ;;  %819 = vst [vmem:[%s7094_s26 + $0x230] sm:$0xff] %v818_v6 }
  0x5b   : > { %v822_v8 = vld [vmem:[%s7089_s25 + $0x900] sm:$0xff]  ;;  %821 = vst [vmem:[%s7094_s26 + $0x238] sm:$0xff] %v820_v7 }
  0x5c   : > { %v824_v9 = vld [vmem:[%s7089_s25 + $0x920] sm:$0xff]  ;;  %823 = vst [vmem:[%s7094_s26 + $0x240] sm:$0xff] %v822_v8 }
  0x5d   : > { %v826_v10 = vld [vmem:[%s7089_s25 + $0x940] sm:$0xff]  ;;  %825 = vst [vmem:[%s7094_s26 + $0x248] sm:$0xff] %v824_v9 }
  0x5e   : > { %v828_v11 = vld [vmem:[%s7089_s25 + $0x960] sm:$0xff]  ;;  %827 = vst [vmem:[%s7094_s26 + $0x250] sm:$0xff] %v826_v10 }
  0x5f   : > { %v830_v12 = vld [vmem:[%s7089_s25 + $0x980] sm:$0xff]  ;;  %829 = vst [vmem:[%s7094_s26 + $0x258] sm:$0xff] %v828_v11 }
  0x60   : > { %v832_v13 = vld [vmem:[%s7089_s25 + $0x9a0] sm:$0xff]  ;;  %831 = vst [vmem:[%s7094_s26 + $0x260] sm:$0xff] %v830_v12 }
  0x61   : > { %v834_v14 = vld [vmem:[%s7089_s25 + $0x9c0] sm:$0xff]  ;;  %833 = vst [vmem:[%s7094_s26 + $0x268] sm:$0xff] %v832_v13 }
  0x62   : > { %v836_v15 = vld [vmem:[%s7089_s25 + $0x9e0] sm:$0xff]  ;;  %835 = vst [vmem:[%s7094_s26 + $0x270] sm:$0xff] %v834_v14 }
  0x63   : > { %v838_v16 = vld [vmem:[%s7089_s25 + $0xa00] sm:$0xff]  ;;  %837 = vst [vmem:[%s7094_s26 + $0x278] sm:$0xff] %v836_v15 }
  0x64   : > { %v840_v17 = vld [vmem:[%s7089_s25 + $0xa20] sm:$0xff]  ;;  %839 = vst [vmem:[%s7094_s26 + $0x280] sm:$0xff] %v838_v16 }
  0x65   : > { %v842_v18 = vld [vmem:[%s7089_s25 + $0xa40] sm:$0xff]  ;;  %841 = vst [vmem:[%s7094_s26 + $0x288] sm:$0xff] %v840_v17 }
  0x66   : > { %v844_v19 = vld [vmem:[%s7089_s25 + $0xa60] sm:$0xff]  ;;  %843 = vst [vmem:[%s7094_s26 + $0x290] sm:$0xff] %v842_v18 }
  0x67   : > { %v846_v20 = vld [vmem:[%s7089_s25 + $0xa80] sm:$0xff]  ;;  %845 = vst [vmem:[%s7094_s26 + $0x298] sm:$0xff] %v844_v19 }
  0x68   : > { %v848_v21 = vld [vmem:[%s7089_s25 + $0xaa0] sm:$0xff]  ;;  %847 = vst [vmem:[%s7094_s26 + $0x2a0] sm:$0xff] %v846_v20 }
  0x69   : > { %v850_v22 = vld [vmem:[%s7089_s25 + $0xac0] sm:$0xff]  ;;  %849 = vst [vmem:[%s7094_s26 + $0x2a8] sm:$0xff] %v848_v21 }
  0x6a   : > { %v852_v23 = vld [vmem:[%s7089_s25 + $0xae0] sm:$0xff]  ;;  %851 = vst [vmem:[%s7094_s26 + $0x2b0] sm:$0xff] %v850_v22 }
  0x6b   : > { %v854_v24 = vld [vmem:[%s7089_s25 + $0xb00] sm:$0xff]  ;;  %853 = vst [vmem:[%s7094_s26 + $0x2b8] sm:$0xff] %v852_v23 }
  0x6c   : > { %v856_v25 = vld [vmem:[%s7089_s25 + $0xb20] sm:$0xff]  ;;  %855 = vst [vmem:[%s7094_s26 + $0x2c0] sm:$0xff] %v854_v24 }
  0x6d   : > { %v858_v26 = vld [vmem:[%s7089_s25 + $0xb40] sm:$0xff]  ;;  %857 = vst [vmem:[%s7094_s26 + $0x2c8] sm:$0xff] %v856_v25 }
  0x6e   : > { %v860_v27 = vld [vmem:[%s7089_s25 + $0xb60] sm:$0xff]  ;;  %859 = vst [vmem:[%s7094_s26 + $0x2d0] sm:$0xff] %v858_v26 }
  0x6f   : > { %v862_v28 = vld [vmem:[%s7089_s25 + $0xb80] sm:$0xff]  ;;  %861 = vst [vmem:[%s7094_s26 + $0x2d8] sm:$0xff] %v860_v27 }
  0x70   : > { %v864_v29 = vld [vmem:[%s7089_s25 + $0xba0] sm:$0xff]  ;;  %863 = vst [vmem:[%s7094_s26 + $0x2e0] sm:$0xff] %v862_v28 }
  0x71   : > { %v866_v30 = vld [vmem:[%s7089_s25 + $0xbc0] sm:$0xff]  ;;  %865 = vst [vmem:[%s7094_s26 + $0x2e8] sm:$0xff] %v864_v29 }
  0x72   : > { %v868_v31 = vld [vmem:[%s7089_s25 + $0xbe0] sm:$0xff]  ;;  %867 = vst [vmem:[%s7094_s26 + $0x2f0] sm:$0xff] %v866_v30 }
  0x73   : > { %v870_v32 = vld [vmem:[%s7089_s25 + $0xc00] sm:$0xff]  ;;  %869 = vst [vmem:[%s7094_s26 + $0x2f8] sm:$0xff] %v868_v31 }
  0x74   : > { %v872_v33 = vld [vmem:[%s7089_s25 + $0xc20] sm:$0xff]  ;;  %871 = vst [vmem:[%s7094_s26 + $0x300] sm:$0xff] %v870_v32 }
  0x75   : > { %v874_v34 = vld [vmem:[%s7089_s25 + $0xc40] sm:$0xff]  ;;  %873 = vst [vmem:[%s7094_s26 + $0x308] sm:$0xff] %v872_v33 }
  0x76   : > { %v876_v35 = vld [vmem:[%s7089_s25 + $0xc60] sm:$0xff]  ;;  %875 = vst [vmem:[%s7094_s26 + $0x310] sm:$0xff] %v874_v34 }
  0x77   : > { %v878_v36 = vld [vmem:[%s7089_s25 + $0xc80] sm:$0xff]  ;;  %877 = vst [vmem:[%s7094_s26 + $0x318] sm:$0xff] %v876_v35 }
  0x78   : > { %v880_v37 = vld [vmem:[%s7089_s25 + $0xca0] sm:$0xff]  ;;  %879 = vst [vmem:[%s7094_s26 + $0x320] sm:$0xff] %v878_v36 }
  0x79   : > { %v882_v38 = vld [vmem:[%s7089_s25 + $0xcc0] sm:$0xff]  ;;  %881 = vst [vmem:[%s7094_s26 + $0x328] sm:$0xff] %v880_v37 }
  0x7a   : > { %v884_v39 = vld [vmem:[%s7089_s25 + $0xce0] sm:$0xff]  ;;  %883 = vst [vmem:[%s7094_s26 + $0x330] sm:$0xff] %v882_v38 }
  0x7b   : > { %v886_v40 = vld [vmem:[%s7089_s25 + $0xd00] sm:$0xff]  ;;  %885 = vst [vmem:[%s7094_s26 + $0x338] sm:$0xff] %v884_v39 }
  0x7c   : > { %v888_v41 = vld [vmem:[%s7089_s25 + $0xd20] sm:$0xff]  ;;  %887 = vst [vmem:[%s7094_s26 + $0x340] sm:$0xff] %v886_v40 }
  0x7d   : > { %v890_v42 = vld [vmem:[%s7089_s25 + $0xd40] sm:$0xff]  ;;  %889 = vst [vmem:[%s7094_s26 + $0x348] sm:$0xff] %v888_v41 }
  0x7e   : > { %v892_v43 = vld [vmem:[%s7089_s25 + $0xd60] sm:$0xff]  ;;  %891 = vst [vmem:[%s7094_s26 + $0x350] sm:$0xff] %v890_v42 }
  0x7f   : > { %v894_v44 = vld [vmem:[%s7089_s25 + $0xd80] sm:$0xff]  ;;  %893 = vst [vmem:[%s7094_s26 + $0x358] sm:$0xff] %v892_v43 }
  0x80   : > { %v896_v45 = vld [vmem:[%s7089_s25 + $0xda0] sm:$0xff]  ;;  %895 = vst [vmem:[%s7094_s26 + $0x360] sm:$0xff] %v894_v44 }
  0x81   : > { %v898_v46 = vld [vmem:[%s7089_s25 + $0xdc0] sm:$0xff]  ;;  %897 = vst [vmem:[%s7094_s26 + $0x368] sm:$0xff] %v896_v45 }
  0x82   : > { %v900_v47 = vld [vmem:[%s7089_s25 + $0xde0] sm:$0xff]  ;;  %899 = vst [vmem:[%s7094_s26 + $0x370] sm:$0xff] %v898_v46 }
  0x83   : > { %v902_v48 = vld [vmem:[%s7089_s25 + $0xe00] sm:$0xff]  ;;  %901 = vst [vmem:[%s7094_s26 + $0x378] sm:$0xff] %v900_v47 }
  0x84   : > { %v904_v49 = vld [vmem:[%s7089_s25 + $0xe20] sm:$0xff]  ;;  %903 = vst [vmem:[%s7094_s26 + $0x380] sm:$0xff] %v902_v48 }
  0x85   : > { %v906_v50 = vld [vmem:[%s7089_s25 + $0xe40] sm:$0xff]  ;;  %905 = vst [vmem:[%s7094_s26 + $0x388] sm:$0xff] %v904_v49 }
  0x86   : > { %v908_v51 = vld [vmem:[%s7089_s25 + $0xe60] sm:$0xff]  ;;  %907 = vst [vmem:[%s7094_s26 + $0x390] sm:$0xff] %v906_v50 }
  0x87   : > { %v910_v52 = vld [vmem:[%s7089_s25 + $0xe80] sm:$0xff]  ;;  %909 = vst [vmem:[%s7094_s26 + $0x398] sm:$0xff] %v908_v51 }
  0x88   : > { %v912_v53 = vld [vmem:[%s7089_s25 + $0xea0] sm:$0xff]  ;;  %911 = vst [vmem:[%s7094_s26 + $0x3a0] sm:$0xff] %v910_v52 }
  0x89   : > { %v914_v54 = vld [vmem:[%s7089_s25 + $0xec0] sm:$0xff]  ;;  %913 = vst [vmem:[%s7094_s26 + $0x3a8] sm:$0xff] %v912_v53 }
  0x8a   : > { %v916_v55 = vld [vmem:[%s7089_s25 + $0xee0] sm:$0xff]  ;;  %915 = vst [vmem:[%s7094_s26 + $0x3b0] sm:$0xff] %v914_v54 }
  0x8b   : > { %v918_v56 = vld [vmem:[%s7089_s25 + $0xf00] sm:$0xff]  ;;  %917 = vst [vmem:[%s7094_s26 + $0x3b8] sm:$0xff] %v916_v55 }
  0x8c   : > { %v920_v57 = vld [vmem:[%s7089_s25 + $0xf20] sm:$0xff]  ;;  %919 = vst [vmem:[%s7094_s26 + $0x3c0] sm:$0xff] %v918_v56 }
  0x8d   : > { %v922_v58 = vld [vmem:[%s7089_s25 + $0xf40] sm:$0xff]  ;;  %921 = vst [vmem:[%s7094_s26 + $0x3c8] sm:$0xff] %v920_v57 }
  0x8e   : > { %v924_v59 = vld [vmem:[%s7089_s25 + $0xf60] sm:$0xff]  ;;  %923 = vst [vmem:[%s7094_s26 + $0x3d0] sm:$0xff] %v922_v58 }
  0x8f   : > { %v926_v60 = vld [vmem:[%s7089_s25 + $0xf80] sm:$0xff]  ;;  %925 = vst [vmem:[%s7094_s26 + $0x3d8] sm:$0xff] %v924_v59 }
  0x90   : > { %v928_v61 = vld [vmem:[%s7089_s25 + $0xfa0] sm:$0xff]  ;;  %927 = vst [vmem:[%s7094_s26 + $0x3e0] sm:$0xff] %v926_v60 }
  0x91   : > { %v930_v62 = vld [vmem:[%s7089_s25 + $0xfc0] sm:$0xff]  ;;  %929 = vst [vmem:[%s7094_s26 + $0x3e8] sm:$0xff] %v928_v61 }
  0x92   : > { %v932_v63 = vld [vmem:[%s7089_s25 + $0xfe0] sm:$0xff]  ;;  %931 = vst [vmem:[%s7094_s26 + $0x3f0] sm:$0xff] %v930_v62 }
  0x93   : > { %v934_v0 = vld [vmem:[%s7089_s25 + $0x1000] sm:$0xff]  ;;  %933 = vst [vmem:[%s7094_s26 + $0x3f8] sm:$0xff] %v932_v63 }
  0x94   : > { %v936_v1 = vld [vmem:[%s7089_s25 + $0x1020] sm:$0xff]  ;;  %935 = vst [vmem:[%s7094_s26 + $0x400] sm:$0xff] %v934_v0 }
  0x95   : > { %v938_v2 = vld [vmem:[%s7089_s25 + $0x1040] sm:$0xff]  ;;  %937 = vst [vmem:[%s7094_s26 + $0x408] sm:$0xff] %v936_v1 }
  0x96   : > { %v940_v3 = vld [vmem:[%s7089_s25 + $0x1060] sm:$0xff]  ;;  %939 = vst [vmem:[%s7094_s26 + $0x410] sm:$0xff] %v938_v2 }
  0x97   : > { %v942_v4 = vld [vmem:[%s7089_s25 + $0x1080] sm:$0xff]  ;;  %941 = vst [vmem:[%s7094_s26 + $0x418] sm:$0xff] %v940_v3 }
  0x98   : > { %v944_v5 = vld [vmem:[%s7089_s25 + $0x10a0] sm:$0xff]  ;;  %943 = vst [vmem:[%s7094_s26 + $0x420] sm:$0xff] %v942_v4 }
  0x99   : > { %v946_v6 = vld [vmem:[%s7089_s25 + $0x10c0] sm:$0xff]  ;;  %945 = vst [vmem:[%s7094_s26 + $0x428] sm:$0xff] %v944_v5 }
  0x9a   : > { %v948_v7 = vld [vmem:[%s7089_s25 + $0x10e0] sm:$0xff]  ;;  %947 = vst [vmem:[%s7094_s26 + $0x430] sm:$0xff] %v946_v6 }
  0x9b   : > { %v950_v8 = vld [vmem:[%s7089_s25 + $0x1100] sm:$0xff]  ;;  %949 = vst [vmem:[%s7094_s26 + $0x438] sm:$0xff] %v948_v7 }
  0x9c   : > { %v952_v9 = vld [vmem:[%s7089_s25 + $0x1120] sm:$0xff]  ;;  %951 = vst [vmem:[%s7094_s26 + $0x440] sm:$0xff] %v950_v8 }
  0x9d   : > { %v954_v10 = vld [vmem:[%s7089_s25 + $0x1140] sm:$0xff]  ;;  %953 = vst [vmem:[%s7094_s26 + $0x448] sm:$0xff] %v952_v9 }
  0x9e   : > { %v956_v11 = vld [vmem:[%s7089_s25 + $0x1160] sm:$0xff]  ;;  %955 = vst [vmem:[%s7094_s26 + $0x450] sm:$0xff] %v954_v10 }
  0x9f   : > { %v958_v12 = vld [vmem:[%s7089_s25 + $0x1180] sm:$0xff]  ;;  %957 = vst [vmem:[%s7094_s26 + $0x458] sm:$0xff] %v956_v11 }
  0xa0   : > { %v960_v13 = vld [vmem:[%s7089_s25 + $0x11a0] sm:$0xff]  ;;  %959 = vst [vmem:[%s7094_s26 + $0x460] sm:$0xff] %v958_v12 }
  0xa1   : > { %v962_v14 = vld [vmem:[%s7089_s25 + $0x11c0] sm:$0xff]  ;;  %961 = vst [vmem:[%s7094_s26 + $0x468] sm:$0xff] %v960_v13 }
  0xa2   : > { %v964_v15 = vld [vmem:[%s7089_s25 + $0x11e0] sm:$0xff]  ;;  %963 = vst [vmem:[%s7094_s26 + $0x470] sm:$0xff] %v962_v14 }
  0xa3   : > { %v966_v16 = vld [vmem:[%s7089_s25 + $0x1200] sm:$0xff]  ;;  %965 = vst [vmem:[%s7094_s26 + $0x478] sm:$0xff] %v964_v15 }
  0xa4   : > { %v968_v17 = vld [vmem:[%s7089_s25 + $0x1220] sm:$0xff]  ;;  %967 = vst [vmem:[%s7094_s26 + $0x480] sm:$0xff] %v966_v16 }
  0xa5   : > { %v970_v18 = vld [vmem:[%s7089_s25 + $0x1240] sm:$0xff]  ;;  %969 = vst [vmem:[%s7094_s26 + $0x488] sm:$0xff] %v968_v17 }
  0xa6   : > { %v972_v19 = vld [vmem:[%s7089_s25 + $0x1260] sm:$0xff]  ;;  %971 = vst [vmem:[%s7094_s26 + $0x490] sm:$0xff] %v970_v18 }
  0xa7   : > { %v974_v20 = vld [vmem:[%s7089_s25 + $0x1280] sm:$0xff]  ;;  %973 = vst [vmem:[%s7094_s26 + $0x498] sm:$0xff] %v972_v19 }
  0xa8   : > { %v976_v21 = vld [vmem:[%s7089_s25 + $0x12a0] sm:$0xff]  ;;  %975 = vst [vmem:[%s7094_s26 + $0x4a0] sm:$0xff] %v974_v20 }
  0xa9   : > { %v978_v22 = vld [vmem:[%s7089_s25 + $0x12c0] sm:$0xff]  ;;  %977 = vst [vmem:[%s7094_s26 + $0x4a8] sm:$0xff] %v976_v21 }
  0xaa   : > { %v980_v23 = vld [vmem:[%s7089_s25 + $0x12e0] sm:$0xff]  ;;  %979 = vst [vmem:[%s7094_s26 + $0x4b0] sm:$0xff] %v978_v22 }
  0xab   : > { %v982_v24 = vld [vmem:[%s7089_s25 + $0x1300] sm:$0xff]  ;;  %981 = vst [vmem:[%s7094_s26 + $0x4b8] sm:$0xff] %v980_v23 }
  0xac   : > { %v984_v25 = vld [vmem:[%s7089_s25 + $0x1320] sm:$0xff]  ;;  %983 = vst [vmem:[%s7094_s26 + $0x4c0] sm:$0xff] %v982_v24 }
  0xad   : > { %v986_v26 = vld [vmem:[%s7089_s25 + $0x1340] sm:$0xff]  ;;  %985 = vst [vmem:[%s7094_s26 + $0x4c8] sm:$0xff] %v984_v25 }
  0xae   : > { %v988_v27 = vld [vmem:[%s7089_s25 + $0x1360] sm:$0xff]  ;;  %987 = vst [vmem:[%s7094_s26 + $0x4d0] sm:$0xff] %v986_v26 }
  0xaf   : > { %v990_v28 = vld [vmem:[%s7089_s25 + $0x1380] sm:$0xff]  ;;  %989 = vst [vmem:[%s7094_s26 + $0x4d8] sm:$0xff] %v988_v27 }
  0xb0   : > { %v992_v29 = vld [vmem:[%s7089_s25 + $0x13a0] sm:$0xff]  ;;  %991 = vst [vmem:[%s7094_s26 + $0x4e0] sm:$0xff] %v990_v28 }
  0xb1   : > { %v994_v30 = vld [vmem:[%s7089_s25 + $0x13c0] sm:$0xff]  ;;  %993 = vst [vmem:[%s7094_s26 + $0x4e8] sm:$0xff] %v992_v29 }
  0xb2   : > { %v996_v31 = vld [vmem:[%s7089_s25 + $0x13e0] sm:$0xff]  ;;  %995 = vst [vmem:[%s7094_s26 + $0x4f0] sm:$0xff] %v994_v30 }
  0xb3   : > { %v998_v32 = vld [vmem:[%s7089_s25 + $0x1400] sm:$0xff]  ;;  %997 = vst [vmem:[%s7094_s26 + $0x4f8] sm:$0xff] %v996_v31 }
  0xb4   : > { %v1000_v33 = vld [vmem:[%s7089_s25 + $0x1420] sm:$0xff]  ;;  %999 = vst [vmem:[%s7094_s26 + $0x500] sm:$0xff] %v998_v32 }
  0xb5   : > { %v1002_v34 = vld [vmem:[%s7089_s25 + $0x1440] sm:$0xff]  ;;  %1001 = vst [vmem:[%s7094_s26 + $0x508] sm:$0xff] %v1000_v33 }
  0xb6   : > { %v1004_v35 = vld [vmem:[%s7089_s25 + $0x1460] sm:$0xff]  ;;  %1003 = vst [vmem:[%s7094_s26 + $0x510] sm:$0xff] %v1002_v34 }
  0xb7   : > { %v1006_v36 = vld [vmem:[%s7089_s25 + $0x1480] sm:$0xff]  ;;  %1005 = vst [vmem:[%s7094_s26 + $0x518] sm:$0xff] %v1004_v35 }
  0xb8   : > { %v1008_v37 = vld [vmem:[%s7089_s25 + $0x14a0] sm:$0xff]  ;;  %1007 = vst [vmem:[%s7094_s26 + $0x520] sm:$0xff] %v1006_v36 }
  0xb9   : > { %v1010_v38 = vld [vmem:[%s7089_s25 + $0x14c0] sm:$0xff]  ;;  %1009 = vst [vmem:[%s7094_s26 + $0x528] sm:$0xff] %v1008_v37 }
  0xba   : > { %v1012_v39 = vld [vmem:[%s7089_s25 + $0x14e0] sm:$0xff]  ;;  %1011 = vst [vmem:[%s7094_s26 + $0x530] sm:$0xff] %v1010_v38 }
  0xbb   : > { %v1014_v40 = vld [vmem:[%s7089_s25 + $0x1500] sm:$0xff]  ;;  %1013 = vst [vmem:[%s7094_s26 + $0x538] sm:$0xff] %v1012_v39 }
  0xbc   : > { %v1016_v41 = vld [vmem:[%s7089_s25 + $0x1520] sm:$0xff]  ;;  %1015 = vst [vmem:[%s7094_s26 + $0x540] sm:$0xff] %v1014_v40 }
  0xbd   : > { %v1018_v42 = vld [vmem:[%s7089_s25 + $0x1540] sm:$0xff]  ;;  %1017 = vst [vmem:[%s7094_s26 + $0x548] sm:$0xff] %v1016_v41 }
  0xbe   : > { %v1020_v43 = vld [vmem:[%s7089_s25 + $0x1560] sm:$0xff]  ;;  %1019 = vst [vmem:[%s7094_s26 + $0x550] sm:$0xff] %v1018_v42 }
  0xbf   : > { %v1022_v44 = vld [vmem:[%s7089_s25 + $0x1580] sm:$0xff]  ;;  %1021 = vst [vmem:[%s7094_s26 + $0x558] sm:$0xff] %v1020_v43 }
  0xc0   : > { %v1024_v45 = vld [vmem:[%s7089_s25 + $0x15a0] sm:$0xff]  ;;  %1023 = vst [vmem:[%s7094_s26 + $0x560] sm:$0xff] %v1022_v44 }
  0xc1   : > { %v1026_v46 = vld [vmem:[%s7089_s25 + $0x15c0] sm:$0xff]  ;;  %1025 = vst [vmem:[%s7094_s26 + $0x568] sm:$0xff] %v1024_v45 }
  0xc2   : > { %v1028_v47 = vld [vmem:[%s7089_s25 + $0x15e0] sm:$0xff]  ;;  %1027 = vst [vmem:[%s7094_s26 + $0x570] sm:$0xff] %v1026_v46 }
  0xc3   : > { %v1030_v48 = vld [vmem:[%s7089_s25 + $0x1600] sm:$0xff]  ;;  %1029 = vst [vmem:[%s7094_s26 + $0x578] sm:$0xff] %v1028_v47 }
  0xc4   : > { %v1032_v49 = vld [vmem:[%s7089_s25 + $0x1620] sm:$0xff]  ;;  %1031 = vst [vmem:[%s7094_s26 + $0x580] sm:$0xff] %v1030_v48 }
  0xc5   : > { %v1034_v50 = vld [vmem:[%s7089_s25 + $0x1640] sm:$0xff]  ;;  %1033 = vst [vmem:[%s7094_s26 + $0x588] sm:$0xff] %v1032_v49 }
  0xc6   : > { %v1036_v51 = vld [vmem:[%s7089_s25 + $0x1660] sm:$0xff]  ;;  %1035 = vst [vmem:[%s7094_s26 + $0x590] sm:$0xff] %v1034_v50 }
  0xc7   : > { %v1038_v52 = vld [vmem:[%s7089_s25 + $0x1680] sm:$0xff]  ;;  %1037 = vst [vmem:[%s7094_s26 + $0x598] sm:$0xff] %v1036_v51 }
  0xc8   : > { %v1040_v53 = vld [vmem:[%s7089_s25 + $0x16a0] sm:$0xff]  ;;  %1039 = vst [vmem:[%s7094_s26 + $0x5a0] sm:$0xff] %v1038_v52 }
  0xc9   : > { %v1042_v54 = vld [vmem:[%s7089_s25 + $0x16c0] sm:$0xff]  ;;  %1041 = vst [vmem:[%s7094_s26 + $0x5a8] sm:$0xff] %v1040_v53 }
  0xca   : > { %v1044_v55 = vld [vmem:[%s7089_s25 + $0x16e0] sm:$0xff]  ;;  %1043 = vst [vmem:[%s7094_s26 + $0x5b0] sm:$0xff] %v1042_v54 }
  0xcb   : > { %v1046_v56 = vld [vmem:[%s7089_s25 + $0x1700] sm:$0xff]  ;;  %1045 = vst [vmem:[%s7094_s26 + $0x5b8] sm:$0xff] %v1044_v55 }
  0xcc   : > { %v1048_v57 = vld [vmem:[%s7089_s25 + $0x1720] sm:$0xff]  ;;  %1047 = vst [vmem:[%s7094_s26 + $0x5c0] sm:$0xff] %v1046_v56 }
  0xcd   : > { %v1050_v58 = vld [vmem:[%s7089_s25 + $0x1740] sm:$0xff]  ;;  %1049 = vst [vmem:[%s7094_s26 + $0x5c8] sm:$0xff] %v1048_v57 }
  0xce   : > { %v1052_v59 = vld [vmem:[%s7089_s25 + $0x1760] sm:$0xff]  ;;  %1051 = vst [vmem:[%s7094_s26 + $0x5d0] sm:$0xff] %v1050_v58 }
  0xcf   : > { %v1054_v60 = vld [vmem:[%s7089_s25 + $0x1780] sm:$0xff]  ;;  %1053 = vst [vmem:[%s7094_s26 + $0x5d8] sm:$0xff] %v1052_v59 }
  0xd0   : > { %v1056_v61 = vld [vmem:[%s7089_s25 + $0x17a0] sm:$0xff]  ;;  %1055 = vst [vmem:[%s7094_s26 + $0x5e0] sm:$0xff] %v1054_v60 }
  0xd1   : > { %v1058_v62 = vld [vmem:[%s7089_s25 + $0x17c0] sm:$0xff]  ;;  %1057 = vst [vmem:[%s7094_s26 + $0x5e8] sm:$0xff] %v1056_v61 }
  0xd2   : > { %v1060_v63 = vld [vmem:[%s7089_s25 + $0x17e0] sm:$0xff]  ;;  %1059 = vst [vmem:[%s7094_s26 + $0x5f0] sm:$0xff] %v1058_v62 }
  0xd3   : > { %v1062_v0 = vld [vmem:[%s7089_s25 + $0x1800] sm:$0xff]  ;;  %1061 = vst [vmem:[%s7094_s26 + $0x5f8] sm:$0xff] %v1060_v63 }
  0xd4   : > { %v1064_v1 = vld [vmem:[%s7089_s25 + $0x1820] sm:$0xff]  ;;  %1063 = vst [vmem:[%s7094_s26 + $0x600] sm:$0xff] %v1062_v0 }
  0xd5   : > { %v1066_v2 = vld [vmem:[%s7089_s25 + $0x1840] sm:$0xff]  ;;  %1065 = vst [vmem:[%s7094_s26 + $0x608] sm:$0xff] %v1064_v1 }
  0xd6   : > { %v1068_v3 = vld [vmem:[%s7089_s25 + $0x1860] sm:$0xff]  ;;  %1067 = vst [vmem:[%s7094_s26 + $0x610] sm:$0xff] %v1066_v2 }
  0xd7   : > { %v1070_v4 = vld [vmem:[%s7089_s25 + $0x1880] sm:$0xff]  ;;  %1069 = vst [vmem:[%s7094_s26 + $0x618] sm:$0xff] %v1068_v3 }
  0xd8   : > { %v1072_v5 = vld [vmem:[%s7089_s25 + $0x18a0] sm:$0xff]  ;;  %1071 = vst [vmem:[%s7094_s26 + $0x620] sm:$0xff] %v1070_v4 }
  0xd9   : > { %v1074_v6 = vld [vmem:[%s7089_s25 + $0x18c0] sm:$0xff]  ;;  %1073 = vst [vmem:[%s7094_s26 + $0x628] sm:$0xff] %v1072_v5 }
  0xda   : > { %v1076_v7 = vld [vmem:[%s7089_s25 + $0x18e0] sm:$0xff]  ;;  %1075 = vst [vmem:[%s7094_s26 + $0x630] sm:$0xff] %v1074_v6 }
  0xdb   : > { %v1078_v8 = vld [vmem:[%s7089_s25 + $0x1900] sm:$0xff]  ;;  %1077 = vst [vmem:[%s7094_s26 + $0x638] sm:$0xff] %v1076_v7 }
  0xdc   : > { %v1080_v9 = vld [vmem:[%s7089_s25 + $0x1920] sm:$0xff]  ;;  %1079 = vst [vmem:[%s7094_s26 + $0x640] sm:$0xff] %v1078_v8 }
  0xdd   : > { %v1082_v10 = vld [vmem:[%s7089_s25 + $0x1940] sm:$0xff]  ;;  %1081 = vst [vmem:[%s7094_s26 + $0x648] sm:$0xff] %v1080_v9 }
  0xde   : > { %v1084_v11 = vld [vmem:[%s7089_s25 + $0x1960] sm:$0xff]  ;;  %1083 = vst [vmem:[%s7094_s26 + $0x650] sm:$0xff] %v1082_v10 }
  0xdf   : > { %v1086_v12 = vld [vmem:[%s7089_s25 + $0x1980] sm:$0xff]  ;;  %1085 = vst [vmem:[%s7094_s26 + $0x658] sm:$0xff] %v1084_v11 }
  0xe0   : > { %v1088_v13 = vld [vmem:[%s7089_s25 + $0x19a0] sm:$0xff]  ;;  %1087 = vst [vmem:[%s7094_s26 + $0x660] sm:$0xff] %v1086_v12 }
  0xe1   : > { %v1090_v14 = vld [vmem:[%s7089_s25 + $0x19c0] sm:$0xff]  ;;  %1089 = vst [vmem:[%s7094_s26 + $0x668] sm:$0xff] %v1088_v13 }
  0xe2   : > { %v1092_v15 = vld [vmem:[%s7089_s25 + $0x19e0] sm:$0xff]  ;;  %1091 = vst [vmem:[%s7094_s26 + $0x670] sm:$0xff] %v1090_v14 }
  0xe3   : > { %v1094_v16 = vld [vmem:[%s7089_s25 + $0x1a00] sm:$0xff]  ;;  %1093 = vst [vmem:[%s7094_s26 + $0x678] sm:$0xff] %v1092_v15 }
  0xe4   : > { %v1096_v17 = vld [vmem:[%s7089_s25 + $0x1a20] sm:$0xff]  ;;  %1095 = vst [vmem:[%s7094_s26 + $0x680] sm:$0xff] %v1094_v16 }
  0xe5   : > { %v1098_v18 = vld [vmem:[%s7089_s25 + $0x1a40] sm:$0xff]  ;;  %1097 = vst [vmem:[%s7094_s26 + $0x688] sm:$0xff] %v1096_v17 }
  0xe6   : > { %v1100_v19 = vld [vmem:[%s7089_s25 + $0x1a60] sm:$0xff]  ;;  %1099 = vst [vmem:[%s7094_s26 + $0x690] sm:$0xff] %v1098_v18 }
  0xe7   : > { %v1102_v20 = vld [vmem:[%s7089_s25 + $0x1a80] sm:$0xff]  ;;  %1101 = vst [vmem:[%s7094_s26 + $0x698] sm:$0xff] %v1100_v19 }
  0xe8   : > { %v1104_v21 = vld [vmem:[%s7089_s25 + $0x1aa0] sm:$0xff]  ;;  %1103 = vst [vmem:[%s7094_s26 + $0x6a0] sm:$0xff] %v1102_v20 }
  0xe9   : > { %v1106_v22 = vld [vmem:[%s7089_s25 + $0x1ac0] sm:$0xff]  ;;  %1105 = vst [vmem:[%s7094_s26 + $0x6a8] sm:$0xff] %v1104_v21 }
  0xea   : > { %v1108_v23 = vld [vmem:[%s7089_s25 + $0x1ae0] sm:$0xff]  ;;  %1107 = vst [vmem:[%s7094_s26 + $0x6b0] sm:$0xff] %v1106_v22 }
  0xeb   : > { %v1110_v24 = vld [vmem:[%s7089_s25 + $0x1b00] sm:$0xff]  ;;  %1109 = vst [vmem:[%s7094_s26 + $0x6b8] sm:$0xff] %v1108_v23 }
  0xec   : > { %v1112_v25 = vld [vmem:[%s7089_s25 + $0x1b20] sm:$0xff]  ;;  %1111 = vst [vmem:[%s7094_s26 + $0x6c0] sm:$0xff] %v1110_v24 }
  0xed   : > { %v1114_v26 = vld [vmem:[%s7089_s25 + $0x1b40] sm:$0xff]  ;;  %1113 = vst [vmem:[%s7094_s26 + $0x6c8] sm:$0xff] %v1112_v25 }
  0xee   : > { %v1116_v27 = vld [vmem:[%s7089_s25 + $0x1b60] sm:$0xff]  ;;  %1115 = vst [vmem:[%s7094_s26 + $0x6d0] sm:$0xff] %v1114_v26 }
  0xef   : > { %v1118_v28 = vld [vmem:[%s7089_s25 + $0x1b80] sm:$0xff]  ;;  %1117 = vst [vmem:[%s7094_s26 + $0x6d8] sm:$0xff] %v1116_v27 }
  0xf0   : > { %v1120_v29 = vld [vmem:[%s7089_s25 + $0x1ba0] sm:$0xff]  ;;  %1119 = vst [vmem:[%s7094_s26 + $0x6e0] sm:$0xff] %v1118_v28 }
  0xf1   : > { %v1122_v30 = vld [vmem:[%s7089_s25 + $0x1bc0] sm:$0xff]  ;;  %1121 = vst [vmem:[%s7094_s26 + $0x6e8] sm:$0xff] %v1120_v29 }
  0xf2   : > { %v1124_v31 = vld [vmem:[%s7089_s25 + $0x1be0] sm:$0xff]  ;;  %1123 = vst [vmem:[%s7094_s26 + $0x6f0] sm:$0xff] %v1122_v30 }
  0xf3   : > { %v1126_v32 = vld [vmem:[%s7089_s25 + $0x1c00] sm:$0xff]  ;;  %1125 = vst [vmem:[%s7094_s26 + $0x6f8] sm:$0xff] %v1124_v31 }
  0xf4   : > { %v1128_v33 = vld [vmem:[%s7089_s25 + $0x1c20] sm:$0xff]  ;;  %1127 = vst [vmem:[%s7094_s26 + $0x700] sm:$0xff] %v1126_v32 }
  0xf5   : > { %v1130_v34 = vld [vmem:[%s7089_s25 + $0x1c40] sm:$0xff]  ;;  %1129 = vst [vmem:[%s7094_s26 + $0x708] sm:$0xff] %v1128_v33 }
  0xf6   : > { %v1132_v35 = vld [vmem:[%s7089_s25 + $0x1c60] sm:$0xff]  ;;  %1131 = vst [vmem:[%s7094_s26 + $0x710] sm:$0xff] %v1130_v34 }
  0xf7   : > { %v1134_v36 = vld [vmem:[%s7089_s25 + $0x1c80] sm:$0xff]  ;;  %1133 = vst [vmem:[%s7094_s26 + $0x718] sm:$0xff] %v1132_v35 }
  0xf8   : > { %v1136_v37 = vld [vmem:[%s7089_s25 + $0x1ca0] sm:$0xff]  ;;  %1135 = vst [vmem:[%s7094_s26 + $0x720] sm:$0xff] %v1134_v36 }
  0xf9   : > { %v1138_v38 = vld [vmem:[%s7089_s25 + $0x1cc0] sm:$0xff]  ;;  %1137 = vst [vmem:[%s7094_s26 + $0x728] sm:$0xff] %v1136_v37 }
  0xfa   : > { %v1140_v39 = vld [vmem:[%s7089_s25 + $0x1ce0] sm:$0xff]  ;;  %1139 = vst [vmem:[%s7094_s26 + $0x730] sm:$0xff] %v1138_v38 }
  0xfb   : > { %v1142_v40 = vld [vmem:[%s7089_s25 + $0x1d00] sm:$0xff]  ;;  %1141 = vst [vmem:[%s7094_s26 + $0x738] sm:$0xff] %v1140_v39 }
  0xfc   : > { %v1144_v41 = vld [vmem:[%s7089_s25 + $0x1d20] sm:$0xff]  ;;  %1143 = vst [vmem:[%s7094_s26 + $0x740] sm:$0xff] %v1142_v40 }
  0xfd   : > { %v1146_v42 = vld [vmem:[%s7089_s25 + $0x1d40] sm:$0xff]  ;;  %1145 = vst [vmem:[%s7094_s26 + $0x748] sm:$0xff] %v1144_v41 }
  0xfe   : > { %v1148_v43 = vld [vmem:[%s7089_s25 + $0x1d60] sm:$0xff]  ;;  %1147 = vst [vmem:[%s7094_s26 + $0x750] sm:$0xff] %v1146_v42 }
  0xff   : > { %v1150_v44 = vld [vmem:[%s7089_s25 + $0x1d80] sm:$0xff]  ;;  %1149 = vst [vmem:[%s7094_s26 + $0x758] sm:$0xff] %v1148_v43 }
 0x100   : > { %v1152_v45 = vld [vmem:[%s7089_s25 + $0x1da0] sm:$0xff]  ;;  %1151 = vst [vmem:[%s7094_s26 + $0x760] sm:$0xff] %v1150_v44 }
 0x101   : > { %v1154_v46 = vld [vmem:[%s7089_s25 + $0x1dc0] sm:$0xff]  ;;  %1153 = vst [vmem:[%s7094_s26 + $0x768] sm:$0xff] %v1152_v45 }
 0x102   : > { %v1156_v47 = vld [vmem:[%s7089_s25 + $0x1de0] sm:$0xff]  ;;  %1155 = vst [vmem:[%s7094_s26 + $0x770] sm:$0xff] %v1154_v46 }
 0x103   : > { %v1158_v48 = vld [vmem:[%s7089_s25 + $0x1e00] sm:$0xff]  ;;  %1157 = vst [vmem:[%s7094_s26 + $0x778] sm:$0xff] %v1156_v47 }
 0x104   : > { %v1160_v49 = vld [vmem:[%s7089_s25 + $0x1e20] sm:$0xff]  ;;  %1159 = vst [vmem:[%s7094_s26 + $0x780] sm:$0xff] %v1158_v48 }
 0x105   : > { %v1162_v50 = vld [vmem:[%s7089_s25 + $0x1e40] sm:$0xff]  ;;  %1161 = vst [vmem:[%s7094_s26 + $0x788] sm:$0xff] %v1160_v49 }
 0x106   : > { %v1164_v51 = vld [vmem:[%s7089_s25 + $0x1e60] sm:$0xff]  ;;  %1163 = vst [vmem:[%s7094_s26 + $0x790] sm:$0xff] %v1162_v50 }
 0x107   : > { %v1166_v52 = vld [vmem:[%s7089_s25 + $0x1e80] sm:$0xff]  ;;  %1165 = vst [vmem:[%s7094_s26 + $0x798] sm:$0xff] %v1164_v51 }
 0x108   : > { %v1168_v53 = vld [vmem:[%s7089_s25 + $0x1ea0] sm:$0xff]  ;;  %1167 = vst [vmem:[%s7094_s26 + $0x7a0] sm:$0xff] %v1166_v52 }
 0x109   : > { %v1170_v54 = vld [vmem:[%s7089_s25 + $0x1ec0] sm:$0xff]  ;;  %1169 = vst [vmem:[%s7094_s26 + $0x7a8] sm:$0xff] %v1168_v53 }
 0x10a   : > { %v1172_v55 = vld [vmem:[%s7089_s25 + $0x1ee0] sm:$0xff]  ;;  %1171 = vst [vmem:[%s7094_s26 + $0x7b0] sm:$0xff] %v1170_v54 }
 0x10b   : > { %v1174_v56 = vld [vmem:[%s7089_s25 + $0x1f00] sm:$0xff]  ;;  %1173 = vst [vmem:[%s7094_s26 + $0x7b8] sm:$0xff] %v1172_v55 }
 0x10c   : > { %v1176_v57 = vld [vmem:[%s7089_s25 + $0x1f20] sm:$0xff]  ;;  %1175 = vst [vmem:[%s7094_s26 + $0x7c0] sm:$0xff] %v1174_v56 }
 0x10d   : > { %v1178_v58 = vld [vmem:[%s7089_s25 + $0x1f40] sm:$0xff]  ;;  %1177 = vst [vmem:[%s7094_s26 + $0x7c8] sm:$0xff] %v1176_v57 }
 0x10e   : > { %v1180_v59 = vld [vmem:[%s7089_s25 + $0x1f60] sm:$0xff]  ;;  %1179 = vst [vmem:[%s7094_s26 + $0x7d0] sm:$0xff] %v1178_v58 }
 0x10f   : > { %v1182_v60 = vld [vmem:[%s7089_s25 + $0x1f80] sm:$0xff]  ;;  %1181 = vst [vmem:[%s7094_s26 + $0x7d8] sm:$0xff] %v1180_v59 }
 0x110   : > { %v1184_v61 = vld [vmem:[%s7089_s25 + $0x1fa0] sm:$0xff]  ;;  %1183 = vst [vmem:[%s7094_s26 + $0x7e0] sm:$0xff] %v1182_v60 }
 0x111   : > { %v1186_v62 = vld [vmem:[%s7089_s25 + $0x1fc0] sm:$0xff]  ;;  %1185 = vst [vmem:[%s7094_s26 + $0x7e8] sm:$0xff] %v1184_v61 }
 0x112   : > { %v1188_v63 = vld [vmem:[%s7089_s25 + $0x1fe0] sm:$0xff]  ;;  %1187 = vst [vmem:[%s7094_s26 + $0x7f0] sm:$0xff] %v1186_v62 }
 0x113   : > { %1189 = vst [vmem:[%s7094_s26 + $0x7f8] sm:$0xff] %v1188_v63 }
 0x114 PF: > { %p5336_p8 = scmp.ge.s32.totalorder %s7024_s13, 1  ;;  %p2253_p9 = scmp.lt.s32.totalorder %s7024_s13, 5 }
 0x116   : > { %p2254_p10 = pnand %p5336_p8, %p2253_p9 }
 0x118   : > { %2257 = sbr.rel (%p2254_p10) target bundleno = 975 (0x3cf), region = 76 }
 0x11d   : > { %s2260_s27 = sand.u32 1, %s7008_s9  }
 0x11e   : > { %s5337_s28 = sshll.u32 %s2260_s27, 11  ;;  %s5338_s6 = sshll.u32 %s2260_s27, 7 }
 0x11f   : > { %s7610_s29 = scalar_lea.vmem [#allocation2], %s5337_s28  ;;  %s8752_s9 = scalar_lea.vmem [#allocation3], %s5338_s6 }
 0x120   : > { %v5653_v0 = vld [vmem:[%s7610_s29 + $0x70] sm:$0xf]  ;;  %v6704_v1 = vld [vmem:[%s7610_s29 + $0x74] sm:$0xf0]  ;;  %v5645_v11 = vld [vmem:[%s7610_s29 + $0x60] sm:$0xf] }
 0x121   : > { %v5717_v2 = vld [vmem:[%s7610_s29 + $0xf0] sm:$0xf]  ;;  %v5654_v3 = vor.u32 %v6704_v1, %v5653_v0  ;;  %v6720_v4 = vld [vmem:[%s7610_s29 + $0xf4] sm:$0xf0]  ;;  %v6702_v13 = vld [vmem:[%s7610_s29 + $0x64] sm:$0xf0] }
 0x122   : > { %v5781_v5 = vld [vmem:[%s7610_s29 + $0x170] sm:$0xf]  ;;  %v6736_v6 = vld [vmem:[%s7610_s29 + $0x174] sm:$0xf0]  ;;  %v5718_v7 = vor.u32 %v6720_v4, %v5717_v2  ;;  %v5709_v14 = vld [vmem:[%s7610_s29 + $0xe0] sm:$0xf]  ;;  %v5646_v16 = vor.u32 %v6702_v13, %v5645_v11 }
 0x123   : > { %v5782_v8 = vor.u32 %v6736_v6, %v5781_v5  ;;  %v5845_v9 = vld [vmem:[%s7610_s29 + $0x1f0] sm:$0xf]  ;;  %v6752_v10 = vld [vmem:[%s7610_s29 + $0x1f4] sm:$0xf0]  ;;  %4216 = vmatpush.bf16.msra.mxu0 %v5654_v3  ;;  %v6718_v15 = vld [vmem:[%s7610_s29 + $0xe4] sm:$0xf0] }
 0x124   : > { %v5846_v12 = vor.u32 %v6752_v10, %v5845_v9  ;;  %4245 = vmatpush.bf16.msra.mxu1 %v5718_v7  ;;  %v5710_v17 = vor.u32 %v6718_v15, %v5709_v14  ;;  %v5773_v18 = vld [vmem:[%s7610_s29 + $0x160] sm:$0xf]  ;;  %v6734_v19 = vld [vmem:[%s7610_s29 + $0x164] sm:$0xf0]  ;;  %v5637_v23 = vld [vmem:[%s7610_s29 + $0x50] sm:$0xf] }
 0x125   : > { %4274 = vmatpush.bf16.msra.mxu2 %v5782_v8  ;;  %v5837_v20 = vld [vmem:[%s7610_s29 + $0x1e0] sm:$0xf]  ;;  %v5774_v21 = vor.u32 %v6734_v19, %v5773_v18  ;;  %v6750_v22 = vld [vmem:[%s7610_s29 + $0x1e4] sm:$0xf0]  ;;  %v6700_v24 = vld [vmem:[%s7610_s29 + $0x54] sm:$0xf0] }
 0x126   : > { %4303 = vmatpush.bf16.msra.mxu3 %v5846_v12  ;;  %v5838_v25 = vor.u32 %v6750_v22, %v5837_v20  ;;  %v5701_v26 = vld [vmem:[%s7610_s29 + $0xd0] sm:$0xf]  ;;  %v6716_v27 = vld [vmem:[%s7610_s29 + $0xd4] sm:$0xf0]  ;;  %v5638_v29 = vor.u32 %v6700_v24, %v5637_v23  ;;  %v5629_v35 = vld [vmem:[%s7610_s29 + $0x40] sm:$0xf] }
 0x127   : > { %v5765_v28 = vld [vmem:[%s7610_s29 + $0x150] sm:$0xf]  ;;  %4217 = vmatpush.bf16.msra.mxu0 %v5646_v16  ;;  %v6732_v30 = vld [vmem:[%s7610_s29 + $0x154] sm:$0xf0]  ;;  %v5702_v33 = vor.u32 %v6716_v27, %v5701_v26  ;;  %v6698_v36 = vld [vmem:[%s7610_s29 + $0x44] sm:$0xf0] }
 0x128   : > { %v5829_v31 = vld [vmem:[%s7610_s29 + $0x1d0] sm:$0xf]  ;;  %v6748_v32 = vld [vmem:[%s7610_s29 + $0x1d4] sm:$0xf0]  ;;  %4246 = vmatpush.bf16.msra.mxu1 %v5710_v17  ;;  %v5766_v34 = vor.u32 %v6732_v30, %v5765_v28  ;;  %v5693_v37 = vld [vmem:[%s7610_s29 + $0xc0] sm:$0xf]  ;;  %v5630_v44 = vor.u32 %v6698_v36, %v5629_v35 }
 0x129   : > { %4275 = vmatpush.bf16.msra.mxu2 %v5774_v21  ;;  %v5830_v38 = vor.u32 %v6748_v32, %v5829_v31  ;;  %v6714_v39 = vld [vmem:[%s7610_s29 + $0xc4] sm:$0xf0]  ;;  %v5757_v40 = vld [vmem:[%s7610_s29 + $0x140] sm:$0xf]  ;;  %v5621_v47 = vld [vmem:[%s7610_s29 + $0x30] sm:$0xf] }
 0x12a   : > { %4304 = vmatpush.bf16.msra.mxu3 %v5838_v25  ;;  %v6730_v41 = vld [vmem:[%s7610_s29 + $0x144] sm:$0xf0]  ;;  %v5821_v42 = vld [vmem:[%s7610_s29 + $0x1c0] sm:$0xf]  ;;  %v5694_v45 = vor.u32 %v6714_v39, %v5693_v37  ;;  %v6696_v48 = vld [vmem:[%s7610_s29 + $0x34] sm:$0xf0] }
 0x12b   : > { %v6746_v43 = vld [vmem:[%s7610_s29 + $0x1c4] sm:$0xf0]  ;;  %4218 = vmatpush.bf16.msra.mxu0 %v5638_v29  ;;  %v5758_v46 = vor.u32 %v6730_v41, %v5757_v40  ;;  %v5685_v49 = vld [vmem:[%s7610_s29 + $0xb0] sm:$0xf]  ;;  %v6712_v51 = vld [vmem:[%s7610_s29 + $0xb4] sm:$0xf0]  ;;  %v5622_v56 = vor.u32 %v6696_v48, %v5621_v47 }
 0x12c   : > { %4247 = vmatpush.bf16.msra.mxu1 %v5702_v33  ;;  %v5822_v50 = vor.u32 %v6746_v43, %v5821_v42  ;;  %v5749_v52 = vld [vmem:[%s7610_s29 + $0x130] sm:$0xf]  ;;  %v6728_v53 = vld [vmem:[%s7610_s29 + $0x134] sm:$0xf0]  ;;  %v5686_v57 = vor.u32 %v6712_v51, %v5685_v49  ;;  %v5613_v59 = vld [vmem:[%s7610_s29 + $0x20] sm:$0xf] }
 0x12d   : > { %4276 = vmatpush.bf16.msra.mxu2 %v5766_v34  ;;  %v5813_v54 = vld [vmem:[%s7610_s29 + $0x1b0] sm:$0xf]  ;;  %v6744_v55 = vld [vmem:[%s7610_s29 + $0x1b4] sm:$0xf0]  ;;  %v5750_v58 = vor.u32 %v6728_v53, %v5749_v52  ;;  %v6694_v60 = vld [vmem:[%s7610_s29 + $0x24] sm:$0xf0] }
 0x12e   : > { %4305 = vmatpush.bf16.msra.mxu3 %v5830_v38  ;;  %v5677_v61 = vld [vmem:[%s7610_s29 + $0xa0] sm:$0xf]  ;;  %v5814_v62 = vor.u32 %v6744_v55, %v5813_v54  ;;  %v6710_v63 = vld [vmem:[%s7610_s29 + $0xa4] sm:$0xf0]  ;;  %v5614_v4 = vor.u32 %v6694_v60, %v5613_v59  ;;  %v5605_v7 = vld [vmem:[%s7610_s29 + $0x10] sm:$0xf] }
 0x12f   : > { %4219 = vmatpush.bf16.msra.mxu0 %v5630_v44  ;;  %v5741_v0 = vld [vmem:[%s7610_s29 + $0x120] sm:$0xf]  ;;  %v6726_v1 = vld [vmem:[%s7610_s29 + $0x124] sm:$0xf0]  ;;  %v5678_v5 = vor.u32 %v6710_v63, %v5677_v61  ;;  %v6692_v8 = vld [vmem:[%s7610_s29 + $0x14] sm:$0xf0] }
 0x130   : > { %4248 = vmatpush.bf16.msra.mxu1 %v5694_v45  ;;  %v5805_v2 = vld [vmem:[%s7610_s29 + $0x1a0] sm:$0xf]  ;;  %v6742_v3 = vld [vmem:[%s7610_s29 + $0x1a4] sm:$0xf0]  ;;  %v5742_v6 = vor.u32 %v6726_v1, %v5741_v0  ;;  %v5669_v9 = vld [vmem:[%s7610_s29 + $0x90] sm:$0xf]  ;;  %v5606_v17 = vor.u32 %v6692_v8, %v5605_v7 }
 0x131   : > { %4277 = vmatpush.bf16.msra.mxu2 %v5758_v46  ;;  %v5806_v10 = vor.u32 %v6742_v3, %v5805_v2  ;;  %v6708_v11 = vld [vmem:[%s7610_s29 + $0x94] sm:$0xf0]  ;;  %v5733_v12 = vld [vmem:[%s7610_s29 + $0x110] sm:$0xf]  ;;  %v5597_v16 = vld [vmem:[%s7610_s29] sm:$0xf] }
 0x132   : > { %4306 = vmatpush.bf16.msra.mxu3 %v5822_v50  ;;  %v6724_v13 = vld [vmem:[%s7610_s29 + $0x114] sm:$0xf0]  ;;  %v5797_v14 = vld [vmem:[%s7610_s29 + $0x190] sm:$0xf]  ;;  %v6690_v18 = vld [vmem:[%s7610_s29 + $0x4] sm:$0xf0]  ;;  %v5670_v21 = vor.u32 %v6708_v11, %v5669_v9 }
 0x133   : > { %4220 = vmatpush.bf16.msra.mxu0 %v5622_v56  ;;  %v6740_v15 = vld [vmem:[%s7610_s29 + $0x194] sm:$0xf0]  ;;  %v5661_v19 = vld [vmem:[%s7610_s29 + $0x80] sm:$0xf]  ;;  %v6706_v20 = vld [vmem:[%s7610_s29 + $0x84] sm:$0xf0]  ;;  %v5734_v22 = vor.u32 %v6724_v13, %v5733_v12  ;;  %v5598_v34 = vor.u32 %v6690_v18, %v5597_v16 }
 0x134   : > { %4249 = vmatpush.bf16.msra.mxu1 %v5686_v57  ;;  %v5725_v23 = vld [vmem:[%s7610_s29 + $0x100] sm:$0xf]  ;;  %v6722_v24 = vld [vmem:[%s7610_s29 + $0x104] sm:$0xf0]  ;;  %v5798_v26 = vor.u32 %v6740_v15, %v5797_v14  ;;  %v6625_v30 = vld [vmem:[%s9055_s0 + $0x4] sm:$0xf]  ;;  %v5662_v38 = vor.u32 %v6706_v20, %v5661_v19 }
 0x135   : > { %4278 = vmatpush.bf16.msra.mxu2 %v5750_v58  ;;  %v5789_v25 = vld [vmem:[%s7610_s29 + $0x180] sm:$0xf]  ;;  %v6738_v27 = vld [vmem:[%s7610_s29 + $0x184] sm:$0xf0]  ;;  %v5343_v31 = vld [vmem:[%s9055_s0 + $0x40] sm:$0xf0]  ;;  %v5726_v39 = vor.u32 %v6722_v24, %v5725_v23 }
 0x136   : > { %4307 = vmatpush.bf16.msra.mxu3 %v5814_v62  ;;  %v5341_v28 = vld [vmem:[%s9055_s0] sm:$0xf]  ;;  %v6037_v32 = vld [vmem:[%s7610_s29 + $0x370] sm:$0xf]  ;;  %v6800_v33 = vld [vmem:[%s7610_s29 + $0x374] sm:$0xf0]  ;;  %v5790_v43 = vor.u32 %v6738_v27, %v5789_v25  ;;  %v7712_v53 = vor.u32 %v6625_v30, %v5343_v31 }
 0x137   : > { %4221 = vmatpush.bf16.msra.mxu0 %v5614_v4  ;;  %v6633_v29 = vld [vmem:[%s9055_s0 + $0x3c] sm:$0xf0]  ;;  %v5349_v35 = vld [vmem:[%s9055_s0 + $0x8] sm:$0xf]  ;;  %v6101_v36 = vld [vmem:[%s7610_s29 + $0x3f0] sm:$0xf]  ;;  %v6038_v44 = vor.u32 %v6800_v33, %v6037_v32 }
 0x138   : > { %4250 = vmatpush.bf16.msra.mxu1 %v5678_v5  ;;  %v6816_v37 = vld [vmem:[%s7610_s29 + $0x3f4] sm:$0xf0]  ;;  %v6634_v40 = vld [vmem:[%s9055_s0 + $0x44] sm:$0xf0]  ;;  %v6626_v41 = vld [vmem:[%s9055_s0 + $0xc] sm:$0xf]  ;;  %v7707_v48 = vor.u32 %v6633_v29, %v5341_v28 }
 0x139   : > { %4279 = vmatpush.bf16.msra.mxu2 %v5742_v6  ;;  %v5351_v42 = vld [vmem:[%s9055_s0 + $0x48] sm:$0xf0]  ;;  %v5909_v45 = vld [vmem:[%s7610_s29 + $0x270] sm:$0xf]  ;;  %v6768_v46 = vld [vmem:[%s7610_s29 + $0x274] sm:$0xf0]  ;;  %v6102_v49 = vor.u32 %v6816_v37, %v6101_v36  ;;  %v7714_v54 = vor.u32 %v6634_v40, %v5349_v35 }
 0x13a   : > { %4308 = vmatpush.bf16.msra.mxu3 %v5806_v10  ;;  %v5973_v47 = vld [vmem:[%s7610_s29 + $0x2f0] sm:$0xf]  ;;  %v6784_v50 = vld [vmem:[%s7610_s29 + $0x2f4] sm:$0xf0]  ;;  %v6029_v51 = vld [vmem:[%s7610_s29 + $0x360] sm:$0xf]  ;;  %v7718_v57 = vor.u32 %v6626_v41, %v5351_v42  ;;  %v5910_v58 = vor.u32 %v6768_v46, %v5909_v45 }
 0x13b   : > { %4222 = vmatpush.bf16.msra.mxu0 %v5606_v17  ;;  %v6798_v52 = vld [vmem:[%s7610_s29 + $0x364] sm:$0xf0]  ;;  %v6093_v55 = vld [vmem:[%s7610_s29 + $0x3e0] sm:$0xf]  ;;  %v5974_v59 = vor.u32 %v6784_v50, %v5973_v47  ;;  %v6021_v2 = vld [vmem:[%s7610_s29 + $0x350] sm:$0xf] }
 0x13c   : > { %4251 = vmatpush.bf16.msra.mxu1 %v5670_v21  ;;  %v6814_v56 = vld [vmem:[%s7610_s29 + $0x3e4] sm:$0xf0]  ;;  %v6030_v60 = vor.u32 %v6798_v52, %v6029_v51  ;;  %v5901_v61 = vld [vmem:[%s7610_s29 + $0x260] sm:$0xf]  ;;  %v6796_v3 = vld [vmem:[%s7610_s29 + $0x354] sm:$0xf0] }
 0x13d   : > { %4280 = vmatpush.bf16.msra.mxu2 %v5734_v22  ;;  %v6766_v62 = vld [vmem:[%s7610_s29 + $0x264] sm:$0xf0]  ;;  %v5965_v63 = vld [vmem:[%s7610_s29 + $0x2e0] sm:$0xf]  ;;  %v6094_v0 = vor.u32 %v6814_v56, %v6093_v55  ;;  %v6085_v4 = vld [vmem:[%s7610_s29 + $0x3d0] sm:$0xf]  ;;  %v6022_v8 = vor.u32 %v6796_v3, %v6021_v2 }
 0x13e   : > { %4309 = vmatpush.bf16.msra.mxu3 %v5798_v26  ;;  %v6782_v1 = vld [vmem:[%s7610_s29 + $0x2e4] sm:$0xf0]  ;;  %v6812_v5 = vld [vmem:[%s7610_s29 + $0x3d4] sm:$0xf0]  ;;  %v5902_v6 = vor.u32 %v6766_v62, %v5901_v61  ;;  %v5893_v9 = vld [vmem:[%s7610_s29 + $0x250] sm:$0xf] }
 0x13f   : > { %4223 = vmatpush.bf16.msra.mxu0 %v5598_v34  ;;  %v5966_v7 = vor.u32 %v6782_v1, %v5965_v63  ;;  %v6764_v10 = vld [vmem:[%s7610_s29 + $0x254] sm:$0xf0]  ;;  %v5957_v11 = vld [vmem:[%s7610_s29 + $0x2d0] sm:$0xf]  ;;  %v6086_v12 = vor.u32 %v6812_v5, %v6085_v4  ;;  %v6013_v14 = vld [vmem:[%s7610_s29 + $0x340] sm:$0xf] }
 0x140   : > { %4252 = vmatpush.bf16.msra.mxu1 %v5662_v38  ;;  %v6780_v13 = vld [vmem:[%s7610_s29 + $0x2d4] sm:$0xf0]  ;;  %v6794_v15 = vld [vmem:[%s7610_s29 + $0x344] sm:$0xf0]  ;;  %v6077_v16 = vld [vmem:[%s7610_s29 + $0x3c0] sm:$0xf]  ;;  %v5894_v18 = vor.u32 %v6764_v10, %v5893_v9 }
 0x141   : > { %4281 = vmatpush.bf16.msra.mxu2 %v5726_v39  ;;  %v6810_v17 = vld [vmem:[%s7610_s29 + $0x3c4] sm:$0xf0]  ;;  %v5405_v19 = vld [vmem:[%s9055_s0 + $0x80] sm:$0xf]  ;;  %v5958_v21 = vor.u32 %v6780_v13, %v5957_v11  ;;  %v6014_v22 = vor.u32 %v6794_v15, %v6013_v14  ;;  %v6641_v26 = vld [vmem:[%s9055_s0 + $0x84] sm:$0xf] }
 0x142   : > { %4310 = vmatpush.bf16.msra.mxu3 %v5790_v43  ;;  %4224 = vmatmul.bf16.vlgmr.msra.gmra.mxu0 %v7707_v48  ;;  %v6649_v20 = vld [vmem:[%s9055_s0 + $0xbc] sm:$0xf0]  ;;  %v6762_v24 = vld [vmem:[%s7610_s29 + $0x244] sm:$0xf0]  ;;  %v5407_v27 = vld [vmem:[%s9055_s0 + $0xc0] sm:$0xf0]  ;;  %v6078_v28 = vor.u32 %v6810_v17, %v6077_v16 }
 0x143   : > { %4253 = vmatmul.bf16.vlgmr.msra.gmra.mxu1 %v7712_v53  ;;  %4332 = vmatpush.bf16.msrb.mxu0 %v5910_v58  ;;  %v5885_v23 = vld [vmem:[%s7610_s29 + $0x240] sm:$0xf]  ;;  %v6778_v29 = vld [vmem:[%s7610_s29 + $0x2c4] sm:$0xf0]  ;;  %v6005_v30 = vld [vmem:[%s7610_s29 + $0x330] sm:$0xf]  ;;  %v7780_v50 = vor.u32 %v6641_v26, %v5407_v27 }
 0x144   : > { %4282 = vmatmul.bf16.vlgmr.msra.gmra.mxu2 %v7714_v54  ;;  %4361 = vmatpush.bf16.msrb.mxu1 %v5974_v59  ;;  %v5949_v25 = vld [vmem:[%s7610_s29 + $0x2c0] sm:$0xf]  ;;  %v6792_v31 = vld [vmem:[%s7610_s29 + $0x334] sm:$0xf0]  ;;  %v5413_v32 = vld [vmem:[%s9055_s0 + $0x88] sm:$0xf]  ;;  %v5886_v38 = vor.u32 %v6762_v24, %v5885_v23 }
 0x145   : > { %4390 = vmatpush.bf16.msrb.mxu2 %v6038_v44  ;;  %4311 = vmatmul.bf16.vlgmr.msra.gmra.mxu3 %v7718_v57  ;;  %v6069_v33 = vld [vmem:[%s7610_s29 + $0x3b0] sm:$0xf]  ;;  %v6808_v34 = vld [vmem:[%s7610_s29 + $0x3b4] sm:$0xf0]  ;;  %v6650_v35 = vld [vmem:[%s9055_s0 + $0xc4] sm:$0xf0]  ;;  %v5950_v39 = vor.u32 %v6778_v29, %v5949_v25  ;;  %v6006_v40 = vor.u32 %v6792_v31, %v6005_v30  ;;  %v7775_v44 = vor.u32 %v6649_v20, %v5405_v19 }
 0x146   : > { %4419 = vmatpush.bf16.msrb.mxu3 %v6102_v49  ;;  %v6642_v36 = vld [vmem:[%s9055_s0 + $0x8c] sm:$0xf]  ;;  %v5877_v41 = vld [vmem:[%s7610_s29 + $0x230] sm:$0xf]  ;;  %v6760_v42 = vld [vmem:[%s7610_s29 + $0x234] sm:$0xf0]  ;;  %v6070_v45 = vor.u32 %v6808_v34, %v6069_v33  ;;  %v7782_v51 = vor.u32 %v6650_v35, %v5413_v32 }
 0x147   : > { %4333 = vmatpush.bf16.msrb.mxu0 %v5902_v6  ;;  %v5415_v37 = vld [vmem:[%s9055_s0 + $0xc8] sm:$0xf0]  ;;  %v5941_v43 = vld [vmem:[%s7610_s29 + $0x2b0] sm:$0xf]  ;;  %v6776_v46 = vld [vmem:[%s7610_s29 + $0x2b4] sm:$0xf0]  ;;  %v5878_v58 = vor.u32 %v6760_v42, %v5877_v41 }
 0x148   : > { %4362 = vmatpush.bf16.msrb.mxu1 %v5966_v7  ;;  %v5997_v47 = vld [vmem:[%s7610_s29 + $0x320] sm:$0xf]  ;;  %v6790_v49 = vld [vmem:[%s7610_s29 + $0x324] sm:$0xf0]  ;;  %v7786_v56 = vor.u32 %v6642_v36, %v5415_v37  ;;  %v5942_v59 = vor.u32 %v6776_v46, %v5941_v43  ;;  %v5989_v3 = vld [vmem:[%s7610_s29 + $0x310] sm:$0xf] }
 0x149   : > { %4391 = vmatpush.bf16.msrb.mxu2 %v6030_v60  ;;  %v6061_v52 = vld [vmem:[%s7610_s29 + $0x3a0] sm:$0xf]  ;;  %v6806_v55 = vld [vmem:[%s7610_s29 + $0x3a4] sm:$0xf0]  ;;  %v5998_v60 = vor.u32 %v6790_v49, %v5997_v47  ;;  %v6788_v4 = vld [vmem:[%s7610_s29 + $0x314] sm:$0xf0] }
 0x14a   : > { %4420 = vmatpush.bf16.msrb.mxu3 %v6094_v0  ;;  %v5869_v61 = vld [vmem:[%s7610_s29 + $0x220] sm:$0xf]  ;;  %v6758_v62 = vld [vmem:[%s7610_s29 + $0x224] sm:$0xf0]  ;;  %v6062_v63 = vor.u32 %v6806_v55, %v6061_v52  ;;  %v5861_v5 = vld [vmem:[%s7610_s29 + $0x210] sm:$0xf]  ;;  %v5990_v7 = vor.u32 %v6788_v4, %v5989_v3 }
 0x14b   : > { %4334 = vmatpush.bf16.msrb.mxu0 %v5894_v18  ;;  %v5933_v0 = vld [vmem:[%s7610_s29 + $0x2a0] sm:$0xf]  ;;  %v6774_v1 = vld [vmem:[%s7610_s29 + $0x2a4] sm:$0xf0]  ;;  %v5870_v2 = vor.u32 %v6758_v62, %v5869_v61  ;;  %v6053_v9 = vld [vmem:[%s7610_s29 + $0x390] sm:$0xf] }
 0x14c   : > { %4363 = vmatpush.bf16.msrb.mxu1 %v5958_v21  ;;  %v5934_v6 = vor.u32 %v6774_v1, %v5933_v0  ;;  %v6804_v10 = vld [vmem:[%s7610_s29 + $0x394] sm:$0xf0]  ;;  %v5981_v14 = vld [vmem:[%s7610_s29 + $0x300] sm:$0xf]  ;;  %v6786_v15 = vld [vmem:[%s7610_s29 + $0x304] sm:$0xf0] }
 0x14d   : > { %4392 = vmatpush.bf16.msrb.mxu2 %v6022_v8  ;;  %v6756_v8 = vld [vmem:[%s7610_s29 + $0x214] sm:$0xf0]  ;;  %v6054_v11 = vor.u32 %v6804_v10, %v6053_v9  ;;  %v6045_v17 = vld [vmem:[%s7610_s29 + $0x380] sm:$0xf]  ;;  %v6802_v18 = vld [vmem:[%s7610_s29 + $0x384] sm:$0xf0]  ;;  %v5982_v20 = vor.u32 %v6786_v15, %v5981_v14 }
 0x14e   : > { %4421 = vmatpush.bf16.msrb.mxu3 %v6086_v12  ;;  %v5925_v12 = vld [vmem:[%s7610_s29 + $0x290] sm:$0xf]  ;;  %v6772_v13 = vld [vmem:[%s7610_s29 + $0x294] sm:$0xf0]  ;;  %v5862_v16 = vor.u32 %v6756_v8, %v5861_v5  ;;  %v5853_v21 = vld [vmem:[%s7610_s29 + $0x200] sm:$0xf]  ;;  %v6046_v23 = vor.u32 %v6802_v18, %v6045_v17 }
 0x14f   : > { %4335 = vmatpush.bf16.msrb.mxu0 %v5886_v38  ;;  %v5926_v19 = vor.u32 %v6772_v13, %v5925_v12  ;;  %v5917_v24 = vld [vmem:[%s7610_s29 + $0x280] sm:$0xf]  ;;  %v6770_v25 = vld [vmem:[%s7610_s29 + $0x284] sm:$0xf0]  ;;  %v5471_v29 = vld [vmem:[%s9055_s0 + $0x140] sm:$0xf0] }
 0x150   : > { %4364 = vmatpush.bf16.msrb.mxu1 %v5950_v39  ;;  %v5469_v26 = vld [vmem:[%s9055_s0 + $0x100] sm:$0xf]  ;;  %v5477_v30 = vld [vmem:[%s9055_s0 + $0x108] sm:$0xf]  ;;  %v6658_v33 = vld [vmem:[%s9055_s0 + $0x10c] sm:$0xf]  ;;  %v5918_v35 = vor.u32 %v6770_v25, %v5917_v24 }
 0x151   : > { %4393 = vmatpush.bf16.msrb.mxu2 %v6014_v22  ;;  %v6754_v22 = vld [vmem:[%s7610_s29 + $0x204] sm:$0xf0]  ;;  %v6665_v27 = vld [vmem:[%s9055_s0 + $0x13c] sm:$0xf0]  ;;  %v5479_v34 = vld [vmem:[%s9055_s0 + $0x148] sm:$0xf0] }
 0x152   : > { %4422 = vmatpush.bf16.msrb.mxu3 %v6078_v28  ;;  %4229 = vmatmul.bf16.gmra.mxu0 %v7775_v44  ;;  %v6657_v28 = vld [vmem:[%s9055_s0 + $0x104] sm:$0xf]  ;;  %v6666_v31 = vld [vmem:[%s9055_s0 + $0x144] sm:$0xf0]  ;;  %v5854_v32 = vor.u32 %v6754_v22, %v5853_v21  ;;  %v7836_v36 = vor.u32 %v6665_v27, %v5469_v26  ;;  %v7842_v39 = vor.u32 %v6658_v33, %v5479_v34  ;;  %v6864_v41 = vld [vmem:[%s7610_s29 + $0x574] sm:$0xf0] }
 0x153   : > { %4258 = vmatmul.bf16.gmra.mxu1 %v7780_v50  ;;  %4336 = vmatpush.bf16.msrb.mxu0 %v5878_v58  ;;  %v7838_v37 = vor.u32 %v6657_v28, %v5471_v29  ;;  %v7840_v38 = vor.u32 %v6666_v31, %v5477_v30  ;;  %v6165_v42 = vld [vmem:[%s7610_s29 + $0x470] sm:$0xf]  ;;  %v6880_v47 = vld [vmem:[%s7610_s29 + $0x5f4] sm:$0xf0]  ;;  %v6862_v61 = vld [vmem:[%s7610_s29 + $0x564] sm:$0xf0] }
 0x154   : > { %4287 = vmatmul.bf16.gmra.mxu2 %v7782_v51  ;;  %4365 = vmatpush.bf16.msrb.mxu1 %v5942_v59  ;;  %v6357_v46 = vld [vmem:[%s7610_s29 + $0x5f0] sm:$0xf]  ;;  %v6848_v58 = vld [vmem:[%s7610_s29 + $0x4f4] sm:$0xf0]  ;;  %v6285_v59 = vld [vmem:[%s7610_s29 + $0x560] sm:$0xf] }
 0x155   : > { %4394 = vmatpush.bf16.msrb.mxu2 %v6006_v40  ;;  %4316 = vmatmul.bf16.gmra.mxu3 %v7786_v56  ;;  %v6293_v40 = vld [vmem:[%s7610_s29 + $0x570] sm:$0xf]  ;;  %v6358_v52 = vor.u32 %v6880_v47, %v6357_v46  ;;  %v6157_v62 = vld [vmem:[%s7610_s29 + $0x460] sm:$0xf]  ;;  %v6286_v0 = vor.u32 %v6862_v61, %v6285_v59  ;;  %v6878_v3 = vld [vmem:[%s7610_s29 + $0x5e4] sm:$0xf0] }
 0x156   : > { %4423 = vmatpush.bf16.msrb.mxu3 %v6070_v45  ;;  %v6294_v43 = vor.u32 %v6864_v41, %v6293_v40  ;;  %v6832_v45 = vld [vmem:[%s7610_s29 + $0x474] sm:$0xf0]  ;;  %v6229_v55 = vld [vmem:[%s7610_s29 + $0x4f0] sm:$0xf]  ;;  %v6221_v4 = vld [vmem:[%s7610_s29 + $0x4e0] sm:$0xf] }
 0x157   : > { %4337 = vmatpush.bf16.msrb.mxu0 %v5870_v2  ;;  %v6166_v49 = vor.u32 %v6832_v45, %v6165_v42  ;;  %v6349_v2 = vld [vmem:[%s7610_s29 + $0x5e0] sm:$0xf]  ;;  %v6673_v10 = vld [vmem:[%s9055_s0 + $0x184] sm:$0xf]  ;;  %v5541_v12 = vld [vmem:[%s9055_s0 + $0x188] sm:$0xf] }
 0x158   : > { %4366 = vmatpush.bf16.msrb.mxu1 %v5934_v6  ;;  %v6350_v5 = vor.u32 %v6878_v3, %v6349_v2  ;;  %v6846_v6 = vld [vmem:[%s7610_s29 + $0x4e4] sm:$0xf0]  ;;  %v5533_v8 = vld [vmem:[%s9055_s0 + $0x180] sm:$0xf]  ;;  %v6674_v14 = vld [vmem:[%s9055_s0 + $0x18c] sm:$0xf] }
 0x159   : > { %4395 = vmatpush.bf16.msrb.mxu2 %v5998_v60  ;;  %v6230_v60 = vor.u32 %v6848_v58, %v6229_v55  ;;  %v6681_v9 = vld [vmem:[%s9055_s0 + $0x1bc] sm:$0xf0]  ;;  %v6682_v13 = vld [vmem:[%s9055_s0 + $0x1c4] sm:$0xf0]  ;;  %v5543_v15 = vld [vmem:[%s9055_s0 + $0x1c8] sm:$0xf0] }
 0x15a   : > { %4424 = vmatpush.bf16.msrb.mxu3 %v6062_v63  ;;  %v6830_v63 = vld [vmem:[%s7610_s29 + $0x464] sm:$0xf0]  ;;  %v7892_v18 = vor.u32 %v6682_v13, %v5541_v12  ;;  %v6860_v21 = vld [vmem:[%s7610_s29 + $0x554] sm:$0xf0]  ;;  %v6149_v22 = vld [vmem:[%s7610_s29 + $0x450] sm:$0xf] }
 0x15b   : > { %4338 = vmatpush.bf16.msrb.mxu0 %v5862_v16  ;;  %v6158_v1 = vor.u32 %v6830_v63, %v6157_v62  ;;  %v7888_v16 = vor.u32 %v6681_v9, %v5533_v8  ;;  %v6828_v24 = vld [vmem:[%s7610_s29 + $0x454] sm:$0xf0]  ;;  %v6341_v25 = vld [vmem:[%s7610_s29 + $0x5d0] sm:$0xf]  ;;  %v6269_v31 = vld [vmem:[%s7610_s29 + $0x540] sm:$0xf] }
 0x15c   : > { %4367 = vmatpush.bf16.msrb.mxu1 %v5926_v19  ;;  %v7894_v19 = vor.u32 %v6674_v14, %v5543_v15  ;;  %v6876_v26 = vld [vmem:[%s7610_s29 + $0x5d4] sm:$0xf0]  ;;  %v6150_v27 = vor.u32 %v6828_v24, %v6149_v22  ;;  %v6213_v29 = vld [vmem:[%s7610_s29 + $0x4d0] sm:$0xf]  ;;  %v6858_v33 = vld [vmem:[%s7610_s29 + $0x544] sm:$0xf0] }
 0x15d   : > { %4396 = vmatpush.bf16.msrb.mxu2 %v5990_v7  ;;  %v6222_v7 = vor.u32 %v6846_v6, %v6221_v4  ;;  %v6342_v28 = vor.u32 %v6876_v26, %v6341_v25  ;;  %v6844_v30 = vld [vmem:[%s7610_s29 + $0x4d4] sm:$0xf0]  ;;  %v6141_v34 = vld [vmem:[%s7610_s29 + $0x440] sm:$0xf]  ;;  %v6270_v40 = vor.u32 %v6858_v33, %v6269_v31  ;;  %v6842_v47 = vld [vmem:[%s7610_s29 + $0x4c4] sm:$0xf0] }
 0x15e   : > { %4425 = vmatpush.bf16.msrb.mxu3 %v6054_v11  ;;  %v5535_v11 = vld [vmem:[%s9055_s0 + $0x1c0] sm:$0xf0]  ;;  %v6333_v42 = vld [vmem:[%s7610_s29 + $0x5c0] sm:$0xf]  ;;  %v6635_v55 = vld [vmem:[%s9055_s0 + $0x4c] sm:$0xf0] }
 0x15f   : > { %4339 = vmatpush.bf16.msrb.mxu0 %v5854_v32  ;;  %v7890_v17 = vor.u32 %v6673_v10, %v5535_v11  ;;  %v6214_v32 = vor.u32 %v6844_v30, %v6213_v29  ;;  %v6205_v45 = vld [vmem:[%s7610_s29 + $0x4c0] sm:$0xf]  ;;  %v6627_v58 = vld [vmem:[%s9055_s0 + $0x14] sm:$0xf]  ;;  %v6636_v61 = vld [vmem:[%s9055_s0 + $0x54] sm:$0xf0] }
 0x160   : > { %4368 = vmatpush.bf16.msrb.mxu1 %v5918_v35  ;;  %v6826_v35 = vld [vmem:[%s7610_s29 + $0x444] sm:$0xf0]  ;;  %v5359_v59 = vld [vmem:[%s9055_s0 + $0x50] sm:$0xf0]  ;;  %v6628_v62 = vld [vmem:[%s9055_s0 + $0x1c] sm:$0xf] }
 0x161   : > { %4397 = vmatpush.bf16.msrb.mxu2 %v5982_v20  ;;  %v6277_v20 = vld [vmem:[%s7610_s29 + $0x550] sm:$0xf]  ;;  %v6142_v41 = vor.u32 %v6826_v35, %v6141_v34  ;;  %v5367_v63 = vld [vmem:[%s9055_s0 + $0x58] sm:$0xf0]  ;;  %v6824_v8 = vld [vmem:[%s7610_s29 + $0x434] sm:$0xf0] }
 0x162   : > { %4426 = vmatpush.bf16.msrb.mxu3 %v6046_v23  ;;  %4234 = vmatmul.bf16.gmra.mxu0 %v7836_v36  ;;  %v6278_v23 = vor.u32 %v6860_v21, %v6277_v20  ;;  %v7946_v3 = vor.u32 %v6628_v62, %v5367_v63  ;;  %v6261_v4 = vld [vmem:[%s7610_s29 + $0x530] sm:$0xf]  ;;  %v6872_v10 = vld [vmem:[%s7610_s29 + $0x5b4] sm:$0xf0]  ;;  %v6253_v15 = vld [vmem:[%s7610_s29 + $0x520] sm:$0xf] }
 0x163   : > { %4263 = vmatmul.bf16.gmra.mxu1 %v7838_v37  ;;  %4448 = vmatpush.bf16.msra.mxu0 %v6166_v49  ;;  %v6206_v49 = vor.u32 %v6842_v47, %v6205_v45  ;;  %v6133_v6 = vld [vmem:[%s7610_s29 + $0x430] sm:$0xf]  ;;  %v6840_v14 = vld [vmem:[%s7610_s29 + $0x4b4] sm:$0xf0]  ;;  %v6854_v21 = vld [vmem:[%s7610_s29 + $0x524] sm:$0xf0] }
 0x164   : > { %4292 = vmatmul.bf16.gmra.mxu2 %v7840_v38  ;;  %4477 = vmatpush.bf16.msra.mxu1 %v6230_v60  ;;  %v5365_v60 = vld [vmem:[%s9055_s0 + $0x18] sm:$0xf]  ;;  %v6325_v9 = vld [vmem:[%s7610_s29 + $0x5b0] sm:$0xf]  ;;  %v6134_v11 = vor.u32 %v6824_v8, %v6133_v6  ;;  %v6125_v22 = vld [vmem:[%s7610_s29 + $0x420] sm:$0xf]  ;;  %v6254_v24 = vor.u32 %v6854_v21, %v6253_v15 }
 0x165   : > { %4321 = vmatmul.bf16.gmra.mxu3 %v7842_v39  ;;  %4506 = vmatpush.bf16.msra.mxu2 %v6294_v43  ;;  %v6874_v43 = vld [vmem:[%s7610_s29 + $0x5c4] sm:$0xf0]  ;;  %v7944_v2 = vor.u32 %v6636_v61, %v5365_v60  ;;  %v6326_v12 = vor.u32 %v6872_v10, %v6325_v9  ;;  %v6197_v13 = vld [vmem:[%s7610_s29 + $0x4b0] sm:$0xf]  ;;  %v6317_v26 = vld [vmem:[%s7610_s29 + $0x5a0] sm:$0xf] }
 0x166   : > { %4535 = vmatpush.bf16.msra.mxu3 %v6358_v52  ;;  %v6334_v46 = vor.u32 %v6874_v43, %v6333_v42  ;;  %v5357_v52 = vld [vmem:[%s9055_s0 + $0x10] sm:$0xf]  ;;  %v6198_v20 = vor.u32 %v6840_v14, %v6197_v13  ;;  %v6838_v30 = vld [vmem:[%s7610_s29 + $0x4a4] sm:$0xf0]  ;;  %v6643_v34 = vld [vmem:[%s9055_s0 + $0x94] sm:$0xf] }
 0x167   : > { %4449 = vmatpush.bf16.msra.mxu0 %v6158_v1  ;;  %v7942_v1 = vor.u32 %v6627_v58, %v5359_v59  ;;  %v6651_v33 = vld [vmem:[%s9055_s0 + $0xcc] sm:$0xf0]  ;;  %v5423_v35 = vld [vmem:[%s9055_s0 + $0xd0] sm:$0xf0]  ;;  %v6644_v42 = vld [vmem:[%s9055_s0 + $0x9c] sm:$0xf] }
 0x168   : > { %4478 = vmatpush.bf16.msra.mxu1 %v6222_v7  ;;  %v5431_v43 = vld [vmem:[%s9055_s0 + $0xd8] sm:$0xf0]  ;;  %v6117_v58 = vld [vmem:[%s7610_s29 + $0x410] sm:$0xf]  ;;  %v6820_v60 = vld [vmem:[%s7610_s29 + $0x414] sm:$0xf0] }
 0x169   : > { %4507 = vmatpush.bf16.msra.mxu2 %v6286_v0  ;;  %v7940_v0 = vor.u32 %v6635_v55, %v5357_v52  ;;  %v6245_v52 = vld [vmem:[%s7610_s29 + $0x510] sm:$0xf]  ;;  %v6852_v55 = vld [vmem:[%s7610_s29 + $0x514] sm:$0xf0]  ;;  %v6118_v63 = vor.u32 %v6820_v60, %v6117_v58  ;;  %v6850_v9 = vld [vmem:[%s7610_s29 + $0x504] sm:$0xf0] }
 0x16a   : > { %4536 = vmatpush.bf16.msra.mxu3 %v6350_v5  ;;  %v6856_v5 = vld [vmem:[%s7610_s29 + $0x534] sm:$0xf0]  ;;  %v6246_v59 = vor.u32 %v6852_v55, %v6245_v52  ;;  %v6309_v61 = vld [vmem:[%s7610_s29 + $0x590] sm:$0xf]  ;;  %v6109_v10 = vld [vmem:[%s7610_s29 + $0x400] sm:$0xf] }
 0x16b   : > { %4450 = vmatpush.bf16.msra.mxu0 %v6150_v27  ;;  %v6262_v7 = vor.u32 %v6856_v5, %v6261_v4  ;;  %v6870_v27 = vld [vmem:[%s7610_s29 + $0x5a4] sm:$0xf0]  ;;  %v6868_v62 = vld [vmem:[%s7610_s29 + $0x594] sm:$0xf0]  ;;  %v6181_v5 = vld [vmem:[%s7610_s29 + $0x490] sm:$0xf] }
 0x16c   : > { %4479 = vmatpush.bf16.msra.mxu1 %v6214_v32  ;;  %v6318_v29 = vor.u32 %v6870_v27, %v6317_v26  ;;  %v5421_v32 = vld [vmem:[%s9055_s0 + $0x90] sm:$0xf]  ;;  %v6310_v4 = vor.u32 %v6868_v62, %v6309_v61  ;;  %v6836_v6 = vld [vmem:[%s7610_s29 + $0x494] sm:$0xf0]  ;;  %v6301_v14 = vld [vmem:[%s7610_s29 + $0x580] sm:$0xf] }
 0x16d   : > { %4508 = vmatpush.bf16.msra.mxu2 %v6278_v23  ;;  %v6822_v23 = vld [vmem:[%s7610_s29 + $0x424] sm:$0xf0]  ;;  %v7992_v45 = vor.u32 %v6651_v33, %v5421_v32  ;;  %v6182_v8 = vor.u32 %v6836_v6, %v6181_v5  ;;  %v6659_v26 = vld [vmem:[%s9055_s0 + $0x114] sm:$0xf]  ;;  %v6896_v52 = vld [vmem:[%s7610_s29 + $0x674] sm:$0xf0] }
 0x16e   : > { %4537 = vmatpush.bf16.msra.mxu3 %v6342_v28  ;;  %v6126_v25 = vor.u32 %v6822_v23, %v6125_v22  ;;  %v6189_v28 = vld [vmem:[%s7610_s29 + $0x4a0] sm:$0xf]  ;;  %v6866_v15 = vld [vmem:[%s7610_s29 + $0x584] sm:$0xf0]  ;;  %v5487_v27 = vld [vmem:[%s9055_s0 + $0x150] sm:$0xf0] }
 0x16f   : > { %4451 = vmatpush.bf16.msra.mxu0 %v6142_v41  ;;  %v6190_v31 = vor.u32 %v6838_v30, %v6189_v28  ;;  %v6652_v41 = vld [vmem:[%s9055_s0 + $0xd4] sm:$0xf0]  ;;  %v6302_v21 = vor.u32 %v6866_v15, %v6301_v14  ;;  %v6834_v22 = vld [vmem:[%s7610_s29 + $0x484] sm:$0xf0]  ;;  %v6660_v30 = vld [vmem:[%s9055_s0 + $0x11c] sm:$0xf]  ;;  %v8046_v33 = vor.u32 %v6659_v26, %v5487_v27 }
 0x170   : > { %4480 = vmatpush.bf16.msra.mxu1 %v6206_v49  ;;  %v7998_v49 = vor.u32 %v6644_v42, %v5431_v43  ;;  %v5493_v28 = vld [vmem:[%s9055_s0 + $0x118] sm:$0xf]  ;;  %v6421_v42 = vld [vmem:[%s7610_s29 + $0x670] sm:$0xf]  ;;  %v6541_v5 = vld [vmem:[%s7610_s29 + $0x760] sm:$0xf] }
 0x171   : > { %4509 = vmatpush.bf16.msra.mxu2 %v6270_v40  ;;  %v5429_v40 = vld [vmem:[%s9055_s0 + $0x98] sm:$0xf]  ;;  %v6613_v55 = vld [vmem:[%s7610_s29 + $0x7f0] sm:$0xf]  ;;  %v6942_v14 = vld [vmem:[%s7610_s29 + $0x7e4] sm:$0xf0] }
 0x172   : > { %4239 = vmatmul.bf16.gmra.mxu0 %v7888_v16  ;;  %4538 = vmatpush.bf16.msra.mxu3 %v6334_v46  ;;  %v7994_v46 = vor.u32 %v6643_v34, %v5423_v35  ;;  %v7996_v47 = vor.u32 %v6652_v41, %v5429_v40  ;;  %v6549_v40 = vld [vmem:[%s7610_s29 + $0x770] sm:$0xf]  ;;  %v6928_v41 = vld [vmem:[%s7610_s29 + $0x774] sm:$0xf0]  ;;  %v5551_v15 = vld [vmem:[%s9055_s0 + $0x1d0] sm:$0xf0] }
 0x173   : > { %4268 = vmatmul.bf16.gmra.mxu1 %v7890_v17  ;;  %4452 = vmatpush.bf16.msra.mxu0 %v6134_v11  ;;  %v6818_v11 = vld [vmem:[%s7610_s29 + $0x404] sm:$0xf0]  ;;  %v6550_v43 = vor.u32 %v6928_v41, %v6549_v40  ;;  %v6944_v58 = vld [vmem:[%s7610_s29 + $0x7f4] sm:$0xf0]  ;;  %v5549_v61 = vld [vmem:[%s9055_s0 + $0x190] sm:$0xf] }
 0x174   : > { %4297 = vmatmul.bf16.gmra.mxu2 %v7892_v18  ;;  %4481 = vmatpush.bf16.msra.mxu1 %v6198_v20  ;;  %v6110_v13 = vor.u32 %v6818_v11, %v6109_v10  ;;  %v6173_v20 = vld [vmem:[%s7610_s29 + $0x480] sm:$0xf]  ;;  %v6614_v60 = vor.u32 %v6944_v58, %v6613_v55  ;;  %v6683_v62 = vld [vmem:[%s9055_s0 + $0x1cc] sm:$0xf0]  ;;  %v6675_v10 = vld [vmem:[%s9055_s0 + $0x194] sm:$0xf] }
 0x175   : > { %4326 = vmatmul.bf16.gmra.mxu3 %v7894_v19  ;;  %4510 = vmatpush.bf16.msra.mxu2 %v6262_v7  ;;  %v6237_v7 = vld [vmem:[%s7610_s29 + $0x500] sm:$0xf]  ;;  %v6174_v23 = vor.u32 %v6834_v22, %v6173_v20  ;;  %v5557_v20 = vld [vmem:[%s9055_s0 + $0x198] sm:$0xf]  ;;  %v8096_v26 = vor.u32 %v6675_v10, %v5551_v15  ;;  %v6533_v40 = vld [vmem:[%s7610_s29 + $0x750] sm:$0xf] }
 0x176   : > { %4539 = vmatpush.bf16.msra.mxu3 %v6326_v12  ;;  %v6238_v12 = vor.u32 %v6850_v9, %v6237_v7  ;;  %v6926_v7 = vld [vmem:[%s7610_s29 + $0x764] sm:$0xf0]  ;;  %v6924_v41 = vld [vmem:[%s7610_s29 + $0x754] sm:$0xf0]  ;;  %v6597_v55 = vld [vmem:[%s7610_s29 + $0x7d0] sm:$0xf] }
 0x177   : > { %4453 = vmatpush.bf16.msra.mxu0 %v6126_v25  ;;  %v6667_v25 = vld [vmem:[%s9055_s0 + $0x14c] sm:$0xf0]  ;;  %v6894_v9 = vld [vmem:[%s7610_s29 + $0x664] sm:$0xf0]  ;;  %v6542_v11 = vor.u32 %v6926_v7, %v6541_v5  ;;  %9094 = vst [vmem:[#allocation4_spill] sm:$0xff] %v8096_v26  ;;  %s6945_s27 = sshll.u32 (%p7076_p6), %s7016_s11, 4 }
 0x178   : > { %4482 = vmatpush.bf16.msra.mxu1 %v6190_v31  ;;  %v5495_v31 = vld [vmem:[%s9055_s0 + $0x158] sm:$0xf0]  ;;  %v6525_v5 = vld [vmem:[%s7610_s29 + $0x740] sm:$0xf]  ;;  %v6922_v7 = vld [vmem:[%s7610_s29 + $0x744] sm:$0xf0]  ;;  %s5188_s8 = scalar_lea.vmem (%p7076_p6), %s9057_s2, %s6945_s27 }
 0x179   : > { %4511 = vmatpush.bf16.msra.mxu2 %v6254_v24  ;;  %v5485_v24 = vld [vmem:[%s9055_s0 + $0x110] sm:$0xf]  ;;  %v8050_v35 = vor.u32 %v6660_v30, %v5495_v31  ;;  %v6910_v30 = vld [vmem:[%s7610_s29 + $0x6e4] sm:$0xf0]  ;;  %v6629_v10 = vld [vmem:[%s9055_s0 + $0x24] sm:$0xf] }
 0x17a   : > { %4540 = vmatpush.bf16.msra.mxu3 %v6318_v29  ;;  %v6668_v29 = vld [vmem:[%s9055_s0 + $0x154] sm:$0xf0]  ;;  %v8044_v32 = vor.u32 %v6667_v25, %v5485_v24  ;;  %v5559_v24 = vld [vmem:[%s9055_s0 + $0x1d8] sm:$0xf0]  ;;  %v8094_v25 = vor.u32 %v6683_v62, %v5549_v61  ;;  %v5373_v61 = vld [vmem:[%s9055_s0 + $0x20] sm:$0xf] }
 0x17b   : > { %4454 = vmatpush.bf16.msra.mxu0 %v6118_v63  ;;  %v8048_v34 = vor.u32 %v6668_v29, %v5493_v28  ;;  %v6485_v63 = vld [vmem:[%s7610_s29 + $0x6f0] sm:$0xf]  ;;  %v6477_v29 = vld [vmem:[%s7610_s29 + $0x6e0] sm:$0xf]  ;;  %v5375_v15 = vld [vmem:[%s9055_s0 + $0x60] sm:$0xf0] }
 0x17c   : > { %4483 = vmatpush.bf16.msra.mxu1 %v6182_v8  ;;  %v6413_v8 = vld [vmem:[%s7610_s29 + $0x660] sm:$0xf]  ;;  %v6478_v31 = vor.u32 %v6910_v30, %v6477_v29 }
 0x17d   : > { %4512 = vmatpush.bf16.msra.mxu2 %v6246_v59  ;;  %v6422_v59 = vor.u32 %v6896_v52, %v6421_v42  ;;  %v6534_v42 = vor.u32 %v6924_v41, %v6533_v40  ;;  %v6892_v52 = vld [vmem:[%s7610_s29 + $0x654] sm:$0xf0]  ;;  %v6637_v62 = vld [vmem:[%s9055_s0 + $0x5c] sm:$0xf0] }
 0x17e   : > { %4541 = vmatpush.bf16.msra.mxu3 %v6310_v4  ;;  %v6912_v4 = vld [vmem:[%s7610_s29 + $0x6f4] sm:$0xf0]  ;;  %v8146_v29 = vor.u32 %v6637_v62, %v5373_v61  ;;  %v6389_v62 = vld [vmem:[%s7610_s29 + $0x630] sm:$0xf] }
 0x17f   : > { %4455 = vmatpush.bf16.msra.mxu0 %v6110_v13  ;;  %v6486_v6 = vor.u32 %v6912_v4, %v6485_v63  ;;  %v6605_v13 = vld [vmem:[%s7610_s29 + $0x7e0] sm:$0xf]  ;;  %v6469_v63 = vld [vmem:[%s7610_s29 + $0x6d0] sm:$0xf]  ;;  %v6908_v4 = vld [vmem:[%s7610_s29 + $0x6d4] sm:$0xf0] }
 0x180   : > { %4484 = vmatpush.bf16.msra.mxu1 %v6174_v23  ;;  %v6606_v22 = vor.u32 %v6942_v14, %v6605_v13  ;;  %v6676_v23 = vld [vmem:[%s9055_s0 + $0x19c] sm:$0xf]  ;;  %v6589_v13 = vld [vmem:[%s7610_s29 + $0x7c0] sm:$0xf]  ;;  %v6938_v14 = vld [vmem:[%s7610_s29 + $0x7c4] sm:$0xf0] }
 0x181   : > { %4513 = vmatpush.bf16.msra.mxu2 %v6238_v12  ;;  %v6414_v12 = vor.u32 %v6894_v9, %v6413_v8  ;;  %v8100_v28 = vor.u32 %v6676_v23, %v5559_v24  ;;  %v6397_v8 = vld [vmem:[%s7610_s29 + $0x640] sm:$0xf]  ;;  %v6890_v9 = vld [vmem:[%s7610_s29 + $0x644] sm:$0xf0]  ;;  %v6630_v23 = vld [vmem:[%s9055_s0 + $0x2c] sm:$0xf] }
 0x182   : > { %4340 = vmatmul.bf16.vlgmr.msrb.gmra.mxu0 %v7940_v0  ;;  %4542 = vmatpush.bf16.msra.mxu3 %v6302_v21  ;;  %v6684_v21 = vld [vmem:[%s9055_s0 + $0x1d4] sm:$0xf0]  ;;  %v5383_v24 = vld [vmem:[%s9055_s0 + $0x68] sm:$0xf0]  ;;  %9097 = vst [vmem:[#allocation7_spill] sm:$0xff] %v8146_v29 }
 0x183   : > { %4369 = vmatmul.bf16.vlgmr.msrb.gmra.mxu1 %v7942_v1  ;;  %4564 = vmatpush.bf16.msrb.mxu0 %v6422_v59  ;;  %v8098_v27 = vor.u32 %v6684_v21, %v5557_v20  ;;  %9096 = vst [vmem:[#allocation6_spill] sm:$0xff] %v8100_v28  ;;  %v6940_v59 = vld [vmem:[%s7610_s29 + $0x7d4] sm:$0xf0]  ;;  %v5381_v20 = vld [vmem:[%s9055_s0 + $0x28] sm:$0xf] }
 0x184   : > { %4398 = vmatmul.bf16.vlgmr.msrb.gmra.mxu2 %v7944_v2  ;;  %4593 = vmatpush.bf16.msrb.mxu1 %v6486_v6  ;;  %v6470_v6 = vor.u32 %v6908_v4, %v6469_v63  ;;  %v6638_v21 = vld [vmem:[%s9055_s0 + $0x64] sm:$0xf0]  ;;  %v6888_v63 = vld [vmem:[%s7610_s29 + $0x634] sm:$0xf0]  ;;  %v6581_v4 = vld [vmem:[%s7610_s29 + $0x7b0] sm:$0xf] }
 0x185   : > { %4427 = vmatmul.bf16.vlgmr.msrb.gmra.mxu3 %v7946_v3  ;;  %4622 = vmatpush.bf16.msrb.mxu2 %v6550_v43  ;;  %9095 = vst [vmem:[#allocation5_spill] sm:$0xff] %v8098_v27  ;;  %v6405_v43 = vld [vmem:[%s7610_s29 + $0x650] sm:$0xf]  ;;  %v8150_v40 = vor.u32 %v6638_v21, %v5381_v20  ;;  %v6653_v20 = vld [vmem:[%s9055_s0 + $0xdc] sm:$0xf0] }
 0x186   : > { %4651 = vmatpush.bf16.msrb.mxu3 %v6614_v60  ;;  %v6406_v58 = vor.u32 %v6892_v52, %v6405_v43  ;;  %v6598_v60 = vor.u32 %v6940_v59, %v6597_v55  ;;  %v6461_v52 = vld [vmem:[%s7610_s29 + $0x6c0] sm:$0xf]  ;;  %v6906_v55 = vld [vmem:[%s7610_s29 + $0x6c4] sm:$0xf0]  ;;  %v6517_v59 = vld [vmem:[%s7610_s29 + $0x730] sm:$0xf] }
 0x187   : > { %4565 = vmatpush.bf16.msrb.mxu0 %v6414_v12  ;;  %v6398_v12 = vor.u32 %v6890_v9, %v6397_v8  ;;  %9099 = vst [vmem:[#allocation9_spill] sm:$0xff] %v8150_v40  ;;  %v6453_v21 = vld [vmem:[%s7610_s29 + $0x6b0] sm:$0xf] }
 0x188   : > { %4594 = vmatpush.bf16.msrb.mxu1 %v6478_v31  ;;  %v8148_v31 = vor.u32 %v6629_v10, %v5375_v15  ;;  %v5437_v15 = vld [vmem:[%s9055_s0 + $0xa0] sm:$0xf] }
 0x189   : > { %4623 = vmatpush.bf16.msrb.mxu2 %v6542_v11  ;;  %v6526_v11 = vor.u32 %v6922_v7, %v6525_v5  ;;  %v6936_v7 = vld [vmem:[%s7610_s29 + $0x7b4] sm:$0xf0] }
 0x18a   : > { %4652 = vmatpush.bf16.msrb.mxu3 %v6606_v22  ;;  %v6590_v22 = vor.u32 %v6938_v14, %v6589_v13  ;;  %9098 = vst [vmem:[#allocation8_spill] sm:$0xff] %v8148_v31 }
 0x18b   : > { %4566 = vmatpush.bf16.msrb.mxu0 %v6406_v58  ;;  %v6462_v58 = vor.u32 %v6906_v55, %v6461_v52  ;;  %v6645_v52 = vld [vmem:[%s9055_s0 + $0xa4] sm:$0xf] }
 0x18c   : > { %4595 = vmatpush.bf16.msrb.mxu1 %v6470_v6  ;;  %v6390_v6 = vor.u32 %v6888_v63, %v6389_v62  ;;  %v5445_v62 = vld [vmem:[%s9055_s0 + $0xa8] sm:$0xf] }
 0x18d   : > { %4624 = vmatpush.bf16.msrb.mxu2 %v6534_v42  ;;  %v8152_v42 = vor.u32 %v6630_v23, %v5383_v24  ;;  %v6509_v23 = vld [vmem:[%s7610_s29 + $0x720] sm:$0xf]  ;;  %v6654_v63 = vld [vmem:[%s9055_s0 + $0xe4] sm:$0xf0] }
 0x18e   : > { %4653 = vmatpush.bf16.msrb.mxu3 %v6598_v60  ;;  %v6920_v60 = vld [vmem:[%s7610_s29 + $0x734] sm:$0xf0] }
 0x18f   : > { %4567 = vmatpush.bf16.msrb.mxu0 %v6398_v12  ;;  %9100 = vst [vmem:[#allocation10_spill] sm:$0xff] %v8152_v42  ;;  %v6518_v61 = vor.u32 %v6920_v60, %v6517_v59  ;;  %v6573_v59 = vld [vmem:[%s7610_s29 + $0x7a0] sm:$0xf]  ;;  %v6934_v60 = vld [vmem:[%s7610_s29 + $0x7a4] sm:$0xf0] }
 0x190   : > { %4596 = vmatpush.bf16.msrb.mxu1 %v6462_v58 }
 0x191   : > { %4625 = vmatpush.bf16.msrb.mxu2 %v6526_v11  ;;  %v6582_v11 = vor.u32 %v6936_v7, %v6581_v4  ;;  %v6574_v4 = vor.u32 %v6934_v60, %v6573_v59  ;;  %v6565_v59 = vld [vmem:[%s7610_s29 + $0x790] sm:$0xf] }
 0x192   : > { %4345 = vmatmul.bf16.gmra.mxu0 %v7992_v45  ;;  %4654 = vmatpush.bf16.msrb.mxu3 %v6590_v22  ;;  %v6904_v22 = vld [vmem:[%s7610_s29 + $0x6b4] sm:$0xf0] }
 0x193   : > { %4374 = vmatmul.bf16.gmra.mxu1 %v7994_v46  ;;  %4568 = vmatpush.bf16.msrb.mxu0 %v6390_v6  ;;  %v6454_v24 = vor.u32 %v6904_v22, %v6453_v21  ;;  %v5447_v6 = vld [vmem:[%s9055_s0 + $0xe8] sm:$0xf0]  ;;  %v8204_v21 = vor.u32 %v6654_v63, %v5445_v62  ;;  %v6932_v62 = vld [vmem:[%s7610_s29 + $0x794] sm:$0xf0] }
 0x194   : > { %4403 = vmatmul.bf16.gmra.mxu2 %v7996_v47 }
 0x195   : > { %4432 = vmatmul.bf16.gmra.mxu3 %v7998_v49  ;;  %4626 = vmatpush.bf16.msrb.mxu2 %v6518_v61  ;;  %v5439_v61 = vld [vmem:[%s9055_s0 + $0xe0] sm:$0xf0]  ;;  %9103 = vst [vmem:[#allocation13_spill] sm:$0xff] %v8204_v21 }
 0x196   : > { %4655 = vmatpush.bf16.msrb.mxu3 %v6582_v11  ;;  %4597 = vmatpush.bf16.msrb.mxu1 %v6454_v24 }
 0x19a   : > { %4656 = vmatpush.bf16.msrb.mxu3 %v6574_v4 }
 0x1a2   : > { %4350 = vmatmul.bf16.gmra.mxu0 %v8044_v32 }
 0x1a3   : > { %4379 = vmatmul.bf16.gmra.mxu1 %v8046_v33 }
 0x1a4   : > { %4408 = vmatmul.bf16.gmra.mxu2 %v8048_v34 }
 0x1a5   : > { %4437 = vmatmul.bf16.gmra.mxu3 %v8050_v35 }
 0x1b2   : > { %4355 = vmatmul.bf16.gmra.mxu0 %v8094_v25 }
 0x1b3   : > { %4384 = vmatmul.bf16.gmra.mxu1 %v8096_v26 }
 0x1b4   : > { %4413 = vmatmul.bf16.gmra.mxu2 %v8098_v27 }
 0x1b5   : > { %4442 = vmatmul.bf16.gmra.mxu3 %v8100_v28 }
 0x1bf   : > { %v4225_v30 = vpop.f32.mrf.mxu0 }
 0x1c0   : > { %v4254_v41 = vpop.f32.mrf.mxu1 }
 0x1c1   : > { %v4255_v43 = vadd.f32 %v4254_v41, %v4225_v30  ;;  %v6918_v30 = vld [vmem:[%s7610_s29 + $0x724] sm:$0xf0]  ;;  %v6381_v41 = vld [vmem:[%s7610_s29 + $0x620] sm:$0xf] }
 0x1c2   : > { %4456 = vmatmul.bf16.vlgmr.msra.gmra.mxu0 %v8146_v29  ;;  %v6510_v55 = vor.u32 %v6918_v30, %v6509_v23 }
 0x1c3   : > { %4485 = vmatmul.bf16.vlgmr.msra.gmra.mxu1 %v8148_v31  ;;  %v6287_v31 = vld [vmem:[%s7610_s29 + $0x568] sm:$0xf0] }
 0x1c4   : > { %4514 = vmatmul.bf16.vlgmr.msra.gmra.mxu2 %v8150_v40 }
 0x1c5   : > { %4543 = vmatmul.bf16.vlgmr.msra.gmra.mxu3 %v8152_v42  ;;  %4627 = vmatpush.bf16.msrb.mxu2 %v6510_v55  ;;  %v6373_v55 = vld [vmem:[%s7610_s29 + $0x610] sm:$0xf] }
 0x1c7   : > { %v4283_v5 = vpop.f32.mrf.mxu2  ;;  %v4227_v10 = vpop.f32.mrf.mxu0 }
 0x1c8   : > { %v4284_v8 = vadd.f32 %v4283_v5, %v4255_v43  ;;  %v4312_v9 = vpop.f32.mrf.mxu3  ;;  %v4256_v12 = vpop.f32.mrf.mxu1  ;;  %v6886_v43 = vld [vmem:[%s7610_s29 + $0x624] sm:$0xf0]  ;;  %v6646_v5 = vld [vmem:[%s9055_s0 + $0xac] sm:$0xf] }
 0x1c9   : > { %v4257_v14 = vadd.f32 %v4256_v12, %v4227_v10  ;;  %v6382_v58 = vor.u32 %v6886_v43, %v6381_v41  ;;  %v8202_v12 = vor.u32 %v6645_v52, %v5439_v61  ;;  %v8206_v23 = vor.u32 %v6646_v5, %v5447_v6  ;;  %v6501_v41 = vld [vmem:[%s7610_s29 + $0x710] sm:$0xf]  ;;  %v6916_v43 = vld [vmem:[%s7610_s29 + $0x714] sm:$0xf0] }
 0x1ca   : > { %v8166_v13 = vadd.f32 %v4312_v9, %v4284_v8  ;;  %v8200_v8 = vor.u32 %v6653_v20, %v5437_v15  ;;  %v6445_v20 = vld [vmem:[%s7610_s29 + $0x6a0] sm:$0xf]  ;;  %v6502_v52 = vor.u32 %v6916_v43, %v6501_v41  ;;  %v6566_v6 = vor.u32 %v6932_v62, %v6565_v59  ;;  %v6914_v41 = vld [vmem:[%s7610_s29 + $0x704] sm:$0xf0]  ;;  %v5503_v62 = vld [vmem:[%s9055_s0 + $0x160] sm:$0xf0] }
 0x1cb   : > { %4569 = vmatpush.bf16.msrb.mxu0 %v6382_v58  ;;  %9102 = vst [vmem:[#allocation12_spill] sm:$0xff] %v8202_v12  ;;  %v6884_v58 = vld [vmem:[%s7610_s29 + $0x614] sm:$0xf0]  ;;  %v6365_v43 = vld [vmem:[%s7610_s29 + $0x600] sm:$0xf] }
 0x1cc   : > { %9101 = vst [vmem:[#allocation11_spill] sm:$0xff] %v8200_v8  ;;  %v6374_v61 = vor.u32 %v6884_v58, %v6373_v55  ;;  %4628 = vmatpush.bf16.msrb.mxu2 %v6502_v52  ;;  %4657 = vmatpush.bf16.msrb.mxu3 %v6566_v6  ;;  %v6882_v52 = vld [vmem:[%s7610_s29 + $0x604] sm:$0xf0]  ;;  %v6661_v55 = vld [vmem:[%s9055_s0 + $0x124] sm:$0xf] }
 0x1cd   : > { %9104 = vst [vmem:[#allocation14_spill] sm:$0xff] %v8206_v23  ;;  %v6366_v59 = vor.u32 %v6882_v52, %v6365_v43  ;;  %v6662_v6 = vld [vmem:[%s9055_s0 + $0x12c] sm:$0xf] }
 0x1cf   : > { %v4285_v7 = vpop.f32.mrf.mxu2  ;;  %v4230_v11 = vpop.f32.mrf.mxu0  ;;  %4570 = vmatpush.bf16.msrb.mxu0 %v6374_v61  ;;  %v6930_v61 = vld [vmem:[%s7610_s29 + $0x784] sm:$0xf0] }
 0x1d0   : > { %v4286_v9 = vadd.f32 %v4285_v7, %v4257_v14  ;;  %v4314_v10 = vpop.f32.mrf.mxu3  ;;  %v4259_v22 = vpop.f32.mrf.mxu1  ;;  %v6902_v14 = vld [vmem:[%s7610_s29 + $0x6a4] sm:$0xf0] }
 0x1d1   : > { %v4260_v15 = vadd.f32 %v4259_v22, %v4230_v11  ;;  %v6446_v30 = vor.u32 %v6902_v14, %v6445_v20  ;;  %v5501_v11 = vld [vmem:[%s9055_s0 + $0x120] sm:$0xf]  ;;  %v6900_v20 = vld [vmem:[%s7610_s29 + $0x694] sm:$0xf0] }
 0x1d2   : > { %v8208_v24 = vadd.f32 %v4314_v10, %v4286_v9  ;;  %4461 = vmatmul.bf16.gmra.mxu0 %v8200_v8  ;;  %v6669_v22 = vld [vmem:[%s9055_s0 + $0x15c] sm:$0xf0] }
 0x1d3   : > { %4490 = vmatmul.bf16.gmra.mxu1 %v8202_v12  ;;  %v6493_v14 = vld [vmem:[%s7610_s29 + $0x700] sm:$0xf]  ;;  %4571 = vmatpush.bf16.msrb.mxu0 %v6366_v59 }
 0x1d4   : > { %4519 = vmatmul.bf16.gmra.mxu2 %v8204_v21  ;;  %4598 = vmatpush.bf16.msrb.mxu1 %v6446_v30  ;;  %v6494_v58 = vor.u32 %v6914_v41, %v6493_v14  ;;  %v6429_v14 = vld [vmem:[%s7610_s29 + $0x680] sm:$0xf]  ;;  %v6898_v41 = vld [vmem:[%s7610_s29 + $0x684] sm:$0xf0] }
 0x1d5   : > { %4548 = vmatmul.bf16.gmra.mxu3 %v8206_v23 }
 0x1d6   : > { %4629 = vmatpush.bf16.msrb.mxu2 %v6494_v58  ;;  %v6430_v58 = vor.u32 %v6898_v41, %v6429_v14 }
 0x1d7   : > { %v4288_v60 = vpop.f32.mrf.mxu2  ;;  %v4232_v5 = vpop.f32.mrf.mxu0 }
 0x1d8   : > { %v4289_v63 = vadd.f32 %v4288_v60, %v4260_v15  ;;  %v4317_v4 = vpop.f32.mrf.mxu3  ;;  %v4261_v7 = vpop.f32.mrf.mxu1  ;;  %v6437_v15 = vld [vmem:[%s7610_s29 + $0x690] sm:$0xf]  ;;  %v6557_v60 = vld [vmem:[%s7610_s29 + $0x780] sm:$0xf] }
 0x1d9   : > { %v4262_v10 = vadd.f32 %v4261_v7, %v4232_v5  ;;  %v6438_v30 = vor.u32 %v6900_v20, %v6437_v15  ;;  %v6558_v5 = vor.u32 %v6930_v61, %v6557_v60  ;;  %v5511_v7 = vld [vmem:[%s9055_s0 + $0x168] sm:$0xf0]  ;;  %v8256_v20 = vor.u32 %v6669_v22, %v5501_v11 }
 0x1da   : > { %v8222_v9 = vadd.f32 %v4317_v4, %v4289_v63  ;;  %v5509_v63 = vld [vmem:[%s9055_s0 + $0x128] sm:$0xf]  ;;  %v8260_v60 = vor.u32 %v6661_v55, %v5503_v62  ;;  %v8264_v11 = vor.u32 %v6662_v6, %v5511_v7  ;;  %v5783_v55 = vld [vmem:[%s7610_s29 + $0x178] sm:$0xf0]  ;;  %v6703_v62 = vld [vmem:[%s7610_s29 + $0x74] sm:$0xf] }
 0x1db   : > { %v6670_v4 = vld [vmem:[%s9055_s0 + $0x164] sm:$0xf0]  ;;  %4599 = vmatpush.bf16.msrb.mxu1 %v6438_v30  ;;  %9105 = vst [vmem:[#allocation15_spill] sm:$0xff] %v8256_v20  ;;  %4658 = vmatpush.bf16.msrb.mxu3 %v6558_v5  ;;  %v5847_v6 = vld [vmem:[%s7610_s29 + $0x1f8] sm:$0xf0] }
 0x1dc   : > { %9106 = vst [vmem:[#allocation16_spill] sm:$0xff] %v8260_v60  ;;  %v8262_v61 = vor.u32 %v6670_v4, %v5509_v63  ;;  %v5655_v4 = vld [vmem:[%s7610_s29 + $0x78] sm:$0xf0] }
 0x1dd   : > { %9108 = vst [vmem:[#allocation18_spill] sm:$0xff] %v8264_v11  ;;  %v5658_v14 = vor.u32 %v6703_v62, %v5655_v4  ;;  %v6719_v62 = vld [vmem:[%s7610_s29 + $0xf4] sm:$0xf]  ;;  %v5719_v4 = vld [vmem:[%s7610_s29 + $0xf8] sm:$0xf0] }
 0x1de   : > { %9107 = vst [vmem:[#allocation17_spill] sm:$0xff] %v8262_v61 }
 0x1df   : > { %v4290_v15 = vpop.f32.mrf.mxu2  ;;  %v4235_v52 = vpop.f32.mrf.mxu0  ;;  %4600 = vmatpush.bf16.msrb.mxu1 %v6430_v58  ;;  %4680 = vmatpush.bf16.msra.mxu0 %v5658_v14  ;;  %v6701_v14 = vld [vmem:[%s7610_s29 + $0x64] sm:$0xf] }
 0x1e0   : > { %v4291_v43 = vadd.f32 %v4290_v15, %v4262_v10  ;;  %v4319_v30 = vpop.f32.mrf.mxu3  ;;  %v4264_v59 = vpop.f32.mrf.mxu1  ;;  %v6735_v10 = vld [vmem:[%s7610_s29 + $0x174] sm:$0xf] }
 0x1e1   : > { %v4265_v5 = vadd.f32 %v4264_v59, %v4235_v52  ;;  %v5786_v63 = vor.u32 %v6735_v10, %v5783_v55  ;;  %v6751_v15 = vld [vmem:[%s7610_s29 + $0x1f4] sm:$0xf]  ;;  %v5565_v55 = vld [vmem:[%s9055_s0 + $0x1a0] sm:$0xf] }
 0x1e2   : > { %v8266_v22 = vadd.f32 %v4319_v30, %v4291_v43  ;;  %4466 = vmatmul.bf16.gmra.mxu0 %v8256_v20  ;;  %v5850_v41 = vor.u32 %v6751_v15, %v5847_v6  ;;  %v5722_v15 = vor.u32 %v6719_v62, %v5719_v4  ;;  %v6733_v6 = vld [vmem:[%s7610_s29 + $0x164] sm:$0xf] }
 0x1e3   : > { %4495 = vmatmul.bf16.gmra.mxu1 %v8260_v60  ;;  %4738 = vmatpush.bf16.msra.mxu2 %v5786_v63  ;;  %v6677_v63 = vld [vmem:[%s9055_s0 + $0x1a4] sm:$0xf] }
 0x1e4   : > { %4524 = vmatmul.bf16.gmra.mxu2 %v8262_v61  ;;  %4767 = vmatpush.bf16.msra.mxu3 %v5850_v41  ;;  %v6686_v61 = vld [vmem:[%s9055_s0 + $0x1e4] sm:$0xf0] }
 0x1e5   : > { %4553 = vmatmul.bf16.gmra.mxu3 %v8264_v11  ;;  %v5573_v11 = vld [vmem:[%s9055_s0 + $0x1a8] sm:$0xf]  ;;  %4709 = vmatpush.bf16.msra.mxu1 %v5722_v15 }
 0x1e7   : > { %v4293_v7 = vpop.f32.mrf.mxu2  ;;  %v4237_v52 = vpop.f32.mrf.mxu0 }
 0x1e8   : > { %v4294_v43 = vadd.f32 %v4293_v7, %v4265_v5  ;;  %v4322_v30 = vpop.f32.mrf.mxu3  ;;  %v4266_v58 = vpop.f32.mrf.mxu1  ;;  %v6685_v5 = vld [vmem:[%s9055_s0 + $0x1dc] sm:$0xf0]  ;;  %v5775_v7 = vld [vmem:[%s7610_s29 + $0x168] sm:$0xf0] }
 0x1e9   : > { %v4267_v10 = vadd.f32 %v4266_v58, %v4237_v52  ;;  %v5778_v41 = vor.u32 %v6733_v6, %v5775_v7  ;;  %v5839_v52 = vld [vmem:[%s7610_s29 + $0x1e8] sm:$0xf0]  ;;  %v5567_v58 = vld [vmem:[%s9055_s0 + $0x1e0] sm:$0xf0]  ;;  %v8312_v20 = vor.u32 %v6685_v5, %v5565_v55 }
 0x1ea   : > { %v8278_v59 = vadd.f32 %v4322_v30, %v4294_v43  ;;  %v5647_v43 = vld [vmem:[%s7610_s29 + $0x68] sm:$0xf0]  ;;  %v6749_v30 = vld [vmem:[%s7610_s29 + $0x1e4] sm:$0xf] }
 0x1eb   : > { %v5650_v62 = vor.u32 %v6701_v14, %v5647_v43  ;;  %v5842_v4 = vor.u32 %v6749_v30, %v5839_v52  ;;  %v6678_v6 = vld [vmem:[%s9055_s0 + $0x1ac] sm:$0xf]  ;;  %4739 = vmatpush.bf16.msra.mxu2 %v5778_v41  ;;  %9109 = vst [vmem:[#allocation19_spill] sm:$0xff] %v8312_v20  ;;  %v8314_v43 = vor.u32 %v6677_v63, %v5567_v58  ;;  %v6717_v5 = vld [vmem:[%s7610_s29 + $0xe4] sm:$0xf] }
 0x1ec   : > { %v5575_v7 = vld [vmem:[%s9055_s0 + $0x1e8] sm:$0xf0]  ;;  %v8316_v30 = vor.u32 %v6686_v61, %v5573_v11  ;;  %v6731_v61 = vld [vmem:[%s7610_s29 + $0x154] sm:$0xf]  ;;  %v5767_v11 = vld [vmem:[%s7610_s29 + $0x158] sm:$0xf0] }
 0x1ed   : > { %4681 = vmatpush.bf16.msra.mxu0 %v5650_v62  ;;  %4768 = vmatpush.bf16.msra.mxu3 %v5842_v4  ;;  %9110 = vst [vmem:[#allocation20_spill] sm:$0xff] %v8314_v43  ;;  %v8318_v21 = vor.u32 %v6678_v6, %v5575_v7  ;;  %v5770_v63 = vor.u32 %v6731_v61, %v5767_v11  ;;  %v6699_v58 = vld [vmem:[%s7610_s29 + $0x54] sm:$0xf]  ;;  %v5831_v7 = vld [vmem:[%s7610_s29 + $0x1d8] sm:$0xf0] }
 0x1ee   : > { %9111 = vst [vmem:[#allocation21_spill] sm:$0xff] %v8316_v30  ;;  %v6747_v62 = vld [vmem:[%s7610_s29 + $0x1d4] sm:$0xf]  ;;  %v5389_v11 = vld [vmem:[%s9055_s0 + $0x30] sm:$0xf] }
 0x1ef   : > { %v4295_v60 = vpop.f32.mrf.mxu2  ;;  %v4240_v14 = vpop.f32.mrf.mxu0  ;;  %9112 = vst [vmem:[#allocation22_spill] sm:$0xff] %v8318_v21  ;;  %4740 = vmatpush.bf16.msra.mxu2 %v5770_v63  ;;  %v5703_v63 = vld [vmem:[%s7610_s29 + $0xd8] sm:$0xf0] }
 0x1f0   : > { %v4296_v23 = vadd.f32 %v4295_v60, %v4267_v10  ;;  %v4324_v15 = vpop.f32.mrf.mxu3  ;;  %v4269_v52 = vpop.f32.mrf.mxu1  ;;  %v5711_v60 = vld [vmem:[%s7610_s29 + $0xe8] sm:$0xf0] }
 0x1f1   : > { %v4270_v55 = vadd.f32 %v4269_v52, %v4240_v14  ;;  %v5714_v10 = vor.u32 %v6717_v5, %v5711_v60  ;;  %v5834_v5 = vor.u32 %v6747_v62, %v5831_v7  ;;  %v6697_v7 = vld [vmem:[%s7610_s29 + $0x44] sm:$0xf] }
 0x1f2   : > { %v8320_v41 = vadd.f32 %v4324_v15, %v4296_v23  ;;  %4471 = vmatmul.bf16.gmra.mxu0 %v8312_v20  ;;  %v5639_v23 = vld [vmem:[%s7610_s29 + $0x58] sm:$0xf0] }
 0x1f3   : > { %4500 = vmatmul.bf16.gmra.mxu1 %v8314_v43  ;;  %v5642_v6 = vor.u32 %v6699_v58, %v5639_v23  ;;  %4769 = vmatpush.bf16.msra.mxu3 %v5834_v5  ;;  %v6715_v58 = vld [vmem:[%s7610_s29 + $0xd4] sm:$0xf]  ;;  %v5397_v5 = vld [vmem:[%s9055_s0 + $0x38] sm:$0xf] }
 0x1f4   : > { %4529 = vmatmul.bf16.gmra.mxu2 %v8316_v30  ;;  %4710 = vmatpush.bf16.msra.mxu1 %v5714_v10  ;;  %v6631_v23 = vld [vmem:[%s9055_s0 + $0x34] sm:$0xf]  ;;  %v5706_v62 = vor.u32 %v6715_v58, %v5703_v63  ;;  %v6640_v30 = vld [vmem:[%s9055_s0 + $0x74] sm:$0xf0] }
 0x1f5   : > { %4558 = vmatmul.bf16.gmra.mxu3 %v8318_v21  ;;  %4682 = vmatpush.bf16.msra.mxu0 %v5642_v6  ;;  %v5759_v6 = vld [vmem:[%s7610_s29 + $0x148] sm:$0xf0]  ;;  %v5391_v21 = vld [vmem:[%s9055_s0 + $0x70] sm:$0xf0] }
 0x1f7   : > { %v4298_v4 = vpop.f32.mrf.mxu2  ;;  %v4242_v52 = vpop.f32.mrf.mxu0 }
 0x1f8   : > { %v4299_v15 = vadd.f32 %v4298_v4, %v4270_v55  ;;  %v4327_v14 = vpop.f32.mrf.mxu3  ;;  %v4271_v60 = vpop.f32.mrf.mxu1  ;;  %v6639_v55 = vld [vmem:[%s9055_s0 + $0x6c] sm:$0xf0]  ;;  %v6729_v4 = vld [vmem:[%s7610_s29 + $0x144] sm:$0xf]  ;;  %4711 = vmatpush.bf16.msra.mxu1 %v5706_v62 }
 0x1f9   : > { %v4272_v61 = vadd.f32 %v4271_v60, %v4242_v52  ;;  %v6745_v52 = vld [vmem:[%s7610_s29 + $0x1c4] sm:$0xf]  ;;  %v5823_v60 = vld [vmem:[%s7610_s29 + $0x1c8] sm:$0xf0]  ;;  %v8368_v20 = vor.u32 %v6639_v55, %v5389_v11 }
 0x1fa   : > { %v8334_v10 = vadd.f32 %v4327_v14, %v4299_v15  ;;  %v5762_v15 = vor.u32 %v6729_v4, %v5759_v6  ;;  %v5631_v14 = vld [vmem:[%s7610_s29 + $0x48] sm:$0xf0]  ;;  %v5826_v63 = vor.u32 %v6745_v52, %v5823_v60  ;;  %v6632_v4 = vld [vmem:[%s9055_s0 + $0x3c] sm:$0xf]  ;;  %v8372_v52 = vor.u32 %v6640_v30, %v5397_v5  ;;  %v6713_v55 = vld [vmem:[%s7610_s29 + $0xc4] sm:$0xf] }
 0x1fb   : > { %v5634_v58 = vor.u32 %v6697_v7, %v5631_v14  ;;  %v5399_v6 = vld [vmem:[%s9055_s0 + $0x78] sm:$0xf0]  ;;  %9113 = vst [vmem:[#allocation23_spill] sm:$0xff] %v8368_v20  ;;  %v8370_v14 = vor.u32 %v6631_v23, %v5391_v21  ;;  %v6695_v5 = vld [vmem:[%s7610_s29 + $0x34] sm:$0xf] }
 0x1fc   : > { %4741 = vmatpush.bf16.msra.mxu2 %v5762_v15  ;;  %4770 = vmatpush.bf16.msra.mxu3 %v5826_v63  ;;  %9115 = vst [vmem:[#allocation25_spill] sm:$0xff] %v8372_v52  ;;  %v8375_v15 = vor.u32 %v6632_v4, %v5399_v6  ;;  %v5751_v30 = vld [vmem:[%s7610_s29 + $0x138] sm:$0xf0] }
 0x1fd   : > { %4683 = vmatpush.bf16.msra.mxu0 %v5634_v58  ;;  %9114 = vst [vmem:[#allocation24_spill] sm:$0xff] %v8370_v14  ;;  %v6743_v58 = vld [vmem:[%s7610_s29 + $0x1b4] sm:$0xf]  ;;  %v5815_v4 = vld [vmem:[%s7610_s29 + $0x1b8] sm:$0xf0] }
 0x1fe   : > { %9116 = vst [vmem:[#allocation26_spill] sm:$0xff] %v8375_v15 }
 0x1ff   : > { %v4300_v43 = vpop.f32.mrf.mxu2  ;;  %v4341_v7 = vpop.f32.mrf.mxu0 }
 0x200   : > { %v4301_v12 = vadd.f32 %v4300_v43, %v4272_v61  ;;  %v4329_v62 = vpop.f32.mrf.mxu3  ;;  %v4342_v60 = vadd.f32 %v4341_v7, %v8166_v13  ;;  %v4370_v8 = vpop.f32.mrf.mxu1  ;;  %v5695_v43 = vld [vmem:[%s7610_s29 + $0xc8] sm:$0xf0]  ;;  %v6727_v13 = vld [vmem:[%s7610_s29 + $0x134] sm:$0xf] }
 0x201   : > { %v5698_v21 = vor.u32 %v6713_v55, %v5695_v43  ;;  %v5754_v23 = vor.u32 %v6727_v13, %v5751_v30  ;;  %v6655_v13 = vld [vmem:[%s9055_s0 + $0xec] sm:$0xf0]  ;;  %v6711_v30 = vld [vmem:[%s7610_s29 + $0xb4] sm:$0xf] }
 0x202   : > { %v8377_v11 = vadd.f32 %v4329_v62, %v4301_v12  ;;  %v4371_v61 = vadd.f32 %v4370_v8, %v4342_v60  ;;  %4572 = vmatmul.bf16.vlgmr.msrb.gmra.mxu0 %v8368_v20  ;;  %v5623_v12 = vld [vmem:[%s7610_s29 + $0x38] sm:$0xf0]  ;;  %v5818_v60 = vor.u32 %v6743_v58, %v5815_v4  ;;  %v6725_v58 = vld [vmem:[%s7610_s29 + $0x124] sm:$0xf] }
 0x203   : > { %4601 = vmatmul.bf16.vlgmr.msrb.gmra.mxu1 %v8370_v14  ;;  %v5626_v8 = vor.u32 %v6695_v5, %v5623_v12  ;;  %4742 = vmatpush.bf16.msra.mxu2 %v5754_v23  ;;  %v5687_v23 = vld [vmem:[%s7610_s29 + $0xb8] sm:$0xf0] }
 0x204   : > { %4630 = vmatmul.bf16.vlgmr.msrb.gmra.mxu2 %v8372_v52  ;;  %4712 = vmatpush.bf16.msra.mxu1 %v5698_v21  ;;  %v5690_v12 = vor.u32 %v6711_v30, %v5687_v23  ;;  %v6648_v23 = vld [vmem:[%s9055_s0 + $0xbc] sm:$0xf] }
 0x205   : > { %4659 = vmatmul.bf16.vlgmr.msrb.gmra.mxu3 %v8375_v15  ;;  %4684 = vmatpush.bf16.msra.mxu0 %v5626_v8  ;;  %v6693_v8 = vld [vmem:[%s7610_s29 + $0x24] sm:$0xf]  ;;  %v5455_v15 = vld [vmem:[%s9055_s0 + $0xf0] sm:$0xf0] }
 0x206   : > { %4771 = vmatpush.bf16.msra.mxu3 %v5818_v60  ;;  %v5461_v60 = vld [vmem:[%s9055_s0 + $0xb8] sm:$0xf] }
 0x207   : > { %v4399_v63 = vpop.f32.mrf.mxu2  ;;  %v4343_v7 = vpop.f32.mrf.mxu0 }
 0x208   : > { %v4400_v6 = vadd.f32 %v4399_v63, %v4371_v61  ;;  %v4428_v62 = vpop.f32.mrf.mxu3  ;;  %v4344_v55 = vadd.f32 %v4343_v7, %v8208_v24  ;;  %v4372_v43 = vpop.f32.mrf.mxu1  ;;  %v5453_v61 = vld [vmem:[%s9055_s0 + $0xb0] sm:$0xf]  ;;  %v6647_v24 = vld [vmem:[%s9055_s0 + $0xb4] sm:$0xf]  ;;  %v5743_v63 = vld [vmem:[%s7610_s29 + $0x128] sm:$0xf0]  ;;  %4713 = vmatpush.bf16.msra.mxu1 %v5690_v12 }
 0x209   : > { %v5746_v4 = vor.u32 %v6725_v58, %v5743_v63  ;;  %v5807_v7 = vld [vmem:[%s7610_s29 + $0x1a8] sm:$0xf0]  ;;  %v5463_v58 = vld [vmem:[%s9055_s0 + $0xf8] sm:$0xf0]  ;;  %v8426_v52 = vor.u32 %v6655_v13, %v5453_v61  ;;  %v6709_v13 = vld [vmem:[%s7610_s29 + $0xa4] sm:$0xf] }
 0x20a   : > { %v8392_v21 = vadd.f32 %v4428_v62, %v4400_v6  ;;  %v4373_v5 = vadd.f32 %v4372_v43, %v4344_v55  ;;  %v5615_v6 = vld [vmem:[%s7610_s29 + $0x28] sm:$0xf0]  ;;  %v6741_v62 = vld [vmem:[%s7610_s29 + $0x1a4] sm:$0xf]  ;;  %v6656_v55 = vld [vmem:[%s9055_s0 + $0xf4] sm:$0xf0] }
 0x20b   : > { %v5618_v43 = vor.u32 %v6693_v8, %v5615_v6  ;;  %v5810_v30 = vor.u32 %v6741_v62, %v5807_v7  ;;  %4743 = vmatpush.bf16.msra.mxu2 %v5746_v4  ;;  %9117 = vst [vmem:[#allocation27_spill] sm:$0xff] %v8426_v52  ;;  %v8428_v6 = vor.u32 %v6647_v24, %v5455_v15  ;;  %v5735_v24 = vld [vmem:[%s7610_s29 + $0x118] sm:$0xf0] }
 0x20c   : > { %v8430_v62 = vor.u32 %v6656_v55, %v5461_v60  ;;  %v8433_v4 = vor.u32 %v6648_v23, %v5463_v58  ;;  %v6691_v55 = vld [vmem:[%s7610_s29 + $0x14] sm:$0xf]  ;;  %v5799_v58 = vld [vmem:[%s7610_s29 + $0x198] sm:$0xf0] }
 0x20d   : > { %4685 = vmatpush.bf16.msra.mxu0 %v5618_v43  ;;  %4772 = vmatpush.bf16.msra.mxu3 %v5810_v30  ;;  %9118 = vst [vmem:[#allocation28_spill] sm:$0xff] %v8428_v6  ;;  %v6739_v30 = vld [vmem:[%s7610_s29 + $0x194] sm:$0xf] }
 0x20e   : > { %9119 = vst [vmem:[#allocation29_spill] sm:$0xff] %v8430_v62 }
 0x20f   : > { %v4401_v63 = vpop.f32.mrf.mxu2  ;;  %v4346_v8 = vpop.f32.mrf.mxu0  ;;  %9120 = vst [vmem:[#allocation30_spill] sm:$0xff] %v8433_v4 }
 0x210   : > { %v4402_v14 = vadd.f32 %v4401_v63, %v4373_v5  ;;  %v4430_v12 = vpop.f32.mrf.mxu3  ;;  %v4347_v7 = vadd.f32 %v4346_v8, %v8222_v9  ;;  %v4375_v20 = vpop.f32.mrf.mxu1  ;;  %v5679_v5 = vld [vmem:[%s7610_s29 + $0xa8] sm:$0xf0]  ;;  %v6723_v9 = vld [vmem:[%s7610_s29 + $0x114] sm:$0xf] }
 0x211   : > { %v5682_v15 = vor.u32 %v6709_v13, %v5679_v5  ;;  %v5738_v60 = vor.u32 %v6723_v9, %v5735_v24  ;;  %v6671_v9 = vld [vmem:[%s9055_s0 + $0x16c] sm:$0xf0]  ;;  %v6707_v24 = vld [vmem:[%s7610_s29 + $0x94] sm:$0xf] }
 0x212   : > { %v8435_v61 = vadd.f32 %v4430_v12, %v4402_v14  ;;  %v4376_v43 = vadd.f32 %v4375_v20, %v4347_v7  ;;  %4577 = vmatmul.bf16.gmra.mxu0 %v8426_v52  ;;  %v5607_v14 = vld [vmem:[%s7610_s29 + $0x18] sm:$0xf0]  ;;  %v5802_v7 = vor.u32 %v6739_v30, %v5799_v58  ;;  %v6721_v30 = vld [vmem:[%s7610_s29 + $0x104] sm:$0xf]  ;;  %v5663_v52 = vld [vmem:[%s7610_s29 + $0x88] sm:$0xf0] }
 0x213   : > { %4606 = vmatmul.bf16.gmra.mxu1 %v8428_v6  ;;  %v5610_v20 = vor.u32 %v6691_v55, %v5607_v14  ;;  %4744 = vmatpush.bf16.msra.mxu2 %v5738_v60  ;;  %v5671_v60 = vld [vmem:[%s7610_s29 + $0x98] sm:$0xf0]  ;;  %v6705_v6 = vld [vmem:[%s7610_s29 + $0x84] sm:$0xf] }
 0x214   : > { %4635 = vmatmul.bf16.gmra.mxu2 %v8430_v62  ;;  %4714 = vmatpush.bf16.msra.mxu1 %v5682_v15  ;;  %v5674_v14 = vor.u32 %v6707_v24, %v5671_v60 }
 0x215   : > { %4664 = vmatmul.bf16.gmra.mxu3 %v8433_v4  ;;  %4686 = vmatpush.bf16.msra.mxu0 %v5610_v20  ;;  %v6689_v20 = vld [vmem:[%s7610_s29 + $0x4] sm:$0xf] }
 0x216   : > { %4773 = vmatpush.bf16.msra.mxu3 %v5802_v7  ;;  %v5519_v7 = vld [vmem:[%s9055_s0 + $0x170] sm:$0xf0] }
 0x217   : > { %v4404_v23 = vpop.f32.mrf.mxu2  ;;  %v4348_v8 = vpop.f32.mrf.mxu0 }
 0x218   : > { %v4405_v63 = vadd.f32 %v4404_v23, %v4376_v43  ;;  %v4433_v12 = vpop.f32.mrf.mxu3  ;;  %v4349_v13 = vadd.f32 %v4348_v8, %v8266_v22  ;;  %v4377_v5 = vpop.f32.mrf.mxu1  ;;  %v5517_v43 = vld [vmem:[%s9055_s0 + $0x130] sm:$0xf]  ;;  %v6663_v22 = vld [vmem:[%s9055_s0 + $0x134] sm:$0xf]  ;;  %v5727_v23 = vld [vmem:[%s7610_s29 + $0x108] sm:$0xf0]  ;;  %4715 = vmatpush.bf16.msra.mxu1 %v5674_v14 }
 0x219   : > { %v5730_v58 = vor.u32 %v6721_v30, %v5727_v23  ;;  %v5791_v8 = vld [vmem:[%s7610_s29 + $0x188] sm:$0xf0]  ;;  %v6664_v30 = vld [vmem:[%s9055_s0 + $0x13c] sm:$0xf]  ;;  %v8484_v62 = vor.u32 %v6671_v9, %v5517_v43 }
 0x21a   : > { %v8450_v15 = vadd.f32 %v4433_v12, %v4405_v63  ;;  %v4378_v55 = vadd.f32 %v4377_v5, %v4349_v13  ;;  %v5599_v63 = vld [vmem:[%s7610_s29 + $0x8] sm:$0xf0]  ;;  %v6737_v12 = vld [vmem:[%s7610_s29 + $0x184] sm:$0xf]  ;;  %v5525_v13 = vld [vmem:[%s9055_s0 + $0x138] sm:$0xf] }
 0x21b   : > { %v6672_v5 = vld [vmem:[%s9055_s0 + $0x174] sm:$0xf0]  ;;  %v5602_v24 = vor.u32 %v6689_v20, %v5599_v63  ;;  %v5794_v60 = vor.u32 %v6737_v12, %v5791_v8  ;;  %v5527_v23 = vld [vmem:[%s9055_s0 + $0x178] sm:$0xf0]  ;;  %4745 = vmatpush.bf16.msra.mxu2 %v5730_v58  ;;  %9121 = vst [vmem:[#allocation31_spill] sm:$0xff] %v8484_v62  ;;  %v8488_v63 = vor.u32 %v6663_v22, %v5519_v7 }
 0x21c   : > { %v8490_v12 = vor.u32 %v6672_v5, %v5525_v13  ;;  %v5666_v8 = vor.u32 %v6705_v6, %v5663_v52  ;;  %v8493_v58 = vor.u32 %v6664_v30, %v5527_v23  ;;  %v6799_v52 = vld [vmem:[%s7610_s29 + $0x374] sm:$0xf]  ;;  %v6039_v6 = vld [vmem:[%s7610_s29 + $0x378] sm:$0xf0] }
 0x21d   : > { %4687 = vmatpush.bf16.msra.mxu0 %v5602_v24  ;;  %4774 = vmatpush.bf16.msra.mxu3 %v5794_v60  ;;  %9122 = vst [vmem:[#allocation32_spill] sm:$0xff] %v8488_v63  ;;  %v5911_v22 = vld [vmem:[%s7610_s29 + $0x278] sm:$0xf0]  ;;  %v6815_v7 = vld [vmem:[%s7610_s29 + $0x3f4] sm:$0xf] }
 0x21e   : > { %9123 = vst [vmem:[#allocation33_spill] sm:$0xff] %v8490_v12  ;;  %4716 = vmatpush.bf16.msra.mxu1 %v5666_v8  ;;  %v6103_v13 = vld [vmem:[%s7610_s29 + $0x3f8] sm:$0xf0] }
 0x21f   : > { %v4406_v4 = vpop.f32.mrf.mxu2  ;;  %v4351_v20 = vpop.f32.mrf.mxu0  ;;  %9124 = vst [vmem:[#allocation34_spill] sm:$0xff] %v8493_v58  ;;  %v6106_v60 = vor.u32 %v6815_v7, %v6103_v13  ;;  %v6031_v7 = vld [vmem:[%s7610_s29 + $0x368] sm:$0xf0]  ;;  %v6765_v13 = vld [vmem:[%s7610_s29 + $0x264] sm:$0xf] }
 0x220   : > { %v4407_v42 = vadd.f32 %v4406_v4, %v4378_v55  ;;  %v4435_v14 = vpop.f32.mrf.mxu3  ;;  %v4352_v43 = vadd.f32 %v4351_v20, %v8278_v59  ;;  %v4380_v9 = vpop.f32.mrf.mxu1  ;;  %v6767_v55 = vld [vmem:[%s7610_s29 + $0x274] sm:$0xf]  ;;  %v6042_v59 = vor.u32 %v6799_v52, %v6039_v6  ;;  %v5975_v6 = vld [vmem:[%s7610_s29 + $0x2f8] sm:$0xf0] }
 0x221   : > { %v5914_v5 = vor.u32 %v6767_v55, %v5911_v22  ;;  %4883 = vmatpush.bf16.msrb.mxu3 %v6106_v60  ;;  %v6783_v52 = vld [vmem:[%s7610_s29 + $0x2f4] sm:$0xf]  ;;  %v6797_v22 = vld [vmem:[%s7610_s29 + $0x364] sm:$0xf] }
 0x222   : > { %v8495_v24 = vadd.f32 %v4435_v14, %v4407_v42  ;;  %v4381_v4 = vadd.f32 %v4380_v9, %v4352_v43  ;;  %4582 = vmatmul.bf16.gmra.mxu0 %v8484_v62  ;;  %4854 = vmatpush.bf16.msrb.mxu2 %v6042_v59  ;;  %v5581_v9 = vld [vmem:[%s9055_s0 + $0x1b0] sm:$0xf]  ;;  %v5978_v59 = vor.u32 %v6783_v52, %v5975_v6  ;;  %v6813_v60 = vld [vmem:[%s7610_s29 + $0x3e4] sm:$0xf]  ;;  %v6680_v6 = vld [vmem:[%s9055_s0 + $0x1bc] sm:$0xf] }
 0x223   : > { %4611 = vmatmul.bf16.gmra.mxu1 %v8488_v63  ;;  %4796 = vmatpush.bf16.msrb.mxu0 %v5914_v5  ;;  %v5903_v5 = vld [vmem:[%s7610_s29 + $0x268] sm:$0xf0] }
 0x224   : > { %4640 = vmatmul.bf16.gmra.mxu2 %v8490_v12  ;;  %4825 = vmatpush.bf16.msrb.mxu1 %v5978_v59 }
 0x225   : > { %4669 = vmatmul.bf16.gmra.mxu3 %v8493_v58 }
 0x227   : > { %v4409_v42 = vpop.f32.mrf.mxu2  ;;  %v4353_v14 = vpop.f32.mrf.mxu0 }
 0x228   : > { %v4410_v30 = vadd.f32 %v4409_v42, %v4381_v4  ;;  %v4438_v23 = vpop.f32.mrf.mxu3  ;;  %v4354_v20 = vadd.f32 %v4353_v14, %v8320_v41  ;;  %v4382_v8 = vpop.f32.mrf.mxu1  ;;  %v6687_v4 = vld [vmem:[%s9055_s0 + $0x1ec] sm:$0xf0]  ;;  %v6679_v41 = vld [vmem:[%s9055_s0 + $0x1b4] sm:$0xf]  ;;  %v6034_v42 = vor.u32 %v6797_v22, %v6031_v7  ;;  %v5589_v14 = vld [vmem:[%s9055_s0 + $0x1b8] sm:$0xf] }
 0x229   : > { %v5591_v22 = vld [vmem:[%s9055_s0 + $0x1f8] sm:$0xf0]  ;;  %v8542_v58 = vor.u32 %v6687_v4, %v5581_v9  ;;  %v6781_v4 = vld [vmem:[%s7610_s29 + $0x2e4] sm:$0xf] }
 0x22a   : > { %v8508_v43 = vadd.f32 %v4438_v23, %v4410_v30  ;;  %v4383_v55 = vadd.f32 %v4382_v8, %v4354_v20  ;;  %v6095_v30 = vld [vmem:[%s7610_s29 + $0x3e8] sm:$0xf0]  ;;  %v5583_v23 = vld [vmem:[%s9055_s0 + $0x1f0] sm:$0xf0]  ;;  %v6688_v20 = vld [vmem:[%s9055_s0 + $0x1f4] sm:$0xf0]  ;;  %v5906_v8 = vor.u32 %v6765_v13, %v5903_v5  ;;  %4855 = vmatpush.bf16.msrb.mxu2 %v6034_v42  ;;  %v8549_v42 = vor.u32 %v6680_v6, %v5591_v22 }
 0x22b   : > { %v6098_v52 = vor.u32 %v6813_v60, %v6095_v30  ;;  %9125 = vst [vmem:[#allocation35_spill] sm:$0xff] %v8542_v58  ;;  %v8544_v5 = vor.u32 %v6679_v41, %v5583_v23  ;;  %v8546_v60 = vor.u32 %v6688_v20, %v5589_v14  ;;  %v6023_v23 = vld [vmem:[%s7610_s29 + $0x358] sm:$0xf0]  ;;  %v6763_v14 = vld [vmem:[%s7610_s29 + $0x254] sm:$0xf] }
 0x22c   : > { %4797 = vmatpush.bf16.msrb.mxu0 %v5906_v8  ;;  %9128 = vst [vmem:[#allocation38_spill] sm:$0xff] %v8549_v42  ;;  %v6087_v6 = vld [vmem:[%s7610_s29 + $0x3d8] sm:$0xf0] }
 0x22d   : > { %4884 = vmatpush.bf16.msrb.mxu3 %v6098_v52  ;;  %9126 = vst [vmem:[#allocation36_spill] sm:$0xff] %v8544_v5  ;;  %v6811_v52 = vld [vmem:[%s7610_s29 + $0x3d4] sm:$0xf] }
 0x22e   : > { %9127 = vst [vmem:[#allocation37_spill] sm:$0xff] %v8546_v60 }
 0x22f   : > { %v4411_v7 = vpop.f32.mrf.mxu2  ;;  %v4356_v13 = vpop.f32.mrf.mxu0 }
 0x230   : > { %v4412_v12 = vadd.f32 %v4411_v7, %v4383_v55  ;;  %v4440_v59 = vpop.f32.mrf.mxu3  ;;  %v4357_v30 = vadd.f32 %v4356_v13, %v8334_v10  ;;  %v4385_v63 = vpop.f32.mrf.mxu1  ;;  %v5967_v55 = vld [vmem:[%s7610_s29 + $0x2e8] sm:$0xf0]  ;;  %v6795_v10 = vld [vmem:[%s7610_s29 + $0x354] sm:$0xf]  ;;  %v6090_v7 = vor.u32 %v6811_v52, %v6087_v6  ;;  %v6793_v52 = vld [vmem:[%s7610_s29 + $0x344] sm:$0xf] }
 0x231   : > { %v5970_v41 = vor.u32 %v6781_v4, %v5967_v55  ;;  %v6026_v20 = vor.u32 %v6795_v10, %v6023_v23  ;;  %v6779_v10 = vld [vmem:[%s7610_s29 + $0x2d4] sm:$0xf]  ;;  %v5959_v23 = vld [vmem:[%s7610_s29 + $0x2d8] sm:$0xf0]  ;;  %v6015_v6 = vld [vmem:[%s7610_s29 + $0x348] sm:$0xf0] }
 0x232   : > { %v8551_v9 = vadd.f32 %v4440_v59, %v4412_v12  ;;  %v4386_v8 = vadd.f32 %v4385_v63, %v4357_v30  ;;  %4587 = vmatmul.bf16.gmra.mxu0 %v8542_v58  ;;  %v5895_v12 = vld [vmem:[%s7610_s29 + $0x258] sm:$0xf0]  ;;  %4885 = vmatpush.bf16.msrb.mxu3 %v6090_v7 }
 0x233   : > { %4616 = vmatmul.bf16.gmra.mxu1 %v8544_v5  ;;  %v5898_v22 = vor.u32 %v6763_v14, %v5895_v12  ;;  %4856 = vmatpush.bf16.msrb.mxu2 %v6026_v20  ;;  %v5962_v12 = vor.u32 %v6779_v10, %v5959_v23  ;;  %v6809_v20 = vld [vmem:[%s7610_s29 + $0x3c4] sm:$0xf]  ;;  %v6791_v23 = vld [vmem:[%s7610_s29 + $0x334] sm:$0xf]  ;;  %v6047_v5 = vld [vmem:[%s7610_s29 + $0x388] sm:$0xf0] }
 0x234   : > { %4645 = vmatmul.bf16.gmra.mxu2 %v8546_v60  ;;  %4826 = vmatpush.bf16.msrb.mxu1 %v5970_v41  ;;  %v6079_v60 = vld [vmem:[%s7610_s29 + $0x3c8] sm:$0xf0] }
 0x235   : > { %4674 = vmatmul.bf16.gmra.mxu3 %v8549_v42  ;;  %4798 = vmatpush.bf16.msrb.mxu0 %v5898_v22  ;;  %v5887_v42 = vld [vmem:[%s7610_s29 + $0x248] sm:$0xf0] }
 0x237   : > { %v4414_v63 = vpop.f32.mrf.mxu2  ;;  %v4358_v30 = vpop.f32.mrf.mxu0 }
 0x238   : > { %v4415_v59 = vadd.f32 %v4414_v63, %v4386_v8  ;;  %v4443_v13 = vpop.f32.mrf.mxu3  ;;  %v4359_v4 = vadd.f32 %v4358_v30, %v8377_v11  ;;  %v4387_v55 = vpop.f32.mrf.mxu1  ;;  %v6761_v8 = vld [vmem:[%s7610_s29 + $0x244] sm:$0xf]  ;;  %v6018_v63 = vor.u32 %v6793_v52, %v6015_v6  ;;  %4827 = vmatpush.bf16.msrb.mxu1 %v5962_v12  ;;  %v6082_v30 = vor.u32 %v6809_v20, %v6079_v60  ;;  %v5951_v60 = vld [vmem:[%s7610_s29 + $0x2c8] sm:$0xf0]  ;;  %v6759_v12 = vld [vmem:[%s7610_s29 + $0x234] sm:$0xf] }
 0x239   : > { %v5890_v11 = vor.u32 %v6761_v8, %v5887_v42  ;;  %v6777_v42 = vld [vmem:[%s7610_s29 + $0x2c4] sm:$0xf]  ;;  %v5879_v6 = vld [vmem:[%s7610_s29 + $0x238] sm:$0xf0]  ;;  %v6807_v8 = vld [vmem:[%s7610_s29 + $0x3b4] sm:$0xf] }
 0x23a   : > { %v8566_v41 = vadd.f32 %v4443_v13, %v4415_v59  ;;  %v4388_v14 = vadd.f32 %v4387_v55, %v4359_v4  ;;  %4857 = vmatpush.bf16.msrb.mxu2 %v6018_v63  ;;  %4886 = vmatpush.bf16.msrb.mxu3 %v6082_v30  ;;  %v5954_v10 = vor.u32 %v6777_v42, %v5951_v60  ;;  %v6775_v30 = vld [vmem:[%s7610_s29 + $0x2b4] sm:$0xf]  ;;  %v5999_v42 = vld [vmem:[%s7610_s29 + $0x328] sm:$0xf0]  ;;  %v6757_v60 = vld [vmem:[%s7610_s29 + $0x224] sm:$0xf] }
 0x23b   : > { %4799 = vmatpush.bf16.msrb.mxu0 %v5890_v11 }
 0x23c   : > { %4828 = vmatpush.bf16.msrb.mxu1 %v5954_v10 }
 0x23f   : > { %v4416_v22 = vpop.f32.mrf.mxu2  ;;  %v8576_v13 = vpop.f32.mrf.mxu0 }
 0x240   : > { %v4417_v7 = vadd.f32 %v4416_v22, %v4388_v14  ;;  %v4445_v59 = vpop.f32.mrf.mxu3  ;;  %v8578_v4 = vpop.f32.mrf.mxu1  ;;  %v6007_v14 = vld [vmem:[%s7610_s29 + $0x338] sm:$0xf0] }
 0x241   : > { %v6010_v52 = vor.u32 %v6791_v23, %v6007_v14  ;;  %v5943_v22 = vld [vmem:[%s7610_s29 + $0x2b8] sm:$0xf0]  ;;  %v5871_v23 = vld [vmem:[%s7610_s29 + $0x228] sm:$0xf0]  ;;  %v6805_v14 = vld [vmem:[%s7610_s29 + $0x3a4] sm:$0xf] }
 0x242   : > { %v8580_v55 = vadd.f32 %v4445_v59, %v4417_v7  ;;  %4688 = vmatmul.bf16.vlgmr.msra.gmra.mxu0 %v7707_v48  ;;  %v6071_v48 = vld [vmem:[%s7610_s29 + $0x3b8] sm:$0xf0]  ;;  %v5946_v7 = vor.u32 %v6775_v30, %v5943_v22  ;;  %v6789_v59 = vld [vmem:[%s7610_s29 + $0x324] sm:$0xf]  ;;  %v5935_v22 = vld [vmem:[%s7610_s29 + $0x2a8] sm:$0xf0] }
 0x243   : > { %4717 = vmatmul.bf16.vlgmr.msra.gmra.mxu1 %v7712_v53  ;;  %v5882_v53 = vor.u32 %v6759_v12, %v5879_v6  ;;  %4858 = vmatpush.bf16.msrb.mxu2 %v6010_v52  ;;  %v6002_v10 = vor.u32 %v6789_v59, %v5999_v42  ;;  %v6063_v12 = vld [vmem:[%s7610_s29 + $0x3a8] sm:$0xf0]  ;;  %v5874_v6 = vor.u32 %v6757_v60, %v5871_v23  ;;  %v6773_v30 = vld [vmem:[%s7610_s29 + $0x2a4] sm:$0xf]  ;;  %v6787_v59 = vld [vmem:[%s7610_s29 + $0x314] sm:$0xf] }
 0x244   : > { %4746 = vmatmul.bf16.vlgmr.msra.gmra.mxu2 %v7714_v54  ;;  %v6074_v54 = vor.u32 %v6807_v8, %v6071_v48  ;;  %4829 = vmatpush.bf16.msrb.mxu1 %v5946_v7  ;;  %v6066_v8 = vor.u32 %v6805_v14, %v6063_v12  ;;  %v5938_v7 = vor.u32 %v6773_v30, %v5935_v22  ;;  %v5991_v42 = vld [vmem:[%s7610_s29 + $0x318] sm:$0xf0]  ;;  %v6755_v60 = vld [vmem:[%s7610_s29 + $0x214] sm:$0xf] }
 0x245   : > { %4775 = vmatmul.bf16.vlgmr.msra.gmra.mxu3 %v7718_v57  ;;  %4800 = vmatpush.bf16.msrb.mxu0 %v5882_v53  ;;  %v5863_v23 = vld [vmem:[%s7610_s29 + $0x218] sm:$0xf0]  ;;  %v6803_v14 = vld [vmem:[%s7610_s29 + $0x394] sm:$0xf] }
 0x246   : > { %4887 = vmatpush.bf16.msrb.mxu3 %v6074_v54  ;;  %v6771_v30 = vld [vmem:[%s7610_s29 + $0x294] sm:$0xf]  ;;  %v5927_v22 = vld [vmem:[%s7610_s29 + $0x298] sm:$0xf0] }
 0x247   : > { %v8594_v63 = vpop.f32.mrf.mxu2  ;;  %v8598_v20 = vpop.f32.mrf.mxu0  ;;  %4859 = vmatpush.bf16.msrb.mxu2 %v6002_v10  ;;  %v5994_v10 = vor.u32 %v6787_v59, %v5991_v42  ;;  %v6785_v59 = vld [vmem:[%s7610_s29 + $0x304] sm:$0xf]  ;;  %v5983_v42 = vld [vmem:[%s7610_s29 + $0x308] sm:$0xf0] }
 0x248   : > { %v8596_v57 = vpop.f32.mrf.mxu3  ;;  %v8600_v11 = vpop.f32.mrf.mxu1  ;;  %4830 = vmatpush.bf16.msrb.mxu1 %v5938_v7  ;;  %v5930_v7 = vor.u32 %v6771_v30, %v5927_v22 }
 0x249   : > { %4801 = vmatpush.bf16.msrb.mxu0 %v5874_v6 }
 0x24a   : > { %4888 = vmatpush.bf16.msrb.mxu3 %v6066_v8 }
 0x24b   : > { %4860 = vmatpush.bf16.msrb.mxu2 %v5994_v10 }
 0x24c   : > { %4831 = vmatpush.bf16.msrb.mxu1 %v5930_v7 }
 0x24f   : > { %v8610_v52 = vpop.f32.mrf.mxu2  ;;  %v8614_v53 = vpop.f32.mrf.mxu0 }
 0x250   : > { %v8612_v48 = vpop.f32.mrf.mxu3  ;;  %v8616_v54 = vpop.f32.mrf.mxu1 }
 0x252   : > { %4693 = vmatmul.bf16.gmra.mxu0 %v7775_v44  ;;  %v6055_v44 = vld [vmem:[%s7610_s29 + $0x398] sm:$0xf0] }
 0x253   : > { %4722 = vmatmul.bf16.gmra.mxu1 %v7780_v50  ;;  %v5866_v50 = vor.u32 %v6755_v60, %v5863_v23  ;;  %v6753_v60 = vld [vmem:[%s7610_s29 + $0x204] sm:$0xf]  ;;  %v5986_v23 = vor.u32 %v6785_v59, %v5983_v42 }
 0x254   : > { %4751 = vmatmul.bf16.gmra.mxu2 %v7782_v51  ;;  %v6058_v51 = vor.u32 %v6803_v14, %v6055_v44  ;;  %v5855_v14 = vld [vmem:[%s7610_s29 + $0x208] sm:$0xf0]  ;;  %v6801_v44 = vld [vmem:[%s7610_s29 + $0x384] sm:$0xf] }
 0x255   : > { %4780 = vmatmul.bf16.gmra.mxu3 %v7786_v56  ;;  %4802 = vmatpush.bf16.msrb.mxu0 %v5866_v50  ;;  %v5858_v58 = vor.u32 %v6753_v60, %v5855_v14  ;;  %v6050_v62 = vor.u32 %v6801_v44, %v6047_v5  ;;  %v6769_v50 = vld [vmem:[%s7610_s29 + $0x284] sm:$0xf]  ;;  %v6831_v5 = vld [vmem:[%s7610_s29 + $0x474] sm:$0xf]  ;;  %v6167_v60 = vld [vmem:[%s7610_s29 + $0x478] sm:$0xf0] }
 0x256   : > { %4889 = vmatpush.bf16.msrb.mxu3 %v6058_v51  ;;  %4861 = vmatpush.bf16.msrb.mxu2 %v5986_v23  ;;  %v5919_v51 = vld [vmem:[%s7610_s29 + $0x288] sm:$0xf0]  ;;  %v6879_v23 = vld [vmem:[%s7610_s29 + $0x5f4] sm:$0xf]  ;;  %v6359_v14 = vld [vmem:[%s7610_s29 + $0x5f8] sm:$0xf0] }
 0x257   : > { %v8630_v12 = vpop.f32.mrf.mxu2  ;;  %v8634_v6 = vpop.f32.mrf.mxu0  ;;  %v5922_v7 = vor.u32 %v6769_v50, %v5919_v51  ;;  %v6847_v51 = vld [vmem:[%s7610_s29 + $0x4f4] sm:$0xf] }
 0x258   : > { %v8632_v56 = vpop.f32.mrf.mxu3  ;;  %v8636_v8 = vpop.f32.mrf.mxu1 }
 0x259   : > { %4803 = vmatpush.bf16.msrb.mxu0 %v5858_v58  ;;  %4832 = vmatpush.bf16.msrb.mxu1 %v5922_v7  ;;  %v6295_v58 = vld [vmem:[%s7610_s29 + $0x578] sm:$0xf0] }
 0x25a   : > { %4890 = vmatpush.bf16.msrb.mxu3 %v6050_v62  ;;  %v6863_v62 = vld [vmem:[%s7610_s29 + $0x574] sm:$0xf]  ;;  %v6231_v7 = vld [vmem:[%s7610_s29 + $0x4f8] sm:$0xf0] }
 0x25b   : > { %v6298_v42 = vor.u32 %v6863_v62, %v6295_v58  ;;  %v6861_v62 = vld [vmem:[%s7610_s29 + $0x564] sm:$0xf]  ;;  %v6234_v40 = vor.u32 %v6847_v51, %v6231_v7  ;;  %v6223_v7 = vld [vmem:[%s7610_s29 + $0x4e8] sm:$0xf0] }
 0x25d   : > { %4970 = vmatpush.bf16.msra.mxu2 %v6298_v42  ;;  %v6290_v42 = vor.u32 %v6861_v62, %v6287_v31  ;;  %4941 = vmatpush.bf16.msra.mxu1 %v6234_v40  ;;  %v4458_v31 = vadd.f32 %v8576_v13, %v8392_v21  ;;  %v6845_v40 = vld [vmem:[%s7610_s29 + $0x4e4] sm:$0xf]  ;;  %v6859_v62 = vld [vmem:[%s7610_s29 + $0x554] sm:$0xf]  ;;  %v6343_v21 = vld [vmem:[%s7610_s29 + $0x5d8] sm:$0xf0] }
 0x25f   : > { %v8646_v10 = vpop.f32.mrf.mxu2  ;;  %v8652_v22 = vpop.f32.mrf.mxu0 }
 0x260   : > { %v8650_v30 = vpop.f32.mrf.mxu3  ;;  %v8654_v59 = vpop.f32.mrf.mxu1 }
 0x261   : > { %4971 = vmatpush.bf16.msra.mxu2 %v6290_v42  ;;  %v6151_v42 = vld [vmem:[%s7610_s29 + $0x458] sm:$0xf0] }
 0x262   : > { %4698 = vmatmul.bf16.gmra.mxu0 %v7836_v36  ;;  %v6170_v36 = vor.u32 %v6831_v5, %v6167_v60  ;;  %v6829_v5 = vld [vmem:[%s7610_s29 + $0x464] sm:$0xf]  ;;  %v6159_v60 = vld [vmem:[%s7610_s29 + $0x468] sm:$0xf0] }
 0x263   : > { %4727 = vmatmul.bf16.gmra.mxu1 %v7838_v37  ;;  %v6362_v37 = vor.u32 %v6879_v23, %v6359_v14  ;;  %v6162_v29 = vor.u32 %v6829_v5, %v6159_v60  ;;  %v6279_v60 = vld [vmem:[%s7610_s29 + $0x558] sm:$0xf0] }
 0x264   : > { %4756 = vmatmul.bf16.gmra.mxu2 %v7840_v38  ;;  %4912 = vmatpush.bf16.msra.mxu0 %v6170_v36  ;;  %v6877_v36 = vld [vmem:[%s7610_s29 + $0x5e4] sm:$0xf] }
 0x265   : > { %4785 = vmatmul.bf16.gmra.mxu3 %v7842_v39 }
 0x266   : > { %4999 = vmatpush.bf16.msra.mxu3 %v6362_v37  ;;  %v6351_v37 = vld [vmem:[%s7610_s29 + $0x5e8] sm:$0xf0] }
 0x267   : > { %v8666_v44 = vpop.f32.mrf.mxu2  ;;  %v8670_v39 = vpop.f32.mrf.mxu0  ;;  %v6354_v51 = vor.u32 %v6877_v36, %v6351_v37  ;;  %v6875_v37 = vld [vmem:[%s7610_s29 + $0x5d4] sm:$0xf] }
 0x268   : > { %v8668_v38 = vpop.f32.mrf.mxu3  ;;  %v8672_v50 = vpop.f32.mrf.mxu1  ;;  %4913 = vmatpush.bf16.msra.mxu0 %v6162_v29  ;;  %v6226_v29 = vor.u32 %v6845_v40, %v6223_v7  ;;  %v4487_v40 = vadd.f32 %v8578_v4, %v4458_v31 }
 0x26a   : > { %5000 = vmatpush.bf16.msra.mxu3 %v6354_v51  ;;  %4942 = vmatpush.bf16.msra.mxu1 %v6226_v29  ;;  %v6346_v51 = vor.u32 %v6875_v37, %v6343_v21  ;;  %v4516_v7 = vadd.f32 %v8594_v63, %v4487_v40  ;;  %v6271_v29 = vld [vmem:[%s7610_s29 + $0x548] sm:$0xf0]  ;;  %v6825_v37 = vld [vmem:[%s7610_s29 + $0x444] sm:$0xf] }
 0x26b   : > { %v6143_v21 = vld [vmem:[%s7610_s29 + $0x448] sm:$0xf0] }
 0x26c   : > { %v4545_v4 = vadd.f32 %v8596_v57, %v4516_v7  ;;  %v6146_v63 = vor.u32 %v6825_v37, %v6143_v21  ;;  %v6335_v40 = vld [vmem:[%s7610_s29 + $0x5c8] sm:$0xf0]  ;;  %v6841_v7 = vld [vmem:[%s7610_s29 + $0x4c4] sm:$0xf]  ;;  %v6263_v37 = vld [vmem:[%s7610_s29 + $0x538] sm:$0xf0] }
 0x26d   : > { %v6135_v21 = vld [vmem:[%s7610_s29 + $0x438] sm:$0xf0] }
 0x26e   : > { %5001 = vmatpush.bf16.msra.mxu3 %v6346_v51  ;;  %v6873_v51 = vld [vmem:[%s7610_s29 + $0x5c4] sm:$0xf] }
 0x26f   : > { %v8677_v58 = vpop.f32.mrf.mxu2  ;;  %v8684_v14 = vpop.f32.mrf.mxu0 }
 0x270   : > { %v8682_v23 = vpop.f32.mrf.mxu3  ;;  %v8688_v28 = vpop.f32.mrf.mxu1 }
 0x272   : > { %4703 = vmatmul.bf16.gmra.mxu0 %v7888_v16  ;;  %v6827_v16 = vld [vmem:[%s7610_s29 + $0x454] sm:$0xf] }
 0x273   : > { %4732 = vmatmul.bf16.gmra.mxu1 %v7890_v17  ;;  %v6154_v36 = vor.u32 %v6827_v16, %v6151_v42  ;;  %v6215_v16 = vld [vmem:[%s7610_s29 + $0x4d8] sm:$0xf0]  ;;  %v6857_v42 = vld [vmem:[%s7610_s29 + $0x544] sm:$0xf] }
 0x274   : > { %4761 = vmatmul.bf16.gmra.mxu2 %v7892_v18 }
 0x275   : > { %4790 = vmatmul.bf16.gmra.mxu3 %v7894_v19  ;;  %v6282_v19 = vor.u32 %v6859_v62, %v6279_v60  ;;  %4914 = vmatpush.bf16.msra.mxu0 %v6154_v36  ;;  %v4460_v62 = vadd.f32 %v8598_v20, %v8435_v61  ;;  %v6843_v60 = vld [vmem:[%s7610_s29 + $0x4d4] sm:$0xf]  ;;  %v6274_v36 = vor.u32 %v6857_v42, %v6271_v29 }
 0x276   : > { %v6218_v26 = vor.u32 %v6843_v60, %v6215_v16  ;;  %v6338_v20 = vor.u32 %v6873_v51, %v6335_v40  ;;  %v6855_v42 = vld [vmem:[%s7610_s29 + $0x534] sm:$0xf] }
 0x277   : > { %v8699_v5 = vpop.f32.mrf.mxu2  ;;  %v8706_v18 = vpop.f32.mrf.mxu0  ;;  %4972 = vmatpush.bf16.msra.mxu2 %v6282_v19  ;;  %v4489_v60 = vadd.f32 %v8600_v11, %v4460_v62  ;;  %v6207_v62 = vld [vmem:[%s7610_s29 + $0x4c8] sm:$0xf0] }
 0x278   : > { %v8704_v17 = vpop.f32.mrf.mxu3  ;;  %v8710_v13 = vpop.f32.mrf.mxu1  ;;  %4943 = vmatpush.bf16.msra.mxu1 %v6218_v26  ;;  %5002 = vmatpush.bf16.msra.mxu3 %v6338_v20  ;;  %v4463_v26 = vadd.f32 %v8614_v53, %v8450_v15  ;;  %v6210_v29 = vor.u32 %v6841_v7, %v6207_v62  ;;  %v6871_v53 = vld [vmem:[%s7610_s29 + $0x5b4] sm:$0xf] }
 0x279   : > { %4915 = vmatpush.bf16.msra.mxu0 %v6146_v63  ;;  %v4518_v57 = vadd.f32 %v8610_v52, %v4489_v60  ;;  %v6823_v52 = vld [vmem:[%s7610_s29 + $0x434] sm:$0xf] }
 0x27a   : > { %v6138_v15 = vor.u32 %v6823_v52, %v6135_v21  ;;  %v4492_v40 = vadd.f32 %v8616_v54, %v4463_v26  ;;  %v6199_v26 = vld [vmem:[%s7610_s29 + $0x4b8] sm:$0xf0] }
 0x27b   : > { %4973 = vmatpush.bf16.msra.mxu2 %v6274_v36  ;;  %v6327_v36 = vld [vmem:[%s7610_s29 + $0x5b8] sm:$0xf0] }
 0x27c   : > { %4944 = vmatpush.bf16.msra.mxu1 %v6210_v29  ;;  %v6330_v51 = vor.u32 %v6871_v53, %v6327_v36  ;;  %v4521_v20 = vadd.f32 %v8630_v12, %v4492_v40  ;;  %v6127_v29 = vld [vmem:[%s7610_s29 + $0x428] sm:$0xf0] }
 0x27d   : > { %4916 = vmatpush.bf16.msra.mxu0 %v6138_v15 }
 0x27e   : > { %5003 = vmatpush.bf16.msra.mxu3 %v6330_v51  ;;  %v4550_v12 = vadd.f32 %v8632_v56, %v4521_v20  ;;  %v6191_v51 = vld [vmem:[%s7610_s29 + $0x4a8] sm:$0xf0]  ;;  %v6819_v20 = vld [vmem:[%s7610_s29 + $0x414] sm:$0xf] }
 0x27f   : > { %v8719_v27 = vpop.f32.mrf.mxu2  ;;  %v4573_v19 = vpop.f32.mrf.mxu0 }
 0x280   : > { %v8725_v31 = vpop.f32.mrf.mxu3  ;;  %v4602_v61 = vpop.f32.mrf.mxu1  ;;  %v4574_v16 = vadd.f32 %v4573_v19, %v4545_v4  ;;  %v6266_v19 = vor.u32 %v6855_v42, %v6263_v37  ;;  %v6255_v42 = vld [vmem:[%s7610_s29 + $0x528] sm:$0xf0] }
 0x282   : > { %4804 = vmatmul.bf16.vlgmr.msrb.gmra.mxu0 %v7940_v0  ;;  %v4603_v11 = vadd.f32 %v4602_v61, %v4574_v16  ;;  %4974 = vmatpush.bf16.msra.mxu2 %v6266_v19  ;;  %v4465_v16 = vadd.f32 %v8634_v6, %v8495_v24 }
 0x283   : > { %4833 = vmatmul.bf16.vlgmr.msrb.gmra.mxu1 %v7942_v1  ;;  %v4547_v1 = vadd.f32 %v8612_v48, %v4518_v57  ;;  %v6839_v57 = vld [vmem:[%s7610_s29 + $0x4b4] sm:$0xf] }
 0x284   : > { %4862 = vmatmul.bf16.vlgmr.msrb.gmra.mxu2 %v7944_v2  ;;  %v6202_v62 = vor.u32 %v6839_v57, %v6199_v26  ;;  %v4494_v19 = vadd.f32 %v8636_v8, %v4465_v16  ;;  %v4468_v8 = vadd.f32 %v8652_v22, %v8508_v43  ;;  %v6119_v43 = vld [vmem:[%s7610_s29 + $0x418] sm:$0xf0]  ;;  %v6867_v22 = vld [vmem:[%s7610_s29 + $0x594] sm:$0xf] }
 0x285   : > { %4891 = vmatmul.bf16.vlgmr.msrb.gmra.mxu3 %v7946_v3  ;;  %v6122_v26 = vor.u32 %v6819_v20, %v6119_v43  ;;  %v6551_v20 = vld [vmem:[%s7610_s29 + $0x778] sm:$0xf0] }
 0x286   : > { %4945 = vmatpush.bf16.msra.mxu1 %v6202_v62  ;;  %v4523_v56 = vadd.f32 %v8646_v10, %v4494_v19  ;;  %v6851_v10 = vld [vmem:[%s7610_s29 + $0x514] sm:$0xf] }
 0x287   : > { %v4631_v0 = vpop.f32.mrf.mxu2  ;;  %v4575_v3 = vpop.f32.mrf.mxu0 }
 0x288   : > { %v4632_v4 = vadd.f32 %v4631_v0, %v4603_v11  ;;  %v4660_v2 = vpop.f32.mrf.mxu3  ;;  %v4604_v63 = vpop.f32.mrf.mxu1  ;;  %v4576_v48 = vadd.f32 %v4575_v3, %v4547_v1  ;;  %v6853_v11 = vld [vmem:[%s7610_s29 + $0x524] sm:$0xf] }
 0x289   : > { %v6821_v0 = vld [vmem:[%s7610_s29 + $0x424] sm:$0xf]  ;;  %v6258_v6 = vor.u32 %v6853_v11, %v6255_v42  ;;  %v6835_v42 = vld [vmem:[%s7610_s29 + $0x494] sm:$0xf] }
 0x28a   : > { %v4661_v61 = vadd.f32 %v4660_v2, %v4632_v4  ;;  %v4605_v54 = vadd.f32 %v4604_v63, %v4576_v48  ;;  %v6130_v21 = vor.u32 %v6821_v0, %v6127_v29  ;;  %v6869_v1 = vld [vmem:[%s7610_s29 + $0x5a4] sm:$0xf]  ;;  %v6319_v4 = vld [vmem:[%s7610_s29 + $0x5a8] sm:$0xf0]  ;;  %v6247_v48 = vld [vmem:[%s7610_s29 + $0x518] sm:$0xf0] }
 0x28b   : > { %v6322_v3 = vor.u32 %v6869_v1, %v6319_v4  ;;  %4975 = vmatpush.bf16.msra.mxu2 %v6258_v6  ;;  %v6250_v16 = vor.u32 %v6851_v10, %v6247_v48  ;;  %v6183_v0 = vld [vmem:[%s7610_s29 + $0x498] sm:$0xf0]  ;;  %v6239_v6 = vld [vmem:[%s7610_s29 + $0x508] sm:$0xf0]  ;;  %v6817_v4 = vld [vmem:[%s7610_s29 + $0x404] sm:$0xf] }
 0x28c   : > { %v5144_v60 = vmax.f32 %v4661_v61, 0.0  ;;  %4917 = vmatpush.bf16.msra.mxu0 %v6130_v21 }
 0x28d   : > { %5004 = vmatpush.bf16.msra.mxu3 %v6322_v3  ;;  %v6865_v3 = vld [vmem:[%s7610_s29 + $0x584] sm:$0xf] }
 0x28e   : > { %5160 = vst [vmem:[%s8752_s9] sm:$0xff] %v5144_v60 }
 0x28f   : > { %v4633_v7 = vpop.f32.mrf.mxu2  ;;  %v4578_v24 = vpop.f32.mrf.mxu0  ;;  %4976 = vmatpush.bf16.msra.mxu2 %v6250_v16 }
 0x290   : > { %v4634_v37 = vadd.f32 %v4633_v7, %v4605_v54  ;;  %v4662_v52 = vpop.f32.mrf.mxu3  ;;  %v4607_v2 = vpop.f32.mrf.mxu1  ;;  %v4579_v53 = vadd.f32 %v4578_v24, %v4550_v12  ;;  %v6311_v54 = vld [vmem:[%s7610_s29 + $0x598] sm:$0xf0]  ;;  %v4497_v7 = vadd.f32 %v8654_v59, %v4468_v8  ;;  %4918 = vmatpush.bf16.msra.mxu0 %v6122_v26  ;;  %v6849_v24 = vld [vmem:[%s7610_s29 + $0x504] sm:$0xf] }
 0x291   : > { %v6314_v11 = vor.u32 %v6867_v22, %v6311_v54  ;;  %v6242_v1 = vor.u32 %v6849_v24, %v6239_v6  ;;  %v4475_v6 = vadd.f32 %v8706_v18, %v8580_v55 }
 0x292   : > { %v4663_v15 = vadd.f32 %v4662_v52, %v4634_v37  ;;  %4809 = vmatmul.bf16.gmra.mxu0 %v7992_v45  ;;  %v4608_v63 = vadd.f32 %v4607_v2, %v4579_v53  ;;  %v6837_v45 = vld [vmem:[%s7610_s29 + $0x4a4] sm:$0xf]  ;;  %v4526_v29 = vadd.f32 %v8666_v44, %v4497_v7  ;;  %v6186_v37 = vor.u32 %v6835_v42, %v6183_v0  ;;  %v6111_v2 = vld [vmem:[%s7610_s29 + $0x408] sm:$0xf0] }
 0x293   : > { %4838 = vmatmul.bf16.gmra.mxu1 %v7994_v46  ;;  %v6194_v61 = vor.u32 %v6837_v45, %v6191_v51  ;;  %v4552_v46 = vadd.f32 %v8650_v30, %v4523_v56  ;;  %5005 = vmatpush.bf16.msra.mxu3 %v6314_v11  ;;  %v4470_v52 = vadd.f32 %v8670_v39, %v8551_v9  ;;  %v6303_v9 = vld [vmem:[%s7610_s29 + $0x588] sm:$0xf0]  ;;  %v6833_v39 = vld [vmem:[%s7610_s29 + $0x484] sm:$0xf]  ;;  %v6911_v11 = vld [vmem:[%s7610_s29 + $0x6f4] sm:$0xf] }
 0x294   : > { %v5146_v36 = vmax.f32 %v4663_v15, 0.0  ;;  %4867 = vmatmul.bf16.gmra.mxu2 %v7996_v47  ;;  %v4555_v44 = vadd.f32 %v8668_v38, %v4526_v29  ;;  %v6114_v56 = vor.u32 %v6817_v4, %v6111_v2  ;;  %v6925_v7 = vld [vmem:[%s7610_s29 + $0x764] sm:$0xf]  ;;  %v6415_v0 = vld [vmem:[%s7610_s29 + $0x668] sm:$0xf0] }
 0x295   : > { %4896 = vmatmul.bf16.gmra.mxu3 %v7998_v49  ;;  %4946 = vmatpush.bf16.msra.mxu1 %v6194_v61  ;;  %v4499_v51 = vadd.f32 %v8672_v50, %v4470_v52  ;;  %v4473_v50 = vadd.f32 %v8684_v14, %v8566_v41  ;;  %v6615_v14 = vld [vmem:[%s7610_s29 + $0x7f8] sm:$0xf0]  ;;  %v6893_v42 = vld [vmem:[%s7610_s29 + $0x664] sm:$0xf] }
 0x296   : > { %5162 = vst [vmem:[%s8752_s9 + $0x10] sm:$0xff] %v5146_v36  ;;  %v6175_v36 = vld [vmem:[%s7610_s29 + $0x488] sm:$0xf0]  ;;  %4977 = vmatpush.bf16.msra.mxu2 %v6242_v1  ;;  %4919 = vmatpush.bf16.msra.mxu0 %v6114_v56  ;;  %v6418_v52 = vor.u32 %v6893_v42, %v6415_v0 }
 0x297   : > { %v4636_v40 = vpop.f32.mrf.mxu2  ;;  %v4580_v49 = vpop.f32.mrf.mxu0  ;;  %v6178_v45 = vor.u32 %v6833_v39, %v6175_v36  ;;  %v4528_v38 = vadd.f32 %v8677_v58, %v4499_v51  ;;  %v6423_v58 = vld [vmem:[%s7610_s29 + $0x678] sm:$0xf0]  ;;  %v4502_v54 = vadd.f32 %v8688_v28, %v4473_v50  ;;  %v6941_v28 = vld [vmem:[%s7610_s29 + $0x7e4] sm:$0xf]  ;;  %v9130_v36 = vld [vmem:[#allocation5_spill] sm:$0xff] }
 0x298   : > { %v4637_v47 = vadd.f32 %v4636_v40, %v4608_v63  ;;  %v4665_v60 = vpop.f32.mrf.mxu3  ;;  %v4609_v57 = vpop.f32.mrf.mxu1  ;;  %v4581_v30 = vadd.f32 %v4580_v49, %v4552_v46  ;;  %v6306_v63 = vor.u32 %v6865_v3, %v6303_v9  ;;  %v9129_v39 = vld [vmem:[#allocation4_spill] sm:$0xff] }
 0x299   : > { %4947 = vmatpush.bf16.msra.mxu1 %v6186_v37  ;;  %v4531_v29 = vadd.f32 %v8699_v5, %v4502_v54  ;;  %v6937_v54 = vld [vmem:[%s7610_s29 + $0x7c4] sm:$0xf] }
 0x29a   : > { %v4666_v62 = vadd.f32 %v4665_v60, %v4637_v47  ;;  %v4610_v59 = vadd.f32 %v4609_v57, %v4581_v30  ;;  %5006 = vmatpush.bf16.msra.mxu3 %v6306_v63  ;;  %v6895_v60 = vld [vmem:[%s7610_s29 + $0x674] sm:$0xf]  ;;  %v6543_v30 = vld [vmem:[%s7610_s29 + $0x768] sm:$0xf0]  ;;  %v6535_v63 = vld [vmem:[%s7610_s29 + $0x758] sm:$0xf0] }
 0x29b   : > { %v6426_v41 = vor.u32 %v6895_v60, %v6423_v58  ;;  %v6546_v37 = vor.u32 %v6925_v7, %v6543_v30  ;;  %v4560_v5 = vadd.f32 %v8704_v17, %v4531_v29 }
 0x29c   : > { %v5148_v12 = vmax.f32 %v4666_v62, 0.0 }
 0x29d   : > { %4948 = vmatpush.bf16.msra.mxu1 %v6178_v45  ;;  %5028 = vmatpush.bf16.msrb.mxu0 %v6426_v41  ;;  %v6891_v45 = vld [vmem:[%s7610_s29 + $0x654] sm:$0xf]  ;;  %v6399_v41 = vld [vmem:[%s7610_s29 + $0x648] sm:$0xf0] }
 0x29e   : > { %5164 = vst [vmem:[%s8752_s9 + $0x20] sm:$0xff] %v5148_v12 }
 0x29f   : > { %v4638_v21 = vpop.f32.mrf.mxu2  ;;  %v4583_v53 = vpop.f32.mrf.mxu0 }
 0x2a0   : > { %v4639_v19 = vadd.f32 %v4638_v21, %v4610_v59  ;;  %v4667_v15 = vpop.f32.mrf.mxu3  ;;  %v4612_v8 = vpop.f32.mrf.mxu1  ;;  %v4584_v61 = vadd.f32 %v4583_v53, %v4555_v44  ;;  %v6607_v59 = vld [vmem:[%s7610_s29 + $0x7e8] sm:$0xf0] }
 0x2a1   : > { %v6610_v24 = vor.u32 %v6941_v28, %v6607_v59  ;;  %5029 = vmatpush.bf16.msrb.mxu0 %v6418_v52  ;;  %v6479_v53 = vld [vmem:[%s7610_s29 + $0x6e8] sm:$0xf0]  ;;  %v9132_v52 = vld [vmem:[#allocation7_spill] sm:$0xff] }
 0x2a2   : > { %v4668_v40 = vadd.f32 %v4667_v15, %v4639_v19  ;;  %4814 = vmatmul.bf16.gmra.mxu0 %v8044_v32  ;;  %v4613_v48 = vadd.f32 %v4612_v8, %v4584_v61  ;;  %v6927_v32 = vld [vmem:[%s7610_s29 + $0x774] sm:$0xf]  ;;  %v4504_v19 = vadd.f32 %v8710_v13, %v4475_v6  ;;  %v6909_v15 = vld [vmem:[%s7610_s29 + $0x6e4] sm:$0xf]  ;;  %v6407_v61 = vld [vmem:[%s7610_s29 + $0x658] sm:$0xf0] }
 0x2a3   : > { %4843 = vmatmul.bf16.gmra.mxu1 %v8046_v33  ;;  %v6554_v47 = vor.u32 %v6927_v32, %v6551_v20  ;;  %v6943_v33 = vld [vmem:[%s7610_s29 + $0x7f4] sm:$0xf]  ;;  %v6482_v56 = vor.u32 %v6909_v15, %v6479_v53  ;;  %v9134_v6 = vld [vmem:[#allocation9_spill] sm:$0xff] }
 0x2a4   : > { %v5150_v10 = vmax.f32 %v4668_v40, 0.0  ;;  %4872 = vmatmul.bf16.gmra.mxu2 %v8048_v34  ;;  %v4557_v34 = vadd.f32 %v8682_v23, %v4528_v38  ;;  %v6618_v22 = vor.u32 %v6943_v33, %v6615_v14  ;;  %v6487_v23 = vld [vmem:[%s7610_s29 + $0x6f8] sm:$0xf0]  ;;  %v4533_v17 = vadd.f32 %v8719_v27, %v4504_v19  ;;  %v9131_v8 = vld [vmem:[#allocation6_spill] sm:$0xff] }
 0x2a5   : > { %4901 = vmatmul.bf16.gmra.mxu3 %v8050_v35  ;;  %5086 = vmatpush.bf16.msrb.mxu2 %v6554_v47  ;;  %v6490_v62 = vor.u32 %v6911_v11, %v6487_v23  ;;  %v6923_v13 = vld [vmem:[%s7610_s29 + $0x754] sm:$0xf]  ;;  %v6410_v38 = vor.u32 %v6891_v45, %v6407_v61  ;;  %v6383_v61 = vld [vmem:[%s7610_s29 + $0x628] sm:$0xf0] }
 0x2a6   : > { %5166 = vst [vmem:[%s8752_s9 + $0x30] sm:$0xff] %v5150_v10  ;;  %5115 = vmatpush.bf16.msrb.mxu3 %v6618_v22  ;;  %v6538_v40 = vor.u32 %v6923_v13, %v6535_v63  ;;  %v6599_v10 = vld [vmem:[%s7610_s29 + $0x7d8] sm:$0xf0]  ;;  %v4562_v50 = vadd.f32 %v8725_v31, %v4533_v17  ;;  %v6907_v33 = vld [vmem:[%s7610_s29 + $0x6d4] sm:$0xf] }
 0x2a7   : > { %v4641_v46 = vpop.f32.mrf.mxu2  ;;  %v4585_v16 = vpop.f32.mrf.mxu0  ;;  %5057 = vmatpush.bf16.msrb.mxu1 %v6490_v62  ;;  %5030 = vmatpush.bf16.msrb.mxu0 %v6410_v38  ;;  %v6527_v31 = vld [vmem:[%s7610_s29 + $0x748] sm:$0xf0]  ;;  %v6455_v13 = vld [vmem:[%s7610_s29 + $0x6b8] sm:$0xf0]  ;;  %v6917_v63 = vld [vmem:[%s7610_s29 + $0x724] sm:$0xf] }
 0x2a8   : > { %v4642_v35 = vadd.f32 %v4641_v46, %v4613_v48  ;;  %v4670_v49 = vpop.f32.mrf.mxu3  ;;  %v4614_v43 = vpop.f32.mrf.mxu1  ;;  %v4586_v26 = vadd.f32 %v4585_v16, %v4557_v34  ;;  %v6471_v34 = vld [vmem:[%s7610_s29 + $0x6d8] sm:$0xf0]  ;;  %v6889_v16 = vld [vmem:[%s7610_s29 + $0x644] sm:$0xf] }
 0x2a9   : > { %5087 = vmatpush.bf16.msrb.mxu2 %v6546_v37  ;;  %v6402_v22 = vor.u32 %v6889_v16, %v6399_v41  ;;  %v6463_v37 = vld [vmem:[%s7610_s29 + $0x6c8] sm:$0xf0]  ;;  %v6933_v38 = vld [vmem:[%s7610_s29 + $0x7a4] sm:$0xf]  ;;  %v9139_v41 = vld [vmem:[#allocation14_spill] sm:$0xff] }
 0x2aa   : > { %v4671_v57 = vadd.f32 %v4670_v49, %v4642_v35  ;;  %v4615_v21 = vadd.f32 %v4614_v43, %v4586_v26  ;;  %5116 = vmatpush.bf16.msrb.mxu3 %v6610_v24  ;;  %v6921_v35 = vld [vmem:[%s7610_s29 + $0x744] sm:$0xf]  ;;  %v6474_v49 = vor.u32 %v6907_v33, %v6471_v34  ;;  %v6447_v34 = vld [vmem:[%s7610_s29 + $0x6a8] sm:$0xf0] }
 0x2ab   : > { %5058 = vmatpush.bf16.msrb.mxu1 %v6482_v56  ;;  %v6530_v43 = vor.u32 %v6921_v35, %v6527_v31  ;;  %5031 = vmatpush.bf16.msrb.mxu0 %v6402_v22  ;;  %v9133_v24 = vld [vmem:[#allocation8_spill] sm:$0xff]  ;;  %v9136_v35 = vld [vmem:[#allocation11_spill] sm:$0xff]  ;;  %v9138_v16 = vld [vmem:[#allocation13_spill] sm:$0xff] }
 0x2ac   : > { %v5152_v12 = vmax.f32 %v4671_v57, 0.0  ;;  %v6591_v57 = vld [vmem:[%s7610_s29 + $0x7c8] sm:$0xf0]  ;;  %v6901_v33 = vld [vmem:[%s7610_s29 + $0x6a4] sm:$0xf] }
 0x2ad   : > { %5088 = vmatpush.bf16.msrb.mxu2 %v6538_v40  ;;  %v6594_v26 = vor.u32 %v6937_v54, %v6591_v57  ;;  %v6885_v40 = vld [vmem:[%s7610_s29 + $0x624] sm:$0xf]  ;;  %v6883_v22 = vld [vmem:[%s7610_s29 + $0x614] sm:$0xf]  ;;  %v6375_v57 = vld [vmem:[%s7610_s29 + $0x618] sm:$0xf0] }
 0x2ae   : > { %5168 = vst [vmem:[%s8752_s9 + $0x40] sm:$0xff] %v5152_v12  ;;  %v6905_v12 = vld [vmem:[%s7610_s29 + $0x6c4] sm:$0xf] }
 0x2af   : > { %v4643_v1 = vpop.f32.mrf.mxu2  ;;  %v4588_v3 = vpop.f32.mrf.mxu0  ;;  %5059 = vmatpush.bf16.msrb.mxu1 %v6474_v49  ;;  %v6466_v28 = vor.u32 %v6905_v12, %v6463_v37  ;;  %v6450_v49 = vor.u32 %v6901_v33, %v6447_v34  ;;  %v9137_v31 = vld [vmem:[#allocation12_spill] sm:$0xff]  ;;  %v9144_v34 = vld [vmem:[#allocation19_spill] sm:$0xff] }
 0x2b0   : > { %v4644_v4 = vadd.f32 %v4643_v1, %v4615_v21  ;;  %v4672_v2 = vpop.f32.mrf.mxu3  ;;  %v4617_v44 = vpop.f32.mrf.mxu1  ;;  %v4589_v18 = vadd.f32 %v4588_v3, %v4560_v5  ;;  %v9135_v21 = vld [vmem:[#allocation10_spill] sm:$0xff]  ;;  %v6519_v5 = vld [vmem:[%s7610_s29 + $0x738] sm:$0xf0] }
 0x2b1   : > { %5089 = vmatpush.bf16.msrb.mxu2 %v6530_v43  ;;  %v6919_v1 = vld [vmem:[%s7610_s29 + $0x734] sm:$0xf]  ;;  %v6391_v3 = vld [vmem:[%s7610_s29 + $0x638] sm:$0xf0] }
 0x2b2   : > { %v4673_v55 = vadd.f32 %v4672_v2, %v4644_v4  ;;  %4819 = vmatmul.bf16.gmra.mxu0 %v8094_v25  ;;  %v4618_v51 = vadd.f32 %v4617_v44, %v4589_v18  ;;  %v6939_v25 = vld [vmem:[%s7610_s29 + $0x7d4] sm:$0xf]  ;;  %v6522_v2 = vor.u32 %v6919_v1, %v6519_v5  ;;  %v6583_v18 = vld [vmem:[%s7610_s29 + $0x7b8] sm:$0xf0]  ;;  %v6367_v1 = vld [vmem:[%s7610_s29 + $0x608] sm:$0xf0] }
 0x2b3   : > { %4848 = vmatmul.bf16.gmra.mxu1 %v9129_v39  ;;  %v6602_v46 = vor.u32 %v6939_v25, %v6599_v10  ;;  %v6887_v4 = vld [vmem:[%s7610_s29 + $0x634] sm:$0xf]  ;;  %v6575_v10 = vld [vmem:[%s7610_s29 + $0x7a8] sm:$0xf0]  ;;  %v6503_v43 = vld [vmem:[%s7610_s29 + $0x718] sm:$0xf0] }
 0x2b4   : > { %v5154_v9 = vmax.f32 %v4673_v55, 0.0  ;;  %4877 = vmatmul.bf16.gmra.mxu2 %v9130_v36  ;;  %5060 = vmatpush.bf16.msrb.mxu1 %v6466_v28  ;;  %v6935_v44 = vld [vmem:[%s7610_s29 + $0x7b4] sm:$0xf]  ;;  %v6394_v55 = vor.u32 %v6887_v4, %v6391_v3  ;;  %v6439_v28 = vld [vmem:[%s7610_s29 + $0x698] sm:$0xf0] }
 0x2b5   : > { %4906 = vmatmul.bf16.gmra.mxu3 %v9131_v8  ;;  %5090 = vmatpush.bf16.msrb.mxu2 %v6522_v2  ;;  %v6586_v17 = vor.u32 %v6935_v44, %v6583_v18  ;;  %v6903_v8 = vld [vmem:[%s7610_s29 + $0x6b4] sm:$0xf]  ;;  %v6929_v2 = vld [vmem:[%s7610_s29 + $0x784] sm:$0xf]  ;;  %v6559_v3 = vld [vmem:[%s7610_s29 + $0x788] sm:$0xf0] }
 0x2b6   : > { %5170 = vst [vmem:[%s8752_s9 + $0x50] sm:$0xff] %v5154_v9  ;;  %5117 = vmatpush.bf16.msrb.mxu3 %v6602_v46  ;;  %5032 = vmatpush.bf16.msrb.mxu0 %v6394_v55  ;;  %v6458_v45 = vor.u32 %v6903_v8, %v6455_v13  ;;  %v6562_v44 = vor.u32 %v6929_v2, %v6559_v3  ;;  %v6897_v55 = vld [vmem:[%s7610_s29 + $0x684] sm:$0xf]  ;;  %v6431_v18 = vld [vmem:[%s7610_s29 + $0x688] sm:$0xf0]  ;;  %v9140_v13 = vld [vmem:[#allocation15_spill] sm:$0xff] }
 0x2b7   : > { %v4646_v27 = vpop.f32.mrf.mxu2  ;;  %v4590_v20 = vpop.f32.mrf.mxu0 }
 0x2b8   : > { %v4647_v48 = vadd.f32 %v4646_v27, %v4618_v51  ;;  %v4675_v32 = vpop.f32.mrf.mxu3  ;;  %v4619_v47 = vpop.f32.mrf.mxu1  ;;  %v4591_v58 = vadd.f32 %v4590_v20, %v4562_v50  ;;  %v6511_v51 = vld [vmem:[%s7610_s29 + $0x728] sm:$0xf0]  ;;  %v6386_v27 = vor.u32 %v6885_v40, %v6383_v61  ;;  %5061 = vmatpush.bf16.msrb.mxu1 %v6458_v45  ;;  %v6578_v50 = vor.u32 %v6933_v38, %v6575_v10 }
 0x2b9   : > { %v6514_v25 = vor.u32 %v6917_v63, %v6511_v51  ;;  %v9141_v63 = vld [vmem:[#allocation16_spill] sm:$0xff]  ;;  %v9142_v45 = vld [vmem:[#allocation17_spill] sm:$0xff]  ;;  %v9143_v51 = vld [vmem:[#allocation18_spill] sm:$0xff] }
 0x2ba   : > { %v4676_v60 = vadd.f32 %v4675_v32, %v4647_v48  ;;  %v4620_v11 = vadd.f32 %v4619_v47, %v4591_v58  ;;  %5118 = vmatpush.bf16.msrb.mxu3 %v6594_v26  ;;  %5033 = vmatpush.bf16.msrb.mxu0 %v6386_v27  ;;  %v6931_v26 = vld [vmem:[%s7610_s29 + $0x794] sm:$0xf] }
 0x2bb   : > { %5091 = vmatpush.bf16.msrb.mxu2 %v6514_v25 }
 0x2bc   : > { %v5156_v14 = vmax.f32 %v4676_v60, 0.0  ;;  %5062 = vmatpush.bf16.msrb.mxu1 %v6450_v49  ;;  %v9146_v49 = vld [vmem:[#allocation21_spill] sm:$0xff] }
 0x2be   : > { %5172 = vst [vmem:[%s8752_s9 + $0x60] sm:$0xff] %v5156_v14  ;;  %5119 = vmatpush.bf16.msrb.mxu3 %v6586_v17  ;;  %v6915_v14 = vld [vmem:[%s7610_s29 + $0x714] sm:$0xf]  ;;  %v6434_v17 = vor.u32 %v6897_v55, %v6431_v18 }
 0x2bf   : > { %v4648_v23 = vpop.f32.mrf.mxu2  ;;  %v4689_v30 = vpop.f32.mrf.mxu0  ;;  %v6506_v54 = vor.u32 %v6915_v14, %v6503_v43 }
 0x2c0   : > { %v4649_v7 = vadd.f32 %v4648_v23, %v4620_v11  ;;  %v4677_v62 = vpop.f32.mrf.mxu3  ;;  %v4718_v42 = vpop.f32.mrf.mxu1  ;;  %v6567_v11 = vld [vmem:[%s7610_s29 + $0x798] sm:$0xf0] }
 0x2c1   : > { %v4719_v29 = vadd.f32 %v4718_v42, %v4689_v30  ;;  %5092 = vmatpush.bf16.msrb.mxu2 %v6506_v54 }
 0x2c2   : > { %v4678_v0 = vadd.f32 %v4677_v62, %v4649_v7  ;;  %4920 = vmatmul.bf16.vlgmr.msra.gmra.mxu0 %v9132_v52  ;;  %5120 = vmatpush.bf16.msrb.mxu3 %v6578_v50  ;;  %v6378_v7 = vor.u32 %v6883_v22, %v6375_v57  ;;  %v6570_v62 = vor.u32 %v6931_v26, %v6567_v11  ;;  %v6899_v52 = vld [vmem:[%s7610_s29 + $0x694] sm:$0xf] }
 0x2c3   : > { %4949 = vmatmul.bf16.vlgmr.msra.gmra.mxu1 %v9133_v24  ;;  %v6442_v24 = vor.u32 %v6899_v52, %v6439_v28  ;;  %v9150_v52 = vld [vmem:[#allocation25_spill] sm:$0xff]  ;;  %v9151_v28 = vld [vmem:[#allocation26_spill] sm:$0xff] }
 0x2c4   : > { %v5158_v59 = vmax.f32 %v4678_v0, 0.0  ;;  %4978 = vmatmul.bf16.vlgmr.msra.gmra.mxu2 %v9134_v6  ;;  %5034 = vmatpush.bf16.msrb.mxu0 %v6378_v7  ;;  %v6495_v6 = vld [vmem:[%s7610_s29 + $0x708] sm:$0xf0] }
 0x2c5   : > { %5007 = vmatmul.bf16.vlgmr.msra.gmra.mxu3 %v9135_v21  ;;  %v6881_v21 = vld [vmem:[%s7610_s29 + $0x604] sm:$0xf]  ;;  %5063 = vmatpush.bf16.msrb.mxu1 %v6442_v24 }
 0x2c6   : > { %5174 = vst [vmem:[%s8752_s9 + $0x70] sm:$0xff] %v5158_v59  ;;  %5121 = vmatpush.bf16.msrb.mxu3 %v6570_v62  ;;  %v6913_v59 = vld [vmem:[%s7610_s29 + $0x704] sm:$0xf]  ;;  %v6370_v4 = vor.u32 %v6881_v21, %v6367_v1 }
 0x2c7   : > { %v4747_v19 = vpop.f32.mrf.mxu2  ;;  %v4691_v56 = vpop.f32.mrf.mxu0  ;;  %v6498_v5 = vor.u32 %v6913_v59, %v6495_v6 }
 0x2c8   : > { %v4748_v15 = vadd.f32 %v4747_v19, %v4719_v29  ;;  %v4776_v53 = vpop.f32.mrf.mxu3  ;;  %v4720_v9 = vpop.f32.mrf.mxu1  ;;  %5035 = vmatpush.bf16.msrb.mxu0 %v6370_v4 }
 0x2c9   : > { %v4721_v36 = vadd.f32 %v4720_v9, %v4691_v56  ;;  %5093 = vmatpush.bf16.msrb.mxu2 %v6498_v5  ;;  %5064 = vmatpush.bf16.msrb.mxu1 %v6434_v17  ;;  %v9153_v17 = vld [vmem:[#allocation28_spill] sm:$0xff] }
 0x2ca   : > { %v8866_v39 = vadd.f32 %v4776_v53, %v4748_v15  ;;  %5122 = vmatpush.bf16.msrb.mxu3 %v6562_v44 }
 0x2cf   : > { %v4749_v48 = vpop.f32.mrf.mxu2  ;;  %v4694_v46 = vpop.f32.mrf.mxu0 }
 0x2d0   : > { %v4750_v32 = vadd.f32 %v4749_v48, %v4721_v36  ;;  %v4778_v20 = vpop.f32.mrf.mxu3  ;;  %v4723_v47 = vpop.f32.mrf.mxu1 }
 0x2d1   : > { %v4724_v58 = vadd.f32 %v4723_v47, %v4694_v46 }
 0x2d2   : > { %v8876_v60 = vadd.f32 %v4778_v20, %v4750_v32  ;;  %4925 = vmatmul.bf16.gmra.mxu0 %v9136_v35  ;;  %v9145_v35 = vld [vmem:[#allocation20_spill] sm:$0xff] }
 0x2d3   : > { %4954 = vmatmul.bf16.gmra.mxu1 %v9137_v31  ;;  %v9147_v31 = vld [vmem:[#allocation22_spill] sm:$0xff] }
 0x2d4   : > { %4983 = vmatmul.bf16.gmra.mxu2 %v9138_v16 }
 0x2d5   : > { %5012 = vmatmul.bf16.gmra.mxu3 %v9139_v41 }
 0x2d7   : > { %v4752_v23 = vpop.f32.mrf.mxu2  ;;  %v4696_v0 = vpop.f32.mrf.mxu0 }
 0x2d8   : > { %v4753_v30 = vadd.f32 %v4752_v23, %v4724_v58  ;;  %v4781_v42 = vpop.f32.mrf.mxu3  ;;  %v4725_v29 = vpop.f32.mrf.mxu1 }
 0x2d9   : > { %v4726_v37 = vadd.f32 %v4725_v29, %v4696_v0  ;;  %v9148_v29 = vld [vmem:[#allocation23_spill] sm:$0xff] }
 0x2da   : > { %v8890_v12 = vadd.f32 %v4781_v42, %v4753_v30 }
 0x2df   : > { %v4754_v19 = vpop.f32.mrf.mxu2  ;;  %v4699_v56 = vpop.f32.mrf.mxu0 }
 0x2e0   : > { %v4755_v15 = vadd.f32 %v4754_v19, %v4726_v37  ;;  %v4783_v53 = vpop.f32.mrf.mxu3  ;;  %v4728_v9 = vpop.f32.mrf.mxu1  ;;  %v9149_v37 = vld [vmem:[#allocation24_spill] sm:$0xff] }
 0x2e1   : > { %v4729_v8 = vadd.f32 %v4728_v9, %v4699_v56  ;;  %v9152_v56 = vld [vmem:[#allocation27_spill] sm:$0xff]  ;;  %v9154_v9 = vld [vmem:[#allocation29_spill] sm:$0xff] }
 0x2e2   : > { %v8902_v36 = vadd.f32 %v4783_v53, %v4755_v15  ;;  %4930 = vmatmul.bf16.gmra.mxu0 %v9140_v13 }
 0x2e3   : > { %4959 = vmatmul.bf16.gmra.mxu1 %v9141_v63 }
 0x2e4   : > { %4988 = vmatmul.bf16.gmra.mxu2 %v9142_v45 }
 0x2e5   : > { %5017 = vmatmul.bf16.gmra.mxu3 %v9143_v51 }
 0x2e7   : > { %v4757_v40 = vpop.f32.mrf.mxu2  ;;  %v4701_v27 = vpop.f32.mrf.mxu0 }
 0x2e8   : > { %v4758_v61 = vadd.f32 %v4757_v40, %v4729_v8  ;;  %v4786_v25 = vpop.f32.mrf.mxu3  ;;  %v4730_v38 = vpop.f32.mrf.mxu1 }
 0x2e9   : > { %v4731_v50 = vadd.f32 %v4730_v38, %v4701_v27 }
 0x2ea   : > { %v8908_v10 = vadd.f32 %v4786_v25, %v4758_v61 }
 0x2ef   : > { %v4759_v48 = vpop.f32.mrf.mxu2  ;;  %v4704_v46 = vpop.f32.mrf.mxu0 }
 0x2f0   : > { %v4760_v32 = vadd.f32 %v4759_v48, %v4731_v50  ;;  %v4788_v20 = vpop.f32.mrf.mxu3  ;;  %v4733_v47 = vpop.f32.mrf.mxu1 }
 0x2f1   : > { %v4734_v33 = vadd.f32 %v4733_v47, %v4704_v46  ;;  %v9156_v47 = vld [vmem:[#allocation31_spill] sm:$0xff] }
 0x2f2   : > { %v8910_v58 = vadd.f32 %v4788_v20, %v4760_v32  ;;  %4935 = vmatmul.bf16.gmra.mxu0 %v9144_v34  ;;  %v9158_v34 = vld [vmem:[#allocation33_spill] sm:$0xff] }
 0x2f3   : > { %4964 = vmatmul.bf16.gmra.mxu1 %v9145_v35 }
 0x2f4   : > { %4993 = vmatmul.bf16.gmra.mxu2 %v9146_v49 }
 0x2f5   : > { %5022 = vmatmul.bf16.gmra.mxu3 %v9147_v31 }
 0x2f7   : > { %v4762_v16 = vpop.f32.mrf.mxu2  ;;  %v4706_v43 = vpop.f32.mrf.mxu0 }
 0x2f8   : > { %v4763_v41 = vadd.f32 %v4762_v16, %v4734_v33  ;;  %v4791_v14 = vpop.f32.mrf.mxu3  ;;  %v4735_v22 = vpop.f32.mrf.mxu1  ;;  %v9157_v33 = vld [vmem:[#allocation32_spill] sm:$0xff] }
 0x2f9   : > { %v4736_v57 = vadd.f32 %v4735_v22, %v4706_v43 }
 0x2fa   : > { %v8916_v54 = vadd.f32 %v4791_v14, %v4763_v41 }
 0x2ff   : > { %v4764_v26 = vpop.f32.mrf.mxu2  ;;  %v4805_v7 = vpop.f32.mrf.mxu0 }
 0x300   : > { %v4765_v11 = vadd.f32 %v4764_v26, %v4736_v57  ;;  %v4793_v23 = vpop.f32.mrf.mxu3  ;;  %v4806_v62 = vadd.f32 %v4805_v7, %v8866_v39  ;;  %v4834_v30 = vpop.f32.mrf.mxu1 }
 0x302   : > { %v8919_v42 = vadd.f32 %v4793_v23, %v4765_v11  ;;  %v4835_v0 = vadd.f32 %v4834_v30, %v4806_v62  ;;  %5036 = vmatmul.bf16.vlgmr.msrb.gmra.mxu0 %v9148_v29  ;;  %v9161_v29 = vld [vmem:[#allocation36_spill] sm:$0xff] }
 0x303   : > { %5065 = vmatmul.bf16.vlgmr.msrb.gmra.mxu1 %v9149_v37  ;;  %v9162_v37 = vld [vmem:[#allocation37_spill] sm:$0xff] }
 0x304   : > { %5094 = vmatmul.bf16.vlgmr.msrb.gmra.mxu2 %v9150_v52 }
 0x305   : > { %5123 = vmatmul.bf16.vlgmr.msrb.gmra.mxu3 %v9151_v28 }
 0x307   : > { %v4863_v59 = vpop.f32.mrf.mxu2  ;;  %v4807_v21 = vpop.f32.mrf.mxu0 }
 0x308   : > { %v4864_v24 = vadd.f32 %v4863_v59, %v4835_v0  ;;  %v4892_v6 = vpop.f32.mrf.mxu3  ;;  %v4808_v1 = vadd.f32 %v4807_v21, %v8876_v60  ;;  %v4836_v5 = vpop.f32.mrf.mxu1  ;;  %v9155_v60 = vld [vmem:[#allocation30_spill] sm:$0xff]  ;;  %v9160_v0 = vld [vmem:[#allocation35_spill] sm:$0xff] }
 0x30a   : > { %v8926_v39 = vadd.f32 %v4892_v6, %v4864_v24  ;;  %v4837_v4 = vadd.f32 %v4836_v5, %v4808_v1 }
 0x30f   : > { %v4865_v2 = vpop.f32.mrf.mxu2  ;;  %v4810_v19 = vpop.f32.mrf.mxu0 }
 0x310   : > { %v4866_v3 = vadd.f32 %v4865_v2, %v4837_v4  ;;  %v4894_v44 = vpop.f32.mrf.mxu3  ;;  %v4811_v55 = vadd.f32 %v4810_v19, %v8890_v12  ;;  %v4839_v18 = vpop.f32.mrf.mxu1 }
 0x312   : > { %v8929_v15 = vadd.f32 %v4894_v44, %v4866_v3  ;;  %v4840_v53 = vadd.f32 %v4839_v18, %v4811_v55  ;;  %5041 = vmatmul.bf16.gmra.mxu0 %v9152_v56 }
 0x313   : > { %5070 = vmatmul.bf16.gmra.mxu1 %v9153_v17 }
 0x314   : > { %5099 = vmatmul.bf16.gmra.mxu2 %v9154_v9 }
 0x315   : > { %5128 = vmatmul.bf16.gmra.mxu3 %v9155_v60 }
 0x317   : > { %v4868_v8 = vpop.f32.mrf.mxu2  ;;  %v4812_v45 = vpop.f32.mrf.mxu0 }
 0x318   : > { %v4869_v13 = vadd.f32 %v4868_v8, %v4840_v53  ;;  %v4897_v63 = vpop.f32.mrf.mxu3  ;;  %v4813_v51 = vadd.f32 %v4812_v45, %v8902_v36  ;;  %v4841_v40 = vpop.f32.mrf.mxu1  ;;  %v9159_v36 = vld [vmem:[#allocation34_spill] sm:$0xff] }
 0x31a   : > { %v8936_v12 = vadd.f32 %v4897_v63, %v4869_v13  ;;  %v4842_v61 = vadd.f32 %v4841_v40, %v4813_v51 }
 0x31f   : > { %v4870_v25 = vpop.f32.mrf.mxu2  ;;  %v4815_v50 = vpop.f32.mrf.mxu0 }
 0x320   : > { %v4871_v27 = vadd.f32 %v4870_v25, %v4842_v61  ;;  %v4899_v38 = vpop.f32.mrf.mxu3  ;;  %v4816_v48 = vadd.f32 %v4815_v50, %v8908_v10  ;;  %v4844_v32 = vpop.f32.mrf.mxu1 }
 0x322   : > { %v8939_v20 = vadd.f32 %v4899_v38, %v4871_v27  ;;  %v4845_v46 = vadd.f32 %v4844_v32, %v4816_v48  ;;  %5046 = vmatmul.bf16.gmra.mxu0 %v9156_v47 }
 0x323   : > { %5075 = vmatmul.bf16.gmra.mxu1 %v9157_v33 }
 0x324   : > { %5104 = vmatmul.bf16.gmra.mxu2 %v9158_v34 }
 0x325   : > { %5133 = vmatmul.bf16.gmra.mxu3 %v9159_v36 }
 0x327   : > { %v4873_v35 = vpop.f32.mrf.mxu2  ;;  %v4817_v16 = vpop.f32.mrf.mxu0 }
 0x328   : > { %v4874_v49 = vadd.f32 %v4873_v35, %v4845_v46  ;;  %v4902_v31 = vpop.f32.mrf.mxu3  ;;  %v4818_v41 = vadd.f32 %v4817_v16, %v8910_v58  ;;  %v4846_v14 = vpop.f32.mrf.mxu1  ;;  %v9163_v58 = vld [vmem:[#allocation38_spill] sm:$0xff] }
 0x32a   : > { %v8946_v10 = vadd.f32 %v4902_v31, %v4874_v49  ;;  %v4847_v43 = vadd.f32 %v4846_v14, %v4818_v41 }
 0x32f   : > { %v4875_v22 = vpop.f32.mrf.mxu2  ;;  %v4820_v11 = vpop.f32.mrf.mxu0 }
 0x330   : > { %v4876_v57 = vadd.f32 %v4875_v22, %v4847_v43  ;;  %v4904_v26 = vpop.f32.mrf.mxu3  ;;  %v4821_v23 = vadd.f32 %v4820_v11, %v8916_v54  ;;  %v4849_v7 = vpop.f32.mrf.mxu1 }
 0x332   : > { %v8949_v62 = vadd.f32 %v4904_v26, %v4876_v57  ;;  %v4850_v30 = vadd.f32 %v4849_v7, %v4821_v23  ;;  %5051 = vmatmul.bf16.gmra.mxu0 %v9160_v0 }
 0x333   : > { %5080 = vmatmul.bf16.gmra.mxu1 %v9161_v29 }
 0x334   : > { %5109 = vmatmul.bf16.gmra.mxu2 %v9162_v37 }
 0x335   : > { %5138 = vmatmul.bf16.gmra.mxu3 %v9163_v58 }
 0x337   : > { %v4878_v52 = vpop.f32.mrf.mxu2  ;;  %v4822_v24 = vpop.f32.mrf.mxu0 }
 0x338   : > { %v4879_v28 = vadd.f32 %v4878_v52, %v4850_v30  ;;  %v4907_v59 = vpop.f32.mrf.mxu3  ;;  %v4823_v6 = vadd.f32 %v4822_v24, %v8919_v42  ;;  %v4851_v21 = vpop.f32.mrf.mxu1 }
 0x33a   : > { %v8956_v54 = vadd.f32 %v4907_v59, %v4879_v28  ;;  %v4852_v1 = vadd.f32 %v4851_v21, %v4823_v6 }
 0x33f   : > { %v4880_v5 = vpop.f32.mrf.mxu2  ;;  %v4921_v3 = vpop.f32.mrf.mxu0 }
 0x340   : > { %v4881_v4 = vadd.f32 %v4880_v5, %v4852_v1  ;;  %v4909_v2 = vpop.f32.mrf.mxu3  ;;  %v4950_v44 = vpop.f32.mrf.mxu1  ;;  %v4922_v34 = vadd.f32 %v4921_v3, %v8926_v39 }
 0x342   : > { %v8958_v19 = vadd.f32 %v4909_v2, %v4881_v4  ;;  %v4951_v16 = vadd.f32 %v4950_v44, %v4922_v34 }
 0x347   : > { %v4979_v55 = vpop.f32.mrf.mxu2  ;;  %v4923_v53 = vpop.f32.mrf.mxu0 }
 0x348   : > { %v5008_v18 = vpop.f32.mrf.mxu3  ;;  %v4952_v56 = vpop.f32.mrf.mxu1  ;;  %v4980_v41 = vadd.f32 %v4979_v55, %v4951_v16  ;;  %v4924_v14 = vadd.f32 %v4923_v53, %v8929_v15 }
 0x34a   : > { %v5009_v22 = vadd.f32 %v5008_v18, %v4980_v41  ;;  %v4953_v39 = vadd.f32 %v4952_v56, %v4924_v14 }
 0x34f   : > { %v4981_v17 = vpop.f32.mrf.mxu2  ;;  %v4926_v60 = vpop.f32.mrf.mxu0 }
 0x350   : > { %v5010_v9 = vpop.f32.mrf.mxu3  ;;  %v4955_v8 = vpop.f32.mrf.mxu1  ;;  %v4982_v7 = vadd.f32 %v4981_v17, %v4953_v39  ;;  %v4927_v30 = vadd.f32 %v4926_v60, %v8936_v12 }
 0x352   : > { %v5011_v37 = vadd.f32 %v5010_v9, %v4982_v7  ;;  %v4956_v59 = vadd.f32 %v4955_v8, %v4927_v30 }
 0x357   : > { %v4984_v42 = vpop.f32.mrf.mxu2  ;;  %v4928_v63 = vpop.f32.mrf.mxu0 }
 0x358   : > { %v5013_v13 = vpop.f32.mrf.mxu3  ;;  %v4957_v45 = vpop.f32.mrf.mxu1  ;;  %v4985_v21 = vadd.f32 %v4984_v42, %v4956_v59  ;;  %v4929_v5 = vadd.f32 %v4928_v63, %v8939_v20 }
 0x35a   : > { %v5014_v3 = vadd.f32 %v5013_v13, %v4985_v21  ;;  %v4958_v53 = vadd.f32 %v4957_v45, %v4929_v5 }
 0x35f   : > { %v4986_v51 = vpop.f32.mrf.mxu2  ;;  %v4931_v61 = vpop.f32.mrf.mxu0 }
 0x360   : > { %v5015_v40 = vpop.f32.mrf.mxu3  ;;  %v4960_v25 = vpop.f32.mrf.mxu1  ;;  %v4987_v9 = vadd.f32 %v4986_v51, %v4958_v53  ;;  %v4932_v8 = vadd.f32 %v4931_v61, %v8946_v10 }
 0x362   : > { %v5016_v20 = vadd.f32 %v5015_v40, %v4987_v9  ;;  %v4961_v14 = vadd.f32 %v4960_v25, %v4932_v8 }
 0x367   : > { %v8960_v27 = vpop.f32.mrf.mxu2  ;;  %v8964_v50 = vpop.f32.mrf.mxu0 }
 0x368   : > { %v8962_v38 = vpop.f32.mrf.mxu3  ;;  %v8966_v48 = vpop.f32.mrf.mxu1  ;;  %v4990_v45 = vadd.f32 %v8960_v27, %v4961_v14  ;;  %v4934_v51 = vadd.f32 %v8964_v50, %v8949_v62  ;;  %v5209_v14 = vld [vmem:[%s8752_s9 + $0x20] sm:$0xff] (%p7076_p6) }
 0x369   : > { %5210 = vst [vmem:[%s5188_s8 + $0x80] sm:$0xff] (%p7076_p6), %v5209_v14 }
 0x36a   : > { %v5019_v39 = vadd.f32 %v8962_v38, %v4990_v45  ;;  %v4963_v25 = vadd.f32 %v8966_v48, %v4934_v51 }
 0x36f   : > { %v8968_v32 = vpop.f32.mrf.mxu2  ;;  %v8972_v47 = vpop.f32.mrf.mxu0 }
 0x370   : > { %v8970_v46 = vpop.f32.mrf.mxu3  ;;  %v8974_v33 = vpop.f32.mrf.mxu1  ;;  %v4992_v27 = vadd.f32 %v8968_v32, %v4963_v25  ;;  %v4937_v62 = vadd.f32 %v8972_v47, %v8956_v54 }
 0x372   : > { %v5021_v38 = vadd.f32 %v8970_v46, %v4992_v27  ;;  %v4966_v48 = vadd.f32 %v8974_v33, %v4937_v62 }
 0x377   : > { %v8977_v36 = vpop.f32.mrf.mxu2  ;;  %v8981_v49 = vpop.f32.mrf.mxu0 }
 0x378   : > { %v8979_v35 = vpop.f32.mrf.mxu3  ;;  %v8983_v31 = vpop.f32.mrf.mxu1  ;;  %v4995_v32 = vadd.f32 %v8977_v36, %v4966_v48  ;;  %v4939_v54 = vadd.f32 %v8981_v49, %v8958_v19 }
 0x37a   : > { %v5024_v46 = vadd.f32 %v8979_v35, %v4995_v32 }
 0x37f   : > { %v8986_v43 = vpop.f32.mrf.mxu2  ;;  %v5037_v26 = vpop.f32.mrf.mxu0 }
 0x380   : > { %v8988_v57 = vpop.f32.mrf.mxu3  ;;  %v5066_v11 = vpop.f32.mrf.mxu1  ;;  %v5038_v23 = vadd.f32 %v5037_v26, %v5009_v22 }
 0x382   : > { %v5067_v0 = vadd.f32 %v5066_v11, %v5038_v23 }
 0x387   : > { %v5095_v29 = vpop.f32.mrf.mxu2  ;;  %v5039_v28 = vpop.f32.mrf.mxu0 }
 0x388   : > { %v5096_v58 = vadd.f32 %v5095_v29, %v5067_v0  ;;  %v5124_v52 = vpop.f32.mrf.mxu3  ;;  %v5068_v15 = vpop.f32.mrf.mxu1  ;;  %v5040_v6 = vadd.f32 %v5039_v28, %v5011_v37 }
 0x38a   : > { %v5125_v24 = vadd.f32 %v5124_v52, %v5096_v58  ;;  %v5069_v4 = vadd.f32 %v5068_v15, %v5040_v6 }
 0x38c   : > { %v5145_v1 = vmax.f32 %v5125_v24, 0.0 }
 0x38e   : > { %5161 = vst [vmem:[%s8752_s9 + $0x8] sm:$0xff] %v5145_v1 }
 0x38f   : > { %v5097_v2 = vpop.f32.mrf.mxu2  ;;  %v5042_v55 = vpop.f32.mrf.mxu0 }
 0x390   : > { %v5098_v12 = vadd.f32 %v5097_v2, %v5069_v4  ;;  %v5126_v44 = vpop.f32.mrf.mxu3  ;;  %v5071_v18 = vpop.f32.mrf.mxu1  ;;  %v5043_v17 = vadd.f32 %v5042_v55, %v5014_v3  ;;  %v4968_v3 = vadd.f32 %v8983_v31, %v4939_v54 }
 0x392   : > { %v5127_v56 = vadd.f32 %v5126_v44, %v5098_v12  ;;  %v5072_v42 = vadd.f32 %v5071_v18, %v5043_v17  ;;  %v4997_v36 = vadd.f32 %v8986_v43, %v4968_v3 }
 0x394   : > { %v5147_v60 = vmax.f32 %v5127_v56, 0.0  ;;  %v5026_v49 = vadd.f32 %v8988_v57, %v4997_v36  ;;  %v5201_v57 = vld [vmem:[%s8752_s9] sm:$0xff] (%p7076_p6) }
 0x395   : > { %5202 = vst [vmem:[%s5188_s8] sm:$0xff] (%p7076_p6), %v5201_v57 }
 0x396   : > { %5163 = vst [vmem:[%s8752_s9 + $0x18] sm:$0xff] %v5147_v60 }
 0x397   : > { %v5100_v34 = vpop.f32.mrf.mxu2  ;;  %v5044_v41 = vpop.f32.mrf.mxu0 }
 0x398   : > { %v5101_v63 = vadd.f32 %v5100_v34, %v5072_v42  ;;  %v5129_v16 = vpop.f32.mrf.mxu3  ;;  %v5073_v13 = vpop.f32.mrf.mxu1  ;;  %v5045_v26 = vadd.f32 %v5044_v41, %v5016_v20  ;;  %v5205_v41 = vld [vmem:[%s8752_s9 + $0x10] sm:$0xff] (%p7076_p6) }
 0x399   : > { %5206 = vst [vmem:[%s5188_s8 + $0x40] sm:$0xff] (%p7076_p6), %v5205_v41 }
 0x39a   : > { %v5130_v22 = vadd.f32 %v5129_v16, %v5101_v63  ;;  %v5074_v10 = vadd.f32 %v5073_v13, %v5045_v26  ;;  %v5203_v16 = vld [vmem:[%s8752_s9 + $0x8] sm:$0xff] (%p7076_p6)  ;;  %v5213_v26 = vld [vmem:[%s8752_s9 + $0x30] sm:$0xff] (%p7076_p6) }
 0x39b   : > { %5204 = vst [vmem:[%s5188_s8 + $0x8] sm:$0xff] (%p7076_p6), %v5203_v16 }
 0x39c   : > { %v5149_v11 = vmax.f32 %v5130_v22, 0.0  ;;  %5214 = vst [vmem:[%s5188_s8 + $0xc0] sm:$0xff] (%p7076_p6), %v5213_v26 }
 0x39d   : > { %v5207_v13 = vld [vmem:[%s8752_s9 + $0x18] sm:$0xff] (%p7076_p6) }
 0x39e   : > { %5165 = vst [vmem:[%s8752_s9 + $0x28] sm:$0xff] %v5149_v11  ;;  %v5217_v11 = vld [vmem:[%s8752_s9 + $0x40] sm:$0xff] (%p7076_p6) }
 0x39f   : > { %v5102_v61 = vpop.f32.mrf.mxu2  ;;  %v5047_v7 = vpop.f32.mrf.mxu0  ;;  %5208 = vst [vmem:[%s5188_s8 + $0x48] sm:$0xff] (%p7076_p6), %v5207_v13 }
 0x3a0   : > { %v5103_v40 = vadd.f32 %v5102_v61, %v5074_v10  ;;  %v5131_v23 = vpop.f32.mrf.mxu3  ;;  %v5076_v30 = vpop.f32.mrf.mxu1  ;;  %v5048_v29 = vadd.f32 %v5047_v7, %v5019_v39  ;;  %v5221_v10 = vld [vmem:[%s8752_s9 + $0x50] sm:$0xff] (%p7076_p6)  ;;  %5218 = vst [vmem:[%s5188_s8 + $0x100] sm:$0xff] (%p7076_p6), %v5217_v11  ;;  %v5225_v39 = vld [vmem:[%s8752_s9 + $0x60] sm:$0xff] (%p7076_p6) }
 0x3a1   : > { %5222 = vst [vmem:[%s5188_s8 + $0x140] sm:$0xff] (%p7076_p6), %v5221_v10 }
 0x3a2   : > { %v5132_v0 = vadd.f32 %v5131_v23, %v5103_v40  ;;  %v5077_v50 = vadd.f32 %v5076_v30, %v5048_v29  ;;  %v5229_v23 = vld [vmem:[%s8752_s9 + $0x70] sm:$0xff] (%p7076_p6)  ;;  %5226 = vst [vmem:[%s5188_s8 + $0x180] sm:$0xff] (%p7076_p6), %v5225_v39 }
 0x3a3   : > { %5230 = vst [vmem:[%s5188_s8 + $0x1c0] sm:$0xff] (%p7076_p6), %v5229_v23 }
 0x3a4   : > { %v5151_v37 = vmax.f32 %v5132_v0, 0.0 }
 0x3a5   : > { %v5211_v22 = vld [vmem:[%s8752_s9 + $0x28] sm:$0xff] (%p7076_p6) }
 0x3a6   : > { %5167 = vst [vmem:[%s8752_s9 + $0x38] sm:$0xff] %v5151_v37 }
 0x3a7   : > { %v5105_v58 = vpop.f32.mrf.mxu2  ;;  %v5049_v15 = vpop.f32.mrf.mxu0  ;;  %5212 = vst [vmem:[%s5188_s8 + $0x88] sm:$0xff] (%p7076_p6), %v5211_v22 }
 0x3a8   : > { %v5106_v52 = vadd.f32 %v5105_v58, %v5077_v50  ;;  %v5134_v28 = vpop.f32.mrf.mxu3  ;;  %v5078_v59 = vpop.f32.mrf.mxu1  ;;  %v5050_v6 = vadd.f32 %v5049_v15, %v5021_v38 }
 0x3aa   : > { %v5135_v24 = vadd.f32 %v5134_v28, %v5106_v52  ;;  %v5079_v47 = vadd.f32 %v5078_v59, %v5050_v6 }
 0x3ac   : > { %v5153_v21 = vmax.f32 %v5135_v24, 0.0 }
 0x3ad   : > { %v5215_v45 = vld [vmem:[%s8752_s9 + $0x38] sm:$0xff] (%p7076_p6) }
 0x3ae   : > { %5169 = vst [vmem:[%s8752_s9 + $0x48] sm:$0xff] %v5153_v21 }
 0x3af   : > { %v5107_v1 = vpop.f32.mrf.mxu2  ;;  %v5052_v2 = vpop.f32.mrf.mxu0  ;;  %5216 = vst [vmem:[%s5188_s8 + $0xc8] sm:$0xff] (%p7076_p6), %v5215_v45 }
 0x3b0   : > { %v5108_v5 = vadd.f32 %v5107_v1, %v5079_v47  ;;  %v5136_v4 = vpop.f32.mrf.mxu3  ;;  %v5053_v12 = vadd.f32 %v5052_v2, %v5024_v46  ;;  %v5081_v44 = vpop.f32.mrf.mxu1 }
 0x3b2   : > { %v5137_v33 = vadd.f32 %v5136_v4, %v5108_v5  ;;  %v5082_v18 = vadd.f32 %v5081_v44, %v5053_v12 }
 0x3b4   : > { %v5155_v55 = vmax.f32 %v5137_v33, 0.0 }
 0x3b5   : > { %v5219_v51 = vld [vmem:[%s8752_s9 + $0x48] sm:$0xff] (%p7076_p6) }
 0x3b6   : > { %5171 = vst [vmem:[%s8752_s9 + $0x58] sm:$0xff] %v5155_v55 }
 0x3b7   : > { %v5110_v19 = vpop.f32.mrf.mxu2  ;;  %v5054_v56 = vpop.f32.mrf.mxu0  ;;  %5220 = vst [vmem:[%s5188_s8 + $0x108] sm:$0xff] (%p7076_p6), %v5219_v51 }
 0x3b8   : > { %v5111_v53 = vadd.f32 %v5110_v19, %v5082_v18  ;;  %v5139_v35 = vpop.f32.mrf.mxu3  ;;  %v5055_v9 = vadd.f32 %v5054_v56, %v5026_v49  ;;  %v5083_v31 = vpop.f32.mrf.mxu1 }
 0x3ba   : > { %v5140_v17 = vadd.f32 %v5139_v35, %v5111_v53  ;;  %v5084_v8 = vadd.f32 %v5083_v31, %v5055_v9 }
 0x3bc   : > { %v5157_v60 = vmax.f32 %v5140_v17, 0.0 }
 0x3bd   : > { %v5223_v61 = vld [vmem:[%s8752_s9 + $0x58] sm:$0xff] (%p7076_p6) }
 0x3be   : > { %5173 = vst [vmem:[%s8752_s9 + $0x68] sm:$0xff] %v5157_v60 }
 0x3bf   : > { %v5112_v42 = vpop.f32.mrf.mxu2  ;;  %5224 = vst [vmem:[%s5188_s8 + $0x148] sm:$0xff] (%p7076_p6), %v5223_v61 }
 0x3c0   : > { %v5113_v34 = vadd.f32 %v5112_v42, %v5084_v8  ;;  %v5141_v20 = vpop.f32.mrf.mxu3 }
 0x3c2   : > { %v5142_v43 = vadd.f32 %v5141_v20, %v5113_v34  ;;  %5182 = sbr.rel (!%p7076_p6) target bundleno = 975 (0x3cf), region = 84 }
 0x3c4   : > { %v5159_v63 = vmax.f32 %v5142_v43, 0.0 }
 0x3c5   : > { %v5227_v40 = vld [vmem:[%s8752_s9 + $0x68] sm:$0xff] (%p7076_p6) }
 0x3c6   : > { %5175 = vst [vmem:[%s8752_s9 + $0x78] sm:$0xff] %v5159_v63 }
 0x3c7   : > { %5228 = vst [vmem:[%s5188_s8 + $0x188] sm:$0xff] %v5227_v40 }
 0x3cd   : > { %v5231_v7 = vld [vmem:[%s8752_s9 + $0x78] sm:$0xff] }
 0x3ce   : > { %5232 = vst [vmem:[%s5188_s8 + $0x1c8] sm:$0xff] %v5231_v7 }
 0x3cf PF: > { %s12_s13 = sadd.s32 1, %s7024_s13   ;;  %s9164_s9 = smov %s7012_s10 }
 0x3d0   : > { %p9_p11 = scmp.ge.s32.totalorder %s12_s13, 6   ;;  %s9165_s10 = smov %s7081_s19 }
 0x3d1   : > { %s9166_s11 = smov %s7020_s12  ;;  %s9167_s12 = smov %s9169_s14 }
 0x3d2   :  { %11 = sbr.rel (!%p9_p11) target bundleno = 3 (0x3), region = 147 }

// kernel: generator_forward.5
= control target key start
LH: loop header
LB: loop body
LE: loop exit
PB: predicated region body
PF: predicated region fallthrough
CT: control target
= control target key end

     0   :  { %s4523_s9 = smov 0   ;;  %s4525_s10 = smov 0   ;;  %s6265_s0 = inlined_call_operand.vmem [shape: bf16[176,1024], index: 0, kind: input, shape index: {}]   ;;  %s6266_s1 = inlined_call_operand.vmem [shape: bf16[1024,512], index: 1, kind: input, shape index: {}]   ;;  %s6267_s2 = inlined_call_operand.vmem [shape: f32[176,512], index: 2, kind: output, shape index: {}]  }
   0x1   :  { %s4527_s11 = smov 0   ;;  %s4529_s12 = smov 0  }
   0x2   :  { %s4531_s13 = smov 0  }
   0x3 LB: > { %s21_s14 = sadd.s32 1, %s4502_s12  ;;  %s3331_s15 = sadd.s32 4294967295, %s4506_s13   ;;  %s4506_s13 = sphi %s4531_s13, %s12_s13   ;;  %s4502_s12 = sphi %s4529_s12, %s6454_s12   ;;  %s4498_s11 = sphi %s4527_s11, %s6453_s11   ;;  %s4494_s10 = sphi %s4525_s10, %s6452_s10   ;;  %s4490_s9 = sphi %s4523_s9, %s6451_s9  }
   0x4   : > { %p22_p0 = scmp.ge.s32.totalorder %s21_s14, 2  ;;  %p64_p1 = scmp.ne.s32.totalorder %s4494_s10, %s4490_s9 }
   0x5   : > { %p65_p2 = scmp.eq.s32.totalorder %s4506_s13, 0  ;;  %p96_p4 = scmp.eq.s32.totalorder %s3331_s15, 1 }
   0x6   : > { %s6456_s14 = smov (%p22_p0, %s21_s14), 0  ;;  %s57_s17 = sadd.s32 1, %s4494_s10 }
   0x7   : > { %p66_p3 = por %p65_p2, %p64_p1  ;;  %s54_s16 = ssub.s32 %s4502_s12, %s6456_s14 }
   0x8   : > { %p55_p5 = scmp.eq.s32.totalorder %s54_s16, 0  ;;  %p4558_p6 = por %p96_p4, %p64_p1 }
   0x9   : > { %p3335_p7 = scmp.ge.s32.totalorder %s4506_s13, 2 }
   0xa   : > { %s4563_s19 = scalar_select %p55_p5, %s4494_s10, %s57_s17  }
   0xb   : > { %128 = sbr.rel (%p3335_p7) target bundleno = 148 (0x94), region = 20 }
  0x10   : > { %131 = sbr.rel (!%p66_p3) target bundleno = 148 (0x94), region = 24  ;;  %s133_s20 = sand.u32 (%p66_p3), 1, %s4494_s10  }
  0x11   : > { %s4209_s21 = sshll.u32 (%p66_p3), %s4502_s12, 3  ;;  %s3336_s22 = sshll.u32 (%p66_p3), %s133_s20, 10 }
  0x12   : > { %s4571_s25 = scalar_lea.vmem (%p66_p3), %s6266_s1, %s4209_s21  ;;  %s4576_s26 = scalar_lea.vmem (%p66_p3), [#allocation2], %s3336_s22 }
  0x13   : > { %v421_v0 = vld [vmem:[%s4571_s25] sm:$0xff] (%p66_p3)  ;;  %v423_v1 = vld [vmem:[%s4571_s25 + $0x10] sm:$0xff] (%p66_p3) }
  0x14   : > { %v425_v2 = vld [vmem:[%s4571_s25 + $0x20] sm:$0xff] (%p66_p3)  ;;  %422 = vst [vmem:[%s4576_s26] sm:$0xff] (%p66_p3), %v421_v0  ;;  %v427_v3 = vld [vmem:[%s4571_s25 + $0x30] sm:$0xff] (%p66_p3) }
  0x15   : > { %424 = vst [vmem:[%s4576_s26 + $0x8] sm:$0xff] %v423_v1  ;;  %v429_v4 = vld [vmem:[%s4571_s25 + $0x40] sm:$0xff]  ;;  %v431_v5 = vld [vmem:[%s4571_s25 + $0x50] sm:$0xff] }
  0x16   : > { %426 = vst [vmem:[%s4576_s26 + $0x10] sm:$0xff] %v425_v2  ;;  %v433_v6 = vld [vmem:[%s4571_s25 + $0x60] sm:$0xff]  ;;  %v435_v7 = vld [vmem:[%s4571_s25 + $0x70] sm:$0xff] }
  0x17   : > { %428 = vst [vmem:[%s4576_s26 + $0x18] sm:$0xff] %v427_v3  ;;  %v437_v8 = vld [vmem:[%s4571_s25 + $0x80] sm:$0xff]  ;;  %v439_v9 = vld [vmem:[%s4571_s25 + $0x90] sm:$0xff] }
  0x18   : > { %430 = vst [vmem:[%s4576_s26 + $0x20] sm:$0xff] %v429_v4  ;;  %v441_v10 = vld [vmem:[%s4571_s25 + $0xa0] sm:$0xff]  ;;  %v443_v11 = vld [vmem:[%s4571_s25 + $0xb0] sm:$0xff] }
  0x19   : > { %432 = vst [vmem:[%s4576_s26 + $0x28] sm:$0xff] %v431_v5  ;;  %v445_v12 = vld [vmem:[%s4571_s25 + $0xc0] sm:$0xff]  ;;  %v447_v13 = vld [vmem:[%s4571_s25 + $0xd0] sm:$0xff] }
  0x1a   : > { %434 = vst [vmem:[%s4576_s26 + $0x30] sm:$0xff] %v433_v6  ;;  %v449_v14 = vld [vmem:[%s4571_s25 + $0xe0] sm:$0xff]  ;;  %v451_v15 = vld [vmem:[%s4571_s25 + $0xf0] sm:$0xff] }
  0x1b   : > { %436 = vst [vmem:[%s4576_s26 + $0x38] sm:$0xff] %v435_v7  ;;  %v453_v16 = vld [vmem:[%s4571_s25 + $0x100] sm:$0xff]  ;;  %v455_v17 = vld [vmem:[%s4571_s25 + $0x110] sm:$0xff] }
  0x1c   : > { %438 = vst [vmem:[%s4576_s26 + $0x40] sm:$0xff] %v437_v8  ;;  %v457_v18 = vld [vmem:[%s4571_s25 + $0x120] sm:$0xff]  ;;  %v459_v19 = vld [vmem:[%s4571_s25 + $0x130] sm:$0xff] }
  0x1d   : > { %440 = vst [vmem:[%s4576_s26 + $0x48] sm:$0xff] %v439_v9  ;;  %v461_v20 = vld [vmem:[%s4571_s25 + $0x140] sm:$0xff]  ;;  %v463_v21 = vld [vmem:[%s4571_s25 + $0x150] sm:$0xff] }
  0x1e   : > { %442 = vst [vmem:[%s4576_s26 + $0x50] sm:$0xff] %v441_v10  ;;  %v465_v22 = vld [vmem:[%s4571_s25 + $0x160] sm:$0xff]  ;;  %v467_v23 = vld [vmem:[%s4571_s25 + $0x170] sm:$0xff] }
  0x1f   : > { %444 = vst [vmem:[%s4576_s26 + $0x58] sm:$0xff] %v443_v11  ;;  %v469_v24 = vld [vmem:[%s4571_s25 + $0x180] sm:$0xff]  ;;  %v471_v25 = vld [vmem:[%s4571_s25 + $0x190] sm:$0xff] }
  0x20   : > { %446 = vst [vmem:[%s4576_s26 + $0x60] sm:$0xff] %v445_v12  ;;  %v473_v26 = vld [vmem:[%s4571_s25 + $0x1a0] sm:$0xff]  ;;  %v475_v27 = vld [vmem:[%s4571_s25 + $0x1b0] sm:$0xff] }
  0x21   : > { %448 = vst [vmem:[%s4576_s26 + $0x68] sm:$0xff] %v447_v13  ;;  %v477_v28 = vld [vmem:[%s4571_s25 + $0x1c0] sm:$0xff]  ;;  %v479_v29 = vld [vmem:[%s4571_s25 + $0x1d0] sm:$0xff] }
  0x22   : > { %450 = vst [vmem:[%s4576_s26 + $0x70] sm:$0xff] %v449_v14  ;;  %v481_v30 = vld [vmem:[%s4571_s25 + $0x1e0] sm:$0xff]  ;;  %v483_v31 = vld [vmem:[%s4571_s25 + $0x1f0] sm:$0xff] }
  0x23   : > { %452 = vst [vmem:[%s4576_s26 + $0x78] sm:$0xff] %v451_v15  ;;  %v485_v32 = vld [vmem:[%s4571_s25 + $0x200] sm:$0xff]  ;;  %v487_v33 = vld [vmem:[%s4571_s25 + $0x210] sm:$0xff] }
  0x24   : > { %454 = vst [vmem:[%s4576_s26 + $0x80] sm:$0xff] %v453_v16  ;;  %v489_v34 = vld [vmem:[%s4571_s25 + $0x220] sm:$0xff]  ;;  %v491_v35 = vld [vmem:[%s4571_s25 + $0x230] sm:$0xff] }
  0x25   : > { %456 = vst [vmem:[%s4576_s26 + $0x88] sm:$0xff] %v455_v17  ;;  %v493_v36 = vld [vmem:[%s4571_s25 + $0x240] sm:$0xff]  ;;  %v495_v37 = vld [vmem:[%s4571_s25 + $0x250] sm:$0xff] }
  0x26   : > { %458 = vst [vmem:[%s4576_s26 + $0x90] sm:$0xff] %v457_v18  ;;  %v497_v38 = vld [vmem:[%s4571_s25 + $0x260] sm:$0xff]  ;;  %v499_v39 = vld [vmem:[%s4571_s25 + $0x270] sm:$0xff] }
  0x27   : > { %460 = vst [vmem:[%s4576_s26 + $0x98] sm:$0xff] %v459_v19  ;;  %v501_v40 = vld [vmem:[%s4571_s25 + $0x280] sm:$0xff]  ;;  %v503_v41 = vld [vmem:[%s4571_s25 + $0x290] sm:$0xff] }
  0x28   : > { %462 = vst [vmem:[%s4576_s26 + $0xa0] sm:$0xff] %v461_v20  ;;  %v505_v42 = vld [vmem:[%s4571_s25 + $0x2a0] sm:$0xff]  ;;  %v507_v43 = vld [vmem:[%s4571_s25 + $0x2b0] sm:$0xff] }
  0x29   : > { %464 = vst [vmem:[%s4576_s26 + $0xa8] sm:$0xff] %v463_v21  ;;  %v509_v44 = vld [vmem:[%s4571_s25 + $0x2c0] sm:$0xff]  ;;  %v511_v45 = vld [vmem:[%s4571_s25 + $0x2d0] sm:$0xff] }
  0x2a   : > { %466 = vst [vmem:[%s4576_s26 + $0xb0] sm:$0xff] %v465_v22  ;;  %v513_v46 = vld [vmem:[%s4571_s25 + $0x2e0] sm:$0xff]  ;;  %v515_v47 = vld [vmem:[%s4571_s25 + $0x2f0] sm:$0xff] }
  0x2b   : > { %468 = vst [vmem:[%s4576_s26 + $0xb8] sm:$0xff] %v467_v23  ;;  %v517_v48 = vld [vmem:[%s4571_s25 + $0x300] sm:$0xff]  ;;  %v519_v49 = vld [vmem:[%s4571_s25 + $0x310] sm:$0xff] }
  0x2c   : > { %470 = vst [vmem:[%s4576_s26 + $0xc0] sm:$0xff] %v469_v24  ;;  %v521_v50 = vld [vmem:[%s4571_s25 + $0x320] sm:$0xff]  ;;  %v523_v51 = vld [vmem:[%s4571_s25 + $0x330] sm:$0xff] }
  0x2d   : > { %472 = vst [vmem:[%s4576_s26 + $0xc8] sm:$0xff] %v471_v25  ;;  %v525_v52 = vld [vmem:[%s4571_s25 + $0x340] sm:$0xff]  ;;  %v527_v53 = vld [vmem:[%s4571_s25 + $0x350] sm:$0xff] }
  0x2e   : > { %474 = vst [vmem:[%s4576_s26 + $0xd0] sm:$0xff] %v473_v26  ;;  %v529_v54 = vld [vmem:[%s4571_s25 + $0x360] sm:$0xff]  ;;  %v531_v55 = vld [vmem:[%s4571_s25 + $0x370] sm:$0xff] }
  0x2f   : > { %476 = vst [vmem:[%s4576_s26 + $0xd8] sm:$0xff] %v475_v27  ;;  %v533_v56 = vld [vmem:[%s4571_s25 + $0x380] sm:$0xff]  ;;  %v535_v57 = vld [vmem:[%s4571_s25 + $0x390] sm:$0xff] }
  0x30   : > { %478 = vst [vmem:[%s4576_s26 + $0xe0] sm:$0xff] %v477_v28  ;;  %v537_v58 = vld [vmem:[%s4571_s25 + $0x3a0] sm:$0xff]  ;;  %v539_v59 = vld [vmem:[%s4571_s25 + $0x3b0] sm:$0xff] }
  0x31   : > { %480 = vst [vmem:[%s4576_s26 + $0xe8] sm:$0xff] %v479_v29  ;;  %v541_v60 = vld [vmem:[%s4571_s25 + $0x3c0] sm:$0xff]  ;;  %v543_v61 = vld [vmem:[%s4571_s25 + $0x3d0] sm:$0xff] }
  0x32   : > { %482 = vst [vmem:[%s4576_s26 + $0xf0] sm:$0xff] %v481_v30  ;;  %v545_v62 = vld [vmem:[%s4571_s25 + $0x3e0] sm:$0xff]  ;;  %v547_v63 = vld [vmem:[%s4571_s25 + $0x3f0] sm:$0xff] }
  0x33   : > { %484 = vst [vmem:[%s4576_s26 + $0xf8] sm:$0xff] %v483_v31  ;;  %v549_v0 = vld [vmem:[%s4571_s25 + $0x400] sm:$0xff]  ;;  %v551_v1 = vld [vmem:[%s4571_s25 + $0x410] sm:$0xff] }
  0x34   : > { %486 = vst [vmem:[%s4576_s26 + $0x100] sm:$0xff] %v485_v32  ;;  %v553_v2 = vld [vmem:[%s4571_s25 + $0x420] sm:$0xff]  ;;  %v555_v3 = vld [vmem:[%s4571_s25 + $0x430] sm:$0xff] }
  0x35   : > { %488 = vst [vmem:[%s4576_s26 + $0x108] sm:$0xff] %v487_v33  ;;  %v557_v4 = vld [vmem:[%s4571_s25 + $0x440] sm:$0xff]  ;;  %v559_v5 = vld [vmem:[%s4571_s25 + $0x450] sm:$0xff] }
  0x36   : > { %490 = vst [vmem:[%s4576_s26 + $0x110] sm:$0xff] %v489_v34  ;;  %v561_v6 = vld [vmem:[%s4571_s25 + $0x460] sm:$0xff]  ;;  %v563_v7 = vld [vmem:[%s4571_s25 + $0x470] sm:$0xff] }
  0x37   : > { %492 = vst [vmem:[%s4576_s26 + $0x118] sm:$0xff] %v491_v35  ;;  %v565_v8 = vld [vmem:[%s4571_s25 + $0x480] sm:$0xff]  ;;  %v567_v9 = vld [vmem:[%s4571_s25 + $0x490] sm:$0xff] }
  0x38   : > { %494 = vst [vmem:[%s4576_s26 + $0x120] sm:$0xff] %v493_v36  ;;  %v569_v10 = vld [vmem:[%s4571_s25 + $0x4a0] sm:$0xff]  ;;  %v571_v11 = vld [vmem:[%s4571_s25 + $0x4b0] sm:$0xff] }
  0x39   : > { %496 = vst [vmem:[%s4576_s26 + $0x128] sm:$0xff] %v495_v37  ;;  %v573_v12 = vld [vmem:[%s4571_s25 + $0x4c0] sm:$0xff]  ;;  %v575_v13 = vld [vmem:[%s4571_s25 + $0x4d0] sm:$0xff] }
  0x3a   : > { %498 = vst [vmem:[%s4576_s26 + $0x130] sm:$0xff] %v497_v38  ;;  %v577_v14 = vld [vmem:[%s4571_s25 + $0x4e0] sm:$0xff]  ;;  %v579_v15 = vld [vmem:[%s4571_s25 + $0x4f0] sm:$0xff] }
  0x3b   : > { %500 = vst [vmem:[%s4576_s26 + $0x138] sm:$0xff] %v499_v39  ;;  %v581_v16 = vld [vmem:[%s4571_s25 + $0x500] sm:$0xff]  ;;  %v583_v17 = vld [vmem:[%s4571_s25 + $0x510] sm:$0xff] }
  0x3c   : > { %502 = vst [vmem:[%s4576_s26 + $0x140] sm:$0xff] %v501_v40  ;;  %v585_v18 = vld [vmem:[%s4571_s25 + $0x520] sm:$0xff]  ;;  %v587_v19 = vld [vmem:[%s4571_s25 + $0x530] sm:$0xff] }
  0x3d   : > { %504 = vst [vmem:[%s4576_s26 + $0x148] sm:$0xff] %v503_v41  ;;  %v589_v20 = vld [vmem:[%s4571_s25 + $0x540] sm:$0xff]  ;;  %v591_v21 = vld [vmem:[%s4571_s25 + $0x550] sm:$0xff] }
  0x3e   : > { %506 = vst [vmem:[%s4576_s26 + $0x150] sm:$0xff] %v505_v42  ;;  %v593_v22 = vld [vmem:[%s4571_s25 + $0x560] sm:$0xff]  ;;  %v595_v23 = vld [vmem:[%s4571_s25 + $0x570] sm:$0xff] }
  0x3f   : > { %508 = vst [vmem:[%s4576_s26 + $0x158] sm:$0xff] %v507_v43  ;;  %v597_v24 = vld [vmem:[%s4571_s25 + $0x580] sm:$0xff]  ;;  %v599_v25 = vld [vmem:[%s4571_s25 + $0x590] sm:$0xff] }
  0x40   : > { %510 = vst [vmem:[%s4576_s26 + $0x160] sm:$0xff] %v509_v44  ;;  %v601_v26 = vld [vmem:[%s4571_s25 + $0x5a0] sm:$0xff]  ;;  %v603_v27 = vld [vmem:[%s4571_s25 + $0x5b0] sm:$0xff] }
  0x41   : > { %512 = vst [vmem:[%s4576_s26 + $0x168] sm:$0xff] %v511_v45  ;;  %v605_v28 = vld [vmem:[%s4571_s25 + $0x5c0] sm:$0xff]  ;;  %v607_v29 = vld [vmem:[%s4571_s25 + $0x5d0] sm:$0xff] }
  0x42   : > { %514 = vst [vmem:[%s4576_s26 + $0x170] sm:$0xff] %v513_v46  ;;  %v609_v30 = vld [vmem:[%s4571_s25 + $0x5e0] sm:$0xff]  ;;  %v611_v31 = vld [vmem:[%s4571_s25 + $0x5f0] sm:$0xff] }
  0x43   : > { %516 = vst [vmem:[%s4576_s26 + $0x178] sm:$0xff] %v515_v47  ;;  %v613_v32 = vld [vmem:[%s4571_s25 + $0x600] sm:$0xff]  ;;  %v615_v33 = vld [vmem:[%s4571_s25 + $0x610] sm:$0xff] }
  0x44   : > { %518 = vst [vmem:[%s4576_s26 + $0x180] sm:$0xff] %v517_v48  ;;  %v617_v34 = vld [vmem:[%s4571_s25 + $0x620] sm:$0xff]  ;;  %v619_v35 = vld [vmem:[%s4571_s25 + $0x630] sm:$0xff] }
  0x45   : > { %520 = vst [vmem:[%s4576_s26 + $0x188] sm:$0xff] %v519_v49  ;;  %v621_v36 = vld [vmem:[%s4571_s25 + $0x640] sm:$0xff]  ;;  %v623_v37 = vld [vmem:[%s4571_s25 + $0x650] sm:$0xff] }
  0x46   : > { %522 = vst [vmem:[%s4576_s26 + $0x190] sm:$0xff] %v521_v50  ;;  %v625_v38 = vld [vmem:[%s4571_s25 + $0x660] sm:$0xff]  ;;  %v627_v39 = vld [vmem:[%s4571_s25 + $0x670] sm:$0xff] }
  0x47   : > { %524 = vst [vmem:[%s4576_s26 + $0x198] sm:$0xff] %v523_v51  ;;  %v629_v40 = vld [vmem:[%s4571_s25 + $0x680] sm:$0xff]  ;;  %v631_v41 = vld [vmem:[%s4571_s25 + $0x690] sm:$0xff] }
  0x48   : > { %526 = vst [vmem:[%s4576_s26 + $0x1a0] sm:$0xff] %v525_v52  ;;  %v633_v42 = vld [vmem:[%s4571_s25 + $0x6a0] sm:$0xff]  ;;  %v635_v43 = vld [vmem:[%s4571_s25 + $0x6b0] sm:$0xff] }
  0x49   : > { %528 = vst [vmem:[%s4576_s26 + $0x1a8] sm:$0xff] %v527_v53  ;;  %v637_v44 = vld [vmem:[%s4571_s25 + $0x6c0] sm:$0xff]  ;;  %v639_v45 = vld [vmem:[%s4571_s25 + $0x6d0] sm:$0xff] }
  0x4a   : > { %530 = vst [vmem:[%s4576_s26 + $0x1b0] sm:$0xff] %v529_v54  ;;  %v641_v46 = vld [vmem:[%s4571_s25 + $0x6e0] sm:$0xff]  ;;  %v643_v47 = vld [vmem:[%s4571_s25 + $0x6f0] sm:$0xff] }
  0x4b   : > { %532 = vst [vmem:[%s4576_s26 + $0x1b8] sm:$0xff] %v531_v55  ;;  %v645_v48 = vld [vmem:[%s4571_s25 + $0x700] sm:$0xff]  ;;  %v647_v49 = vld [vmem:[%s4571_s25 + $0x710] sm:$0xff] }
  0x4c   : > { %534 = vst [vmem:[%s4576_s26 + $0x1c0] sm:$0xff] %v533_v56  ;;  %v649_v50 = vld [vmem:[%s4571_s25 + $0x720] sm:$0xff]  ;;  %v651_v51 = vld [vmem:[%s4571_s25 + $0x730] sm:$0xff] }
  0x4d   : > { %536 = vst [vmem:[%s4576_s26 + $0x1c8] sm:$0xff] %v535_v57  ;;  %v653_v52 = vld [vmem:[%s4571_s25 + $0x740] sm:$0xff]  ;;  %v655_v53 = vld [vmem:[%s4571_s25 + $0x750] sm:$0xff] }
  0x4e   : > { %538 = vst [vmem:[%s4576_s26 + $0x1d0] sm:$0xff] %v537_v58  ;;  %v657_v54 = vld [vmem:[%s4571_s25 + $0x760] sm:$0xff]  ;;  %v659_v55 = vld [vmem:[%s4571_s25 + $0x770] sm:$0xff] }
  0x4f   : > { %540 = vst [vmem:[%s4576_s26 + $0x1d8] sm:$0xff] %v539_v59  ;;  %v661_v56 = vld [vmem:[%s4571_s25 + $0x780] sm:$0xff]  ;;  %v663_v57 = vld [vmem:[%s4571_s25 + $0x790] sm:$0xff] }
  0x50   : > { %542 = vst [vmem:[%s4576_s26 + $0x1e0] sm:$0xff] %v541_v60  ;;  %v665_v58 = vld [vmem:[%s4571_s25 + $0x7a0] sm:$0xff]  ;;  %v667_v59 = vld [vmem:[%s4571_s25 + $0x7b0] sm:$0xff] }
  0x51   : > { %544 = vst [vmem:[%s4576_s26 + $0x1e8] sm:$0xff] %v543_v61  ;;  %v669_v60 = vld [vmem:[%s4571_s25 + $0x7c0] sm:$0xff]  ;;  %v671_v61 = vld [vmem:[%s4571_s25 + $0x7d0] sm:$0xff] }
  0x52   : > { %546 = vst [vmem:[%s4576_s26 + $0x1f0] sm:$0xff] %v545_v62  ;;  %v673_v62 = vld [vmem:[%s4571_s25 + $0x7e0] sm:$0xff] }
  0x53   : > { %548 = vst [vmem:[%s4576_s26 + $0x1f8] sm:$0xff] %v547_v63  ;;  %v675_v63 = vld [vmem:[%s4571_s25 + $0x7f0] sm:$0xff] }
  0x54   : > { %550 = vst [vmem:[%s4576_s26 + $0x200] sm:$0xff] %v549_v0 }
  0x55   : > { %552 = vst [vmem:[%s4576_s26 + $0x208] sm:$0xff] %v551_v1 }
  0x56   : > { %554 = vst [vmem:[%s4576_s26 + $0x210] sm:$0xff] %v553_v2 }
  0x57   : > { %556 = vst [vmem:[%s4576_s26 + $0x218] sm:$0xff] %v555_v3 }
  0x58   : > { %558 = vst [vmem:[%s4576_s26 + $0x220] sm:$0xff] %v557_v4 }
  0x59   : > { %560 = vst [vmem:[%s4576_s26 + $0x228] sm:$0xff] %v559_v5 }
  0x5a   : > { %562 = vst [vmem:[%s4576_s26 + $0x230] sm:$0xff] %v561_v6 }
  0x5b   : > { %564 = vst [vmem:[%s4576_s26 + $0x238] sm:$0xff] %v563_v7 }
  0x5c   : > { %566 = vst [vmem:[%s4576_s26 + $0x240] sm:$0xff] %v565_v8 }
  0x5d   : > { %568 = vst [vmem:[%s4576_s26 + $0x248] sm:$0xff] %v567_v9 }
  0x5e   : > { %570 = vst [vmem:[%s4576_s26 + $0x250] sm:$0xff] %v569_v10 }
  0x5f   : > { %572 = vst [vmem:[%s4576_s26 + $0x258] sm:$0xff] %v571_v11 }
  0x60   : > { %574 = vst [vmem:[%s4576_s26 + $0x260] sm:$0xff] %v573_v12 }
  0x61   : > { %576 = vst [vmem:[%s4576_s26 + $0x268] sm:$0xff] %v575_v13 }
  0x62   : > { %578 = vst [vmem:[%s4576_s26 + $0x270] sm:$0xff] %v577_v14 }
  0x63   : > { %580 = vst [vmem:[%s4576_s26 + $0x278] sm:$0xff] %v579_v15 }
  0x64   : > { %582 = vst [vmem:[%s4576_s26 + $0x280] sm:$0xff] %v581_v16 }
  0x65   : > { %584 = vst [vmem:[%s4576_s26 + $0x288] sm:$0xff] %v583_v17 }
  0x66   : > { %586 = vst [vmem:[%s4576_s26 + $0x290] sm:$0xff] %v585_v18 }
  0x67   : > { %588 = vst [vmem:[%s4576_s26 + $0x298] sm:$0xff] %v587_v19 }
  0x68   : > { %590 = vst [vmem:[%s4576_s26 + $0x2a0] sm:$0xff] %v589_v20 }
  0x69   : > { %592 = vst [vmem:[%s4576_s26 + $0x2a8] sm:$0xff] %v591_v21 }
  0x6a   : > { %594 = vst [vmem:[%s4576_s26 + $0x2b0] sm:$0xff] %v593_v22 }
  0x6b   : > { %596 = vst [vmem:[%s4576_s26 + $0x2b8] sm:$0xff] %v595_v23 }
  0x6c   : > { %598 = vst [vmem:[%s4576_s26 + $0x2c0] sm:$0xff] %v597_v24 }
  0x6d   : > { %600 = vst [vmem:[%s4576_s26 + $0x2c8] sm:$0xff] %v599_v25 }
  0x6e   : > { %602 = vst [vmem:[%s4576_s26 + $0x2d0] sm:$0xff] %v601_v26 }
  0x6f   : > { %604 = vst [vmem:[%s4576_s26 + $0x2d8] sm:$0xff] %v603_v27 }
  0x70   : > { %606 = vst [vmem:[%s4576_s26 + $0x2e0] sm:$0xff] %v605_v28 }
  0x71   : > { %608 = vst [vmem:[%s4576_s26 + $0x2e8] sm:$0xff] %v607_v29 }
  0x72   : > { %610 = vst [vmem:[%s4576_s26 + $0x2f0] sm:$0xff] %v609_v30 }
  0x73   : > { %612 = vst [vmem:[%s4576_s26 + $0x2f8] sm:$0xff] %v611_v31 }
  0x74   : > { %614 = vst [vmem:[%s4576_s26 + $0x300] sm:$0xff] %v613_v32 }
  0x75   : > { %616 = vst [vmem:[%s4576_s26 + $0x308] sm:$0xff] %v615_v33 }
  0x76   : > { %618 = vst [vmem:[%s4576_s26 + $0x310] sm:$0xff] %v617_v34 }
  0x77   : > { %620 = vst [vmem:[%s4576_s26 + $0x318] sm:$0xff] %v619_v35 }
  0x78   : > { %622 = vst [vmem:[%s4576_s26 + $0x320] sm:$0xff] %v621_v36 }
  0x79   : > { %624 = vst [vmem:[%s4576_s26 + $0x328] sm:$0xff] %v623_v37 }
  0x7a   : > { %626 = vst [vmem:[%s4576_s26 + $0x330] sm:$0xff] %v625_v38 }
  0x7b   : > { %628 = vst [vmem:[%s4576_s26 + $0x338] sm:$0xff] %v627_v39 }
  0x7c   : > { %630 = vst [vmem:[%s4576_s26 + $0x340] sm:$0xff] %v629_v40 }
  0x7d   : > { %632 = vst [vmem:[%s4576_s26 + $0x348] sm:$0xff] %v631_v41 }
  0x7e   : > { %634 = vst [vmem:[%s4576_s26 + $0x350] sm:$0xff] %v633_v42 }
  0x7f   : > { %636 = vst [vmem:[%s4576_s26 + $0x358] sm:$0xff] %v635_v43 }
  0x80   : > { %638 = vst [vmem:[%s4576_s26 + $0x360] sm:$0xff] %v637_v44 }
  0x81   : > { %640 = vst [vmem:[%s4576_s26 + $0x368] sm:$0xff] %v639_v45 }
  0x82   : > { %642 = vst [vmem:[%s4576_s26 + $0x370] sm:$0xff] %v641_v46 }
  0x83   : > { %644 = vst [vmem:[%s4576_s26 + $0x378] sm:$0xff] %v643_v47 }
  0x84   : > { %646 = vst [vmem:[%s4576_s26 + $0x380] sm:$0xff] %v645_v48 }
  0x85   : > { %648 = vst [vmem:[%s4576_s26 + $0x388] sm:$0xff] %v647_v49 }
  0x86   : > { %650 = vst [vmem:[%s4576_s26 + $0x390] sm:$0xff] %v649_v50 }
  0x87   : > { %652 = vst [vmem:[%s4576_s26 + $0x398] sm:$0xff] %v651_v51 }
  0x88   : > { %654 = vst [vmem:[%s4576_s26 + $0x3a0] sm:$0xff] %v653_v52 }
  0x89   : > { %656 = vst [vmem:[%s4576_s26 + $0x3a8] sm:$0xff] %v655_v53 }
  0x8a   : > { %658 = vst [vmem:[%s4576_s26 + $0x3b0] sm:$0xff] %v657_v54 }
  0x8b   : > { %660 = vst [vmem:[%s4576_s26 + $0x3b8] sm:$0xff] %v659_v55 }
  0x8c   : > { %662 = vst [vmem:[%s4576_s26 + $0x3c0] sm:$0xff] %v661_v56 }
  0x8d   : > { %664 = vst [vmem:[%s4576_s26 + $0x3c8] sm:$0xff] %v663_v57 }
  0x8e   : > { %666 = vst [vmem:[%s4576_s26 + $0x3d0] sm:$0xff] %v665_v58 }
  0x8f   : > { %668 = vst [vmem:[%s4576_s26 + $0x3d8] sm:$0xff] %v667_v59 }
  0x90   : > { %670 = vst [vmem:[%s4576_s26 + $0x3e0] sm:$0xff] %v669_v60 }
  0x91   : > { %672 = vst [vmem:[%s4576_s26 + $0x3e8] sm:$0xff] %v671_v61 }
  0x92   : > { %674 = vst [vmem:[%s4576_s26 + $0x3f0] sm:$0xff] %v673_v62 }
  0x93   : > { %676 = vst [vmem:[%s4576_s26 + $0x3f8] sm:$0xff] %v675_v63 }
  0x94 PF: > { %p3339_p8 = scmp.ge.s32.totalorder %s4506_s13, 1  ;;  %p681_p9 = scmp.lt.s32.totalorder %s4506_s13, 3 }
  0x96   : > { %p682_p10 = pnand %p3339_p8, %p681_p9 }
  0x98   : > { %685 = sbr.rel (%p682_p10) target bundleno = 1039 (0x40f), region = 62 }
  0x9d   : > { %s688_s27 = sand.u32 1, %s4490_s9  }
  0x9e   : > { %s3340_s28 = sshll.u32 %s688_s27, 10  ;;  %s4427_s24 = smul.u32 352, %s688_s27 }
  0x9f   : > { %s4836_s29 = scalar_lea.vmem [#allocation2], %s3340_s28 }
  0xa0   : > { %v3751_v0 = vld [vmem:[%s4836_s29 + $0x70] sm:$0xf]  ;;  %v4313_v1 = vld [vmem:[%s4836_s29 + $0x74] sm:$0xf0]  ;;  %v3743_v11 = vld [vmem:[%s4836_s29 + $0x60] sm:$0xf] }
  0xa1   : > { %v3815_v2 = vld [vmem:[%s4836_s29 + $0xf0] sm:$0xf]  ;;  %v3752_v3 = vor.u32 %v4313_v1, %v3751_v0  ;;  %v4329_v4 = vld [vmem:[%s4836_s29 + $0xf4] sm:$0xf0]  ;;  %v4311_v13 = vld [vmem:[%s4836_s29 + $0x64] sm:$0xf0] }
  0xa2   : > { %v3879_v5 = vld [vmem:[%s4836_s29 + $0x170] sm:$0xf]  ;;  %v4345_v6 = vld [vmem:[%s4836_s29 + $0x174] sm:$0xf0]  ;;  %v3816_v7 = vor.u32 %v4329_v4, %v3815_v2  ;;  %v3807_v14 = vld [vmem:[%s4836_s29 + $0xe0] sm:$0xf]  ;;  %v3744_v16 = vor.u32 %v4311_v13, %v3743_v11 }
  0xa3   : > { %v3880_v8 = vor.u32 %v4345_v6, %v3879_v5  ;;  %v3943_v9 = vld [vmem:[%s4836_s29 + $0x1f0] sm:$0xf]  ;;  %v4361_v10 = vld [vmem:[%s4836_s29 + $0x1f4] sm:$0xf0]  ;;  %2020 = vmatpush.bf16.msra.mxu0 %v3752_v3  ;;  %v4327_v15 = vld [vmem:[%s4836_s29 + $0xe4] sm:$0xf0] }
  0xa4   : > { %v3944_v12 = vor.u32 %v4361_v10, %v3943_v9  ;;  %2084 = vmatpush.bf16.msra.mxu1 %v3816_v7  ;;  %v3808_v17 = vor.u32 %v4327_v15, %v3807_v14  ;;  %v3871_v18 = vld [vmem:[%s4836_s29 + $0x160] sm:$0xf]  ;;  %v4343_v19 = vld [vmem:[%s4836_s29 + $0x164] sm:$0xf0]  ;;  %v3735_v23 = vld [vmem:[%s4836_s29 + $0x50] sm:$0xf] }
  0xa5   : > { %2148 = vmatpush.bf16.msra.mxu2 %v3880_v8  ;;  %v3935_v20 = vld [vmem:[%s4836_s29 + $0x1e0] sm:$0xf]  ;;  %v3872_v21 = vor.u32 %v4343_v19, %v3871_v18  ;;  %v4359_v22 = vld [vmem:[%s4836_s29 + $0x1e4] sm:$0xf0]  ;;  %v4309_v24 = vld [vmem:[%s4836_s29 + $0x54] sm:$0xf0] }
  0xa6   : > { %2212 = vmatpush.bf16.msra.mxu3 %v3944_v12  ;;  %v3936_v25 = vor.u32 %v4359_v22, %v3935_v20  ;;  %v3799_v26 = vld [vmem:[%s4836_s29 + $0xd0] sm:$0xf]  ;;  %v4325_v27 = vld [vmem:[%s4836_s29 + $0xd4] sm:$0xf0]  ;;  %v3736_v29 = vor.u32 %v4309_v24, %v3735_v23  ;;  %v3727_v35 = vld [vmem:[%s4836_s29 + $0x40] sm:$0xf] }
  0xa7   : > { %v3863_v28 = vld [vmem:[%s4836_s29 + $0x150] sm:$0xf]  ;;  %2021 = vmatpush.bf16.msra.mxu0 %v3744_v16  ;;  %v4341_v30 = vld [vmem:[%s4836_s29 + $0x154] sm:$0xf0]  ;;  %v3800_v33 = vor.u32 %v4325_v27, %v3799_v26  ;;  %v4307_v36 = vld [vmem:[%s4836_s29 + $0x44] sm:$0xf0] }
  0xa8   : > { %v3927_v31 = vld [vmem:[%s4836_s29 + $0x1d0] sm:$0xf]  ;;  %v4357_v32 = vld [vmem:[%s4836_s29 + $0x1d4] sm:$0xf0]  ;;  %2085 = vmatpush.bf16.msra.mxu1 %v3808_v17  ;;  %v3864_v34 = vor.u32 %v4341_v30, %v3863_v28  ;;  %v3791_v37 = vld [vmem:[%s4836_s29 + $0xc0] sm:$0xf]  ;;  %v3728_v44 = vor.u32 %v4307_v36, %v3727_v35 }
  0xa9   : > { %2149 = vmatpush.bf16.msra.mxu2 %v3872_v21  ;;  %v3928_v38 = vor.u32 %v4357_v32, %v3927_v31  ;;  %v4323_v39 = vld [vmem:[%s4836_s29 + $0xc4] sm:$0xf0]  ;;  %v3855_v40 = vld [vmem:[%s4836_s29 + $0x140] sm:$0xf]  ;;  %v3719_v47 = vld [vmem:[%s4836_s29 + $0x30] sm:$0xf] }
  0xaa   : > { %2213 = vmatpush.bf16.msra.mxu3 %v3936_v25  ;;  %v4339_v41 = vld [vmem:[%s4836_s29 + $0x144] sm:$0xf0]  ;;  %v3919_v42 = vld [vmem:[%s4836_s29 + $0x1c0] sm:$0xf]  ;;  %v3792_v45 = vor.u32 %v4323_v39, %v3791_v37  ;;  %v4305_v48 = vld [vmem:[%s4836_s29 + $0x34] sm:$0xf0] }
  0xab   : > { %v4355_v43 = vld [vmem:[%s4836_s29 + $0x1c4] sm:$0xf0]  ;;  %2022 = vmatpush.bf16.msra.mxu0 %v3736_v29  ;;  %v3856_v46 = vor.u32 %v4339_v41, %v3855_v40  ;;  %v3783_v49 = vld [vmem:[%s4836_s29 + $0xb0] sm:$0xf]  ;;  %v4321_v51 = vld [vmem:[%s4836_s29 + $0xb4] sm:$0xf0]  ;;  %v3720_v56 = vor.u32 %v4305_v48, %v3719_v47 }
  0xac   : > { %2086 = vmatpush.bf16.msra.mxu1 %v3800_v33  ;;  %v3920_v50 = vor.u32 %v4355_v43, %v3919_v42  ;;  %v3847_v52 = vld [vmem:[%s4836_s29 + $0x130] sm:$0xf]  ;;  %v4337_v53 = vld [vmem:[%s4836_s29 + $0x134] sm:$0xf0]  ;;  %v3784_v57 = vor.u32 %v4321_v51, %v3783_v49  ;;  %v3711_v59 = vld [vmem:[%s4836_s29 + $0x20] sm:$0xf] }
  0xad   : > { %2150 = vmatpush.bf16.msra.mxu2 %v3864_v34  ;;  %v3911_v54 = vld [vmem:[%s4836_s29 + $0x1b0] sm:$0xf]  ;;  %v4353_v55 = vld [vmem:[%s4836_s29 + $0x1b4] sm:$0xf0]  ;;  %v3848_v58 = vor.u32 %v4337_v53, %v3847_v52  ;;  %v4303_v60 = vld [vmem:[%s4836_s29 + $0x24] sm:$0xf0] }
  0xae   : > { %2214 = vmatpush.bf16.msra.mxu3 %v3928_v38  ;;  %v3775_v61 = vld [vmem:[%s4836_s29 + $0xa0] sm:$0xf]  ;;  %v3912_v62 = vor.u32 %v4353_v55, %v3911_v54  ;;  %v4319_v63 = vld [vmem:[%s4836_s29 + $0xa4] sm:$0xf0]  ;;  %v3712_v4 = vor.u32 %v4303_v60, %v3711_v59  ;;  %v3703_v7 = vld [vmem:[%s4836_s29 + $0x10] sm:$0xf] }
  0xaf   : > { %2023 = vmatpush.bf16.msra.mxu0 %v3728_v44  ;;  %v3839_v0 = vld [vmem:[%s4836_s29 + $0x120] sm:$0xf]  ;;  %v4335_v1 = vld [vmem:[%s4836_s29 + $0x124] sm:$0xf0]  ;;  %v3776_v5 = vor.u32 %v4319_v63, %v3775_v61  ;;  %v4301_v8 = vld [vmem:[%s4836_s29 + $0x14] sm:$0xf0] }
  0xb0   : > { %2087 = vmatpush.bf16.msra.mxu1 %v3792_v45  ;;  %v3903_v2 = vld [vmem:[%s4836_s29 + $0x1a0] sm:$0xf]  ;;  %v4351_v3 = vld [vmem:[%s4836_s29 + $0x1a4] sm:$0xf0]  ;;  %v3840_v6 = vor.u32 %v4335_v1, %v3839_v0  ;;  %v3767_v9 = vld [vmem:[%s4836_s29 + $0x90] sm:$0xf]  ;;  %v3704_v17 = vor.u32 %v4301_v8, %v3703_v7 }
  0xb1   : > { %2151 = vmatpush.bf16.msra.mxu2 %v3856_v46  ;;  %v3904_v10 = vor.u32 %v4351_v3, %v3903_v2  ;;  %v4317_v11 = vld [vmem:[%s4836_s29 + $0x94] sm:$0xf0]  ;;  %v3831_v12 = vld [vmem:[%s4836_s29 + $0x110] sm:$0xf]  ;;  %v3695_v16 = vld [vmem:[%s4836_s29] sm:$0xf] }
  0xb2   : > { %2215 = vmatpush.bf16.msra.mxu3 %v3920_v50  ;;  %v4333_v13 = vld [vmem:[%s4836_s29 + $0x114] sm:$0xf0]  ;;  %v3895_v14 = vld [vmem:[%s4836_s29 + $0x190] sm:$0xf]  ;;  %v4299_v18 = vld [vmem:[%s4836_s29 + $0x4] sm:$0xf0]  ;;  %v3768_v21 = vor.u32 %v4317_v11, %v3767_v9 }
  0xb3   : > { %2024 = vmatpush.bf16.msra.mxu0 %v3720_v56  ;;  %v4349_v15 = vld [vmem:[%s4836_s29 + $0x194] sm:$0xf0]  ;;  %v3759_v19 = vld [vmem:[%s4836_s29 + $0x80] sm:$0xf]  ;;  %v4315_v20 = vld [vmem:[%s4836_s29 + $0x84] sm:$0xf0]  ;;  %v3832_v22 = vor.u32 %v4333_v13, %v3831_v12  ;;  %v3696_v34 = vor.u32 %v4299_v18, %v3695_v16 }
  0xb4   : > { %2088 = vmatpush.bf16.msra.mxu1 %v3784_v57  ;;  %v3823_v23 = vld [vmem:[%s4836_s29 + $0x100] sm:$0xf]  ;;  %v4331_v24 = vld [vmem:[%s4836_s29 + $0x104] sm:$0xf0]  ;;  %v3896_v26 = vor.u32 %v4349_v15, %v3895_v14  ;;  %v4210_v30 = vld [vmem:[%s6265_s0 + $0x4] sm:$0xf]  ;;  %v3760_v38 = vor.u32 %v4315_v20, %v3759_v19 }
  0xb5   : > { %2152 = vmatpush.bf16.msra.mxu2 %v3848_v58  ;;  %v3887_v25 = vld [vmem:[%s4836_s29 + $0x180] sm:$0xf]  ;;  %v4347_v27 = vld [vmem:[%s4836_s29 + $0x184] sm:$0xf0]  ;;  %v3345_v31 = vld [vmem:[%s6265_s0 + $0x20] sm:$0xf0]  ;;  %v3824_v39 = vor.u32 %v4331_v24, %v3823_v23 }
  0xb6   : > { %2216 = vmatpush.bf16.msra.mxu3 %v3912_v62  ;;  %v3343_v28 = vld [vmem:[%s6265_s0] sm:$0xf]  ;;  %v4135_v32 = vld [vmem:[%s4836_s29 + $0x370] sm:$0xf]  ;;  %v4409_v33 = vld [vmem:[%s4836_s29 + $0x374] sm:$0xf0]  ;;  %v3888_v43 = vor.u32 %v4347_v27, %v3887_v25  ;;  %v4938_v53 = vor.u32 %v4210_v30, %v3345_v31 }
  0xb7   : > { %2025 = vmatpush.bf16.msra.mxu0 %v3712_v4  ;;  %v4214_v29 = vld [vmem:[%s6265_s0 + $0x1c] sm:$0xf0]  ;;  %v3351_v35 = vld [vmem:[%s6265_s0 + $0x8] sm:$0xf]  ;;  %v4199_v36 = vld [vmem:[%s4836_s29 + $0x3f0] sm:$0xf]  ;;  %v4136_v44 = vor.u32 %v4409_v33, %v4135_v32 }
  0xb8   : > { %2089 = vmatpush.bf16.msra.mxu1 %v3776_v5  ;;  %v4425_v37 = vld [vmem:[%s4836_s29 + $0x3f4] sm:$0xf0]  ;;  %v4215_v40 = vld [vmem:[%s6265_s0 + $0x24] sm:$0xf0]  ;;  %v4211_v41 = vld [vmem:[%s6265_s0 + $0xc] sm:$0xf]  ;;  %v4933_v48 = vor.u32 %v4214_v29, %v3343_v28 }
  0xb9   : > { %2153 = vmatpush.bf16.msra.mxu2 %v3840_v6  ;;  %v3353_v42 = vld [vmem:[%s6265_s0 + $0x28] sm:$0xf0]  ;;  %v4007_v45 = vld [vmem:[%s4836_s29 + $0x270] sm:$0xf]  ;;  %v4377_v46 = vld [vmem:[%s4836_s29 + $0x274] sm:$0xf0]  ;;  %v4200_v49 = vor.u32 %v4425_v37, %v4199_v36  ;;  %v4940_v54 = vor.u32 %v4215_v40, %v3351_v35 }
  0xba   : > { %2217 = vmatpush.bf16.msra.mxu3 %v3904_v10  ;;  %v4071_v47 = vld [vmem:[%s4836_s29 + $0x2f0] sm:$0xf]  ;;  %v4393_v50 = vld [vmem:[%s4836_s29 + $0x2f4] sm:$0xf0]  ;;  %v4127_v51 = vld [vmem:[%s4836_s29 + $0x360] sm:$0xf]  ;;  %v4944_v57 = vor.u32 %v4211_v41, %v3353_v42  ;;  %v4008_v58 = vor.u32 %v4377_v46, %v4007_v45 }
  0xbb   : > { %2026 = vmatpush.bf16.msra.mxu0 %v3704_v17  ;;  %v4407_v52 = vld [vmem:[%s4836_s29 + $0x364] sm:$0xf0]  ;;  %v4191_v55 = vld [vmem:[%s4836_s29 + $0x3e0] sm:$0xf]  ;;  %v4072_v59 = vor.u32 %v4393_v50, %v4071_v47  ;;  %v4119_v3 = vld [vmem:[%s4836_s29 + $0x350] sm:$0xf] }
  0xbc   : > { %2090 = vmatpush.bf16.msra.mxu1 %v3768_v21  ;;  %v4423_v56 = vld [vmem:[%s4836_s29 + $0x3e4] sm:$0xf0]  ;;  %v4128_v60 = vor.u32 %v4407_v52, %v4127_v51  ;;  %v3999_v61 = vld [vmem:[%s4836_s29 + $0x260] sm:$0xf]  ;;  %v4405_v4 = vld [vmem:[%s4836_s29 + $0x354] sm:$0xf0] }
  0xbd   : > { %2154 = vmatpush.bf16.msra.mxu2 %v3832_v22  ;;  %v4375_v62 = vld [vmem:[%s4836_s29 + $0x264] sm:$0xf0]  ;;  %v4192_v63 = vor.u32 %v4423_v56, %v4191_v55  ;;  %v4063_v0 = vld [vmem:[%s4836_s29 + $0x2e0] sm:$0xf]  ;;  %v3991_v5 = vld [vmem:[%s4836_s29 + $0x250] sm:$0xf]  ;;  %v4120_v7 = vor.u32 %v4405_v4, %v4119_v3 }
  0xbe   : > { %2218 = vmatpush.bf16.msra.mxu3 %v3896_v26  ;;  %v4391_v1 = vld [vmem:[%s4836_s29 + $0x2e4] sm:$0xf0]  ;;  %v4000_v2 = vor.u32 %v4375_v62, %v3999_v61  ;;  %v4373_v8 = vld [vmem:[%s4836_s29 + $0x254] sm:$0xf0]  ;;  %v4183_v9 = vld [vmem:[%s4836_s29 + $0x3d0] sm:$0xf] }
  0xbf   : > { %2027 = vmatpush.bf16.msra.mxu0 %v3696_v34  ;;  %v4064_v6 = vor.u32 %v4391_v1, %v4063_v0  ;;  %v4421_v10 = vld [vmem:[%s4836_s29 + $0x3d4] sm:$0xf0]  ;;  %v3992_v12 = vor.u32 %v4373_v8, %v3991_v5  ;;  %v3375_v13 = vld [vmem:[%s6265_s0 + $0x40] sm:$0xf]  ;;  %v4218_v15 = vld [vmem:[%s6265_s0 + $0x44] sm:$0xf] }
  0xc0   : > { %2091 = vmatpush.bf16.msra.mxu1 %v3760_v38  ;;  %v4184_v11 = vor.u32 %v4421_v10, %v4183_v9  ;;  %v4222_v14 = vld [vmem:[%s6265_s0 + $0x5c] sm:$0xf0]  ;;  %v3377_v16 = vld [vmem:[%s6265_s0 + $0x60] sm:$0xf0]  ;;  %v3383_v17 = vld [vmem:[%s6265_s0 + $0x48] sm:$0xf] }
  0xc1   : > { %2155 = vmatpush.bf16.msra.mxu2 %v3824_v39  ;;  %v4223_v18 = vld [vmem:[%s6265_s0 + $0x64] sm:$0xf0]  ;;  %v4219_v19 = vld [vmem:[%s6265_s0 + $0x4c] sm:$0xf]  ;;  %v4984_v21 = vor.u32 %v4222_v14, %v3375_v13  ;;  %v4986_v22 = vor.u32 %v4218_v15, %v3377_v16  ;;  %v4055_v25 = vld [vmem:[%s4836_s29 + $0x2d0] sm:$0xf] }
  0xc2   : > { %2219 = vmatpush.bf16.msra.mxu3 %v3888_v43  ;;  %2028 = vmatmul.bf16.vlgmr.msra.gmra.mxu0 %v4933_v48  ;;  %v3385_v20 = vld [vmem:[%s6265_s0 + $0x68] sm:$0xf0]  ;;  %v4988_v23 = vor.u32 %v4223_v18, %v3383_v17  ;;  %v4389_v26 = vld [vmem:[%s4836_s29 + $0x2d4] sm:$0xf0]  ;;  %v3407_v28 = vld [vmem:[%s6265_s0 + $0x80] sm:$0xf] }
  0xc3   : > { %2092 = vmatmul.bf16.vlgmr.msra.gmra.mxu1 %v4938_v53  ;;  %2276 = vmatpush.bf16.msrb.mxu0 %v4008_v58  ;;  %v4990_v24 = vor.u32 %v4219_v19, %v3385_v20  ;;  %v4056_v27 = vor.u32 %v4389_v26, %v4055_v25  ;;  %v4230_v29 = vld [vmem:[%s6265_s0 + $0x9c] sm:$0xf0]  ;;  %v4226_v30 = vld [vmem:[%s6265_s0 + $0x84] sm:$0xf]  ;;  %v3415_v32 = vld [vmem:[%s6265_s0 + $0x88] sm:$0xf] }
  0xc4   : > { %2156 = vmatmul.bf16.vlgmr.msra.gmra.mxu2 %v4940_v54  ;;  %2340 = vmatpush.bf16.msrb.mxu1 %v4072_v59  ;;  %v3409_v31 = vld [vmem:[%s6265_s0 + $0xa0] sm:$0xf0]  ;;  %v4231_v33 = vld [vmem:[%s6265_s0 + $0xa4] sm:$0xf0]  ;;  %v4227_v34 = vld [vmem:[%s6265_s0 + $0x8c] sm:$0xf]  ;;  %v5022_v36 = vor.u32 %v4230_v29, %v3407_v28 }
  0xc5   : > { %2404 = vmatpush.bf16.msrb.mxu2 %v4136_v44  ;;  %2220 = vmatmul.bf16.vlgmr.msra.gmra.mxu3 %v4944_v57  ;;  %v3417_v35 = vld [vmem:[%s6265_s0 + $0xa8] sm:$0xf0]  ;;  %v5024_v37 = vor.u32 %v4226_v30, %v3409_v31  ;;  %v5026_v38 = vor.u32 %v4231_v33, %v3415_v32  ;;  %v4111_v40 = vld [vmem:[%s4836_s29 + $0x340] sm:$0xf]  ;;  %v4403_v41 = vld [vmem:[%s4836_s29 + $0x344] sm:$0xf0] }
  0xc6   : > { %2468 = vmatpush.bf16.msrb.mxu3 %v4200_v49  ;;  %v5028_v39 = vor.u32 %v4227_v34, %v3417_v35  ;;  %v3983_v42 = vld [vmem:[%s4836_s29 + $0x240] sm:$0xf]  ;;  %v4112_v43 = vor.u32 %v4403_v41, %v4111_v40  ;;  %v4371_v44 = vld [vmem:[%s4836_s29 + $0x244] sm:$0xf0]  ;;  %v4234_v58 = vld [vmem:[%s6265_s0 + $0xc4] sm:$0xf] }
  0xc7   : > { %2277 = vmatpush.bf16.msrb.mxu0 %v4000_v2  ;;  %v4175_v45 = vld [vmem:[%s4836_s29 + $0x3c0] sm:$0xf]  ;;  %v4419_v46 = vld [vmem:[%s4836_s29 + $0x3c4] sm:$0xf0]  ;;  %v3984_v47 = vor.u32 %v4371_v44, %v3983_v42  ;;  %v3441_v59 = vld [vmem:[%s6265_s0 + $0xe0] sm:$0xf0] }
  0xc8   : > { %2341 = vmatpush.bf16.msrb.mxu1 %v4064_v6  ;;  %v4176_v49 = vor.u32 %v4419_v46, %v4175_v45  ;;  %v4047_v50 = vld [vmem:[%s4836_s29 + $0x2c0] sm:$0xf]  ;;  %v4387_v51 = vld [vmem:[%s4836_s29 + $0x2c4] sm:$0xf0]  ;;  %v4235_v62 = vld [vmem:[%s6265_s0 + $0xcc] sm:$0xf]  ;;  %v5068_v1 = vor.u32 %v4234_v58, %v3441_v59 }
  0xc9   : > { %2405 = vmatpush.bf16.msrb.mxu2 %v4128_v60  ;;  %v4048_v52 = vor.u32 %v4387_v51, %v4047_v50  ;;  %v3439_v55 = vld [vmem:[%s6265_s0 + $0xc0] sm:$0xf]  ;;  %v3447_v60 = vld [vmem:[%s6265_s0 + $0xc8] sm:$0xf]  ;;  %v4103_v4 = vld [vmem:[%s4836_s29 + $0x330] sm:$0xf] }
  0xca   : > { %2469 = vmatpush.bf16.msrb.mxu3 %v4192_v63  ;;  %v4238_v56 = vld [vmem:[%s6265_s0 + $0xdc] sm:$0xf0]  ;;  %v4239_v61 = vld [vmem:[%s6265_s0 + $0xe4] sm:$0xf0]  ;;  %v3449_v63 = vld [vmem:[%s6265_s0 + $0xe8] sm:$0xf0] }
  0xcb   : > { %2278 = vmatpush.bf16.msrb.mxu0 %v3992_v12  ;;  %v5066_v0 = vor.u32 %v4238_v56, %v3439_v55  ;;  %v5070_v2 = vor.u32 %v4239_v61, %v3447_v60  ;;  %v5072_v3 = vor.u32 %v4235_v62, %v3449_v63  ;;  %v4401_v5 = vld [vmem:[%s4836_s29 + $0x334] sm:$0xf0]  ;;  %v3975_v6 = vld [vmem:[%s4836_s29 + $0x230] sm:$0xf]  ;;  %v3471_v16 = vld [vmem:[%s6265_s0 + $0x100] sm:$0xf] }
  0xcc   : > { %2342 = vmatpush.bf16.msrb.mxu1 %v4056_v27  ;;  %v4369_v8 = vld [vmem:[%s4836_s29 + $0x234] sm:$0xf0]  ;;  %v4167_v9 = vld [vmem:[%s4836_s29 + $0x3b0] sm:$0xf]  ;;  %v4246_v17 = vld [vmem:[%s6265_s0 + $0x11c] sm:$0xf0] }
  0xcd   : > { %2406 = vmatpush.bf16.msrb.mxu2 %v4120_v7  ;;  %v4104_v7 = vor.u32 %v4401_v5, %v4103_v4  ;;  %v4417_v10 = vld [vmem:[%s4836_s29 + $0x3b4] sm:$0xf0]  ;;  %v4039_v13 = vld [vmem:[%s4836_s29 + $0x2b0] sm:$0xf]  ;;  %v4242_v18 = vld [vmem:[%s6265_s0 + $0x104] sm:$0xf]  ;;  %v5110_v28 = vor.u32 %v4246_v17, %v3471_v16 }
  0xce   : > { %2470 = vmatpush.bf16.msrb.mxu3 %v4184_v11  ;;  %v3976_v11 = vor.u32 %v4369_v8, %v3975_v6  ;;  %v4168_v12 = vor.u32 %v4417_v10, %v4167_v9  ;;  %v4385_v14 = vld [vmem:[%s4836_s29 + $0x2b4] sm:$0xf0]  ;;  %v3473_v19 = vld [vmem:[%s6265_s0 + $0x120] sm:$0xf0]  ;;  %v3479_v20 = vld [vmem:[%s6265_s0 + $0x108] sm:$0xf] }
  0xcf   : > { %2279 = vmatpush.bf16.msrb.mxu0 %v3984_v47  ;;  %v4040_v15 = vor.u32 %v4385_v14, %v4039_v13  ;;  %v4247_v25 = vld [vmem:[%s6265_s0 + $0x124] sm:$0xf0]  ;;  %v4243_v26 = vld [vmem:[%s6265_s0 + $0x10c] sm:$0xf]  ;;  %v5112_v29 = vor.u32 %v4242_v18, %v3473_v19  ;;  %v4095_v32 = vld [vmem:[%s4836_s29 + $0x320] sm:$0xf] }
  0xd0   : > { %2343 = vmatpush.bf16.msrb.mxu1 %v4048_v52  ;;  %v3481_v27 = vld [vmem:[%s6265_s0 + $0x128] sm:$0xf0]  ;;  %v5114_v30 = vor.u32 %v4247_v25, %v3479_v20  ;;  %v4399_v33 = vld [vmem:[%s4836_s29 + $0x324] sm:$0xf0]  ;;  %v3503_v35 = vld [vmem:[%s6265_s0 + $0x140] sm:$0xf] }
  0xd1   : > { %2407 = vmatpush.bf16.msrb.mxu2 %v4112_v43  ;;  %v5116_v31 = vor.u32 %v4243_v26, %v3481_v27  ;;  %v4096_v34 = vor.u32 %v4399_v33, %v4095_v32  ;;  %v4254_v40 = vld [vmem:[%s6265_s0 + $0x15c] sm:$0xf0]  ;;  %v4250_v41 = vld [vmem:[%s6265_s0 + $0x144] sm:$0xf]  ;;  %v3511_v43 = vld [vmem:[%s6265_s0 + $0x148] sm:$0xf] }
  0xd2   : > { %2033 = vmatmul.bf16.gmra.mxu0 %v4984_v21  ;;  %2471 = vmatpush.bf16.msrb.mxu3 %v4176_v49  ;;  %v3505_v42 = vld [vmem:[%s6265_s0 + $0x160] sm:$0xf0]  ;;  %v4255_v44 = vld [vmem:[%s6265_s0 + $0x164] sm:$0xf0]  ;;  %v4251_v45 = vld [vmem:[%s6265_s0 + $0x14c] sm:$0xf]  ;;  %v5148_v47 = vor.u32 %v4254_v40, %v3503_v35 }
  0xd3   : > { %2097 = vmatmul.bf16.gmra.mxu1 %v4986_v22  ;;  %2280 = vmatpush.bf16.msrb.mxu0 %v3976_v11  ;;  %v3513_v46 = vld [vmem:[%s6265_s0 + $0x168] sm:$0xf0]  ;;  %v5150_v49 = vor.u32 %v4250_v41, %v3505_v42  ;;  %v5152_v50 = vor.u32 %v4255_v44, %v3511_v43  ;;  %v3967_v52 = vld [vmem:[%s4836_s29 + $0x220] sm:$0xf]  ;;  %v4367_v55 = vld [vmem:[%s4836_s29 + $0x224] sm:$0xf0] }
  0xd4   : > { %2161 = vmatmul.bf16.gmra.mxu2 %v4988_v23  ;;  %2344 = vmatpush.bf16.msrb.mxu1 %v4040_v15  ;;  %6327 = vst [vmem:[#allocation4_spill] sm:$0xff] %v5148_v47  ;;  %v5154_v51 = vor.u32 %v4251_v45, %v3513_v46  ;;  %v4159_v56 = vld [vmem:[%s4836_s29 + $0x3a0] sm:$0xf]  ;;  %v3968_v58 = vor.u32 %v4367_v55, %v3967_v52  ;;  %v4415_v59 = vld [vmem:[%s4836_s29 + $0x3a4] sm:$0xf0]  ;;  %s5816_s15 = scalar_lea.vmem [#allocation3], %s4427_s24 }
  0xd5   : > { %2225 = vmatmul.bf16.gmra.mxu3 %v4990_v24  ;;  %2408 = vmatpush.bf16.msrb.mxu2 %v4104_v7  ;;  %6328 = vst [vmem:[#allocation5_spill] sm:$0xff] %v5150_v49  ;;  %v4031_v60 = vld [vmem:[%s4836_s29 + $0x2a0] sm:$0xf]  ;;  %v4383_v61 = vld [vmem:[%s4836_s29 + $0x2a4] sm:$0xf0]  ;;  %v4160_v62 = vor.u32 %v4415_v59, %v4159_v56 }
  0xd6   : > { %2472 = vmatpush.bf16.msrb.mxu3 %v4168_v12  ;;  %6329 = vst [vmem:[#allocation6_spill] sm:$0xff] %v5152_v50  ;;  %v4032_v63 = vor.u32 %v4383_v61, %v4031_v60  ;;  %v3535_v4 = vld [vmem:[%s6265_s0 + $0x180] sm:$0xf]  ;;  %v4258_v6 = vld [vmem:[%s6265_s0 + $0x184] sm:$0xf] }
  0xd7   : > { %6330 = vst [vmem:[#allocation7_spill] sm:$0xff] %v5154_v51  ;;  %2281 = vmatpush.bf16.msrb.mxu0 %v3968_v58  ;;  %v4262_v5 = vld [vmem:[%s6265_s0 + $0x19c] sm:$0xf0]  ;;  %v3537_v7 = vld [vmem:[%s6265_s0 + $0x1a0] sm:$0xf0] }
  0xd8   : > { %2345 = vmatpush.bf16.msrb.mxu1 %v4032_v63  ;;  %v3543_v8 = vld [vmem:[%s6265_s0 + $0x188] sm:$0xf]  ;;  %v4259_v10 = vld [vmem:[%s6265_s0 + $0x18c] sm:$0xf]  ;;  %v5190_v12 = vor.u32 %v4262_v5, %v3535_v4  ;;  %v5192_v13 = vor.u32 %v4258_v6, %v3537_v7  ;;  %v3567_v16 = vld [vmem:[%s6265_s0 + $0x1c0] sm:$0xf] }
  0xd9   : > { %2409 = vmatpush.bf16.msrb.mxu2 %v4096_v34  ;;  %v4263_v9 = vld [vmem:[%s6265_s0 + $0x1a4] sm:$0xf0]  ;;  %v3545_v11 = vld [vmem:[%s6265_s0 + $0x1a8] sm:$0xf0]  ;;  %v4270_v17 = vld [vmem:[%s6265_s0 + $0x1dc] sm:$0xf0] }
  0xda   : > { %2473 = vmatpush.bf16.msrb.mxu3 %v4160_v62  ;;  %6331 = vst [vmem:[#allocation8_spill] sm:$0xff] %v5190_v12  ;;  %v5194_v14 = vor.u32 %v4263_v9, %v3543_v8  ;;  %v5196_v15 = vor.u32 %v4259_v10, %v3545_v11  ;;  %v4087_v18 = vld [vmem:[%s4836_s29 + $0x310] sm:$0xf]  ;;  %v4397_v19 = vld [vmem:[%s4836_s29 + $0x314] sm:$0xf0]  ;;  %v5234_v55 = vor.u32 %v4270_v17, %v3567_v16 }
  0xdb   : > { %6332 = vst [vmem:[#allocation9_spill] sm:$0xff] %v5192_v13  ;;  %v3959_v20 = vld [vmem:[%s4836_s29 + $0x210] sm:$0xf]  ;;  %v4088_v25 = vor.u32 %v4397_v19, %v4087_v18  ;;  %v4365_v26 = vld [vmem:[%s4836_s29 + $0x214] sm:$0xf0] }
  0xdc   : > { %6333 = vst [vmem:[#allocation10_spill] sm:$0xff] %v5194_v14  ;;  %v4151_v27 = vld [vmem:[%s4836_s29 + $0x390] sm:$0xf]  ;;  %v4413_v32 = vld [vmem:[%s4836_s29 + $0x394] sm:$0xf0]  ;;  %v3960_v34 = vor.u32 %v4365_v26, %v3959_v20 }
  0xdd   : > { %6334 = vst [vmem:[#allocation11_spill] sm:$0xff] %v5196_v15  ;;  %v4266_v33 = vld [vmem:[%s6265_s0 + $0x1c4] sm:$0xf]  ;;  %v4152_v35 = vor.u32 %v4413_v32, %v4151_v27  ;;  %v4023_v40 = vld [vmem:[%s4836_s29 + $0x290] sm:$0xf]  ;;  %2410 = vmatpush.bf16.msrb.mxu2 %v4088_v25 }
  0xde   : > { %v4381_v41 = vld [vmem:[%s4836_s29 + $0x294] sm:$0xf0]  ;;  %v3569_v42 = vld [vmem:[%s6265_s0 + $0x1e0] sm:$0xf0]  ;;  %v3575_v43 = vld [vmem:[%s6265_s0 + $0x1c8] sm:$0xf]  ;;  %2282 = vmatpush.bf16.msrb.mxu0 %v3960_v34 }
  0xdf   : > { %v4271_v44 = vld [vmem:[%s6265_s0 + $0x1e4] sm:$0xf0]  ;;  %v4024_v45 = vor.u32 %v4381_v41, %v4023_v40  ;;  %v4267_v46 = vld [vmem:[%s6265_s0 + $0x1cc] sm:$0xf]  ;;  %2474 = vmatpush.bf16.msrb.mxu3 %v4152_v35  ;;  %6335 = vst [vmem:[#allocation12_spill] sm:$0xff] %v5234_v55  ;;  %v5236_v56 = vor.u32 %v4266_v33, %v3569_v42 }
  0xe0   : > { %v3577_v52 = vld [vmem:[%s6265_s0 + $0x1e8] sm:$0xf0]  ;;  %v5238_v58 = vor.u32 %v4271_v44, %v3575_v43  ;;  %v4079_v60 = vld [vmem:[%s4836_s29 + $0x300] sm:$0xf]  ;;  %v4395_v61 = vld [vmem:[%s4836_s29 + $0x304] sm:$0xf0] }
  0xe1   : > { %2346 = vmatpush.bf16.msrb.mxu1 %v4024_v45  ;;  %6336 = vst [vmem:[#allocation13_spill] sm:$0xff] %v5236_v56  ;;  %v5240_v59 = vor.u32 %v4267_v46, %v3577_v52  ;;  %v4080_v62 = vor.u32 %v4395_v61, %v4079_v60  ;;  %v3599_v63 = vld [vmem:[%s6265_s0 + $0x200] sm:$0xf]  ;;  %v4274_v5 = vld [vmem:[%s6265_s0 + $0x204] sm:$0xf] }
  0xe2   : > { %2038 = vmatmul.bf16.gmra.mxu0 %v5022_v36  ;;  %6337 = vst [vmem:[#allocation14_spill] sm:$0xff] %v5238_v58  ;;  %v4278_v4 = vld [vmem:[%s6265_s0 + $0x21c] sm:$0xf0]  ;;  %v3601_v6 = vld [vmem:[%s6265_s0 + $0x220] sm:$0xf0] }
  0xe3   : > { %2102 = vmatmul.bf16.gmra.mxu1 %v5024_v37  ;;  %6338 = vst [vmem:[#allocation15_spill] sm:$0xff] %v5240_v59  ;;  %v3607_v7 = vld [vmem:[%s6265_s0 + $0x208] sm:$0xf]  ;;  %2411 = vmatpush.bf16.msrb.mxu2 %v4080_v62  ;;  %v4275_v9 = vld [vmem:[%s6265_s0 + $0x20c] sm:$0xf]  ;;  %v5272_v11 = vor.u32 %v4278_v4, %v3599_v63  ;;  %v5274_v17 = vor.u32 %v4274_v5, %v3601_v6 }
  0xe4   : > { %2166 = vmatmul.bf16.gmra.mxu2 %v5026_v38  ;;  %v4279_v8 = vld [vmem:[%s6265_s0 + $0x224] sm:$0xf0]  ;;  %v3609_v10 = vld [vmem:[%s6265_s0 + $0x228] sm:$0xf0]  ;;  %v3951_v26 = vld [vmem:[%s4836_s29 + $0x200] sm:$0xf] }
  0xe5   : > { %2230 = vmatmul.bf16.gmra.mxu3 %v5028_v39  ;;  %6339 = vst [vmem:[#allocation16_spill] sm:$0xff] %v5272_v11  ;;  %v5276_v18 = vor.u32 %v4279_v8, %v3607_v7  ;;  %v5278_v20 = vor.u32 %v4275_v9, %v3609_v10  ;;  %v4363_v27 = vld [vmem:[%s4836_s29 + $0x204] sm:$0xf0]  ;;  %v4143_v32 = vld [vmem:[%s4836_s29 + $0x380] sm:$0xf] }
  0xe6   : > { %6340 = vst [vmem:[#allocation17_spill] sm:$0xff] %v5274_v17  ;;  %v3952_v33 = vor.u32 %v4363_v27, %v3951_v26  ;;  %v4411_v34 = vld [vmem:[%s4836_s29 + $0x384] sm:$0xf0]  ;;  %v4015_v35 = vld [vmem:[%s4836_s29 + $0x280] sm:$0xf] }
  0xe7   : > { %6341 = vst [vmem:[#allocation18_spill] sm:$0xff] %v5276_v18  ;;  %v4379_v40 = vld [vmem:[%s4836_s29 + $0x284] sm:$0xf0]  ;;  %v4144_v41 = vor.u32 %v4411_v34, %v4143_v32  ;;  %v3631_v62 = vld [vmem:[%s6265_s0 + $0x240] sm:$0xf] }
  0xe8   : > { %6342 = vst [vmem:[#allocation19_spill] sm:$0xff] %v5278_v20  ;;  %v4016_v42 = vor.u32 %v4379_v40, %v4015_v35  ;;  %2283 = vmatpush.bf16.msrb.mxu0 %v3952_v33  ;;  %v4286_v63 = vld [vmem:[%s6265_s0 + $0x25c] sm:$0xf0]  ;;  %v4282_v4 = vld [vmem:[%s6265_s0 + $0x244] sm:$0xf] }
  0xe9   : > { %2475 = vmatpush.bf16.msrb.mxu3 %v4144_v41  ;;  %v3633_v5 = vld [vmem:[%s6265_s0 + $0x260] sm:$0xf0]  ;;  %v3639_v6 = vld [vmem:[%s6265_s0 + $0x248] sm:$0xf]  ;;  %v4283_v8 = vld [vmem:[%s6265_s0 + $0x24c] sm:$0xf] }
  0xea   : > { %2347 = vmatpush.bf16.msrb.mxu1 %v4016_v42  ;;  %v4287_v7 = vld [vmem:[%s6265_s0 + $0x264] sm:$0xf0]  ;;  %v3641_v9 = vld [vmem:[%s6265_s0 + $0x268] sm:$0xf0]  ;;  %v5318_v27 = vor.u32 %v4282_v4, %v3633_v5  ;;  %v4344_v41 = vld [vmem:[%s4836_s29 + $0x174] sm:$0xf] }
  0xeb   : > { %v5320_v32 = vor.u32 %v4287_v7, %v3639_v6  ;;  %v5322_v34 = vor.u32 %v4283_v8, %v3641_v9  ;;  %v3881_v42 = vld [vmem:[%s4836_s29 + $0x178] sm:$0xf0] }
  0xec   : > { %6344 = vst [vmem:[#allocation21_spill] sm:$0xff] %v5318_v27 }
  0xed   : > { %6345 = vst [vmem:[#allocation22_spill] sm:$0xff] %v5320_v32 }
  0xee   : > { %6346 = vst [vmem:[#allocation23_spill] sm:$0xff] %v5322_v34 }
  0xf2   : > { %2043 = vmatmul.bf16.gmra.mxu0 %v5066_v0 }
  0xf3   : > { %2107 = vmatmul.bf16.gmra.mxu1 %v5068_v1 }
  0xf4   : > { %2171 = vmatmul.bf16.gmra.mxu2 %v5070_v2 }
  0xf5   : > { %2235 = vmatmul.bf16.gmra.mxu3 %v5072_v3 }
 0x102   : > { %2048 = vmatmul.bf16.gmra.mxu0 %v5110_v28 }
 0x103   : > { %2112 = vmatmul.bf16.gmra.mxu1 %v5112_v29 }
 0x104   : > { %2176 = vmatmul.bf16.gmra.mxu2 %v5114_v30 }
 0x105   : > { %2240 = vmatmul.bf16.gmra.mxu3 %v5116_v31 }
 0x112   : > { %2053 = vmatmul.bf16.gmra.mxu0 %v5148_v47  ;;  %v3769_v47 = vld [vmem:[%s4836_s29 + $0x98] sm:$0xf0] }
 0x113   : > { %2117 = vmatmul.bf16.gmra.mxu1 %v5150_v49  ;;  %v4316_v49 = vld [vmem:[%s4836_s29 + $0x94] sm:$0xf] }
 0x114   : > { %2181 = vmatmul.bf16.gmra.mxu2 %v5152_v50 }
 0x115   : > { %2245 = vmatmul.bf16.gmra.mxu3 %v5154_v51 }
 0x122   : > { %2058 = vmatmul.bf16.gmra.mxu0 %v5190_v12 }
 0x123   : > { %2122 = vmatmul.bf16.gmra.mxu1 %v5192_v13 }
 0x124   : > { %2186 = vmatmul.bf16.gmra.mxu2 %v5194_v14  ;;  %v3897_v14 = vld [vmem:[%s4836_s29 + $0x198] sm:$0xf0] }
 0x125   : > { %2250 = vmatmul.bf16.gmra.mxu3 %v5196_v15  ;;  %v3785_v15 = vld [vmem:[%s4836_s29 + $0xb8] sm:$0xf0] }
 0x132   : > { %2063 = vmatmul.bf16.gmra.mxu0 %v5234_v55  ;;  %v4320_v55 = vld [vmem:[%s4836_s29 + $0xb4] sm:$0xf] }
 0x133   : > { %2127 = vmatmul.bf16.gmra.mxu1 %v5236_v56 }
 0x134   : > { %2191 = vmatmul.bf16.gmra.mxu2 %v5238_v58 }
 0x135   : > { %2255 = vmatmul.bf16.gmra.mxu3 %v5240_v59 }
 0x13f   : > { %v2029_v16 = vpop.f32.mrf.mxu0 }
 0x140   : > { %v2093_v19 = vpop.f32.mrf.mxu1 }
 0x141   : > { %v2094_v25 = vadd.f32 %v2093_v19, %v2029_v16  ;;  %v5316_v16 = vor.u32 %v4286_v63, %v3631_v62 }
 0x142   : > { %2068 = vmatmul.bf16.gmra.mxu0 %v5272_v11 }
 0x143   : > { %2132 = vmatmul.bf16.gmra.mxu1 %v5274_v17  ;;  %6343 = vst [vmem:[#allocation20_spill] sm:$0xff] %v5316_v16 }
 0x144   : > { %2196 = vmatmul.bf16.gmra.mxu2 %v5276_v18 }
 0x145   : > { %2260 = vmatmul.bf16.gmra.mxu3 %v5278_v20  ;;  %v3865_v20 = vld [vmem:[%s4836_s29 + $0x158] sm:$0xf0] }
 0x147   : > { %v2157_v43 = vpop.f32.mrf.mxu2  ;;  %v2031_v46 = vpop.f32.mrf.mxu0 }
 0x148   : > { %v2158_v44 = vadd.f32 %v2157_v43, %v2094_v25  ;;  %v2221_v45 = vpop.f32.mrf.mxu3  ;;  %v2095_v52 = vpop.f32.mrf.mxu1  ;;  %v4312_v43 = vld [vmem:[%s4836_s29 + $0x74] sm:$0xf] }
 0x149   : > { %v2096_v61 = vadd.f32 %v2095_v52, %v2031_v46  ;;  %v4360_v46 = vld [vmem:[%s4836_s29 + $0x1f4] sm:$0xf]  ;;  %v3945_v52 = vld [vmem:[%s4836_s29 + $0x1f8] sm:$0xf0] }
 0x14a   : > { %v5290_v60 = vadd.f32 %v2221_v45, %v2158_v44  ;;  %v3884_v44 = vor.u32 %v4344_v41, %v3881_v42  ;;  %v3753_v45 = vld [vmem:[%s4836_s29 + $0x78] sm:$0xf0]  ;;  %v3948_v63 = vor.u32 %v4360_v46, %v3945_v52  ;;  %v3665_v41 = vld [vmem:[%s6265_s0 + $0x2a0] sm:$0xf0]  ;;  %v3671_v42 = vld [vmem:[%s6265_s0 + $0x288] sm:$0xf] }
 0x14b   : > { %v3756_v62 = vor.u32 %v4312_v43, %v3753_v45  ;;  %v4295_v43 = vld [vmem:[%s6265_s0 + $0x2a4] sm:$0xf0]  ;;  %v3673_v45 = vld [vmem:[%s6265_s0 + $0x2a8] sm:$0xf0] }
 0x14c   : > { %2660 = vmatpush.bf16.msra.mxu2 %v3884_v44  ;;  %2724 = vmatpush.bf16.msra.mxu3 %v3948_v63  ;;  %v4291_v44 = vld [vmem:[%s6265_s0 + $0x28c] sm:$0xf] }
 0x14d   : > { %2532 = vmatpush.bf16.msra.mxu0 %v3756_v62 }
 0x14f   : > { %v2159_v10 = vpop.f32.mrf.mxu2  ;;  %v2034_v26 = vpop.f32.mrf.mxu0 }
 0x150   : > { %v2160_v19 = vadd.f32 %v2159_v10, %v2096_v61  ;;  %v2223_v25 = vpop.f32.mrf.mxu3  ;;  %v2098_v33 = vpop.f32.mrf.mxu1  ;;  %v4328_v10 = vld [vmem:[%s4836_s29 + $0xf4] sm:$0xf] }
 0x151   : > { %v2099_v40 = vadd.f32 %v2098_v33, %v2034_v26  ;;  %v3663_v26 = vld [vmem:[%s6265_s0 + $0x280] sm:$0xf] }
 0x152   : > { %v5324_v35 = vadd.f32 %v2223_v25, %v2160_v19  ;;  %2073 = vmatmul.bf16.gmra.mxu0 %v5316_v16  ;;  %v3817_v19 = vld [vmem:[%s4836_s29 + $0xf8] sm:$0xf0]  ;;  %v4294_v33 = vld [vmem:[%s6265_s0 + $0x29c] sm:$0xf0] }
 0x153   : > { %2137 = vmatmul.bf16.gmra.mxu1 %v5318_v27  ;;  %v3820_v25 = vor.u32 %v4328_v10, %v3817_v19  ;;  %v5364_v52 = vor.u32 %v4294_v33, %v3663_v26 }
 0x154   : > { %2201 = vmatmul.bf16.gmra.mxu2 %v5320_v32 }
 0x155   : > { %2265 = vmatmul.bf16.gmra.mxu3 %v5322_v34  ;;  %2596 = vmatpush.bf16.msra.mxu1 %v3820_v25  ;;  %6347 = vst [vmem:[#allocation24_spill] sm:$0xff] %v5364_v52 }
 0x157   : > { %v2162_v61 = vpop.f32.mrf.mxu2  ;;  %v2036_v6 = vpop.f32.mrf.mxu0 }
 0x158   : > { %v2163_v4 = vadd.f32 %v2162_v61, %v2099_v40  ;;  %v2226_v5 = vpop.f32.mrf.mxu3  ;;  %v2100_v7 = vpop.f32.mrf.mxu1  ;;  %v4290_v40 = vld [vmem:[%s6265_s0 + $0x284] sm:$0xf] }
 0x159   : > { %v2101_v9 = vadd.f32 %v2100_v7, %v2036_v6  ;;  %v5370_v7 = vor.u32 %v4291_v44, %v3673_v45  ;;  %v4216_v44 = vld [vmem:[%s6265_s0 + $0x2c] sm:$0xf0]  ;;  %v4342_v45 = vld [vmem:[%s4836_s29 + $0x164] sm:$0xf] }
 0x15a   : > { %v5336_v8 = vadd.f32 %v2226_v5, %v2163_v4  ;;  %v5366_v4 = vor.u32 %v4290_v40, %v3665_v41  ;;  %v5368_v5 = vor.u32 %v4295_v43, %v3671_v42  ;;  %v3359_v43 = vld [vmem:[%s6265_s0 + $0x10] sm:$0xf] }
 0x15b   : > { %6350 = vst [vmem:[#allocation27_spill] sm:$0xff] %v5370_v7 }
 0x15c   : > { %6348 = vst [vmem:[#allocation25_spill] sm:$0xff] %v5366_v4 }
 0x15d   : > { %6349 = vst [vmem:[#allocation26_spill] sm:$0xff] %v5368_v5 }
 0x15f   : > { %v2164_v46 = vpop.f32.mrf.mxu2  ;;  %v2039_v63 = vpop.f32.mrf.mxu0 }
 0x160   : > { %v2165_v61 = vadd.f32 %v2164_v46, %v2101_v9  ;;  %v2228_v62 = vpop.f32.mrf.mxu3  ;;  %v2103_v6 = vpop.f32.mrf.mxu1  ;;  %v3873_v46 = vld [vmem:[%s4836_s29 + $0x168] sm:$0xf0] }
 0x161   : > { %v2104_v19 = vadd.f32 %v2103_v6, %v2039_v63  ;;  %v3745_v63 = vld [vmem:[%s4836_s29 + $0x68] sm:$0xf0]  ;;  %v4358_v6 = vld [vmem:[%s4836_s29 + $0x1e4] sm:$0xf] }
 0x162   : > { %v5372_v10 = vadd.f32 %v2228_v62, %v2165_v61  ;;  %2078 = vmatmul.bf16.gmra.mxu0 %v5364_v52  ;;  %v4310_v61 = vld [vmem:[%s4836_s29 + $0x64] sm:$0xf]  ;;  %v3876_v62 = vor.u32 %v4342_v45, %v3873_v46  ;;  %v4217_v45 = vld [vmem:[%s6265_s0 + $0x34] sm:$0xf0] }
 0x163   : > { %2142 = vmatmul.bf16.gmra.mxu1 %v5366_v4 }
 0x164   : > { %2206 = vmatmul.bf16.gmra.mxu2 %v5368_v5  ;;  %v3367_v5 = vld [vmem:[%s6265_s0 + $0x18] sm:$0xf] }
 0x165   : > { %2270 = vmatmul.bf16.gmra.mxu3 %v5370_v7  ;;  %v3361_v7 = vld [vmem:[%s6265_s0 + $0x30] sm:$0xf0]  ;;  %2661 = vmatpush.bf16.msra.mxu2 %v3876_v62  ;;  %v5416_v62 = vor.u32 %v4217_v45, %v3367_v5  ;;  %v4225_v45 = vld [vmem:[%s6265_s0 + $0x74] sm:$0xf0] }
 0x167   : > { %v2167_v9 = vpop.f32.mrf.mxu2  ;;  %v2041_v33 = vpop.f32.mrf.mxu0  ;;  %6353 = vst [vmem:[#allocation30_spill] sm:$0xff] %v5416_v62 }
 0x168   : > { %v2168_v25 = vadd.f32 %v2167_v9, %v2104_v19  ;;  %v2231_v26 = vpop.f32.mrf.mxu3  ;;  %v2105_v40 = vpop.f32.mrf.mxu1  ;;  %v3937_v19 = vld [vmem:[%s4836_s29 + $0x1e8] sm:$0xf0]  ;;  %v4212_v9 = vld [vmem:[%s6265_s0 + $0x14] sm:$0xf] }
 0x169   : > { %v2106_v42 = vadd.f32 %v2105_v40, %v2041_v33  ;;  %v4326_v33 = vld [vmem:[%s4836_s29 + $0xe4] sm:$0xf]  ;;  %v3809_v40 = vld [vmem:[%s4836_s29 + $0xe8] sm:$0xf0]  ;;  %v5414_v32 = vor.u32 %v4212_v9, %v3361_v7 }
 0x16a   : > { %v5378_v41 = vadd.f32 %v2231_v26, %v2168_v25  ;;  %v3748_v25 = vor.u32 %v4310_v61, %v3745_v63  ;;  %v3940_v26 = vor.u32 %v4358_v6, %v3937_v19  ;;  %v3812_v46 = vor.u32 %v4326_v33, %v3809_v40  ;;  %v4213_v61 = vld [vmem:[%s6265_s0 + $0x1c] sm:$0xf] }
 0x16b   : > { %v3369_v63 = vld [vmem:[%s6265_s0 + $0x38] sm:$0xf0]  ;;  %v5412_v19 = vor.u32 %v4216_v44, %v3359_v43  ;;  %6352 = vst [vmem:[#allocation29_spill] sm:$0xff] %v5414_v32 }
 0x16c   : > { %2533 = vmatpush.bf16.msra.mxu0 %v3748_v25  ;;  %2725 = vmatpush.bf16.msra.mxu3 %v3940_v26  ;;  %v5418_v40 = vor.u32 %v4213_v61, %v3369_v63  ;;  %v3399_v26 = vld [vmem:[%s6265_s0 + $0x58] sm:$0xf]  ;;  %v3401_v61 = vld [vmem:[%s6265_s0 + $0x78] sm:$0xf0] }
 0x16d   : > { %6351 = vst [vmem:[#allocation28_spill] sm:$0xff] %v5412_v19  ;;  %2597 = vmatpush.bf16.msra.mxu1 %v3812_v46  ;;  %v4221_v46 = vld [vmem:[%s6265_s0 + $0x5c] sm:$0xf] }
 0x16e   : > { %6354 = vst [vmem:[#allocation31_spill] sm:$0xff] %v5418_v40 }
 0x16f   : > { %v2169_v6 = vpop.f32.mrf.mxu2  ;;  %v2044_v34 = vpop.f32.mrf.mxu0 }
 0x170   : > { %v2170_v4 = vadd.f32 %v2169_v6, %v2106_v42  ;;  %v2233_v52 = vpop.f32.mrf.mxu3  ;;  %v2108_v33 = vpop.f32.mrf.mxu1 }
 0x171   : > { %v2109_v16 = vadd.f32 %v2108_v33, %v2044_v34  ;;  %v3391_v34 = vld [vmem:[%s6265_s0 + $0x50] sm:$0xf] }
 0x172   : > { %v5420_v27 = vadd.f32 %v2233_v52, %v2170_v4  ;;  %2284 = vmatmul.bf16.vlgmr.msrb.gmra.mxu0 %v5412_v19  ;;  %v4224_v52 = vld [vmem:[%s6265_s0 + $0x6c] sm:$0xf0]  ;;  %v4220_v4 = vld [vmem:[%s6265_s0 + $0x54] sm:$0xf] }
 0x173   : > { %2348 = vmatmul.bf16.vlgmr.msrb.gmra.mxu1 %v5414_v32  ;;  %v5452_v6 = vor.u32 %v4224_v52, %v3391_v34  ;;  %v4340_v19 = vld [vmem:[%s4836_s29 + $0x154] sm:$0xf]  ;;  %v3737_v52 = vld [vmem:[%s4836_s29 + $0x58] sm:$0xf0] }
 0x174   : > { %2412 = vmatmul.bf16.vlgmr.msrb.gmra.mxu2 %v5416_v62  ;;  %v4308_v34 = vld [vmem:[%s4836_s29 + $0x54] sm:$0xf] }
 0x175   : > { %2476 = vmatmul.bf16.vlgmr.msrb.gmra.mxu3 %v5418_v40  ;;  %6355 = vst [vmem:[#allocation32_spill] sm:$0xff] %v5452_v6  ;;  %v5458_v40 = vor.u32 %v4221_v46, %v3401_v61  ;;  %v3801_v61 = vld [vmem:[%s4836_s29 + $0xd8] sm:$0xf0] }
 0x177   : > { %v2172_v42 = vpop.f32.mrf.mxu2  ;;  %v2046_v44 = vpop.f32.mrf.mxu0  ;;  %6358 = vst [vmem:[#allocation35_spill] sm:$0xff] %v5458_v40 }
 0x178   : > { %v2173_v43 = vadd.f32 %v2172_v42, %v2109_v16  ;;  %v2236_v7 = vpop.f32.mrf.mxu3  ;;  %v2110_v5 = vpop.f32.mrf.mxu1  ;;  %v3393_v16 = vld [vmem:[%s6265_s0 + $0x70] sm:$0xf0] }
 0x179   : > { %v2111_v25 = vadd.f32 %v2110_v5, %v2046_v44  ;;  %v5456_v44 = vor.u32 %v4225_v45, %v3399_v26  ;;  %v4324_v45 = vld [vmem:[%s4836_s29 + $0xd4] sm:$0xf] }
 0x17a   : > { %v5426_v9 = vadd.f32 %v2236_v7, %v2173_v43  ;;  %v5454_v7 = vor.u32 %v4220_v4, %v3393_v16  ;;  %v3929_v4 = vld [vmem:[%s4836_s29 + $0x1d8] sm:$0xf0]  ;;  %v3740_v16 = vor.u32 %v4308_v34, %v3737_v52  ;;  %v3423_v34 = vld [vmem:[%s6265_s0 + $0x90] sm:$0xf]  ;;  %v3425_v52 = vld [vmem:[%s6265_s0 + $0xb0] sm:$0xf0] }
 0x17b   : > { %6357 = vst [vmem:[#allocation34_spill] sm:$0xff] %v5456_v44 }
 0x17c   : > { %6356 = vst [vmem:[#allocation33_spill] sm:$0xff] %v5454_v7  ;;  %2534 = vmatpush.bf16.msra.mxu0 %v3740_v16  ;;  %v4229_v16 = vld [vmem:[%s6265_s0 + $0x9c] sm:$0xf] }
 0x17f   : > { %v2174_v63 = vpop.f32.mrf.mxu2  ;;  %v2049_v43 = vpop.f32.mrf.mxu0 }
 0x180   : > { %v2175_v33 = vadd.f32 %v2174_v63, %v2111_v25  ;;  %v2238_v42 = vpop.f32.mrf.mxu3  ;;  %v2113_v5 = vpop.f32.mrf.mxu1  ;;  %v3868_v25 = vor.u32 %v4340_v19, %v3865_v20  ;;  %v4356_v63 = vld [vmem:[%s4836_s29 + $0x1d4] sm:$0xf]  ;;  %v3804_v19 = vor.u32 %v4324_v45, %v3801_v61 }
 0x181   : > { %v2114_v32 = vadd.f32 %v2113_v5, %v2049_v43  ;;  %v3932_v26 = vor.u32 %v4356_v63, %v3929_v4  ;;  %v3431_v63 = vld [vmem:[%s6265_s0 + $0x98] sm:$0xf] }
 0x182   : > { %v5460_v62 = vadd.f32 %v2238_v42, %v2175_v33  ;;  %2289 = vmatmul.bf16.gmra.mxu0 %v5452_v6  ;;  %2662 = vmatpush.bf16.msra.mxu2 %v3868_v25  ;;  %v4232_v25 = vld [vmem:[%s6265_s0 + $0xac] sm:$0xf0]  ;;  %v4233_v4 = vld [vmem:[%s6265_s0 + $0xb4] sm:$0xf0] }
 0x183   : > { %2353 = vmatmul.bf16.gmra.mxu1 %v5454_v7  ;;  %2726 = vmatpush.bf16.msra.mxu3 %v3932_v26  ;;  %v3433_v26 = vld [vmem:[%s6265_s0 + $0xb8] sm:$0xf0] }
 0x184   : > { %2417 = vmatmul.bf16.gmra.mxu2 %v5456_v44  ;;  %2598 = vmatpush.bf16.msra.mxu1 %v3804_v19  ;;  %v5504_v19 = vor.u32 %v4233_v4, %v3431_v63 }
 0x185   : > { %2481 = vmatmul.bf16.gmra.mxu3 %v5458_v40  ;;  %v5506_v40 = vor.u32 %v4229_v16, %v3433_v26 }
 0x186   : > { %6361 = vst [vmem:[#allocation38_spill] sm:$0xff] %v5504_v19 }
 0x187   : > { %v2177_v46 = vpop.f32.mrf.mxu2  ;;  %v2051_v20 = vpop.f32.mrf.mxu0  ;;  %6362 = vst [vmem:[#allocation39_spill] sm:$0xff] %v5506_v40 }
 0x188   : > { %v2178_v33 = vadd.f32 %v2177_v46, %v2114_v32  ;;  %v2241_v42 = vpop.f32.mrf.mxu3  ;;  %v2115_v43 = vpop.f32.mrf.mxu1  ;;  %v4228_v32 = vld [vmem:[%s6265_s0 + $0x94] sm:$0xf]  ;;  %v5500_v46 = vor.u32 %v4232_v25, %v3423_v34  ;;  %v3857_v34 = vld [vmem:[%s4836_s29 + $0x148] sm:$0xf0] }
 0x189   : > { %v2116_v7 = vadd.f32 %v2115_v43, %v2051_v20  ;;  %v5502_v20 = vor.u32 %v4228_v32, %v3425_v52 }
 0x18a   : > { %v5474_v5 = vadd.f32 %v2241_v42, %v2178_v33  ;;  %6359 = vst [vmem:[#allocation36_spill] sm:$0xff] %v5500_v46 }
 0x18b   : > { %6360 = vst [vmem:[#allocation37_spill] sm:$0xff] %v5502_v20 }
 0x18f   : > { %v2179_v45 = vpop.f32.mrf.mxu2  ;;  %v2054_v42 = vpop.f32.mrf.mxu0 }
 0x190   : > { %v2180_v61 = vadd.f32 %v2179_v45, %v2116_v7  ;;  %v2243_v33 = vpop.f32.mrf.mxu3  ;;  %v2118_v43 = vpop.f32.mrf.mxu1  ;;  %v4338_v7 = vld [vmem:[%s4836_s29 + $0x144] sm:$0xf] }
 0x191   : > { %v2119_v6 = vadd.f32 %v2118_v43, %v2054_v42  ;;  %v3860_v25 = vor.u32 %v4338_v7, %v3857_v34  ;;  %v4354_v42 = vld [vmem:[%s4836_s29 + $0x1c4] sm:$0xf]  ;;  %v3455_v7 = vld [vmem:[%s6265_s0 + $0xd0] sm:$0xf]  ;;  %v4236_v34 = vld [vmem:[%s6265_s0 + $0xd4] sm:$0xf] }
 0x192   : > { %v5508_v44 = vadd.f32 %v2243_v33, %v2180_v61  ;;  %2294 = vmatmul.bf16.gmra.mxu0 %v5500_v46  ;;  %v4306_v61 = vld [vmem:[%s4836_s29 + $0x44] sm:$0xf]  ;;  %v3729_v33 = vld [vmem:[%s4836_s29 + $0x48] sm:$0xf0] }
 0x193   : > { %2358 = vmatmul.bf16.gmra.mxu1 %v5502_v20  ;;  %2663 = vmatpush.bf16.msra.mxu2 %v3860_v25  ;;  %v3732_v43 = vor.u32 %v4306_v61, %v3729_v33  ;;  %v3793_v20 = vld [vmem:[%s4836_s29 + $0xc8] sm:$0xf0] }
 0x194   : > { %2422 = vmatmul.bf16.gmra.mxu2 %v5504_v19  ;;  %v4322_v19 = vld [vmem:[%s4836_s29 + $0xc4] sm:$0xf] }
 0x195   : > { %2486 = vmatmul.bf16.gmra.mxu3 %v5506_v40  ;;  %v3921_v40 = vld [vmem:[%s4836_s29 + $0x1c8] sm:$0xf0]  ;;  %2535 = vmatpush.bf16.msra.mxu0 %v3732_v43 }
 0x196   : > { %v3924_v25 = vor.u32 %v4354_v42, %v3921_v40  ;;  %v3465_v40 = vld [vmem:[%s6265_s0 + $0xf8] sm:$0xf0] }
 0x197   : > { %v2182_v32 = vpop.f32.mrf.mxu2  ;;  %v2056_v4 = vpop.f32.mrf.mxu0 }
 0x198   : > { %v2183_v52 = vadd.f32 %v2182_v32, %v2119_v6  ;;  %v2246_v63 = vpop.f32.mrf.mxu3  ;;  %v2120_v16 = vpop.f32.mrf.mxu1  ;;  %v4240_v6 = vld [vmem:[%s6265_s0 + $0xec] sm:$0xf0]  ;;  %v3796_v32 = vor.u32 %v4322_v19, %v3793_v20  ;;  %2727 = vmatpush.bf16.msra.mxu3 %v3924_v25 }
 0x199   : > { %v2121_v45 = vadd.f32 %v2120_v16, %v2056_v4  ;;  %v4241_v4 = vld [vmem:[%s6265_s0 + $0xf4] sm:$0xf0]  ;;  %v4237_v16 = vld [vmem:[%s6265_s0 + $0xdc] sm:$0xf]  ;;  %v5548_v19 = vor.u32 %v4240_v6, %v3455_v7 }
 0x19a   : > { %v5516_v26 = vadd.f32 %v2246_v63, %v2183_v52  ;;  %v3457_v52 = vld [vmem:[%s6265_s0 + $0xf0] sm:$0xf0]  ;;  %v3463_v63 = vld [vmem:[%s6265_s0 + $0xd8] sm:$0xf]  ;;  %2599 = vmatpush.bf16.msra.mxu1 %v3796_v32  ;;  %v5554_v17 = vor.u32 %v4237_v16, %v3465_v40  ;;  %v3849_v16 = vld [vmem:[%s4836_s29 + $0x138] sm:$0xf0] }
 0x19b   : > { %6363 = vst [vmem:[#allocation40_spill] sm:$0xff] %v5548_v19  ;;  %v5550_v46 = vor.u32 %v4236_v34, %v3457_v52  ;;  %v5552_v18 = vor.u32 %v4241_v4, %v3463_v63  ;;  %v4336_v4 = vld [vmem:[%s4836_s29 + $0x134] sm:$0xf] }
 0x19c   : > { %6366 = vst [vmem:[#allocation43_spill] sm:$0xff] %v5554_v17  ;;  %v4304_v40 = vld [vmem:[%s4836_s29 + $0x34] sm:$0xf] }
 0x19d   : > { %6364 = vst [vmem:[#allocation41_spill] sm:$0xff] %v5550_v46 }
 0x19e   : > { %6365 = vst [vmem:[#allocation42_spill] sm:$0xff] %v5552_v18 }
 0x19f   : > { %v2184_v20 = vpop.f32.mrf.mxu2  ;;  %v2059_v42 = vpop.f32.mrf.mxu0 }
 0x1a0   : > { %v2185_v61 = vadd.f32 %v2184_v20, %v2121_v45  ;;  %v2248_v33 = vpop.f32.mrf.mxu3  ;;  %v2123_v43 = vpop.f32.mrf.mxu1  ;;  %v3852_v20 = vor.u32 %v4336_v4, %v3849_v16  ;;  %v4249_v4 = vld [vmem:[%s6265_s0 + $0x134] sm:$0xf0]  ;;  %v4245_v16 = vld [vmem:[%s6265_s0 + $0x11c] sm:$0xf] }
 0x1a1   : > { %v2124_v25 = vadd.f32 %v2123_v43, %v2059_v42  ;;  %v3913_v42 = vld [vmem:[%s4836_s29 + $0x1b8] sm:$0xf0]  ;;  %v3487_v43 = vld [vmem:[%s6265_s0 + $0x110] sm:$0xf] }
 0x1a2   : > { %v5556_v11 = vadd.f32 %v2248_v33, %v2185_v61  ;;  %2299 = vmatmul.bf16.gmra.mxu0 %v5548_v19  ;;  %v3721_v61 = vld [vmem:[%s4836_s29 + $0x38] sm:$0xf0]  ;;  %v4352_v33 = vld [vmem:[%s4836_s29 + $0x1b4] sm:$0xf]  ;;  %2664 = vmatpush.bf16.msra.mxu2 %v3852_v20 }
 0x1a3   : > { %2363 = vmatmul.bf16.gmra.mxu1 %v5550_v46 }
 0x1a4   : > { %2427 = vmatmul.bf16.gmra.mxu2 %v5552_v18 }
 0x1a5   : > { %2491 = vmatmul.bf16.gmra.mxu3 %v5554_v17 }
 0x1a7   : > { %v2187_v45 = vpop.f32.mrf.mxu2  ;;  %v2061_v34 = vpop.f32.mrf.mxu0 }
 0x1a8   : > { %v2188_v7 = vadd.f32 %v2187_v45, %v2124_v25  ;;  %v2251_v6 = vpop.f32.mrf.mxu3  ;;  %v2125_v32 = vpop.f32.mrf.mxu1  ;;  %v4248_v25 = vld [vmem:[%s6265_s0 + $0x12c] sm:$0xf0]  ;;  %v4244_v45 = vld [vmem:[%s6265_s0 + $0x114] sm:$0xf] }
 0x1a9   : > { %v2126_v63 = vadd.f32 %v2125_v32, %v2061_v34  ;;  %v3489_v34 = vld [vmem:[%s6265_s0 + $0x130] sm:$0xf0]  ;;  %v3495_v32 = vld [vmem:[%s6265_s0 + $0x118] sm:$0xf] }
 0x1aa   : > { %v5562_v52 = vadd.f32 %v2251_v6, %v2188_v7  ;;  %v3724_v7 = vor.u32 %v4304_v40, %v3721_v61  ;;  %v3916_v6 = vor.u32 %v4352_v33, %v3913_v42  ;;  %v3497_v40 = vld [vmem:[%s6265_s0 + $0x138] sm:$0xf0]  ;;  %v5594_v33 = vor.u32 %v4248_v25, %v3487_v43 }
 0x1ab   : > { %v5596_v46 = vor.u32 %v4244_v45, %v3489_v34  ;;  %v5598_v20 = vor.u32 %v4249_v4, %v3495_v32  ;;  %v5600_v59 = vor.u32 %v4245_v16, %v3497_v40  ;;  %v3527_v34 = vld [vmem:[%s6265_s0 + $0x158] sm:$0xf]  ;;  %v4253_v4 = vld [vmem:[%s6265_s0 + $0x15c] sm:$0xf] }
 0x1ac   : > { %2536 = vmatpush.bf16.msra.mxu0 %v3724_v7  ;;  %2728 = vmatpush.bf16.msra.mxu3 %v3916_v6  ;;  %6367 = vst [vmem:[#allocation44_spill] sm:$0xff] %v5594_v33  ;;  %v3788_v7 = vor.u32 %v4320_v55, %v3785_v15  ;;  %v4256_v15 = vld [vmem:[%s6265_s0 + $0x16c] sm:$0xf0]  ;;  %v4252_v55 = vld [vmem:[%s6265_s0 + $0x154] sm:$0xf] }
 0x1ad   : > { %6368 = vst [vmem:[#allocation45_spill] sm:$0xff] %v5596_v46  ;;  %v4257_v32 = vld [vmem:[%s6265_s0 + $0x174] sm:$0xf0]  ;;  %v3529_v16 = vld [vmem:[%s6265_s0 + $0x178] sm:$0xf0] }
 0x1ae   : > { %6369 = vst [vmem:[#allocation46_spill] sm:$0xff] %v5598_v20  ;;  %2600 = vmatpush.bf16.msra.mxu1 %v3788_v7 }
 0x1af   : > { %v2189_v61 = vpop.f32.mrf.mxu2  ;;  %v2064_v18 = vpop.f32.mrf.mxu0  ;;  %6370 = vst [vmem:[#allocation47_spill] sm:$0xff] %v5600_v59 }
 0x1b0   : > { %v2190_v42 = vadd.f32 %v2189_v61, %v2126_v63  ;;  %v2253_v17 = vpop.f32.mrf.mxu3  ;;  %v2128_v19 = vpop.f32.mrf.mxu1 }
 0x1b1   : > { %v2129_v56 = vadd.f32 %v2128_v19, %v2064_v18  ;;  %v3519_v19 = vld [vmem:[%s6265_s0 + $0x150] sm:$0xf] }
 0x1b2   : > { %v5602_v58 = vadd.f32 %v2253_v17, %v2190_v42  ;;  %2304 = vmatmul.bf16.gmra.mxu0 %v5594_v33  ;;  %v5636_v61 = vor.u32 %v4256_v15, %v3519_v19  ;;  %v4334_v19 = vld [vmem:[%s4836_s29 + $0x124] sm:$0xf] }
 0x1b3   : > { %2368 = vmatmul.bf16.gmra.mxu1 %v5596_v46 }
 0x1b4   : > { %2432 = vmatmul.bf16.gmra.mxu2 %v5598_v20  ;;  %6371 = vst [vmem:[#allocation48_spill] sm:$0xff] %v5636_v61 }
 0x1b5   : > { %2496 = vmatmul.bf16.gmra.mxu3 %v5600_v59 }
 0x1b7   : > { %v2192_v63 = vpop.f32.mrf.mxu2  ;;  %v2066_v45 = vpop.f32.mrf.mxu0 }
 0x1b8   : > { %v2193_v43 = vadd.f32 %v2192_v63, %v2129_v56  ;;  %v2256_v25 = vpop.f32.mrf.mxu3  ;;  %v2130_v6 = vpop.f32.mrf.mxu1  ;;  %v3521_v56 = vld [vmem:[%s6265_s0 + $0x170] sm:$0xf0] }
 0x1b9   : > { %v2131_v18 = vadd.f32 %v2130_v6, %v2066_v45  ;;  %v5642_v6 = vor.u32 %v4253_v4, %v3529_v16  ;;  %v3905_v4 = vld [vmem:[%s4836_s29 + $0x1a8] sm:$0xf0]  ;;  %v4318_v16 = vld [vmem:[%s4836_s29 + $0xa4] sm:$0xf] }
 0x1ba   : > { %v5610_v17 = vadd.f32 %v2256_v25, %v2193_v43  ;;  %v5638_v43 = vor.u32 %v4252_v55, %v3521_v56  ;;  %v5640_v25 = vor.u32 %v4257_v32, %v3527_v34  ;;  %v4302_v55 = vld [vmem:[%s4836_s29 + $0x24] sm:$0xf]  ;;  %v3713_v56 = vld [vmem:[%s4836_s29 + $0x28] sm:$0xf0] }
 0x1bb   : > { %6374 = vst [vmem:[#allocation51_spill] sm:$0xff] %v5642_v6  ;;  %v3716_v34 = vor.u32 %v4302_v55, %v3713_v56  ;;  %v4350_v32 = vld [vmem:[%s4836_s29 + $0x1a4] sm:$0xf]  ;;  %v4264_v55 = vld [vmem:[%s6265_s0 + $0x1ac] sm:$0xf0] }
 0x1bc   : > { %6372 = vst [vmem:[#allocation49_spill] sm:$0xff] %v5638_v43  ;;  %v3553_v56 = vld [vmem:[%s6265_s0 + $0x1b0] sm:$0xf0] }
 0x1bd   : > { %6373 = vst [vmem:[#allocation50_spill] sm:$0xff] %v5640_v25  ;;  %2537 = vmatpush.bf16.msra.mxu0 %v3716_v34  ;;  %v4265_v34 = vld [vmem:[%s6265_s0 + $0x1b4] sm:$0xf0] }
 0x1bf   : > { %v2194_v40 = vpop.f32.mrf.mxu2  ;;  %v2069_v63 = vpop.f32.mrf.mxu0 }
 0x1c0   : > { %v2195_v42 = vadd.f32 %v2194_v40, %v2131_v18  ;;  %v2258_v7 = vpop.f32.mrf.mxu3  ;;  %v2133_v45 = vpop.f32.mrf.mxu1  ;;  %v3841_v18 = vld [vmem:[%s4836_s29 + $0x128] sm:$0xf0] }
 0x1c1   : > { %v2134_v20 = vadd.f32 %v2133_v45, %v2069_v63  ;;  %v3844_v15 = vor.u32 %v4334_v19, %v3841_v18 }
 0x1c2   : > { %v5644_v59 = vadd.f32 %v2258_v7, %v2195_v42  ;;  %2309 = vmatmul.bf16.gmra.mxu0 %v5636_v61  ;;  %v3908_v42 = vor.u32 %v4350_v32, %v3905_v4  ;;  %v3777_v7 = vld [vmem:[%s4836_s29 + $0xa8] sm:$0xf0]  ;;  %v4261_v32 = vld [vmem:[%s6265_s0 + $0x19c] sm:$0xf] }
 0x1c3   : > { %2373 = vmatmul.bf16.gmra.mxu1 %v5638_v43  ;;  %2665 = vmatpush.bf16.msra.mxu2 %v3844_v15  ;;  %v3780_v19 = vor.u32 %v4318_v16, %v3777_v7  ;;  %v3551_v15 = vld [vmem:[%s6265_s0 + $0x190] sm:$0xf]  ;;  %v3561_v4 = vld [vmem:[%s6265_s0 + $0x1b8] sm:$0xf0] }
 0x1c4   : > { %6375 = vst [vmem:[#allocation52_spill] sm:$0xff] %v5644_v59  ;;  %2437 = vmatmul.bf16.gmra.mxu2 %v5640_v25  ;;  %2729 = vmatpush.bf16.msra.mxu3 %v3908_v42  ;;  %v5690_v43 = vor.u32 %v4261_v32, %v3561_v4  ;;  %v3583_v32 = vld [vmem:[%s6265_s0 + $0x1d0] sm:$0xf] }
 0x1c5   : > { %2501 = vmatmul.bf16.gmra.mxu3 %v5642_v6  ;;  %2601 = vmatpush.bf16.msra.mxu1 %v3780_v19  ;;  %v4272_v4 = vld [vmem:[%s6265_s0 + $0x1ec] sm:$0xf0] }
 0x1c6   : > { %6380 = vst [vmem:[#allocation57_spill] sm:$0xff] %v5690_v43 }
 0x1c7   : > { %v2197_v40 = vpop.f32.mrf.mxu2  ;;  %v2071_v61 = vpop.f32.mrf.mxu0 }
 0x1c8   : > { %v2198_v63 = vadd.f32 %v2197_v40, %v2134_v20  ;;  %v2261_v45 = vpop.f32.mrf.mxu3  ;;  %v2135_v18 = vpop.f32.mrf.mxu1  ;;  %v4260_v20 = vld [vmem:[%s6265_s0 + $0x194] sm:$0xf]  ;;  %v5684_v40 = vor.u32 %v4264_v55, %v3551_v15 }
 0x1c9   : > { %v2136_v6 = vadd.f32 %v2135_v18, %v2071_v61  ;;  %v3559_v61 = vld [vmem:[%s6265_s0 + $0x198] sm:$0xf] }
 0x1ca   : > { %v5658_v25 = vadd.f32 %v2261_v45, %v2198_v63  ;;  %6377 = vst [vmem:[#allocation54_spill] sm:$0xff] %v5684_v40  ;;  %v5686_v45 = vor.u32 %v4260_v20, %v3553_v56  ;;  %v5688_v19 = vor.u32 %v4265_v34, %v3559_v61 }
 0x1cc   : > { %6376 = vst [vmem:[#allocation53_spill] sm:$0xff] %v5658_v25 }
 0x1cd   : > { %6378 = vst [vmem:[#allocation55_spill] sm:$0xff] %v5686_v45 }
 0x1ce   : > { %6379 = vst [vmem:[#allocation56_spill] sm:$0xff] %v5688_v19 }
 0x1cf   : > { %v2199_v16 = vpop.f32.mrf.mxu2  ;;  %v2074_v63 = vpop.f32.mrf.mxu0 }
 0x1d0   : > { %v2200_v42 = vadd.f32 %v2199_v16, %v2136_v6  ;;  %v2263_v7 = vpop.f32.mrf.mxu3  ;;  %v2138_v18 = vpop.f32.mrf.mxu1  ;;  %v3585_v16 = vld [vmem:[%s6265_s0 + $0x1f0] sm:$0xf0] }
 0x1d1   : > { %v2139_v33 = vadd.f32 %v2138_v18, %v2074_v63  ;;  %v4269_v63 = vld [vmem:[%s6265_s0 + $0x1dc] sm:$0xf] }
 0x1d2   : > { %v5692_v46 = vadd.f32 %v2263_v7, %v2200_v42  ;;  %2314 = vmatmul.bf16.gmra.mxu0 %v5684_v40  ;;  %v3591_v42 = vld [vmem:[%s6265_s0 + $0x1d8] sm:$0xf]  ;;  %v3593_v18 = vld [vmem:[%s6265_s0 + $0x1f8] sm:$0xf0]  ;;  %v4348_v40 = vld [vmem:[%s4836_s29 + $0x194] sm:$0xf] }
 0x1d3   : > { %2378 = vmatmul.bf16.gmra.mxu1 %v5686_v45  ;;  %v4273_v7 = vld [vmem:[%s6265_s0 + $0x1f4] sm:$0xf0]  ;;  %v3705_v45 = vld [vmem:[%s4836_s29 + $0x18] sm:$0xf0]  ;;  %v3900_v50 = vor.u32 %v4348_v40, %v3897_v14  ;;  %v5738_v59 = vor.u32 %v4269_v63, %v3593_v18  ;;  %v3825_v63 = vld [vmem:[%s4836_s29 + $0x108] sm:$0xf0] }
 0x1d4   : > { %6381 = vst [vmem:[#allocation58_spill] sm:$0xff] %v5692_v46  ;;  %2442 = vmatmul.bf16.gmra.mxu2 %v5688_v19  ;;  %v5734_v46 = vor.u32 %v4273_v7, %v3591_v42  ;;  %v3625_v42 = vld [vmem:[%s6265_s0 + $0x238] sm:$0xf0]  ;;  %v4330_v7 = vld [vmem:[%s4836_s29 + $0x104] sm:$0xf] }
 0x1d5   : > { %2506 = vmatmul.bf16.gmra.mxu3 %v5690_v43 }
 0x1d6   : > { %2730 = vmatpush.bf16.msra.mxu3 %v3900_v50  ;;  %v3615_v50 = vld [vmem:[%s6265_s0 + $0x210] sm:$0xf] }
 0x1d7   : > { %v2202_v6 = vpop.f32.mrf.mxu2  ;;  %v2076_v20 = vpop.f32.mrf.mxu0 }
 0x1d8   : > { %v2203_v15 = vadd.f32 %v2202_v6, %v2139_v33  ;;  %v2266_v55 = vpop.f32.mrf.mxu3  ;;  %v2140_v56 = vpop.f32.mrf.mxu1  ;;  %v4268_v33 = vld [vmem:[%s6265_s0 + $0x1d4] sm:$0xf] }
 0x1d9   : > { %v2141_v34 = vadd.f32 %v2140_v56, %v2076_v20  ;;  %v4332_v6 = vld [vmem:[%s4836_s29 + $0x114] sm:$0xf]  ;;  %v5727_v56 = vor.u32 %v4272_v4, %v3583_v32  ;;  %v5729_v43 = vor.u32 %v4268_v33, %v3585_v16  ;;  %v3772_v32 = vor.u32 %v4316_v49, %v3769_v47  ;;  %v4277_v16 = vld [vmem:[%s6265_s0 + $0x21c] sm:$0xf] }
 0x1da   : > { %v5698_v61 = vadd.f32 %v2266_v55, %v2203_v15  ;;  %v3833_v15 = vld [vmem:[%s4836_s29 + $0x118] sm:$0xf0]  ;;  %v4300_v55 = vld [vmem:[%s4836_s29 + $0x14] sm:$0xf] }
 0x1db   : > { %v3836_v19 = vor.u32 %v4332_v6, %v3833_v15  ;;  %v3708_v51 = vor.u32 %v4300_v55, %v3705_v45  ;;  %2602 = vmatpush.bf16.msra.mxu1 %v3772_v32  ;;  %v3828_v15 = vor.u32 %v4330_v7, %v3825_v63 }
 0x1dc   : > { %6382 = vst [vmem:[#allocation59_spill] sm:$0xff] %v5698_v61 }
 0x1dd   : > { %2666 = vmatpush.bf16.msra.mxu2 %v3836_v19  ;;  %2538 = vmatpush.bf16.msra.mxu0 %v3708_v51  ;;  %v3617_v19 = vld [vmem:[%s6265_s0 + $0x230] sm:$0xf0] }
 0x1df   : > { %v2204_v20 = vpop.f32.mrf.mxu2  ;;  %v2079_v61 = vpop.f32.mrf.mxu0 }
 0x1e0   : > { %v2205_v13 = vadd.f32 %v2204_v20, %v2141_v34  ;;  %v2268_v12 = vpop.f32.mrf.mxu3  ;;  %v2143_v25 = vpop.f32.mrf.mxu1  ;;  %v4281_v34 = vld [vmem:[%s6265_s0 + $0x234] sm:$0xf0] }
 0x1e1   : > { %v2144_v33 = vadd.f32 %v2143_v25, %v2079_v61  ;;  %v4276_v25 = vld [vmem:[%s6265_s0 + $0x214] sm:$0xf]  ;;  %v3623_v61 = vld [vmem:[%s6265_s0 + $0x218] sm:$0xf]  ;;  %2667 = vmatpush.bf16.msra.mxu2 %v3828_v15 }
 0x1e2   : > { %v5740_v4 = vadd.f32 %v2268_v12, %v2205_v13  ;;  %2319 = vmatmul.bf16.gmra.mxu0 %v5727_v56  ;;  %v4280_v13 = vld [vmem:[%s6265_s0 + $0x22c] sm:$0xf0] }
 0x1e3   : > { %2383 = vmatmul.bf16.gmra.mxu1 %v5729_v43  ;;  %v5774_v6 = vor.u32 %v4280_v13, %v3615_v50  ;;  %v4298_v50 = vld [vmem:[%s4836_s29 + $0x4] sm:$0xf]  ;;  %v3697_v13 = vld [vmem:[%s4836_s29 + $0x8] sm:$0xf0] }
 0x1e4   : > { %2447 = vmatmul.bf16.gmra.mxu2 %v5734_v46 }
 0x1e5   : > { %2511 = vmatmul.bf16.gmra.mxu3 %v5738_v59 }
 0x1e7   : > { %v2207_v14 = vpop.f32.mrf.mxu2  ;;  %v2081_v47 = vpop.f32.mrf.mxu0 }
 0x1e8   : > { %v2208_v40 = vadd.f32 %v2207_v14, %v2144_v33  ;;  %v2271_v45 = vpop.f32.mrf.mxu3  ;;  %v2145_v49 = vpop.f32.mrf.mxu1  ;;  %v5776_v33 = vor.u32 %v4276_v25, %v3617_v19  ;;  %v5778_v14 = vor.u32 %v4281_v34, %v3623_v61  ;;  %v4346_v25 = vld [vmem:[%s4836_s29 + $0x184] sm:$0xf]  ;;  %v3700_v61 = vor.u32 %v4298_v50, %v3697_v13  ;;  %v3889_v34 = vld [vmem:[%s4836_s29 + $0x188] sm:$0xf0]  ;;  %v4284_v50 = vld [vmem:[%s6265_s0 + $0x254] sm:$0xf] }
 0x1e9   : > { %v2146_v51 = vadd.f32 %v2145_v49, %v2081_v47  ;;  %v3649_v13 = vld [vmem:[%s6265_s0 + $0x270] sm:$0xf0] }
 0x1ea   : > { %v5746_v12 = vadd.f32 %v2271_v45, %v2208_v40  ;;  %6383 = vst [vmem:[#allocation60_spill] sm:$0xff] %v5778_v14  ;;  %v5780_v45 = vor.u32 %v4277_v16, %v3625_v42  ;;  %v4314_v16 = vld [vmem:[%s4836_s29 + $0x84] sm:$0xf]  ;;  %v3761_v42 = vld [vmem:[%s4836_s29 + $0x88] sm:$0xf0]  ;;  %2539 = vmatpush.bf16.msra.mxu0 %v3700_v61 }
 0x1eb   : > { %v3764_v15 = vor.u32 %v4314_v16, %v3761_v42  ;;  %v4285_v61 = vld [vmem:[%s6265_s0 + $0x25c] sm:$0xf] }
 0x1ec   : > { %6384 = vst [vmem:[#allocation61_spill] sm:$0xff] %v5780_v45 }
 0x1ed   : > { %2603 = vmatpush.bf16.msra.mxu1 %v3764_v15 }
 0x1ef   : > { %v2209_v18 = vpop.f32.mrf.mxu2  ;;  %v2285_v32 = vpop.f32.mrf.mxu0 }
 0x1f0   : > { %v2210_v55 = vadd.f32 %v2209_v18, %v2146_v51  ;;  %v2273_v20 = vpop.f32.mrf.mxu3  ;;  %v2349_v40 = vpop.f32.mrf.mxu1  ;;  %v2286_v49 = vadd.f32 %v2285_v32, %v5290_v60  ;;  %v3892_v18 = vor.u32 %v4346_v25, %v3889_v34  ;;  %v4289_v25 = vld [vmem:[%s6265_s0 + $0x274] sm:$0xf0]  ;;  %v3657_v34 = vld [vmem:[%s6265_s0 + $0x278] sm:$0xf0] }
 0x1f2   : > { %v5782_v47 = vadd.f32 %v2273_v20, %v2210_v55  ;;  %2324 = vmatmul.bf16.gmra.mxu0 %v5774_v6  ;;  %v2350_v51 = vadd.f32 %v2349_v40, %v2286_v49  ;;  %2731 = vmatpush.bf16.msra.mxu3 %v3892_v18  ;;  %v3647_v40 = vld [vmem:[%s6265_s0 + $0x250] sm:$0xf]  ;;  %v5827_v18 = vor.u32 %v4284_v50, %v3649_v13  ;;  %v4408_v50 = vld [vmem:[%s4836_s29 + $0x374] sm:$0xf]  ;;  %v4137_v13 = vld [vmem:[%s4836_s29 + $0x378] sm:$0xf0] }
 0x1f3   : > { %2388 = vmatmul.bf16.gmra.mxu1 %v5776_v33 }
 0x1f4   : > { %2452 = vmatmul.bf16.gmra.mxu2 %v5778_v14  ;;  %6386 = vst [vmem:[#allocation63_spill] sm:$0xff] %v5827_v18 }
 0x1f5   : > { %2516 = vmatmul.bf16.gmra.mxu3 %v5780_v45 }
 0x1f7   : > { %v2413_v19 = vpop.f32.mrf.mxu2  ;;  %v2287_v63 = vpop.f32.mrf.mxu0 }
 0x1f8   : > { %v2414_v60 = vadd.f32 %v2413_v19, %v2350_v51  ;;  %v2477_v7 = vpop.f32.mrf.mxu3  ;;  %v2351_v55 = vpop.f32.mrf.mxu1  ;;  %v2288_v32 = vadd.f32 %v2287_v63, %v5324_v35  ;;  %v4288_v51 = vld [vmem:[%s6265_s0 + $0x26c] sm:$0xf0]  ;;  %v3655_v35 = vld [vmem:[%s6265_s0 + $0x258] sm:$0xf] }
 0x1f9   : > { %v5825_v42 = vor.u32 %v4288_v51, %v3647_v40  ;;  %v5829_v15 = vor.u32 %v4289_v25, %v3655_v35  ;;  %v4140_v25 = vor.u32 %v4408_v50, %v4137_v13  ;;  %v3681_v13 = vld [vmem:[%s6265_s0 + $0x2b0] sm:$0xf0] }
 0x1fa   : > { %v2478_v20 = vadd.f32 %v2477_v7, %v2414_v60  ;;  %v2352_v19 = vadd.f32 %v2351_v55, %v2288_v32 }
 0x1fb   : > { %6385 = vst [vmem:[#allocation62_spill] sm:$0xff] %v5825_v42  ;;  %2916 = vmatpush.bf16.msrb.mxu2 %v4140_v25  ;;  %v4293_v25 = vld [vmem:[%s6265_s0 + $0x29c] sm:$0xf] }
 0x1fc   : > { %v3044_v49 = vmax.f32 %v2478_v20, 0.0  ;;  %6387 = vst [vmem:[#allocation64_spill] sm:$0xff] %v5829_v15  ;;  %v5831_v20 = vor.u32 %v4285_v61, %v3657_v34  ;;  %v4009_v61 = vld [vmem:[%s4836_s29 + $0x278] sm:$0xf0]  ;;  %v4424_v34 = vld [vmem:[%s4836_s29 + $0x3f4] sm:$0xf] }
 0x1fe   : > { %3088 = vst [vmem:[%s5816_s15] sm:$0xff] %v3044_v49 }
 0x1ff   : > { %v2415_v16 = vpop.f32.mrf.mxu2  ;;  %v2290_v63 = vpop.f32.mrf.mxu0  ;;  %6388 = vst [vmem:[#allocation65_spill] sm:$0xff] %v5831_v20 }
 0x200   : > { %v2416_v60 = vadd.f32 %v2415_v16, %v2352_v19  ;;  %v2479_v7 = vpop.f32.mrf.mxu3  ;;  %v2354_v55 = vpop.f32.mrf.mxu1  ;;  %v2291_v49 = vadd.f32 %v2290_v63, %v5336_v8  ;;  %v4376_v19 = vld [vmem:[%s4836_s29 + $0x274] sm:$0xf]  ;;  %v4201_v63 = vld [vmem:[%s4836_s29 + $0x3f8] sm:$0xf0] }
 0x202   : > { %v2480_v32 = vadd.f32 %v2479_v7, %v2416_v60  ;;  %2329 = vmatmul.bf16.gmra.mxu0 %v5825_v42  ;;  %v2355_v51 = vadd.f32 %v2354_v55, %v2291_v49  ;;  %v4012_v7 = vor.u32 %v4376_v19, %v4009_v61  ;;  %v3679_v49 = vld [vmem:[%s6265_s0 + $0x290] sm:$0xf]  ;;  %v4392_v19 = vld [vmem:[%s4836_s29 + $0x2f4] sm:$0xf]  ;;  %v4073_v61 = vld [vmem:[%s4836_s29 + $0x2f8] sm:$0xf0] }
 0x203   : > { %2393 = vmatmul.bf16.gmra.mxu1 %v5827_v18 }
 0x204   : > { %v3046_v40 = vmax.f32 %v2480_v32, 0.0  ;;  %2457 = vmatmul.bf16.gmra.mxu2 %v5829_v15  ;;  %v4204_v15 = vor.u32 %v4424_v34, %v4201_v63  ;;  %2788 = vmatpush.bf16.msrb.mxu0 %v4012_v7 }
 0x205   : > { %2521 = vmatmul.bf16.gmra.mxu3 %v5831_v20 }
 0x206   : > { %3090 = vst [vmem:[%s5816_s15 + $0x10] sm:$0xff] %v3046_v40  ;;  %v4296_v40 = vld [vmem:[%s6265_s0 + $0x2ac] sm:$0xf0]  ;;  %2980 = vmatpush.bf16.msrb.mxu3 %v4204_v15  ;;  %v3689_v15 = vld [vmem:[%s6265_s0 + $0x2b8] sm:$0xf0] }
 0x207   : > { %v2418_v35 = vpop.f32.mrf.mxu2  ;;  %v2292_v60 = vpop.f32.mrf.mxu0  ;;  %v5879_v14 = vor.u32 %v4293_v25, %v3689_v15 }
 0x208   : > { %v2419_v8 = vadd.f32 %v2418_v35, %v2355_v51  ;;  %v2482_v16 = vpop.f32.mrf.mxu3  ;;  %v2356_v32 = vpop.f32.mrf.mxu1  ;;  %v2293_v55 = vadd.f32 %v2292_v60, %v5372_v10  ;;  %v4292_v51 = vld [vmem:[%s6265_s0 + $0x294] sm:$0xf]  ;;  %v3687_v10 = vld [vmem:[%s6265_s0 + $0x298] sm:$0xf] }
 0x209   : > { %v4297_v35 = vld [vmem:[%s6265_s0 + $0x2b4] sm:$0xf0]  ;;  %v5875_v18 = vor.u32 %v4292_v51, %v3681_v13 }
 0x20a   : > { %v2483_v20 = vadd.f32 %v2482_v16, %v2419_v8  ;;  %v5873_v8 = vor.u32 %v4296_v40, %v3679_v49  ;;  %v4076_v16 = vor.u32 %v4392_v19, %v4073_v61  ;;  %v5877_v42 = vor.u32 %v4297_v35, %v3687_v10  ;;  %v4406_v19 = vld [vmem:[%s4836_s29 + $0x364] sm:$0xf]  ;;  %v4129_v61 = vld [vmem:[%s4836_s29 + $0x368] sm:$0xf0] }
 0x20c   : > { %v3048_v50 = vmax.f32 %v2483_v20, 0.0  ;;  %v2357_v20 = vadd.f32 %v2356_v32, %v2293_v55  ;;  %2852 = vmatpush.bf16.msrb.mxu1 %v4076_v16  ;;  %v4374_v16 = vld [vmem:[%s4836_s29 + $0x264] sm:$0xf] }
 0x20e   : > { %3092 = vst [vmem:[%s5816_s15 + $0x20] sm:$0xff] %v3048_v50 }
 0x20f   : > { %v2420_v34 = vpop.f32.mrf.mxu2  ;;  %v2295_v63 = vpop.f32.mrf.mxu0 }
 0x210   : > { %v2421_v60 = vadd.f32 %v2420_v34, %v2357_v20  ;;  %v2484_v7 = vpop.f32.mrf.mxu3  ;;  %v2359_v45 = vpop.f32.mrf.mxu1  ;;  %v2296_v32 = vadd.f32 %v2295_v63, %v5378_v41 }
 0x212   : > { %v2485_v50 = vadd.f32 %v2484_v7, %v2421_v60  ;;  %2334 = vmatmul.bf16.gmra.mxu0 %v5873_v8  ;;  %v2360_v49 = vadd.f32 %v2359_v45, %v2296_v32  ;;  %v4132_v45 = vor.u32 %v4406_v19, %v4129_v61  ;;  %v4001_v60 = vld [vmem:[%s4836_s29 + $0x268] sm:$0xf0]  ;;  %v4422_v7 = vld [vmem:[%s4836_s29 + $0x3e4] sm:$0xf] }
 0x213   : > { %2398 = vmatmul.bf16.gmra.mxu1 %v5875_v18 }
 0x214   : > { %v3050_v55 = vmax.f32 %v2485_v50, 0.0  ;;  %2462 = vmatmul.bf16.gmra.mxu2 %v5877_v42 }
 0x215   : > { %2526 = vmatmul.bf16.gmra.mxu3 %v5879_v14  ;;  %2917 = vmatpush.bf16.msrb.mxu2 %v4132_v45 }
 0x216   : > { %3094 = vst [vmem:[%s5816_s15 + $0x30] sm:$0xff] %v3050_v55  ;;  %v4004_v55 = vor.u32 %v4374_v16, %v4001_v60 }
 0x217   : > { %v2423_v40 = vpop.f32.mrf.mxu2  ;;  %v2297_v13 = vpop.f32.mrf.mxu0 }
 0x218   : > { %v2424_v51 = vadd.f32 %v2423_v40, %v2360_v49  ;;  %v2487_v41 = vpop.f32.mrf.mxu3  ;;  %v2361_v10 = vpop.f32.mrf.mxu1  ;;  %v2298_v25 = vadd.f32 %v2297_v13, %v5420_v27  ;;  %v4193_v49 = vld [vmem:[%s4836_s29 + $0x3e8] sm:$0xf0]  ;;  %v4390_v40 = vld [vmem:[%s4836_s29 + $0x2e4] sm:$0xf]  ;;  %2789 = vmatpush.bf16.msrb.mxu0 %v4004_v55 }
 0x219   : > { %v4065_v27 = vld [vmem:[%s4836_s29 + $0x2e8] sm:$0xf0] }
 0x21a   : > { %v2488_v35 = vadd.f32 %v2487_v41, %v2424_v51  ;;  %v2362_v20 = vadd.f32 %v2361_v10, %v2298_v25  ;;  %v4196_v41 = vor.u32 %v4422_v7, %v4193_v49  ;;  %v4068_v13 = vor.u32 %v4390_v40, %v4065_v27  ;;  %v4404_v49 = vld [vmem:[%s4836_s29 + $0x354] sm:$0xf]  ;;  %v4121_v40 = vld [vmem:[%s4836_s29 + $0x358] sm:$0xf0] }
 0x21c   : > { %v3052_v15 = vmax.f32 %v2488_v35, 0.0  ;;  %2981 = vmatpush.bf16.msrb.mxu3 %v4196_v41  ;;  %2853 = vmatpush.bf16.msrb.mxu1 %v4068_v13  ;;  %v4372_v41 = vld [vmem:[%s4836_s29 + $0x254] sm:$0xf] }
 0x21d   : > { %v4420_v13 = vld [vmem:[%s4836_s29 + $0x3d4] sm:$0xf] }
 0x21e   : > { %3096 = vst [vmem:[%s5816_s15 + $0x40] sm:$0xff] %v3052_v15 }
 0x21f   : > { %v2425_v34 = vpop.f32.mrf.mxu2  ;;  %v2300_v32 = vpop.f32.mrf.mxu0 }
 0x220   : > { %v2426_v63 = vadd.f32 %v2425_v34, %v2362_v20  ;;  %v2489_v50 = vpop.f32.mrf.mxu3  ;;  %v2364_v51 = vpop.f32.mrf.mxu1  ;;  %v2301_v35 = vadd.f32 %v2300_v32, %v5426_v9 }
 0x222   : > { %v2490_v10 = vadd.f32 %v2489_v50, %v2426_v63  ;;  %2540 = vmatmul.bf16.vlgmr.msra.gmra.mxu0 %v4933_v48  ;;  %v2365_v15 = vadd.f32 %v2364_v51, %v2301_v35  ;;  %v4124_v51 = vor.u32 %v4404_v49, %v4121_v40 }
 0x223   : > { %2604 = vmatmul.bf16.vlgmr.msra.gmra.mxu1 %v4938_v53 }
 0x224   : > { %v3054_v25 = vmax.f32 %v2490_v10, 0.0  ;;  %2668 = vmatmul.bf16.vlgmr.msra.gmra.mxu2 %v4940_v54 }
 0x225   : > { %2732 = vmatmul.bf16.vlgmr.msra.gmra.mxu3 %v4944_v57  ;;  %2918 = vmatpush.bf16.msrb.mxu2 %v4124_v51  ;;  %v4370_v51 = vld [vmem:[%s4836_s29 + $0x244] sm:$0xf] }
 0x226   : > { %3098 = vst [vmem:[%s5816_s15 + $0x50] sm:$0xff] %v3054_v25  ;;  %v4185_v25 = vld [vmem:[%s4836_s29 + $0x3d8] sm:$0xf0] }
 0x227   : > { %v2428_v20 = vpop.f32.mrf.mxu2  ;;  %v2302_v34 = vpop.f32.mrf.mxu0 }
 0x228   : > { %v2429_v19 = vadd.f32 %v2428_v20, %v2365_v15  ;;  %v2492_v61 = vpop.f32.mrf.mxu3  ;;  %v2366_v9 = vpop.f32.mrf.mxu1  ;;  %v2303_v48 = vadd.f32 %v2302_v34, %v5460_v62  ;;  %v4057_v15 = vld [vmem:[%s4836_s29 + $0x2d8] sm:$0xf0] }
 0x22a   : > { %v2493_v45 = vadd.f32 %v2492_v61, %v2429_v19  ;;  %v2367_v53 = vadd.f32 %v2366_v9, %v2303_v48 }
 0x22c   : > { %v3056_v16 = vmax.f32 %v2493_v45, 0.0 }
 0x22e   : > { %3100 = vst [vmem:[%s5816_s15 + $0x60] sm:$0xff] %v3056_v16 }
 0x22f   : > { %v2430_v54 = vpop.f32.mrf.mxu2  ;;  %v2305_v7 = vpop.f32.mrf.mxu0 }
 0x230   : > { %v2431_v60 = vadd.f32 %v2430_v54, %v2367_v53  ;;  %v2494_v57 = vpop.f32.mrf.mxu3  ;;  %v2369_v63 = vpop.f32.mrf.mxu1  ;;  %v2306_v32 = vadd.f32 %v2305_v7, %v5474_v5  ;;  %v3993_v5 = vld [vmem:[%s4836_s29 + $0x258] sm:$0xf0] }
 0x231   : > { %v3996_v35 = vor.u32 %v4372_v41, %v3993_v5  ;;  %v3985_v41 = vld [vmem:[%s4836_s29 + $0x248] sm:$0xf0] }
 0x232   : > { %v2495_v50 = vadd.f32 %v2494_v57, %v2431_v60  ;;  %2545 = vmatmul.bf16.gmra.mxu0 %v4984_v21  ;;  %v2370_v55 = vadd.f32 %v2369_v63, %v2306_v32  ;;  %v4113_v32 = vld [vmem:[%s4836_s29 + $0x348] sm:$0xf0] }
 0x233   : > { %2609 = vmatmul.bf16.gmra.mxu1 %v4986_v22  ;;  %2790 = vmatpush.bf16.msrb.mxu0 %v3996_v35 }
 0x234   : > { %v3058_v62 = vmax.f32 %v2495_v50, 0.0  ;;  %2673 = vmatmul.bf16.gmra.mxu2 %v4988_v23  ;;  %v4388_v23 = vld [vmem:[%s4836_s29 + $0x2d4] sm:$0xf]  ;;  %v4402_v50 = vld [vmem:[%s4836_s29 + $0x344] sm:$0xf] }
 0x235   : > { %2737 = vmatmul.bf16.gmra.mxu3 %v4990_v24  ;;  %v4188_v24 = vor.u32 %v4420_v13, %v4185_v25  ;;  %v4060_v19 = vor.u32 %v4388_v23, %v4057_v15  ;;  %v3988_v13 = vor.u32 %v4370_v51, %v3985_v41  ;;  %v4041_v51 = vld [vmem:[%s4836_s29 + $0x2b8] sm:$0xf0] }
 0x236   : > { %3102 = vst [vmem:[%s5816_s15 + $0x70] sm:$0xff] %v3058_v62 }
 0x237   : > { %v2433_v27 = vpop.f32.mrf.mxu2  ;;  %v2307_v22 = vpop.f32.mrf.mxu0  ;;  %2982 = vmatpush.bf16.msrb.mxu3 %v4188_v24  ;;  %2854 = vmatpush.bf16.msrb.mxu1 %v4060_v19 }
 0x238   : > { %v2434_v21 = vadd.f32 %v2433_v27, %v2370_v55  ;;  %v2497_v10 = vpop.f32.mrf.mxu3  ;;  %v2371_v20 = vpop.f32.mrf.mxu1  ;;  %v2308_v34 = vadd.f32 %v2307_v22, %v5508_v44  ;;  %v4116_v55 = vor.u32 %v4402_v50, %v4113_v32  ;;  %v4386_v22 = vld [vmem:[%s4836_s29 + $0x2c4] sm:$0xf]  ;;  %2791 = vmatpush.bf16.msrb.mxu0 %v3988_v13  ;;  %v4416_v50 = vld [vmem:[%s4836_s29 + $0x3b4] sm:$0xf] }
 0x23a   : > { %v2498_v61 = vadd.f32 %v2497_v10, %v2434_v21  ;;  %v2372_v45 = vadd.f32 %v2371_v20, %v2308_v34  ;;  %2919 = vmatpush.bf16.msrb.mxu2 %v4116_v55  ;;  %v4418_v21 = vld [vmem:[%s4836_s29 + $0x3c4] sm:$0xf]  ;;  %v4177_v10 = vld [vmem:[%s4836_s29 + $0x3c8] sm:$0xf0] }
 0x23b   : > { %v4180_v15 = vor.u32 %v4418_v21, %v4177_v10  ;;  %v4049_v20 = vld [vmem:[%s4836_s29 + $0x2c8] sm:$0xf0] }
 0x23c   : > { %v3060_v9 = vmax.f32 %v2498_v61, 0.0  ;;  %v4052_v19 = vor.u32 %v4386_v22, %v4049_v20  ;;  %v6389_v22 = vld [vmem:[#allocation52_spill] sm:$0xff] }
 0x23d   : > { %2983 = vmatpush.bf16.msrb.mxu3 %v4180_v15 }
 0x23e   : > { %3104 = vst [vmem:[%s5816_s15 + $0x80] sm:$0xff] %v3060_v9  ;;  %2855 = vmatpush.bf16.msrb.mxu1 %v4052_v19  ;;  %v6390_v19 = vld [vmem:[#allocation53_spill] sm:$0xff] }
 0x23f   : > { %v2435_v48 = vpop.f32.mrf.mxu2  ;;  %v2310_v54 = vpop.f32.mrf.mxu0 }
 0x240   : > { %v2436_v16 = vadd.f32 %v2435_v48, %v2372_v45  ;;  %v2499_v53 = vpop.f32.mrf.mxu3  ;;  %v2374_v60 = vpop.f32.mrf.mxu1  ;;  %v2311_v7 = vadd.f32 %v2310_v54, %v5516_v26 }
 0x242   : > { %v2500_v57 = vadd.f32 %v2499_v53, %v2436_v16  ;;  %2550 = vmatmul.bf16.gmra.mxu0 %v5022_v36  ;;  %v2375_v63 = vadd.f32 %v2374_v60, %v2311_v7 }
 0x243   : > { %2614 = vmatmul.bf16.gmra.mxu1 %v5024_v37 }
 0x244   : > { %v3062_v44 = vmax.f32 %v2500_v57, 0.0  ;;  %2678 = vmatmul.bf16.gmra.mxu2 %v5026_v38  ;;  %v4105_v57 = vld [vmem:[%s4836_s29 + $0x338] sm:$0xf0] }
 0x245   : > { %2742 = vmatmul.bf16.gmra.mxu3 %v5028_v39 }
 0x246   : > { %3106 = vst [vmem:[%s5816_s15 + $0x90] sm:$0xff] %v3062_v44  ;;  %v4368_v44 = vld [vmem:[%s4836_s29 + $0x234] sm:$0xf] }
 0x247   : > { %v2438_v62 = vpop.f32.mrf.mxu2  ;;  %v2312_v49 = vpop.f32.mrf.mxu0 }
 0x248   : > { %v2439_v26 = vadd.f32 %v2438_v62, %v2375_v63  ;;  %v2502_v36 = vpop.f32.mrf.mxu3  ;;  %v2376_v37 = vpop.f32.mrf.mxu1  ;;  %v2313_v39 = vadd.f32 %v2312_v49, %v5556_v11  ;;  %v3977_v63 = vld [vmem:[%s4836_s29 + $0x238] sm:$0xf0] }
 0x24a   : > { %v2503_v38 = vadd.f32 %v2502_v36, %v2439_v26  ;;  %v2377_v27 = vadd.f32 %v2376_v37, %v2313_v39  ;;  %v3980_v26 = vor.u32 %v4368_v44, %v3977_v63  ;;  %v4169_v36 = vld [vmem:[%s4836_s29 + $0x3b8] sm:$0xf0]  ;;  %v4161_v63 = vld [vmem:[%s4836_s29 + $0x3a8] sm:$0xf0] }
 0x24c   : > { %v3064_v40 = vmax.f32 %v2503_v38, 0.0  ;;  %2792 = vmatpush.bf16.msrb.mxu0 %v3980_v26 }
 0x24e   : > { %3108 = vst [vmem:[%s5816_s15 + $0xa0] sm:$0xff] %v3064_v40 }
 0x24f   : > { %v2440_v5 = vpop.f32.mrf.mxu2  ;;  %v2315_v23 = vpop.f32.mrf.mxu0 }
 0x250   : > { %v2441_v35 = vadd.f32 %v2440_v5, %v2377_v27  ;;  %v2504_v25 = vpop.f32.mrf.mxu3  ;;  %v2379_v24 = vpop.f32.mrf.mxu1  ;;  %v2316_v61 = vadd.f32 %v2315_v23, %v5562_v52  ;;  %v4384_v27 = vld [vmem:[%s4836_s29 + $0x2b4] sm:$0xf] }
 0x251   : > { %v4044_v5 = vor.u32 %v4384_v27, %v4041_v51 }
 0x252   : > { %v2505_v11 = vadd.f32 %v2504_v25, %v2441_v35  ;;  %2555 = vmatmul.bf16.gmra.mxu0 %v5066_v0  ;;  %v2380_v9 = vadd.f32 %v2379_v24, %v2316_v61  ;;  %v6391_v61 = vld [vmem:[#allocation4_spill] sm:$0xff] }
 0x253   : > { %2619 = vmatmul.bf16.gmra.mxu1 %v5068_v1 }
 0x254   : > { %v3066_v34 = vmax.f32 %v2505_v11, 0.0  ;;  %2683 = vmatmul.bf16.gmra.mxu2 %v5070_v2  ;;  %v4400_v2 = vld [vmem:[%s4836_s29 + $0x334] sm:$0xf]  ;;  %2856 = vmatpush.bf16.msrb.mxu1 %v4044_v5 }
 0x255   : > { %2747 = vmatmul.bf16.gmra.mxu3 %v5072_v3  ;;  %v4108_v7 = vor.u32 %v4400_v2, %v4105_v57  ;;  %v4414_v2 = vld [vmem:[%s4836_s29 + $0x3a4] sm:$0xf] }
 0x256   : > { %3110 = vst [vmem:[%s5816_s15 + $0xb0] sm:$0xff] %v3066_v34 }
 0x257   : > { %v2443_v45 = vpop.f32.mrf.mxu2  ;;  %v2317_v0 = vpop.f32.mrf.mxu0  ;;  %2920 = vmatpush.bf16.msrb.mxu2 %v4108_v7 }
 0x258   : > { %v2444_v52 = vadd.f32 %v2443_v45, %v2380_v9  ;;  %v2507_v48 = vpop.f32.mrf.mxu3  ;;  %v2381_v16 = vpop.f32.mrf.mxu1  ;;  %v2318_v54 = vadd.f32 %v2317_v0, %v5602_v58  ;;  %v4172_v58 = vor.u32 %v4416_v50, %v4169_v36  ;;  %v6392_v9 = vld [vmem:[#allocation5_spill] sm:$0xff]  ;;  %v6393_v45 = vld [vmem:[#allocation6_spill] sm:$0xff]  ;;  %v4398_v0 = vld [vmem:[%s4836_s29 + $0x324] sm:$0xf] }
 0x259   : > { %v4382_v50 = vld [vmem:[%s4836_s29 + $0x2a4] sm:$0xf] }
 0x25a   : > { %v2508_v53 = vadd.f32 %v2507_v48, %v2444_v52  ;;  %v2382_v60 = vadd.f32 %v2381_v16, %v2318_v54  ;;  %2984 = vmatpush.bf16.msrb.mxu3 %v4172_v58  ;;  %v6394_v52 = vld [vmem:[#allocation7_spill] sm:$0xff]  ;;  %v4097_v16 = vld [vmem:[%s4836_s29 + $0x328] sm:$0xf0] }
 0x25b   : > { %v4100_v54 = vor.u32 %v4398_v0, %v4097_v16 }
 0x25c   : > { %v3068_v1 = vmax.f32 %v2508_v53, 0.0 }
 0x25d   : > { %2921 = vmatpush.bf16.msrb.mxu2 %v4100_v54  ;;  %v4025_v54 = vld [vmem:[%s4836_s29 + $0x298] sm:$0xf0] }
 0x25e   : > { %3112 = vst [vmem:[%s5816_s15 + $0xc0] sm:$0xff] %v3068_v1  ;;  %v4366_v1 = vld [vmem:[%s4836_s29 + $0x224] sm:$0xf] }
 0x25f   : > { %v2445_v3 = vpop.f32.mrf.mxu2  ;;  %v2320_v55 = vpop.f32.mrf.mxu0 }
 0x260   : > { %v2446_v32 = vadd.f32 %v2445_v3, %v2382_v60  ;;  %v2509_v62 = vpop.f32.mrf.mxu3  ;;  %v2384_v49 = vpop.f32.mrf.mxu1  ;;  %v2321_v38 = vadd.f32 %v2320_v55, %v5610_v17  ;;  %v3969_v60 = vld [vmem:[%s4836_s29 + $0x228] sm:$0xf0]  ;;  %v4164_v55 = vor.u32 %v4414_v2, %v4161_v63 }
 0x261   : > { %v3972_v44 = vor.u32 %v4366_v1, %v3969_v60 }
 0x262   : > { %v2510_v37 = vadd.f32 %v2509_v62, %v2446_v32  ;;  %2560 = vmatmul.bf16.gmra.mxu0 %v5110_v28  ;;  %v2385_v40 = vadd.f32 %v2384_v49, %v2321_v38  ;;  %v4033_v32 = vld [vmem:[%s4836_s29 + $0x2a8] sm:$0xf0]  ;;  %v6395_v49 = vld [vmem:[#allocation58_spill] sm:$0xff]  ;;  %2985 = vmatpush.bf16.msrb.mxu3 %v4164_v55 }
 0x263   : > { %2624 = vmatmul.bf16.gmra.mxu1 %v5112_v29  ;;  %v4036_v26 = vor.u32 %v4382_v50, %v4033_v32  ;;  %2793 = vmatpush.bf16.msrb.mxu0 %v3972_v44  ;;  %v6401_v50 = vld [vmem:[#allocation12_spill] sm:$0xff]  ;;  %v6403_v55 = vld [vmem:[#allocation14_spill] sm:$0xff] }
 0x264   : > { %v3070_v39 = vmax.f32 %v2510_v37, 0.0  ;;  %2688 = vmatmul.bf16.gmra.mxu2 %v5114_v30 }
 0x265   : > { %2752 = vmatmul.bf16.gmra.mxu3 %v5116_v31  ;;  %2857 = vmatpush.bf16.msrb.mxu1 %v4036_v26  ;;  %v6404_v26 = vld [vmem:[#allocation15_spill] sm:$0xff] }
 0x266   : > { %3114 = vst [vmem:[%s5816_s15 + $0xd0] sm:$0xff] %v3070_v39 }
 0x267   : > { %v2448_v41 = vpop.f32.mrf.mxu2  ;;  %v2322_v21 = vpop.f32.mrf.mxu0 }
 0x268   : > { %v2449_v13 = vadd.f32 %v2448_v41, %v2385_v40  ;;  %v2512_v17 = vpop.f32.mrf.mxu3  ;;  %v2386_v10 = vpop.f32.mrf.mxu1  ;;  %v2323_v35 = vadd.f32 %v2322_v21, %v6389_v22  ;;  %v6397_v21 = vld [vmem:[#allocation8_spill] sm:$0xff]  ;;  %v6399_v22 = vld [vmem:[#allocation10_spill] sm:$0xff] }
 0x26a   : > { %v2513_v28 = vadd.f32 %v2512_v17, %v2449_v13  ;;  %v2387_v30 = vadd.f32 %v2386_v10, %v2323_v35  ;;  %v6396_v13 = vld [vmem:[#allocation59_spill] sm:$0xff] }
 0x26b   : > { %v6400_v35 = vld [vmem:[#allocation11_spill] sm:$0xff] }
 0x26c   : > { %v3072_v29 = vmax.f32 %v2513_v28, 0.0  ;;  %v6398_v28 = vld [vmem:[#allocation9_spill] sm:$0xff] }
 0x26e   : > { %3116 = vst [vmem:[%s5816_s15 + $0xe0] sm:$0xff] %v3072_v29 }
 0x26f   : > { %v2450_v31 = vpop.f32.mrf.mxu2  ;;  %v2325_v15 = vpop.f32.mrf.mxu0 }
 0x270   : > { %v2451_v25 = vadd.f32 %v2450_v31, %v2387_v30  ;;  %v2514_v23 = vpop.f32.mrf.mxu3  ;;  %v2389_v20 = vpop.f32.mrf.mxu1  ;;  %v2326_v11 = vadd.f32 %v2325_v15, %v6390_v19  ;;  %v4396_v19 = vld [vmem:[%s4836_s29 + $0x314] sm:$0xf] }
 0x272   : > { %v2515_v24 = vadd.f32 %v2514_v23, %v2451_v25  ;;  %2565 = vmatmul.bf16.gmra.mxu0 %v6391_v61  ;;  %v2390_v48 = vadd.f32 %v2389_v20, %v2326_v11  ;;  %v4089_v11 = vld [vmem:[%s4836_s29 + $0x318] sm:$0xf0]  ;;  %v4364_v61 = vld [vmem:[%s4836_s29 + $0x214] sm:$0xf] }
 0x273   : > { %2629 = vmatmul.bf16.gmra.mxu1 %v6392_v9  ;;  %v3961_v9 = vld [vmem:[%s4836_s29 + $0x218] sm:$0xf0] }
 0x274   : > { %v3074_v34 = vmax.f32 %v2515_v24, 0.0  ;;  %2693 = vmatmul.bf16.gmra.mxu2 %v6393_v45  ;;  %v4412_v45 = vld [vmem:[%s4836_s29 + $0x394] sm:$0xf]  ;;  %v3964_v0 = vor.u32 %v4364_v61, %v3961_v9 }
 0x275   : > { %2757 = vmatmul.bf16.gmra.mxu3 %v6394_v52  ;;  %v4153_v52 = vld [vmem:[%s4836_s29 + $0x398] sm:$0xf0]  ;;  %v6407_v61 = vld [vmem:[#allocation18_spill] sm:$0xff] }
 0x276   : > { %3118 = vst [vmem:[%s5816_s15 + $0xf0] sm:$0xff] %v3074_v34  ;;  %v4092_v34 = vor.u32 %v4396_v19, %v4089_v11  ;;  %v4156_v16 = vor.u32 %v4412_v45, %v4153_v52  ;;  %2794 = vmatpush.bf16.msrb.mxu0 %v3964_v0  ;;  %v6406_v11 = vld [vmem:[#allocation17_spill] sm:$0xff]  ;;  %v6408_v45 = vld [vmem:[#allocation19_spill] sm:$0xff] }
 0x277   : > { %v2453_v53 = vpop.f32.mrf.mxu2  ;;  %v2327_v7 = vpop.f32.mrf.mxu0 }
 0x278   : > { %v2454_v57 = vadd.f32 %v2453_v53, %v2390_v48  ;;  %v2517_v3 = vpop.f32.mrf.mxu3  ;;  %v2391_v62 = vpop.f32.mrf.mxu1  ;;  %v2328_v58 = vadd.f32 %v2327_v7, %v6395_v49  ;;  %v4380_v53 = vld [vmem:[%s4836_s29 + $0x294] sm:$0xf]  ;;  %2922 = vmatpush.bf16.msrb.mxu2 %v4092_v34  ;;  %2986 = vmatpush.bf16.msrb.mxu3 %v4156_v16 }
 0x279   : > { %v4028_v1 = vor.u32 %v4380_v53, %v4025_v54 }
 0x27a   : > { %v2518_v36 = vadd.f32 %v2517_v3, %v2454_v57  ;;  %v2392_v38 = vadd.f32 %v2391_v62, %v2328_v58  ;;  %v6402_v62 = vld [vmem:[#allocation13_spill] sm:$0xff] }
 0x27b   : > { %2858 = vmatpush.bf16.msrb.mxu1 %v4028_v1 }
 0x27c   : > { %v3076_v37 = vmax.f32 %v2518_v36, 0.0 }
 0x27e   : > { %3120 = vst [vmem:[%s5816_s15 + $0x100] sm:$0xff] %v3076_v37 }
 0x27f   : > { %v2455_v39 = vpop.f32.mrf.mxu2  ;;  %v2330_v51 = vpop.f32.mrf.mxu0 }
 0x280   : > { %v2456_v40 = vadd.f32 %v2455_v39, %v2392_v38  ;;  %v2519_v27 = vpop.f32.mrf.mxu3  ;;  %v2394_v41 = vpop.f32.mrf.mxu1  ;;  %v2331_v17 = vadd.f32 %v2330_v51, %v6396_v13  ;;  %v4081_v51 = vld [vmem:[%s4836_s29 + $0x308] sm:$0xf0] }
 0x282   : > { %v2520_v5 = vadd.f32 %v2519_v27, %v2456_v40  ;;  %2570 = vmatmul.bf16.gmra.mxu0 %v6397_v21  ;;  %v2395_v29 = vadd.f32 %v2394_v41, %v2331_v17  ;;  %v4394_v27 = vld [vmem:[%s4836_s29 + $0x304] sm:$0xf] }
 0x283   : > { %2634 = vmatmul.bf16.gmra.mxu1 %v6398_v28  ;;  %v4084_v41 = vor.u32 %v4394_v27, %v4081_v51 }
 0x284   : > { %v3078_v10 = vmax.f32 %v2520_v5, 0.0  ;;  %2698 = vmatmul.bf16.gmra.mxu2 %v6399_v22 }
 0x285   : > { %2762 = vmatmul.bf16.gmra.mxu3 %v6400_v35  ;;  %2923 = vmatpush.bf16.msrb.mxu2 %v4084_v41 }
 0x286   : > { %3122 = vst [vmem:[%s5816_s15 + $0x110] sm:$0xff] %v3078_v10 }
 0x287   : > { %v2458_v30 = vpop.f32.mrf.mxu2  ;;  %v2332_v23 = vpop.f32.mrf.mxu0 }
 0x288   : > { %v2459_v31 = vadd.f32 %v2458_v30, %v2395_v29  ;;  %v2522_v25 = vpop.f32.mrf.mxu3  ;;  %v2396_v15 = vpop.f32.mrf.mxu1  ;;  %v2333_v24 = vadd.f32 %v2332_v23, %v5740_v4  ;;  %v3953_v30 = vld [vmem:[%s4836_s29 + $0x208] sm:$0xf0] }
 0x28a   : > { %v2523_v20 = vadd.f32 %v2522_v25, %v2459_v31  ;;  %v2397_v60 = vadd.f32 %v2396_v15, %v2333_v24  ;;  %v4410_v31 = vld [vmem:[%s4836_s29 + $0x384] sm:$0xf]  ;;  %v4145_v15 = vld [vmem:[%s4836_s29 + $0x388] sm:$0xf0] }
 0x28b   : > { %v6405_v25 = vld [vmem:[#allocation16_spill] sm:$0xff]  ;;  %v4017_v24 = vld [vmem:[%s4836_s29 + $0x288] sm:$0xf0]  ;;  %v4148_v34 = vor.u32 %v4410_v31, %v4145_v15 }
 0x28c   : > { %v3080_v48 = vmax.f32 %v2523_v20, 0.0  ;;  %v4378_v20 = vld [vmem:[%s4836_s29 + $0x284] sm:$0xf] }
 0x28d   : > { %v4020_v9 = vor.u32 %v4378_v20, %v4017_v24  ;;  %2987 = vmatpush.bf16.msrb.mxu3 %v4148_v34  ;;  %v6418_v34 = vld [vmem:[#allocation29_spill] sm:$0xff] }
 0x28e   : > { %3124 = vst [vmem:[%s5816_s15 + $0x120] sm:$0xff] %v3080_v48 }
 0x28f   : > { %v2460_v4 = vpop.f32.mrf.mxu2  ;;  %v2335_v3 = vpop.f32.mrf.mxu0  ;;  %2859 = vmatpush.bf16.msrb.mxu1 %v4020_v9  ;;  %v6419_v9 = vld [vmem:[#allocation30_spill] sm:$0xff] }
 0x290   : > { %v2461_v2 = vadd.f32 %v2460_v4, %v2397_v60  ;;  %v2524_v57 = vpop.f32.mrf.mxu3  ;;  %v2399_v7 = vpop.f32.mrf.mxu1  ;;  %v2336_v63 = vadd.f32 %v2335_v3, %v5746_v12 }
 0x292   : > { %v2525_v44 = vadd.f32 %v2524_v57, %v2461_v2  ;;  %2575 = vmatmul.bf16.gmra.mxu0 %v6401_v50  ;;  %v2400_v36 = vadd.f32 %v2399_v7, %v2336_v63  ;;  %v6409_v63 = vld [vmem:[#allocation20_spill] sm:$0xff]  ;;  %v6410_v50 = vld [vmem:[#allocation21_spill] sm:$0xff] }
 0x293   : > { %2639 = vmatmul.bf16.gmra.mxu1 %v6402_v62  ;;  %v6412_v62 = vld [vmem:[#allocation23_spill] sm:$0xff] }
 0x294   : > { %v3082_v32 = vmax.f32 %v2525_v44, 0.0  ;;  %2703 = vmatmul.bf16.gmra.mxu2 %v6403_v55 }
 0x295   : > { %2767 = vmatmul.bf16.gmra.mxu3 %v6404_v26 }
 0x296   : > { %3126 = vst [vmem:[%s5816_s15 + $0x130] sm:$0xff] %v3082_v32  ;;  %v6411_v32 = vld [vmem:[#allocation22_spill] sm:$0xff] }
 0x297   : > { %v2463_v49 = vpop.f32.mrf.mxu2  ;;  %v2337_v38 = vpop.f32.mrf.mxu0 }
 0x298   : > { %v2464_v58 = vadd.f32 %v2463_v49, %v2400_v36  ;;  %v2527_v37 = vpop.f32.mrf.mxu3  ;;  %v2401_v39 = vpop.f32.mrf.mxu1  ;;  %v2338_v12 = vadd.f32 %v2337_v38, %v5782_v47  ;;  %v4362_v47 = vld [vmem:[%s4836_s29 + $0x204] sm:$0xf]  ;;  %s4426_s29 = sshll.u32 (%p4558_p6), %s4498_s11, 4 }
 0x299   : > { %v3956_v23 = vor.u32 %v4362_v47, %v3953_v30  ;;  %s6162_s21 = scalar_lea.vmem (%p4558_p6), %s6267_s2, %s4426_s29 }
 0x29a   : > { %v2528_v40 = vadd.f32 %v2527_v37, %v2464_v58  ;;  %v2402_v13 = vadd.f32 %v2401_v39, %v2338_v12 }
 0x29b   : > { %2795 = vmatpush.bf16.msrb.mxu0 %v3956_v23 }
 0x29c   : > { %v3084_v5 = vmax.f32 %v2528_v40, 0.0 }
 0x29e   : > { %3128 = vst [vmem:[%s5816_s15 + $0x140] sm:$0xff] %v3084_v5 }
 0x29f   : > { %v2465_v17 = vpop.f32.mrf.mxu2  ;;  %v2541_v28 = vpop.f32.mrf.mxu0 }
 0x2a0   : > { %v2466_v21 = vadd.f32 %v2465_v17, %v2402_v13  ;;  %v2529_v10 = vpop.f32.mrf.mxu3  ;;  %v2605_v22 = vpop.f32.mrf.mxu1  ;;  %v6413_v13 = vld [vmem:[#allocation24_spill] sm:$0xff]  ;;  %v6414_v17 = vld [vmem:[#allocation25_spill] sm:$0xff] }
 0x2a1   : > { %v2606_v29 = vadd.f32 %v2605_v22, %v2541_v28 }
 0x2a2   : > { %v2530_v35 = vadd.f32 %v2529_v10, %v2466_v21  ;;  %2580 = vmatmul.bf16.gmra.mxu0 %v6405_v25  ;;  %v6415_v21 = vld [vmem:[#allocation26_spill] sm:$0xff]  ;;  %v6416_v10 = vld [vmem:[#allocation27_spill] sm:$0xff] }
 0x2a3   : > { %2644 = vmatmul.bf16.gmra.mxu1 %v6406_v11 }
 0x2a4   : > { %v3086_v19 = vmax.f32 %v2530_v35, 0.0  ;;  %2708 = vmatmul.bf16.gmra.mxu2 %v6407_v61  ;;  %v6417_v61 = vld [vmem:[#allocation28_spill] sm:$0xff] }
 0x2a5   : > { %2772 = vmatmul.bf16.gmra.mxu3 %v6408_v45  ;;  %v6420_v45 = vld [vmem:[#allocation31_spill] sm:$0xff] }
 0x2a6   : > { %3130 = vst [vmem:[%s5816_s15 + $0x150] sm:$0xff] %v3086_v19 }
 0x2a7   : > { %v2669_v52 = vpop.f32.mrf.mxu2  ;;  %v2543_v16 = vpop.f32.mrf.mxu0 }
 0x2a8   : > { %v2670_v48 = vadd.f32 %v2669_v52, %v2606_v29  ;;  %v2733_v0 = vpop.f32.mrf.mxu3  ;;  %v2607_v53 = vpop.f32.mrf.mxu1 }
 0x2a9   : > { %v2608_v1 = vadd.f32 %v2607_v53, %v2543_v16 }
 0x2aa   : > { %v6014_v54 = vadd.f32 %v2733_v0, %v2670_v48 }
 0x2af   : > { %v2671_v60 = vpop.f32.mrf.mxu2  ;;  %v2546_v57 = vpop.f32.mrf.mxu0 }
 0x2b0   : > { %v2672_v4 = vadd.f32 %v2671_v60, %v2608_v1  ;;  %v2735_v2 = vpop.f32.mrf.mxu3  ;;  %v2610_v3 = vpop.f32.mrf.mxu1 }
 0x2b1   : > { %v2611_v44 = vadd.f32 %v2610_v3, %v2546_v57 }
 0x2b2   : > { %v6016_v7 = vadd.f32 %v2735_v2, %v2672_v4  ;;  %2585 = vmatmul.bf16.gmra.mxu0 %v6409_v63 }
 0x2b3   : > { %2649 = vmatmul.bf16.gmra.mxu1 %v6410_v50 }
 0x2b4   : > { %2713 = vmatmul.bf16.gmra.mxu2 %v6411_v32  ;;  %v6421_v32 = vld [vmem:[#allocation32_spill] sm:$0xff] }
 0x2b5   : > { %2777 = vmatmul.bf16.gmra.mxu3 %v6412_v62  ;;  %v6422_v62 = vld [vmem:[#allocation33_spill] sm:$0xff] }
 0x2b7   : > { %v2674_v55 = vpop.f32.mrf.mxu2  ;;  %v2548_v49 = vpop.f32.mrf.mxu0 }
 0x2b8   : > { %v2675_v26 = vadd.f32 %v2674_v55, %v2611_v44  ;;  %v2738_v36 = vpop.f32.mrf.mxu3  ;;  %v2612_v58 = vpop.f32.mrf.mxu1  ;;  %v6423_v55 = vld [vmem:[#allocation34_spill] sm:$0xff] }
 0x2b9   : > { %v2613_v38 = vadd.f32 %v2612_v58, %v2548_v49 }
 0x2ba   : > { %v6022_v37 = vadd.f32 %v2738_v36, %v2675_v26  ;;  %v6424_v26 = vld [vmem:[#allocation35_spill] sm:$0xff] }
 0x2bf   : > { %v2676_v39 = vpop.f32.mrf.mxu2  ;;  %v2551_v27 = vpop.f32.mrf.mxu0 }
 0x2c0   : > { %v2677_v40 = vadd.f32 %v2676_v39, %v2613_v38  ;;  %v2740_v12 = vpop.f32.mrf.mxu3  ;;  %v2615_v51 = vpop.f32.mrf.mxu1 }
 0x2c1   : > { %v2616_v5 = vadd.f32 %v2615_v51, %v2551_v27 }
 0x2c2   : > { %v6024_v41 = vadd.f32 %v2740_v12, %v2677_v40  ;;  %2590 = vmatmul.bf16.gmra.mxu0 %v6413_v13 }
 0x2c3   : > { %2654 = vmatmul.bf16.gmra.mxu1 %v6414_v17 }
 0x2c4   : > { %2718 = vmatmul.bf16.gmra.mxu2 %v6415_v21 }
 0x2c5   : > { %2782 = vmatmul.bf16.gmra.mxu3 %v6416_v10 }
 0x2c7   : > { %v2679_v28 = vpop.f32.mrf.mxu2  ;;  %v2553_v29 = vpop.f32.mrf.mxu0 }
 0x2c8   : > { %v2680_v22 = vadd.f32 %v2679_v28, %v2616_v5  ;;  %v2743_v35 = vpop.f32.mrf.mxu3  ;;  %v2617_v47 = vpop.f32.mrf.mxu1  ;;  %v6425_v28 = vld [vmem:[#allocation36_spill] sm:$0xff] }
 0x2c9   : > { %v2618_v31 = vadd.f32 %v2617_v47, %v2553_v29  ;;  %v6428_v29 = vld [vmem:[#allocation39_spill] sm:$0xff] }
 0x2ca   : > { %v6030_v30 = vadd.f32 %v2743_v35, %v2680_v22  ;;  %v6426_v22 = vld [vmem:[#allocation37_spill] sm:$0xff]  ;;  %v6427_v35 = vld [vmem:[#allocation38_spill] sm:$0xff] }
 0x2cf   : > { %v2681_v25 = vpop.f32.mrf.mxu2  ;;  %v2556_v20 = vpop.f32.mrf.mxu0 }
 0x2d0   : > { %v2682_v23 = vadd.f32 %v2681_v25, %v2618_v31  ;;  %v2745_v15 = vpop.f32.mrf.mxu3  ;;  %v2620_v24 = vpop.f32.mrf.mxu1 }
 0x2d1   : > { %v2621_v11 = vadd.f32 %v2620_v24, %v2556_v20 }
 0x2d2   : > { %v6032_v19 = vadd.f32 %v2745_v15, %v2682_v23  ;;  %2796 = vmatmul.bf16.vlgmr.msrb.gmra.mxu0 %v6417_v61 }
 0x2d3   : > { %2860 = vmatmul.bf16.vlgmr.msrb.gmra.mxu1 %v6418_v34 }
 0x2d4   : > { %2924 = vmatmul.bf16.vlgmr.msrb.gmra.mxu2 %v6419_v9 }
 0x2d5   : > { %2988 = vmatmul.bf16.vlgmr.msrb.gmra.mxu3 %v6420_v45 }
 0x2d7   : > { %v2684_v52 = vpop.f32.mrf.mxu2  ;;  %v2558_v16 = vpop.f32.mrf.mxu0 }
 0x2d8   : > { %v2685_v48 = vadd.f32 %v2684_v52, %v2621_v11  ;;  %v2748_v0 = vpop.f32.mrf.mxu3  ;;  %v2622_v53 = vpop.f32.mrf.mxu1 }
 0x2d9   : > { %v2623_v60 = vadd.f32 %v2622_v53, %v2558_v16  ;;  %v6430_v16 = vld [vmem:[#allocation41_spill] sm:$0xff]  ;;  %v6431_v53 = vld [vmem:[#allocation42_spill] sm:$0xff] }
 0x2da   : > { %v6038_v1 = vadd.f32 %v2748_v0, %v2685_v48  ;;  %v6429_v0 = vld [vmem:[#allocation40_spill] sm:$0xff] }
 0x2df   : > { %v2686_v4 = vpop.f32.mrf.mxu2  ;;  %v2561_v3 = vpop.f32.mrf.mxu0 }
 0x2e0   : > { %v2687_v2 = vadd.f32 %v2686_v4, %v2623_v60  ;;  %v2750_v57 = vpop.f32.mrf.mxu3  ;;  %v2625_v44 = vpop.f32.mrf.mxu1  ;;  %v6432_v60 = vld [vmem:[#allocation43_spill] sm:$0xff] }
 0x2e1   : > { %v2626_v50 = vadd.f32 %v2625_v44, %v2561_v3 }
 0x2e2   : > { %v6040_v63 = vadd.f32 %v2750_v57, %v2687_v2  ;;  %2801 = vmatmul.bf16.gmra.mxu0 %v6421_v32 }
 0x2e3   : > { %2865 = vmatmul.bf16.gmra.mxu1 %v6422_v62 }
 0x2e4   : > { %2929 = vmatmul.bf16.gmra.mxu2 %v6423_v55 }
 0x2e5   : > { %2993 = vmatmul.bf16.gmra.mxu3 %v6424_v26 }
 0x2e7   : > { %v2689_v36 = vpop.f32.mrf.mxu2  ;;  %v2563_v38 = vpop.f32.mrf.mxu0 }
 0x2e8   : > { %v2690_v49 = vadd.f32 %v2689_v36, %v2626_v50  ;;  %v2753_v58 = vpop.f32.mrf.mxu3  ;;  %v2627_v39 = vpop.f32.mrf.mxu1 }
 0x2e9   : > { %v2628_v12 = vadd.f32 %v2627_v39, %v2563_v38  ;;  %v6433_v39 = vld [vmem:[#allocation44_spill] sm:$0xff] }
 0x2ea   : > { %v6046_v40 = vadd.f32 %v2753_v58, %v2690_v49 }
 0x2ef   : > { %v2691_v27 = vpop.f32.mrf.mxu2  ;;  %v2566_v13 = vpop.f32.mrf.mxu0 }
 0x2f0   : > { %v2692_v51 = vadd.f32 %v2691_v27, %v2628_v12  ;;  %v2755_v5 = vpop.f32.mrf.mxu3  ;;  %v2630_v17 = vpop.f32.mrf.mxu1  ;;  %v6434_v12 = vld [vmem:[#allocation45_spill] sm:$0xff]  ;;  %v6435_v27 = vld [vmem:[#allocation46_spill] sm:$0xff] }
 0x2f1   : > { %v2631_v10 = vadd.f32 %v2630_v17, %v2566_v13 }
 0x2f2   : > { %v6048_v21 = vadd.f32 %v2755_v5, %v2692_v51  ;;  %2806 = vmatmul.bf16.gmra.mxu0 %v6425_v28  ;;  %v6436_v51 = vld [vmem:[#allocation47_spill] sm:$0xff] }
 0x2f3   : > { %2870 = vmatmul.bf16.gmra.mxu1 %v6426_v22 }
 0x2f4   : > { %2934 = vmatmul.bf16.gmra.mxu2 %v6427_v35 }
 0x2f5   : > { %2998 = vmatmul.bf16.gmra.mxu3 %v6428_v29 }
 0x2f7   : > { %v2694_v47 = vpop.f32.mrf.mxu2  ;;  %v2568_v23 = vpop.f32.mrf.mxu0 }
 0x2f8   : > { %v2695_v31 = vadd.f32 %v2694_v47, %v2631_v10  ;;  %v2758_v25 = vpop.f32.mrf.mxu3  ;;  %v2632_v15 = vpop.f32.mrf.mxu1 }
 0x2f9   : > { %v2633_v24 = vadd.f32 %v2632_v15, %v2568_v23 }
 0x2fa   : > { %v6054_v20 = vadd.f32 %v2758_v25, %v2695_v31 }
 0x2ff   : > { %v2696_v11 = vpop.f32.mrf.mxu2  ;;  %v2571_v9 = vpop.f32.mrf.mxu0 }
 0x300   : > { %v2697_v61 = vadd.f32 %v2696_v11, %v2633_v24  ;;  %v2760_v34 = vpop.f32.mrf.mxu3  ;;  %v2635_v45 = vpop.f32.mrf.mxu1  ;;  %v6437_v11 = vld [vmem:[#allocation48_spill] sm:$0xff] }
 0x301   : > { %v2636_v48 = vadd.f32 %v2635_v45, %v2571_v9  ;;  %v6440_v9 = vld [vmem:[#allocation51_spill] sm:$0xff] }
 0x302   : > { %v6056_v52 = vadd.f32 %v2760_v34, %v2697_v61  ;;  %2811 = vmatmul.bf16.gmra.mxu0 %v6429_v0  ;;  %v6438_v61 = vld [vmem:[#allocation49_spill] sm:$0xff]  ;;  %v6439_v34 = vld [vmem:[#allocation50_spill] sm:$0xff] }
 0x303   : > { %2875 = vmatmul.bf16.gmra.mxu1 %v6430_v16 }
 0x304   : > { %2939 = vmatmul.bf16.gmra.mxu2 %v6431_v53 }
 0x305   : > { %3003 = vmatmul.bf16.gmra.mxu3 %v6432_v60 }
 0x307   : > { %v2699_v4 = vpop.f32.mrf.mxu2  ;;  %v2573_v3 = vpop.f32.mrf.mxu0 }
 0x308   : > { %v2700_v2 = vadd.f32 %v2699_v4, %v2636_v48  ;;  %v2763_v57 = vpop.f32.mrf.mxu3  ;;  %v2637_v44 = vpop.f32.mrf.mxu1 }
 0x309   : > { %v2638_v32 = vadd.f32 %v2637_v44, %v2573_v3 }
 0x30a   : > { %v6062_v50 = vadd.f32 %v2763_v57, %v2700_v2 }
 0x30f   : > { %v2701_v62 = vpop.f32.mrf.mxu2  ;;  %v2576_v36 = vpop.f32.mrf.mxu0 }
 0x310   : > { %v2702_v55 = vadd.f32 %v2701_v62, %v2638_v32  ;;  %v2765_v26 = vpop.f32.mrf.mxu3  ;;  %v2640_v49 = vpop.f32.mrf.mxu1 }
 0x311   : > { %v2641_v38 = vadd.f32 %v2640_v49, %v2576_v36  ;;  %v6442_v36 = vld [vmem:[#allocation55_spill] sm:$0xff]  ;;  %v6443_v49 = vld [vmem:[#allocation56_spill] sm:$0xff] }
 0x312   : > { %v6064_v58 = vadd.f32 %v2765_v26, %v2702_v55  ;;  %2816 = vmatmul.bf16.gmra.mxu0 %v6433_v39  ;;  %v6441_v26 = vld [vmem:[#allocation54_spill] sm:$0xff] }
 0x313   : > { %2880 = vmatmul.bf16.gmra.mxu1 %v6434_v12 }
 0x314   : > { %2944 = vmatmul.bf16.gmra.mxu2 %v6435_v27 }
 0x315   : > { %3008 = vmatmul.bf16.gmra.mxu3 %v6436_v51 }
 0x317   : > { %v2704_v5 = vpop.f32.mrf.mxu2  ;;  %v2578_v10 = vpop.f32.mrf.mxu0 }
 0x318   : > { %v2705_v13 = vadd.f32 %v2704_v5, %v2641_v38  ;;  %v2768_v17 = vpop.f32.mrf.mxu3  ;;  %v2642_v28 = vpop.f32.mrf.mxu1  ;;  %v6444_v38 = vld [vmem:[#allocation57_spill] sm:$0xff] }
 0x319   : > { %v2643_v35 = vadd.f32 %v2642_v28, %v2578_v10 }
 0x31a   : > { %v6070_v22 = vadd.f32 %v2768_v17, %v2705_v13 }
 0x31f   : > { %v2706_v29 = vpop.f32.mrf.mxu2  ;;  %v2581_v25 = vpop.f32.mrf.mxu0 }
 0x320   : > { %v2707_v47 = vadd.f32 %v2706_v29, %v2643_v35  ;;  %v2770_v31 = vpop.f32.mrf.mxu3  ;;  %v2645_v23 = vpop.f32.mrf.mxu1 }
 0x321   : > { %v2646_v24 = vadd.f32 %v2645_v23, %v2581_v25 }
 0x322   : > { %v6072_v15 = vadd.f32 %v2770_v31, %v2707_v47  ;;  %2821 = vmatmul.bf16.gmra.mxu0 %v6437_v11 }
 0x323   : > { %2885 = vmatmul.bf16.gmra.mxu1 %v6438_v61 }
 0x324   : > { %2949 = vmatmul.bf16.gmra.mxu2 %v6439_v34 }
 0x325   : > { %3013 = vmatmul.bf16.gmra.mxu3 %v6440_v9 }
 0x327   : > { %v2709_v45 = vpop.f32.mrf.mxu2  ;;  %v2583_v16 = vpop.f32.mrf.mxu0 }
 0x328   : > { %v2710_v48 = vadd.f32 %v2709_v45, %v2646_v24  ;;  %v2773_v0 = vpop.f32.mrf.mxu3  ;;  %v2647_v53 = vpop.f32.mrf.mxu1 }
 0x329   : > { %v2648_v4 = vadd.f32 %v2647_v53, %v2583_v16 }
 0x32a   : > { %v6078_v60 = vadd.f32 %v2773_v0, %v2710_v48 }
 0x32f   : > { %v2711_v2 = vpop.f32.mrf.mxu2  ;;  %v2586_v44 = vpop.f32.mrf.mxu0 }
 0x330   : > { %v2712_v57 = vadd.f32 %v2711_v2, %v2648_v4  ;;  %v2775_v3 = vpop.f32.mrf.mxu3  ;;  %v2650_v32 = vpop.f32.mrf.mxu1 }
 0x331   : > { %v2651_v55 = vadd.f32 %v2650_v32, %v2586_v44 }
 0x332   : > { %v6080_v62 = vadd.f32 %v2775_v3, %v2712_v57  ;;  %2826 = vmatmul.bf16.gmra.mxu0 %v6441_v26 }
 0x333   : > { %2890 = vmatmul.bf16.gmra.mxu1 %v6442_v36 }
 0x334   : > { %2954 = vmatmul.bf16.gmra.mxu2 %v6443_v49 }
 0x335   : > { %3018 = vmatmul.bf16.gmra.mxu3 %v6444_v38 }
 0x337   : > { %v2714_v39 = vpop.f32.mrf.mxu2  ;;  %v2588_v51 = vpop.f32.mrf.mxu0 }
 0x338   : > { %v2715_v12 = vadd.f32 %v2714_v39, %v2651_v55  ;;  %v2778_v27 = vpop.f32.mrf.mxu3  ;;  %v2652_v5 = vpop.f32.mrf.mxu1 }
 0x339   : > { %v2653_v17 = vadd.f32 %v2652_v5, %v2588_v51  ;;  %v6447_v5 = vld [vmem:[#allocation62_spill] sm:$0xff] }
 0x33a   : > { %v6086_v13 = vadd.f32 %v2778_v27, %v2715_v12 }
 0x33f   : > { %v2716_v10 = vpop.f32.mrf.mxu2  ;;  %v2591_v29 = vpop.f32.mrf.mxu0 }
 0x340   : > { %v2717_v28 = vadd.f32 %v2716_v10, %v2653_v17  ;;  %v2780_v35 = vpop.f32.mrf.mxu3  ;;  %v2655_v47 = vpop.f32.mrf.mxu1  ;;  %v6448_v10 = vld [vmem:[#allocation63_spill] sm:$0xff] }
 0x341   : > { %v2656_v25 = vadd.f32 %v2655_v47, %v2591_v29 }
 0x342   : > { %v6088_v31 = vadd.f32 %v2780_v35, %v2717_v28  ;;  %2831 = vmatmul.bf16.gmra.mxu0 %v5727_v56  ;;  %v6449_v28 = vld [vmem:[#allocation64_spill] sm:$0xff] }
 0x343   : > { %2895 = vmatmul.bf16.gmra.mxu1 %v5729_v43  ;;  %v6446_v43 = vld [vmem:[#allocation61_spill] sm:$0xff] }
 0x344   : > { %2959 = vmatmul.bf16.gmra.mxu2 %v5734_v46 }
 0x345   : > { %3023 = vmatmul.bf16.gmra.mxu3 %v5738_v59  ;;  %v6445_v59 = vld [vmem:[#allocation60_spill] sm:$0xff] }
 0x347   : > { %v2719_v23 = vpop.f32.mrf.mxu2  ;;  %v2593_v61 = vpop.f32.mrf.mxu0 }
 0x348   : > { %v2720_v24 = vadd.f32 %v2719_v23, %v2656_v25  ;;  %v2783_v11 = vpop.f32.mrf.mxu3  ;;  %v2657_v34 = vpop.f32.mrf.mxu1 }
 0x349   : > { %v2658_v45 = vadd.f32 %v2657_v34, %v2593_v61 }
 0x34a   : > { %v6094_v9 = vadd.f32 %v2783_v11, %v2720_v24 }
 0x34f   : > { %v2721_v48 = vpop.f32.mrf.mxu2  ;;  %v2797_v53 = vpop.f32.mrf.mxu0 }
 0x350   : > { %v2722_v0 = vadd.f32 %v2721_v48, %v2658_v45  ;;  %v2785_v16 = vpop.f32.mrf.mxu3  ;;  %v2861_v4 = vpop.f32.mrf.mxu1  ;;  %v2798_v46 = vadd.f32 %v2797_v53, %v6014_v54 }
 0x352   : > { %v6096_v56 = vadd.f32 %v2785_v16, %v2722_v0  ;;  %2836 = vmatmul.bf16.gmra.mxu0 %v5774_v6  ;;  %v2862_v2 = vadd.f32 %v2861_v4, %v2798_v46 }
 0x353   : > { %2900 = vmatmul.bf16.gmra.mxu1 %v5776_v33 }
 0x354   : > { %2964 = vmatmul.bf16.gmra.mxu2 %v6445_v59 }
 0x355   : > { %3028 = vmatmul.bf16.gmra.mxu3 %v6446_v43 }
 0x357   : > { %v2925_v57 = vpop.f32.mrf.mxu2  ;;  %v2799_v32 = vpop.f32.mrf.mxu0 }
 0x358   : > { %v2926_v3 = vadd.f32 %v2925_v57, %v2862_v2  ;;  %v2989_v44 = vpop.f32.mrf.mxu3  ;;  %v2863_v55 = vpop.f32.mrf.mxu1  ;;  %v2800_v36 = vadd.f32 %v2799_v32, %v6016_v7  ;;  %v6450_v7 = vld [vmem:[#allocation65_spill] sm:$0xff] }
 0x35a   : > { %v2990_v26 = vadd.f32 %v2989_v44, %v2926_v3  ;;  %v2864_v54 = vadd.f32 %v2863_v55, %v2800_v36 }
 0x35c   : > { %v3045_v49 = vmax.f32 %v2990_v26, 0.0 }
 0x35e   : > { %3089 = vst [vmem:[%s5816_s15 + $0x8] sm:$0xff] %v3045_v49 }
 0x35f   : > { %v2927_v6 = vpop.f32.mrf.mxu2  ;;  %v2802_v39 = vpop.f32.mrf.mxu0 }
 0x360   : > { %v2928_v38 = vadd.f32 %v2927_v6, %v2864_v54  ;;  %v2991_v33 = vpop.f32.mrf.mxu3  ;;  %v2866_v12 = vpop.f32.mrf.mxu1  ;;  %v2803_v51 = vadd.f32 %v2802_v39, %v6022_v37 }
 0x362   : > { %v2992_v27 = vadd.f32 %v2991_v33, %v2928_v38  ;;  %2841 = vmatmul.bf16.gmra.mxu0 %v6447_v5  ;;  %v2867_v35 = vadd.f32 %v2866_v12, %v2803_v51 }
 0x363   : > { %2905 = vmatmul.bf16.gmra.mxu1 %v6448_v10 }
 0x364   : > { %v3047_v17 = vmax.f32 %v2992_v27, 0.0  ;;  %2969 = vmatmul.bf16.gmra.mxu2 %v6449_v28 }
 0x365   : > { %3033 = vmatmul.bf16.gmra.mxu3 %v6450_v7 }
 0x366   : > { %3091 = vst [vmem:[%s5816_s15 + $0x18] sm:$0xff] %v3047_v17 }
 0x367   : > { %v2930_v29 = vpop.f32.mrf.mxu2  ;;  %v2804_v23 = vpop.f32.mrf.mxu0 }
 0x368   : > { %v2931_v47 = vadd.f32 %v2930_v29, %v2867_v35  ;;  %v2994_v25 = vpop.f32.mrf.mxu3  ;;  %v2868_v24 = vpop.f32.mrf.mxu1  ;;  %v2805_v37 = vadd.f32 %v2804_v23, %v6024_v41 }
 0x36a   : > { %v2995_v11 = vadd.f32 %v2994_v25, %v2931_v47  ;;  %v2869_v34 = vadd.f32 %v2868_v24, %v2805_v37 }
 0x36c   : > { %v3049_v61 = vmax.f32 %v2995_v11, 0.0 }
 0x36e   : > { %3093 = vst [vmem:[%s5816_s15 + $0x28] sm:$0xff] %v3049_v61 }
 0x36f   : > { %v2932_v45 = vpop.f32.mrf.mxu2  ;;  %v2807_v16 = vpop.f32.mrf.mxu0 }
 0x370   : > { %v2933_v48 = vadd.f32 %v2932_v45, %v2869_v34  ;;  %v2996_v0 = vpop.f32.mrf.mxu3  ;;  %v2871_v53 = vpop.f32.mrf.mxu1  ;;  %v2808_v46 = vadd.f32 %v2807_v16, %v6030_v30 }
 0x372   : > { %v2997_v4 = vadd.f32 %v2996_v0, %v2933_v48  ;;  %2846 = vmatmul.bf16.gmra.mxu0 %v5873_v8  ;;  %v2872_v41 = vadd.f32 %v2871_v53, %v2808_v46 }
 0x373   : > { %2910 = vmatmul.bf16.gmra.mxu1 %v5875_v18 }
 0x374   : > { %v3051_v59 = vmax.f32 %v2997_v4, 0.0  ;;  %2974 = vmatmul.bf16.gmra.mxu2 %v5877_v42 }
 0x375   : > { %3038 = vmatmul.bf16.gmra.mxu3 %v5879_v14 }
 0x376   : > { %3095 = vst [vmem:[%s5816_s15 + $0x38] sm:$0xff] %v3051_v59 }
 0x377   : > { %v2935_v43 = vpop.f32.mrf.mxu2  ;;  %v2809_v3 = vpop.f32.mrf.mxu0 }
 0x378   : > { %v2936_v2 = vadd.f32 %v2935_v43, %v2872_v41  ;;  %v2999_v57 = vpop.f32.mrf.mxu3  ;;  %v2873_v44 = vpop.f32.mrf.mxu1  ;;  %v2810_v30 = vadd.f32 %v2809_v3, %v6032_v19 }
 0x37a   : > { %v3000_v32 = vadd.f32 %v2999_v57, %v2936_v2  ;;  %v2874_v8 = vadd.f32 %v2873_v44, %v2810_v30 }
 0x37c   : > { %v3053_v55 = vmax.f32 %v3000_v32, 0.0 }
 0x37e   : > { %3097 = vst [vmem:[%s5816_s15 + $0x48] sm:$0xff] %v3053_v55 }
 0x37f   : > { %v2937_v26 = vpop.f32.mrf.mxu2  ;;  %v2812_v42 = vpop.f32.mrf.mxu0 }
 0x380   : > { %v2938_v18 = vadd.f32 %v2937_v26, %v2874_v8  ;;  %v3001_v36 = vpop.f32.mrf.mxu3  ;;  %v2876_v14 = vpop.f32.mrf.mxu1  ;;  %v2813_v54 = vadd.f32 %v2812_v42, %v6038_v1 }
 0x382   : > { %v3002_v49 = vadd.f32 %v3001_v36, %v2938_v18  ;;  %v2877_v38 = vadd.f32 %v2876_v14, %v2813_v54 }
 0x384   : > { %v3055_v6 = vmax.f32 %v3002_v49, 0.0 }
 0x386   : > { %3099 = vst [vmem:[%s5816_s15 + $0x58] sm:$0xff] %v3055_v6 }
 0x387   : > { %v2940_v33 = vpop.f32.mrf.mxu2  ;;  %v2814_v19 = vpop.f32.mrf.mxu0 }
 0x388   : > { %v2941_v39 = vadd.f32 %v2940_v33, %v2877_v38  ;;  %v3004_v12 = vpop.f32.mrf.mxu3  ;;  %v2878_v27 = vpop.f32.mrf.mxu1  ;;  %v2815_v5 = vadd.f32 %v2814_v19, %v6040_v63 }
 0x38a   : > { %v3005_v51 = vadd.f32 %v3004_v12, %v2941_v39  ;;  %v2879_v10 = vadd.f32 %v2878_v27, %v2815_v5 }
 0x38c   : > { %v3057_v17 = vmax.f32 %v3005_v51, 0.0 }
 0x38e   : > { %3101 = vst [vmem:[%s5816_s15 + $0x68] sm:$0xff] %v3057_v17 }
 0x38f   : > { %v2942_v28 = vpop.f32.mrf.mxu2  ;;  %v2817_v1 = vpop.f32.mrf.mxu0 }
 0x390   : > { %v2943_v7 = vadd.f32 %v2942_v28, %v2879_v10  ;;  %v3006_v35 = vpop.f32.mrf.mxu3  ;;  %v2881_v29 = vpop.f32.mrf.mxu1  ;;  %v2818_v25 = vadd.f32 %v2817_v1, %v6046_v40 }
 0x392   : > { %v3007_v47 = vadd.f32 %v3006_v35, %v2943_v7  ;;  %v2882_v24 = vadd.f32 %v2881_v29, %v2818_v25 }
 0x394   : > { %v3059_v23 = vmax.f32 %v3007_v47, 0.0 }
 0x396   : > { %3103 = vst [vmem:[%s5816_s15 + $0x78] sm:$0xff] %v3059_v23 }
 0x397   : > { %v2945_v11 = vpop.f32.mrf.mxu2  ;;  %v2819_v63 = vpop.f32.mrf.mxu0 }
 0x398   : > { %v2946_v37 = vadd.f32 %v2945_v11, %v2882_v24  ;;  %v3009_v61 = vpop.f32.mrf.mxu3  ;;  %v2883_v34 = vpop.f32.mrf.mxu1  ;;  %v2820_v48 = vadd.f32 %v2819_v63, %v6048_v21 }
 0x39a   : > { %v3010_v45 = vadd.f32 %v3009_v61, %v2946_v37  ;;  %v2884_v16 = vadd.f32 %v2883_v34, %v2820_v48 }
 0x39c   : > { %v3061_v0 = vmax.f32 %v3010_v45, 0.0 }
 0x39e   : > { %3105 = vst [vmem:[%s5816_s15 + $0x88] sm:$0xff] %v3061_v0 }
 0x39f   : > { %v2947_v53 = vpop.f32.mrf.mxu2  ;;  %v2822_v40 = vpop.f32.mrf.mxu0 }
 0x3a0   : > { %v2948_v4 = vadd.f32 %v2947_v53, %v2884_v16  ;;  %v3011_v46 = vpop.f32.mrf.mxu3  ;;  %v2886_v59 = vpop.f32.mrf.mxu1  ;;  %v2823_v43 = vadd.f32 %v2822_v40, %v6054_v20 }
 0x3a2   : > { %v3012_v41 = vadd.f32 %v3011_v46, %v2948_v4  ;;  %v2887_v57 = vadd.f32 %v2886_v59, %v2823_v43 }
 0x3a4   : > { %v3063_v2 = vmax.f32 %v3012_v41, 0.0 }
 0x3a6   : > { %3107 = vst [vmem:[%s5816_s15 + $0x98] sm:$0xff] %v3063_v2 }
 0x3a7   : > { %v2950_v3 = vpop.f32.mrf.mxu2  ;;  %v2824_v21 = vpop.f32.mrf.mxu0 }
 0x3a8   : > { %v2951_v44 = vadd.f32 %v2950_v3, %v2887_v57  ;;  %v3014_v32 = vpop.f32.mrf.mxu3  ;;  %v2888_v30 = vpop.f32.mrf.mxu1  ;;  %v2825_v8 = vadd.f32 %v2824_v21, %v6056_v52 }
 0x3aa   : > { %v3015_v55 = vadd.f32 %v3014_v32, %v2951_v44  ;;  %v2889_v18 = vadd.f32 %v2888_v30, %v2825_v8 }
 0x3ac   : > { %v3065_v26 = vmax.f32 %v3015_v55, 0.0 }
 0x3ae   : > { %3109 = vst [vmem:[%s5816_s15 + $0xa8] sm:$0xff] %v3065_v26 }
 0x3af   : > { %v2952_v36 = vpop.f32.mrf.mxu2  ;;  %v2827_v20 = vpop.f32.mrf.mxu0 }
 0x3b0   : > { %v2953_v42 = vadd.f32 %v2952_v36, %v2889_v18  ;;  %v3016_v14 = vpop.f32.mrf.mxu3  ;;  %v2891_v49 = vpop.f32.mrf.mxu1  ;;  %v2828_v6 = vadd.f32 %v2827_v20, %v6062_v50 }
 0x3b2   : > { %v3017_v54 = vadd.f32 %v3016_v14, %v2953_v42  ;;  %v2892_v33 = vadd.f32 %v2891_v49, %v2828_v6 }
 0x3b4   : > { %v3067_v38 = vmax.f32 %v3017_v54, 0.0 }
 0x3b6   : > { %3111 = vst [vmem:[%s5816_s15 + $0xb8] sm:$0xff] %v3067_v38 }
 0x3b7   : > { %v2955_v39 = vpop.f32.mrf.mxu2  ;;  %v2829_v52 = vpop.f32.mrf.mxu0 }
 0x3b8   : > { %v2956_v12 = vadd.f32 %v2955_v39, %v2892_v33  ;;  %v3019_v19 = vpop.f32.mrf.mxu3  ;;  %v2893_v27 = vpop.f32.mrf.mxu1  ;;  %v2830_v5 = vadd.f32 %v2829_v52, %v6064_v58 }
 0x3ba   : > { %v3020_v51 = vadd.f32 %v3019_v19, %v2956_v12  ;;  %v2894_v10 = vadd.f32 %v2893_v27, %v2830_v5 }
 0x3bc   : > { %v3069_v17 = vmax.f32 %v3020_v51, 0.0 }
 0x3be   : > { %3113 = vst [vmem:[%s5816_s15 + $0xc8] sm:$0xff] %v3069_v17 }
 0x3bf   : > { %v2957_v28 = vpop.f32.mrf.mxu2  ;;  %v2832_v50 = vpop.f32.mrf.mxu0 }
 0x3c0   : > { %v2958_v7 = vadd.f32 %v2957_v28, %v2894_v10  ;;  %v3021_v35 = vpop.f32.mrf.mxu3  ;;  %v2896_v1 = vpop.f32.mrf.mxu1  ;;  %v2833_v47 = vadd.f32 %v2832_v50, %v6070_v22 }
 0x3c2   : > { %v3022_v29 = vadd.f32 %v3021_v35, %v2958_v7  ;;  %v2897_v23 = vadd.f32 %v2896_v1, %v2833_v47 }
 0x3c4   : > { %v3071_v25 = vmax.f32 %v3022_v29, 0.0 }
 0x3c6   : > { %3115 = vst [vmem:[%s5816_s15 + $0xd8] sm:$0xff] %v3071_v25 }
 0x3c7   : > { %v2960_v24 = vpop.f32.mrf.mxu2  ;;  %v2834_v58 = vpop.f32.mrf.mxu0 }
 0x3c8   : > { %v2961_v11 = vadd.f32 %v2960_v24, %v2897_v23  ;;  %v3024_v37 = vpop.f32.mrf.mxu3  ;;  %v2898_v61 = vpop.f32.mrf.mxu1  ;;  %v2835_v34 = vadd.f32 %v2834_v58, %v6072_v15 }
 0x3ca   : > { %v3025_v63 = vadd.f32 %v3024_v37, %v2961_v11  ;;  %v2899_v48 = vadd.f32 %v2898_v61, %v2835_v34  ;;  %v3161_v34 = vld [vmem:[%s5816_s15 + $0x10] sm:$0xff] (%p4558_p6) }
 0x3cb   : > { %3162 = vst [vmem:[%s6162_s21 + $0x20] sm:$0xff] (%p4558_p6), %v3161_v34 }
 0x3cc   : > { %v3073_v45 = vmax.f32 %v3025_v63, 0.0  ;;  %v3159_v63 = vld [vmem:[%s5816_s15 + $0x8] sm:$0xff] (%p4558_p6) }
 0x3cd   : > { %3160 = vst [vmem:[%s6162_s21 + $0x8] sm:$0xff] (%p4558_p6), %v3159_v63 }
 0x3ce   : > { %3117 = vst [vmem:[%s5816_s15 + $0xe8] sm:$0xff] %v3073_v45  ;;  %v3163_v45 = vld [vmem:[%s5816_s15 + $0x18] sm:$0xff] (%p4558_p6) }
 0x3cf   : > { %v2962_v0 = vpop.f32.mrf.mxu2  ;;  %v2837_v22 = vpop.f32.mrf.mxu0  ;;  %3164 = vst [vmem:[%s6162_s21 + $0x28] sm:$0xff] (%p4558_p6), %v3163_v45 }
 0x3d0   : > { %v2963_v16 = vadd.f32 %v2962_v0, %v2899_v48  ;;  %v3026_v53 = vpop.f32.mrf.mxu3  ;;  %v2901_v4 = vpop.f32.mrf.mxu1  ;;  %v2838_v40 = vadd.f32 %v2837_v22, %v6078_v60  ;;  %v3165_v48 = vld [vmem:[%s5816_s15 + $0x20] sm:$0xff] (%p4558_p6)  ;;  %v3167_v0 = vld [vmem:[%s5816_s15 + $0x28] sm:$0xff] (%p4558_p6) }
 0x3d1   : > { %3166 = vst [vmem:[%s6162_s21 + $0x40] sm:$0xff] (%p4558_p6), %v3165_v48  ;;  %v3173_v22 = vld [vmem:[%s5816_s15 + $0x40] sm:$0xff] (%p4558_p6) }
 0x3d2   : > { %v3027_v46 = vadd.f32 %v3026_v53, %v2963_v16  ;;  %v2902_v41 = vadd.f32 %v2901_v4, %v2838_v40  ;;  %v3169_v16 = vld [vmem:[%s5816_s15 + $0x30] sm:$0xff] (%p4558_p6)  ;;  %v3171_v53 = vld [vmem:[%s5816_s15 + $0x38] sm:$0xff] (%p4558_p6)  ;;  %3168 = vst [vmem:[%s6162_s21 + $0x48] sm:$0xff] (%p4558_p6), %v3167_v0  ;;  %v3175_v4 = vld [vmem:[%s5816_s15 + $0x48] sm:$0xff] (%p4558_p6) }
 0x3d3   : > { %3170 = vst [vmem:[%s6162_s21 + $0x60] sm:$0xff] (%p4558_p6), %v3169_v16  ;;  %v3179_v40 = vld [vmem:[%s5816_s15 + $0x58] sm:$0xff] (%p4558_p6) }
 0x3d4   : > { %v3075_v59 = vmax.f32 %v3027_v46, 0.0  ;;  %3172 = vst [vmem:[%s6162_s21 + $0x68] sm:$0xff] (%p4558_p6), %v3171_v53  ;;  %v3177_v46 = vld [vmem:[%s5816_s15 + $0x50] sm:$0xff] (%p4558_p6) }
 0x3d5   : > { %3174 = vst [vmem:[%s6162_s21 + $0x80] sm:$0xff] (%p4558_p6), %v3173_v22 }
 0x3d6   : > { %3119 = vst [vmem:[%s5816_s15 + $0xf8] sm:$0xff] %v3075_v59  ;;  %v3181_v59 = vld [vmem:[%s5816_s15 + $0x60] sm:$0xff] (%p4558_p6) }
 0x3d7   : > { %v2965_v43 = vpop.f32.mrf.mxu2  ;;  %v2839_v15 = vpop.f32.mrf.mxu0  ;;  %3176 = vst [vmem:[%s6162_s21 + $0x88] sm:$0xff] (%p4558_p6), %v3175_v4 }
 0x3d8   : > { %v2966_v2 = vadd.f32 %v2965_v43, %v2902_v41  ;;  %v3029_v57 = vpop.f32.mrf.mxu3  ;;  %v2903_v3 = vpop.f32.mrf.mxu1  ;;  %v2840_v32 = vadd.f32 %v2839_v15, %v6080_v62  ;;  %3178 = vst [vmem:[%s6162_s21 + $0xa0] sm:$0xff] (%p4558_p6), %v3177_v46  ;;  %v3183_v41 = vld [vmem:[%s5816_s15 + $0x68] sm:$0xff] (%p4558_p6)  ;;  %v3185_v43 = vld [vmem:[%s5816_s15 + $0x70] sm:$0xff] (%p4558_p6) }
 0x3d9   : > { %3180 = vst [vmem:[%s6162_s21 + $0xa8] sm:$0xff] (%p4558_p6), %v3179_v40  ;;  %v3191_v15 = vld [vmem:[%s5816_s15 + $0x88] sm:$0xff] (%p4558_p6) }
 0x3da   : > { %v3030_v44 = vadd.f32 %v3029_v57, %v2966_v2  ;;  %v2904_v30 = vadd.f32 %v2903_v3, %v2840_v32  ;;  %3182 = vst [vmem:[%s6162_s21 + $0xc0] sm:$0xff] (%p4558_p6), %v3181_v59  ;;  %v3187_v2 = vld [vmem:[%s5816_s15 + $0x78] sm:$0xff] (%p4558_p6)  ;;  %v3189_v57 = vld [vmem:[%s5816_s15 + $0x80] sm:$0xff] (%p4558_p6)  ;;  %v3193_v3 = vld [vmem:[%s5816_s15 + $0x90] sm:$0xff] (%p4558_p6) }
 0x3db   : > { %3184 = vst [vmem:[%s6162_s21 + $0xc8] sm:$0xff] (%p4558_p6), %v3183_v41  ;;  %v3197_v32 = vld [vmem:[%s5816_s15 + $0xa0] sm:$0xff] (%p4558_p6) }
 0x3dc   : > { %v3077_v21 = vmax.f32 %v3030_v44, 0.0  ;;  %3186 = vst [vmem:[%s6162_s21 + $0xe0] sm:$0xff] (%p4558_p6), %v3185_v43  ;;  %v3195_v44 = vld [vmem:[%s5816_s15 + $0x98] sm:$0xff] (%p4558_p6) }
 0x3dd   : > { %3188 = vst [vmem:[%s6162_s21 + $0xe8] sm:$0xff] (%p4558_p6), %v3187_v2 }
 0x3de   : > { %3121 = vst [vmem:[%s5816_s15 + $0x108] sm:$0xff] %v3077_v21  ;;  %v3199_v21 = vld [vmem:[%s5816_s15 + $0xa8] sm:$0xff] (%p4558_p6) }
 0x3df   : > { %v2967_v55 = vpop.f32.mrf.mxu2  ;;  %v2842_v60 = vpop.f32.mrf.mxu0  ;;  %3190 = vst [vmem:[%s6162_s21 + $0x100] sm:$0xff] (%p4558_p6), %v3189_v57 }
 0x3e0   : > { %v2968_v8 = vadd.f32 %v2967_v55, %v2904_v30  ;;  %v3031_v26 = vpop.f32.mrf.mxu3  ;;  %v2906_v18 = vpop.f32.mrf.mxu1  ;;  %v2843_v42 = vadd.f32 %v2842_v60, %v6086_v13  ;;  %3192 = vst [vmem:[%s6162_s21 + $0x108] sm:$0xff] (%p4558_p6), %v3191_v15  ;;  %v3201_v30 = vld [vmem:[%s5816_s15 + $0xb0] sm:$0xff] (%p4558_p6)  ;;  %v3203_v55 = vld [vmem:[%s5816_s15 + $0xb8] sm:$0xff] (%p4558_p6) }
 0x3e1   : > { %3194 = vst [vmem:[%s6162_s21 + $0x120] sm:$0xff] (%p4558_p6), %v3193_v3  ;;  %v3209_v60 = vld [vmem:[%s5816_s15 + $0xd0] sm:$0xff] (%p4558_p6) }
 0x3e2   : > { %v3032_v36 = vadd.f32 %v3031_v26, %v2968_v8  ;;  %v2907_v20 = vadd.f32 %v2906_v18, %v2843_v42  ;;  %3196 = vst [vmem:[%s6162_s21 + $0x128] sm:$0xff] (%p4558_p6), %v3195_v44  ;;  %v3205_v8 = vld [vmem:[%s5816_s15 + $0xc0] sm:$0xff] (%p4558_p6)  ;;  %v3207_v26 = vld [vmem:[%s5816_s15 + $0xc8] sm:$0xff] (%p4558_p6)  ;;  %v3211_v18 = vld [vmem:[%s5816_s15 + $0xd8] sm:$0xff] (%p4558_p6) }
 0x3e3   : > { %3198 = vst [vmem:[%s6162_s21 + $0x140] sm:$0xff] (%p4558_p6), %v3197_v32  ;;  %v3215_v42 = vld [vmem:[%s5816_s15 + $0xe8] sm:$0xff] (%p4558_p6) }
 0x3e4   : > { %v3079_v14 = vmax.f32 %v3032_v36, 0.0  ;;  %3200 = vst [vmem:[%s6162_s21 + $0x148] sm:$0xff] (%p4558_p6), %v3199_v21  ;;  %v3213_v36 = vld [vmem:[%s5816_s15 + $0xe0] sm:$0xff] (%p4558_p6) }
 0x3e5   : > { %3202 = vst [vmem:[%s6162_s21 + $0x160] sm:$0xff] (%p4558_p6), %v3201_v30 }
 0x3e6   : > { %3123 = vst [vmem:[%s5816_s15 + $0x118] sm:$0xff] %v3079_v14  ;;  %v3217_v14 = vld [vmem:[%s5816_s15 + $0xf0] sm:$0xff] (%p4558_p6) }
 0x3e7   : > { %v2970_v49 = vpop.f32.mrf.mxu2  ;;  %v2844_v62 = vpop.f32.mrf.mxu0  ;;  %3204 = vst [vmem:[%s6162_s21 + $0x168] sm:$0xff] (%p4558_p6), %v3203_v55 }
 0x3e8   : > { %v2971_v54 = vadd.f32 %v2970_v49, %v2907_v20  ;;  %v3034_v6 = vpop.f32.mrf.mxu3  ;;  %v2908_v38 = vpop.f32.mrf.mxu1  ;;  %v2845_v39 = vadd.f32 %v2844_v62, %v6088_v31  ;;  %3206 = vst [vmem:[%s6162_s21 + $0x180] sm:$0xff] (%p4558_p6), %v3205_v8  ;;  %v3219_v20 = vld [vmem:[%s5816_s15 + $0xf8] sm:$0xff] (%p4558_p6)  ;;  %v3221_v49 = vld [vmem:[%s5816_s15 + $0x100] sm:$0xff] (%p4558_p6) }
 0x3e9   : > { %3208 = vst [vmem:[%s6162_s21 + $0x188] sm:$0xff] (%p4558_p6), %v3207_v26 }
 0x3ea   : > { %v3035_v33 = vadd.f32 %v3034_v6, %v2971_v54  ;;  %v2909_v19 = vadd.f32 %v2908_v38, %v2845_v39  ;;  %3210 = vst [vmem:[%s6162_s21 + $0x1a0] sm:$0xff] (%p4558_p6), %v3209_v60  ;;  %v3223_v54 = vld [vmem:[%s5816_s15 + $0x108] sm:$0xff] (%p4558_p6)  ;;  %v3225_v6 = vld [vmem:[%s5816_s15 + $0x110] sm:$0xff] (%p4558_p6)  ;;  %v3229_v38 = vld [vmem:[%s5816_s15 + $0x120] sm:$0xff] (%p4558_p6) }
 0x3eb   : > { %3212 = vst [vmem:[%s6162_s21 + $0x1a8] sm:$0xff] (%p4558_p6), %v3211_v18  ;;  %v3233_v39 = vld [vmem:[%s5816_s15 + $0x130] sm:$0xff] (%p4558_p6) }
 0x3ec   : > { %v3081_v12 = vmax.f32 %v3035_v33, 0.0  ;;  %3214 = vst [vmem:[%s6162_s21 + $0x1c0] sm:$0xff] (%p4558_p6), %v3213_v36 }
 0x3ed   : > { %3216 = vst [vmem:[%s6162_s21 + $0x1c8] sm:$0xff] (%p4558_p6), %v3215_v42  ;;  %v3227_v62 = vld [vmem:[%s5816_s15 + $0x118] sm:$0xff] (%p4558_p6) }
 0x3ee   : > { %3125 = vst [vmem:[%s5816_s15 + $0x128] sm:$0xff] %v3081_v12 }
 0x3ef   : > { %v2972_v52 = vpop.f32.mrf.mxu2  ;;  %v2847_v13 = vpop.f32.mrf.mxu0  ;;  %3218 = vst [vmem:[%s6162_s21 + $0x1e0] sm:$0xff] (%p4558_p6), %v3217_v14 }
 0x3f0   : > { %v2973_v27 = vadd.f32 %v2972_v52, %v2909_v19  ;;  %v3036_v51 = vpop.f32.mrf.mxu3  ;;  %v2848_v17 = vadd.f32 %v2847_v13, %v6094_v9  ;;  %v2911_v10 = vpop.f32.mrf.mxu1  ;;  %3220 = vst [vmem:[%s6162_s21 + $0x1e8] sm:$0xff] (%p4558_p6), %v3219_v20  ;;  %v3237_v19 = vld [vmem:[%s5816_s15 + $0x140] sm:$0xff] (%p4558_p6) }
 0x3f1   : > { %3222 = vst [vmem:[%s6162_s21 + $0x200] sm:$0xff] (%p4558_p6), %v3221_v49 }
 0x3f2   : > { %v3037_v5 = vadd.f32 %v3036_v51, %v2973_v27  ;;  %v2912_v7 = vadd.f32 %v2911_v10, %v2848_v17  ;;  %3224 = vst [vmem:[%s6162_s21 + $0x208] sm:$0xff] (%p4558_p6), %v3223_v54  ;;  %v3241_v27 = vld [vmem:[%s5816_s15 + $0x150] sm:$0xff] (%p4558_p6) }
 0x3f3   : > { %3226 = vst [vmem:[%s6162_s21 + $0x220] sm:$0xff] (%p4558_p6), %v3225_v6 }
 0x3f4   : > { %v3083_v28 = vmax.f32 %v3037_v5, 0.0  ;;  %3228 = vst [vmem:[%s6162_s21 + $0x228] sm:$0xff] (%p4558_p6), %v3227_v62 }
 0x3f5   : > { %v3231_v33 = vld [vmem:[%s5816_s15 + $0x128] sm:$0xff] (%p4558_p6)  ;;  %3230 = vst [vmem:[%s6162_s21 + $0x240] sm:$0xff] (%p4558_p6), %v3229_v38 }
 0x3f6   : > { %3127 = vst [vmem:[%s5816_s15 + $0x138] sm:$0xff] %v3083_v28 }
 0x3f7   : > { %v2975_v35 = vpop.f32.mrf.mxu2  ;;  %v2849_v31 = vpop.f32.mrf.mxu0  ;;  %3232 = vst [vmem:[%s6162_s21 + $0x248] sm:$0xff] (%p4558_p6), %v3231_v33 }
 0x3f8   : > { %v2976_v50 = vadd.f32 %v2975_v35, %v2912_v7  ;;  %v3039_v1 = vpop.f32.mrf.mxu3  ;;  %v2850_v47 = vadd.f32 %v2849_v31, %v6096_v56  ;;  %v2913_v23 = vpop.f32.mrf.mxu1  ;;  %v3157_v56 = vld [vmem:[%s5816_s15] sm:$0xff] (%p4558_p6)  ;;  %3234 = vst [vmem:[%s6162_s21 + $0x260] sm:$0xff] (%p4558_p6), %v3233_v39 }
 0x3f9   : > { %3158 = vst [vmem:[%s6162_s21] sm:$0xff] (%p4558_p6), %v3157_v56 }
 0x3fa   : > { %v3040_v29 = vadd.f32 %v3039_v1, %v2976_v50  ;;  %v2914_v24 = vadd.f32 %v2913_v23, %v2850_v47  ;;  %3238 = vst [vmem:[%s6162_s21 + $0x280] sm:$0xff] (%p4558_p6), %v3237_v19 }
 0x3fb   : > { %3242 = vst [vmem:[%s6162_s21 + $0x2a0] sm:$0xff] (%p4558_p6), %v3241_v27 }
 0x3fc   : > { %v3085_v25 = vmax.f32 %v3040_v29, 0.0 }
 0x3fd   : > { %v3235_v12 = vld [vmem:[%s5816_s15 + $0x138] sm:$0xff] (%p4558_p6) }
 0x3fe   : > { %3129 = vst [vmem:[%s5816_s15 + $0x148] sm:$0xff] %v3085_v25 }
 0x3ff   : > { %v2977_v11 = vpop.f32.mrf.mxu2  ;;  %3236 = vst [vmem:[%s6162_s21 + $0x268] sm:$0xff] (%p4558_p6), %v3235_v12 }
 0x400   : > { %v2978_v37 = vadd.f32 %v2977_v11, %v2914_v24  ;;  %v3041_v58 = vpop.f32.mrf.mxu3 }
 0x402   : > { %v3042_v9 = vadd.f32 %v3041_v58, %v2978_v37  ;;  %3138 = sbr.rel (!%p4558_p6) target bundleno = 1039 (0x40f), region = 70 }
 0x404   : > { %v3087_v61 = vmax.f32 %v3042_v9, 0.0 }
 0x405   : > { %v3239_v52 = vld [vmem:[%s5816_s15 + $0x148] sm:$0xff] (%p4558_p6) }
 0x406   : > { %3131 = vst [vmem:[%s5816_s15 + $0x158] sm:$0xff] %v3087_v61 }
 0x407   : > { %3240 = vst [vmem:[%s6162_s21 + $0x288] sm:$0xff] %v3239_v52 }
 0x40d   : > { %v3243_v51 = vld [vmem:[%s5816_s15 + $0x158] sm:$0xff] }
 0x40e   : > { %3244 = vst [vmem:[%s6162_s21 + $0x2a8] sm:$0xff] %v3243_v51 }
 0x40f PF: > { %s12_s13 = sadd.s32 1, %s4506_s13   ;;  %s6451_s9 = smov %s4494_s10 }
 0x410   : > { %p9_p11 = scmp.ge.s32.totalorder %s12_s13, 4   ;;  %s6452_s10 = smov %s4563_s19 }
 0x411   : > { %s6453_s11 = smov %s4502_s12  ;;  %s6454_s12 = smov %s6456_s14 }
 0x412   :  { %11 = sbr.rel (!%p9_p11) target bundleno = 3 (0x3), region = 127 }

// kernel: generator_forward.6
= control target key start
LH: loop header
LB: loop body
LE: loop exit
PB: predicated region body
PF: predicated region fallthrough
CT: control target
= control target key end

     0   :  { %s2623_s9 = smov 0   ;;  %s2625_s10 = smov 0   ;;  %s3502_s0 = inlined_call_operand.vmem [shape: bf16[768,512], index: 0, kind: input, shape index: {}]   ;;  %s3503_s1 = inlined_call_operand.vmem [shape: bf16[512,256], index: 1, kind: input, shape index: {}]   ;;  %s3504_s2 = inlined_call_operand.vmem [shape: f32[768,256], index: 2, kind: output, shape index: {}]  }
   0x1   :  { %s2627_s11 = smov 0  }
   0x2 LB: > { %s24_s12 = sadd.s32 1, %s2602_s10  ;;  %p1909_p0 = scmp.ge.s32.totalorder %s2606_s11, 1  ;;  %s2606_s11 = sphi %s2627_s11, %s12_s11   ;;  %s2602_s10 = sphi %s2625_s10, %s3560_s10   ;;  %s2598_s9 = sphi %s2623_s9, %s3559_s9  }
   0x3   : > { %p26_p1 = scmp.ge.s32.totalorder %s24_s12, 3  ;;  %p139_p2 = scmp.lt.s32.totalorder %s2606_s11, 4 }
   0x5   : > { %s3562_s12 = smov (%p26_p1, %s24_s12), 0  ;;  %p140_p3 = pnand %p1909_p0, %p139_p2 }
   0x7   : > { %143 = sbr.rel (%p140_p3) target bundleno = 691 (0x2b3), region = 28 }
   0xc   : > { %v2230_v0 = vld [vmem:[%s3503_s1 + $0x70] sm:$0xf]  ;;  %v2511_v1 = vld [vmem:[%s3503_s1 + $0x74] sm:$0xf0]  ;;  %v2222_v11 = vld [vmem:[%s3503_s1 + $0x60] sm:$0xf] }
   0xd   : > { %v2294_v2 = vld [vmem:[%s3503_s1 + $0xf0] sm:$0xf]  ;;  %v2231_v3 = vor.u32 %v2511_v1, %v2230_v0  ;;  %v2527_v4 = vld [vmem:[%s3503_s1 + $0xf4] sm:$0xf0]  ;;  %v2509_v13 = vld [vmem:[%s3503_s1 + $0x64] sm:$0xf0] }
   0xe   : > { %v2358_v5 = vld [vmem:[%s3503_s1 + $0x170] sm:$0xf]  ;;  %v2543_v6 = vld [vmem:[%s3503_s1 + $0x174] sm:$0xf0]  ;;  %v2295_v7 = vor.u32 %v2527_v4, %v2294_v2  ;;  %v2286_v14 = vld [vmem:[%s3503_s1 + $0xe0] sm:$0xf]  ;;  %v2223_v16 = vor.u32 %v2509_v13, %v2222_v11 }
   0xf   : > { %v2359_v8 = vor.u32 %v2543_v6, %v2358_v5  ;;  %v2422_v9 = vld [vmem:[%s3503_s1 + $0x1f0] sm:$0xf]  ;;  %v2559_v10 = vld [vmem:[%s3503_s1 + $0x1f4] sm:$0xf0]  ;;  %965 = vmatpush.bf16.msra.mxu0 %v2231_v3  ;;  %v2525_v15 = vld [vmem:[%s3503_s1 + $0xe4] sm:$0xf0] }
  0x10   : > { %v2423_v12 = vor.u32 %v2559_v10, %v2422_v9  ;;  %1054 = vmatpush.bf16.msra.mxu1 %v2295_v7  ;;  %v2287_v17 = vor.u32 %v2525_v15, %v2286_v14  ;;  %v2350_v18 = vld [vmem:[%s3503_s1 + $0x160] sm:$0xf]  ;;  %v2541_v19 = vld [vmem:[%s3503_s1 + $0x164] sm:$0xf0]  ;;  %v2214_v23 = vld [vmem:[%s3503_s1 + $0x50] sm:$0xf] }
  0x11   : > { %1143 = vmatpush.bf16.msra.mxu2 %v2359_v8  ;;  %v2414_v20 = vld [vmem:[%s3503_s1 + $0x1e0] sm:$0xf]  ;;  %v2351_v21 = vor.u32 %v2541_v19, %v2350_v18  ;;  %v2557_v22 = vld [vmem:[%s3503_s1 + $0x1e4] sm:$0xf0]  ;;  %v2507_v24 = vld [vmem:[%s3503_s1 + $0x54] sm:$0xf0] }
  0x12   : > { %1232 = vmatpush.bf16.msra.mxu3 %v2423_v12  ;;  %v2415_v25 = vor.u32 %v2557_v22, %v2414_v20  ;;  %v2278_v26 = vld [vmem:[%s3503_s1 + $0xd0] sm:$0xf]  ;;  %v2523_v27 = vld [vmem:[%s3503_s1 + $0xd4] sm:$0xf0]  ;;  %v2215_v29 = vor.u32 %v2507_v24, %v2214_v23  ;;  %v2206_v35 = vld [vmem:[%s3503_s1 + $0x40] sm:$0xf] }
  0x13   : > { %v2342_v28 = vld [vmem:[%s3503_s1 + $0x150] sm:$0xf]  ;;  %966 = vmatpush.bf16.msra.mxu0 %v2223_v16  ;;  %v2539_v30 = vld [vmem:[%s3503_s1 + $0x154] sm:$0xf0]  ;;  %v2279_v33 = vor.u32 %v2523_v27, %v2278_v26  ;;  %v2505_v36 = vld [vmem:[%s3503_s1 + $0x44] sm:$0xf0] }
  0x14   : > { %v2406_v31 = vld [vmem:[%s3503_s1 + $0x1d0] sm:$0xf]  ;;  %v2555_v32 = vld [vmem:[%s3503_s1 + $0x1d4] sm:$0xf0]  ;;  %1055 = vmatpush.bf16.msra.mxu1 %v2287_v17  ;;  %v2343_v34 = vor.u32 %v2539_v30, %v2342_v28  ;;  %v2270_v37 = vld [vmem:[%s3503_s1 + $0xc0] sm:$0xf]  ;;  %v2207_v44 = vor.u32 %v2505_v36, %v2206_v35 }
  0x15   : > { %1144 = vmatpush.bf16.msra.mxu2 %v2351_v21  ;;  %v2407_v38 = vor.u32 %v2555_v32, %v2406_v31  ;;  %v2521_v39 = vld [vmem:[%s3503_s1 + $0xc4] sm:$0xf0]  ;;  %v2334_v40 = vld [vmem:[%s3503_s1 + $0x140] sm:$0xf]  ;;  %v2198_v47 = vld [vmem:[%s3503_s1 + $0x30] sm:$0xf] }
  0x16   : > { %1233 = vmatpush.bf16.msra.mxu3 %v2415_v25  ;;  %v2537_v41 = vld [vmem:[%s3503_s1 + $0x144] sm:$0xf0]  ;;  %v2398_v42 = vld [vmem:[%s3503_s1 + $0x1c0] sm:$0xf]  ;;  %v2271_v45 = vor.u32 %v2521_v39, %v2270_v37  ;;  %v2503_v48 = vld [vmem:[%s3503_s1 + $0x34] sm:$0xf0] }
  0x17   : > { %v2553_v43 = vld [vmem:[%s3503_s1 + $0x1c4] sm:$0xf0]  ;;  %967 = vmatpush.bf16.msra.mxu0 %v2215_v29  ;;  %v2335_v46 = vor.u32 %v2537_v41, %v2334_v40  ;;  %v2262_v49 = vld [vmem:[%s3503_s1 + $0xb0] sm:$0xf]  ;;  %v2519_v51 = vld [vmem:[%s3503_s1 + $0xb4] sm:$0xf0]  ;;  %v2199_v56 = vor.u32 %v2503_v48, %v2198_v47 }
  0x18   : > { %1056 = vmatpush.bf16.msra.mxu1 %v2279_v33  ;;  %v2399_v50 = vor.u32 %v2553_v43, %v2398_v42  ;;  %v2326_v52 = vld [vmem:[%s3503_s1 + $0x130] sm:$0xf]  ;;  %v2535_v53 = vld [vmem:[%s3503_s1 + $0x134] sm:$0xf0]  ;;  %v2263_v57 = vor.u32 %v2519_v51, %v2262_v49  ;;  %v2190_v59 = vld [vmem:[%s3503_s1 + $0x20] sm:$0xf] }
  0x19   : > { %1145 = vmatpush.bf16.msra.mxu2 %v2343_v34  ;;  %v2390_v54 = vld [vmem:[%s3503_s1 + $0x1b0] sm:$0xf]  ;;  %v2551_v55 = vld [vmem:[%s3503_s1 + $0x1b4] sm:$0xf0]  ;;  %v2327_v58 = vor.u32 %v2535_v53, %v2326_v52  ;;  %v2501_v60 = vld [vmem:[%s3503_s1 + $0x24] sm:$0xf0] }
  0x1a   : > { %1234 = vmatpush.bf16.msra.mxu3 %v2407_v38  ;;  %v2254_v61 = vld [vmem:[%s3503_s1 + $0xa0] sm:$0xf]  ;;  %v2391_v62 = vor.u32 %v2551_v55, %v2390_v54  ;;  %v2517_v63 = vld [vmem:[%s3503_s1 + $0xa4] sm:$0xf0]  ;;  %v2191_v4 = vor.u32 %v2501_v60, %v2190_v59  ;;  %v2182_v5 = vld [vmem:[%s3503_s1 + $0x10] sm:$0xf] }
  0x1b   : > { %968 = vmatpush.bf16.msra.mxu0 %v2207_v44  ;;  %v2318_v0 = vld [vmem:[%s3503_s1 + $0x120] sm:$0xf]  ;;  %v2533_v1 = vld [vmem:[%s3503_s1 + $0x124] sm:$0xf0]  ;;  %v2499_v6 = vld [vmem:[%s3503_s1 + $0x14] sm:$0xf0]  ;;  %v2255_v7 = vor.u32 %v2517_v63, %v2254_v61 }
  0x1c   : > { %1057 = vmatpush.bf16.msra.mxu1 %v2271_v45  ;;  %v2382_v2 = vld [vmem:[%s3503_s1 + $0x1a0] sm:$0xf]  ;;  %v2549_v3 = vld [vmem:[%s3503_s1 + $0x1a4] sm:$0xf0]  ;;  %v2319_v8 = vor.u32 %v2533_v1, %v2318_v0  ;;  %v2246_v9 = vld [vmem:[%s3503_s1 + $0x90] sm:$0xf]  ;;  %v2183_v17 = vor.u32 %v2499_v6, %v2182_v5 }
  0x1d   : > { %1146 = vmatpush.bf16.msra.mxu2 %v2335_v46  ;;  %v2515_v10 = vld [vmem:[%s3503_s1 + $0x94] sm:$0xf0]  ;;  %v2310_v11 = vld [vmem:[%s3503_s1 + $0x110] sm:$0xf]  ;;  %v2383_v12 = vor.u32 %v2549_v3, %v2382_v2  ;;  %s1910_s27 = sshll.u32 %s2598_s9, 5 }
  0x1e   : > { %1235 = vmatpush.bf16.msra.mxu3 %v2399_v50  ;;  %v2531_v13 = vld [vmem:[%s3503_s1 + $0x114] sm:$0xf0]  ;;  %v2374_v14 = vld [vmem:[%s3503_s1 + $0x190] sm:$0xf]  ;;  %v2174_v16 = vld [vmem:[%s3503_s1] sm:$0xf]  ;;  %v2247_v21 = vor.u32 %v2515_v10, %v2246_v9 }
  0x1f   : > { %969 = vmatpush.bf16.msra.mxu0 %v2199_v56  ;;  %v2547_v15 = vld [vmem:[%s3503_s1 + $0x194] sm:$0xf0]  ;;  %p173_p4 = scmp.lt.s32.totalorder %s1910_s27, 95  ;;  %v2497_v18 = vld [vmem:[%s3503_s1 + $0x4] sm:$0xf0]  ;;  %v2311_v22 = vor.u32 %v2531_v13, %v2310_v11 }
  0x20   : > { %1058 = vmatpush.bf16.msra.mxu1 %v2263_v57  ;;  %v2238_v19 = vld [vmem:[%s3503_s1 + $0x80] sm:$0xf]  ;;  %v2513_v20 = vld [vmem:[%s3503_s1 + $0x84] sm:$0xf0]  ;;  %v2375_v25 = vor.u32 %v2547_v15, %v2374_v14  ;;  %v2542_v28 = vld [vmem:[%s3503_s1 + $0x174] sm:$0xf]  ;;  %v2175_v31 = vor.u32 %v2497_v18, %v2174_v16 }
  0x21   : > { %1147 = vmatpush.bf16.msra.mxu2 %v2327_v58  ;;  %v2302_v23 = vld [vmem:[%s3503_s1 + $0x100] sm:$0xf]  ;;  %v2529_v24 = vld [vmem:[%s3503_s1 + $0x104] sm:$0xf0]  ;;  %s3564_s27 = smov (!%p173_p4, %s1910_s27), 95  ;;  %v2239_v35 = vor.u32 %v2513_v20, %v2238_v19 }
  0x22   : > { %1236 = vmatpush.bf16.msra.mxu3 %v2391_v62  ;;  %v2366_v26 = vld [vmem:[%s3503_s1 + $0x180] sm:$0xf]  ;;  %v2545_v27 = vld [vmem:[%s3503_s1 + $0x184] sm:$0xf0]  ;;  %s2430_s23 = sshll.u32 %s3564_s27, 4  ;;  %v2303_v36 = vor.u32 %v2529_v24, %v2302_v23 }
  0x23   : > { %970 = vmatpush.bf16.msra.mxu0 %v2191_v4  ;;  %v2360_v29 = vld [vmem:[%s3503_s1 + $0x178] sm:$0xf0]  ;;  %v2558_v30 = vld [vmem:[%s3503_s1 + $0x1f4] sm:$0xf]  ;;  %s2853_s3 = scalar_lea.vmem %s3502_s0, %s2430_s23  ;;  %v2367_v41 = vor.u32 %v2545_v27, %v2366_v26  ;;  %v2540_v56 = vld [vmem:[%s3503_s1 + $0x164] sm:$0xf]  ;;  %s3163_s26 = scalar_lea.vmem %s3504_s2, %s2430_s23 }
  0x24   : > { %1059 = vmatpush.bf16.msra.mxu1 %v2255_v7  ;;  %v2424_v32 = vld [vmem:[%s3503_s1 + $0x1f8] sm:$0xf0]  ;;  %v2510_v33 = vld [vmem:[%s3503_s1 + $0x74] sm:$0xf]  ;;  %v1918_v37 = vld [vmem:[%s2853_s3] sm:$0xf]  ;;  %v2363_v45 = vor.u32 %v2542_v28, %v2360_v29 }
  0x25   : > { %1148 = vmatpush.bf16.msra.mxu2 %v2319_v8  ;;  %v2232_v34 = vld [vmem:[%s3503_s1 + $0x78] sm:$0xf0]  ;;  %v2434_v38 = vld [vmem:[%s2853_s3 + $0xc] sm:$0xf0]  ;;  %v2432_v39 = vld [vmem:[%s2853_s3 + $0x4] sm:$0xf]  ;;  %v2427_v49 = vor.u32 %v2558_v30, %v2424_v32 }
  0x26   : > { %1237 = vmatpush.bf16.msra.mxu3 %v2383_v12  ;;  %v2526_v40 = vld [vmem:[%s3503_s1 + $0xf4] sm:$0xf]  ;;  %v1926_v43 = vld [vmem:[%s2853_s3 + $0x8] sm:$0xf]  ;;  %v2435_v44 = vld [vmem:[%s2853_s3 + $0x14] sm:$0xf0]  ;;  %v2873_v46 = vor.u32 %v2434_v38, %v1918_v37  ;;  %v2235_v54 = vor.u32 %v2510_v33, %v2232_v34 }
  0x27   : > { %971 = vmatpush.bf16.msra.mxu0 %v2183_v17  ;;  %v1920_v42 = vld [vmem:[%s2853_s3 + $0x10] sm:$0xf0]  ;;  %v2433_v47 = vld [vmem:[%s2853_s3 + $0xc] sm:$0xf]  ;;  %v1928_v48 = vld [vmem:[%s2853_s3 + $0x18] sm:$0xf0]  ;;  %v2882_v52 = vor.u32 %v2435_v44, %v1926_v43 }
  0x28   : > { %1060 = vmatpush.bf16.msra.mxu1 %v2247_v21  ;;  %v2296_v50 = vld [vmem:[%s3503_s1 + $0xf8] sm:$0xf0]  ;;  %v2880_v51 = vor.u32 %v2432_v39, %v1920_v42  ;;  %v2884_v53 = vor.u32 %v2433_v47, %v1928_v48  ;;  %v2352_v57 = vld [vmem:[%s3503_s1 + $0x168] sm:$0xf0]  ;;  %v2556_v58 = vld [vmem:[%s3503_s1 + $0x1e4] sm:$0xf] }
  0x29   : > { %1149 = vmatpush.bf16.msra.mxu2 %v2311_v22  ;;  %v2299_v55 = vor.u32 %v2526_v40, %v2296_v50  ;;  %v2355_v59 = vor.u32 %v2540_v56, %v2352_v57  ;;  %v2416_v60 = vld [vmem:[%s3503_s1 + $0x1e8] sm:$0xf0]  ;;  %v2508_v61 = vld [vmem:[%s3503_s1 + $0x64] sm:$0xf]  ;;  %v1934_v4 = vld [vmem:[%s2853_s3 + $0x20] sm:$0xf] }
  0x2a   : > { %1238 = vmatpush.bf16.msra.mxu3 %v2375_v25  ;;  %v2224_v62 = vld [vmem:[%s3503_s1 + $0x68] sm:$0xf0]  ;;  %v2419_v63 = vor.u32 %v2556_v58, %v2416_v60  ;;  %v2524_v1 = vld [vmem:[%s3503_s1 + $0xe4] sm:$0xf]  ;;  %v2438_v5 = vld [vmem:[%s2853_s3 + $0x2c] sm:$0xf0] }
  0x2b   : > { %972 = vmatpush.bf16.msra.mxu0 %v2175_v31  ;;  %v2227_v0 = vor.u32 %v2508_v61, %v2224_v62  ;;  %v2288_v2 = vld [vmem:[%s3503_s1 + $0xe8] sm:$0xf0]  ;;  %v2436_v6 = vld [vmem:[%s2853_s3 + $0x24] sm:$0xf]  ;;  %v1936_v7 = vld [vmem:[%s2853_s3 + $0x30] sm:$0xf0]  ;;  %v2922_v12 = vor.u32 %v2438_v5, %v1934_v4 }
  0x2c   : > { %1061 = vmatpush.bf16.msra.mxu1 %v2239_v35  ;;  %v2291_v3 = vor.u32 %v2524_v1, %v2288_v2  ;;  %v1942_v8 = vld [vmem:[%s2853_s3 + $0x28] sm:$0xf]  ;;  %v2439_v9 = vld [vmem:[%s2853_s3 + $0x34] sm:$0xf0]  ;;  %v2437_v10 = vld [vmem:[%s2853_s3 + $0x2c] sm:$0xf]  ;;  %v2924_v13 = vor.u32 %v2436_v6, %v1936_v7 }
  0x2d   : > { %1150 = vmatpush.bf16.msra.mxu2 %v2303_v36  ;;  %v1944_v11 = vld [vmem:[%s2853_s3 + $0x38] sm:$0xf0]  ;;  %v2926_v14 = vor.u32 %v2439_v9, %v1942_v8  ;;  %v1950_v16 = vld [vmem:[%s2853_s3 + $0x40] sm:$0xf]  ;;  %v2442_v17 = vld [vmem:[%s2853_s3 + $0x4c] sm:$0xf0] }
  0x2e   : > { %1239 = vmatpush.bf16.msra.mxu3 %v2367_v41  ;;  %973 = vmatmul.bf16.vlgmr.msra.gmra.mxu0 %v2873_v46  ;;  %v2928_v15 = vor.u32 %v2437_v10, %v1944_v11  ;;  %v2440_v18 = vld [vmem:[%s2853_s3 + $0x44] sm:$0xf]  ;;  %v1952_v19 = vld [vmem:[%s2853_s3 + $0x50] sm:$0xf0]  ;;  %v1958_v20 = vld [vmem:[%s2853_s3 + $0x48] sm:$0xf]  ;;  %v2942_v24 = vor.u32 %v2442_v17, %v1950_v16 }
  0x2f   : > { %1062 = vmatmul.bf16.vlgmr.msra.gmra.mxu1 %v2880_v51  ;;  %1321 = vmatpush.bf16.msrb.mxu0 %v2235_v54  ;;  %v2443_v21 = vld [vmem:[%s2853_s3 + $0x54] sm:$0xf0]  ;;  %v2441_v22 = vld [vmem:[%s2853_s3 + $0x4c] sm:$0xf]  ;;  %v1960_v23 = vld [vmem:[%s2853_s3 + $0x58] sm:$0xf0]  ;;  %v2944_v25 = vor.u32 %v2440_v18, %v1952_v19 }
  0x30   : > { %1151 = vmatmul.bf16.vlgmr.msra.gmra.mxu2 %v2882_v52  ;;  %1410 = vmatpush.bf16.msrb.mxu1 %v2299_v55  ;;  %v2946_v26 = vor.u32 %v2443_v21, %v1958_v20  ;;  %v2948_v27 = vor.u32 %v2441_v22, %v1960_v23  ;;  %v2538_v28 = vld [vmem:[%s3503_s1 + $0x154] sm:$0xf]  ;;  %v2344_v29 = vld [vmem:[%s3503_s1 + $0x158] sm:$0xf0]  ;;  %v1966_v40 = vld [vmem:[%s2853_s3 + $0x60] sm:$0xf] }
  0x31   : > { %1499 = vmatpush.bf16.msrb.mxu2 %v2363_v45  ;;  %1240 = vmatmul.bf16.vlgmr.msra.gmra.mxu3 %v2884_v53  ;;  %v2554_v30 = vld [vmem:[%s3503_s1 + $0x1d4] sm:$0xf]  ;;  %v2347_v31 = vor.u32 %v2538_v28, %v2344_v29  ;;  %v2408_v32 = vld [vmem:[%s3503_s1 + $0x1d8] sm:$0xf0]  ;;  %v2446_v41 = vld [vmem:[%s2853_s3 + $0x6c] sm:$0xf0] }
  0x32   : > { %1588 = vmatpush.bf16.msrb.mxu3 %v2427_v49  ;;  %v2506_v33 = vld [vmem:[%s3503_s1 + $0x54] sm:$0xf]  ;;  %v2216_v34 = vld [vmem:[%s3503_s1 + $0x58] sm:$0xf0]  ;;  %v2411_v35 = vor.u32 %v2554_v30, %v2408_v32  ;;  %v2444_v42 = vld [vmem:[%s2853_s3 + $0x64] sm:$0xf]  ;;  %v2986_v49 = vor.u32 %v2446_v41, %v1966_v40 }
  0x33   : > { %1322 = vmatpush.bf16.msrb.mxu0 %v2227_v0  ;;  %v2219_v36 = vor.u32 %v2506_v33, %v2216_v34  ;;  %v2522_v37 = vld [vmem:[%s3503_s1 + $0xd4] sm:$0xf]  ;;  %v2280_v38 = vld [vmem:[%s3503_s1 + $0xd8] sm:$0xf0]  ;;  %v1974_v44 = vld [vmem:[%s2853_s3 + $0x68] sm:$0xf] }
  0x34   : > { %1411 = vmatpush.bf16.msrb.mxu1 %v2291_v3  ;;  %v2283_v39 = vor.u32 %v2522_v37, %v2280_v38  ;;  %v1968_v43 = vld [vmem:[%s2853_s3 + $0x70] sm:$0xf0]  ;;  %v2447_v45 = vld [vmem:[%s2853_s3 + $0x74] sm:$0xf0]  ;;  %v2445_v47 = vld [vmem:[%s2853_s3 + $0x6c] sm:$0xf] }
  0x35   : > { %1500 = vmatpush.bf16.msrb.mxu2 %v2355_v59  ;;  %v1976_v48 = vld [vmem:[%s2853_s3 + $0x78] sm:$0xf0]  ;;  %v2988_v50 = vor.u32 %v2444_v42, %v1968_v43  ;;  %v2990_v54 = vor.u32 %v2447_v45, %v1974_v44  ;;  %v1982_v56 = vld [vmem:[%s2853_s3 + $0x80] sm:$0xf]  ;;  %v2450_v57 = vld [vmem:[%s2853_s3 + $0x8c] sm:$0xf0] }
  0x36   : > { %1589 = vmatpush.bf16.msrb.mxu3 %v2419_v63  ;;  %v2992_v55 = vor.u32 %v2445_v47, %v1976_v48  ;;  %v2448_v58 = vld [vmem:[%s2853_s3 + $0x84] sm:$0xf]  ;;  %v1984_v59 = vld [vmem:[%s2853_s3 + $0x90] sm:$0xf0]  ;;  %v1990_v60 = vld [vmem:[%s2853_s3 + $0x88] sm:$0xf]  ;;  %v3006_v0 = vor.u32 %v2450_v57, %v1982_v56 }
  0x37   : > { %1323 = vmatpush.bf16.msrb.mxu0 %v2219_v36  ;;  %v2451_v61 = vld [vmem:[%s2853_s3 + $0x94] sm:$0xf0]  ;;  %v2449_v62 = vld [vmem:[%s2853_s3 + $0x8c] sm:$0xf]  ;;  %v1992_v63 = vld [vmem:[%s2853_s3 + $0x98] sm:$0xf0]  ;;  %v3008_v1 = vor.u32 %v2448_v58, %v1984_v59 }
  0x38   : > { %1412 = vmatpush.bf16.msrb.mxu1 %v2283_v39  ;;  %v3010_v2 = vor.u32 %v2451_v61, %v1990_v60  ;;  %v3012_v3 = vor.u32 %v2449_v62, %v1992_v63  ;;  %v2536_v4 = vld [vmem:[%s3503_s1 + $0x144] sm:$0xf]  ;;  %v2336_v5 = vld [vmem:[%s3503_s1 + $0x148] sm:$0xf0]  ;;  %v1998_v20 = vld [vmem:[%s2853_s3 + $0xa0] sm:$0xf] }
  0x39   : > { %1501 = vmatpush.bf16.msrb.mxu2 %v2347_v31  ;;  %v2552_v6 = vld [vmem:[%s3503_s1 + $0x1c4] sm:$0xf]  ;;  %v2339_v7 = vor.u32 %v2536_v4, %v2336_v5  ;;  %v2400_v8 = vld [vmem:[%s3503_s1 + $0x1c8] sm:$0xf0]  ;;  %v2454_v21 = vld [vmem:[%s2853_s3 + $0xac] sm:$0xf0] }
  0x3a   : > { %1590 = vmatpush.bf16.msrb.mxu3 %v2411_v35  ;;  %v2504_v9 = vld [vmem:[%s3503_s1 + $0x44] sm:$0xf]  ;;  %v2208_v10 = vld [vmem:[%s3503_s1 + $0x48] sm:$0xf0]  ;;  %v2403_v11 = vor.u32 %v2552_v6, %v2400_v8  ;;  %v2000_v23 = vld [vmem:[%s2853_s3 + $0xb0] sm:$0xf0]  ;;  %v3050_v32 = vor.u32 %v2454_v21, %v1998_v20 }
  0x3b   : > { %v2211_v16 = vor.u32 %v2504_v9, %v2208_v10  ;;  %v2520_v17 = vld [vmem:[%s3503_s1 + $0xc4] sm:$0xf]  ;;  %v2272_v18 = vld [vmem:[%s3503_s1 + $0xc8] sm:$0xf0]  ;;  %v2006_v28 = vld [vmem:[%s2853_s3 + $0xa8] sm:$0xf] }
  0x3c   : > { %v2275_v19 = vor.u32 %v2520_v17, %v2272_v18  ;;  %v2452_v22 = vld [vmem:[%s2853_s3 + $0xa4] sm:$0xf]  ;;  %v2455_v29 = vld [vmem:[%s2853_s3 + $0xb4] sm:$0xf0]  ;;  %v2453_v30 = vld [vmem:[%s2853_s3 + $0xac] sm:$0xf] }
  0x3d   : > { %1502 = vmatpush.bf16.msrb.mxu2 %v2339_v7  ;;  %1324 = vmatpush.bf16.msrb.mxu0 %v2211_v16  ;;  %v2008_v31 = vld [vmem:[%s2853_s3 + $0xb8] sm:$0xf0]  ;;  %v3052_v33 = vor.u32 %v2452_v22, %v2000_v23  ;;  %v3054_v34 = vor.u32 %v2455_v29, %v2006_v28  ;;  %v2014_v36 = vld [vmem:[%s2853_s3 + $0xc0] sm:$0xf]  ;;  %v2458_v37 = vld [vmem:[%s2853_s3 + $0xcc] sm:$0xf0] }
  0x3e   : > { %978 = vmatmul.bf16.gmra.mxu0 %v2922_v12  ;;  %1591 = vmatpush.bf16.msrb.mxu3 %v2403_v11  ;;  %v3056_v35 = vor.u32 %v2453_v30, %v2008_v31  ;;  %v2456_v38 = vld [vmem:[%s2853_s3 + $0xc4] sm:$0xf]  ;;  %v2016_v39 = vld [vmem:[%s2853_s3 + $0xd0] sm:$0xf0]  ;;  %v2022_v40 = vld [vmem:[%s2853_s3 + $0xc8] sm:$0xf]  ;;  %v3070_v44 = vor.u32 %v2458_v37, %v2014_v36 }
  0x3f   : > { %1067 = vmatmul.bf16.gmra.mxu1 %v2924_v13  ;;  %v2459_v41 = vld [vmem:[%s2853_s3 + $0xd4] sm:$0xf0]  ;;  %v2457_v42 = vld [vmem:[%s2853_s3 + $0xcc] sm:$0xf]  ;;  %v2024_v43 = vld [vmem:[%s2853_s3 + $0xd8] sm:$0xf0]  ;;  %v3072_v45 = vor.u32 %v2456_v38, %v2016_v39 }
  0x40   : > { %1156 = vmatmul.bf16.gmra.mxu2 %v2926_v14  ;;  %1413 = vmatpush.bf16.msrb.mxu1 %v2275_v19  ;;  %v3074_v47 = vor.u32 %v2459_v41, %v2022_v40  ;;  %v3076_v48 = vor.u32 %v2457_v42, %v2024_v43  ;;  %v2534_v56 = vld [vmem:[%s3503_s1 + $0x134] sm:$0xf]  ;;  %v2328_v57 = vld [vmem:[%s3503_s1 + $0x138] sm:$0xf0]  ;;  %v2030_v62 = vld [vmem:[%s2853_s3 + $0xe0] sm:$0xf] }
  0x41   : > { %1245 = vmatmul.bf16.gmra.mxu3 %v2928_v15  ;;  %v2550_v58 = vld [vmem:[%s3503_s1 + $0x1b4] sm:$0xf]  ;;  %v2331_v59 = vor.u32 %v2534_v56, %v2328_v57  ;;  %v2392_v60 = vld [vmem:[%s3503_s1 + $0x1b8] sm:$0xf0]  ;;  %v2462_v63 = vld [vmem:[%s2853_s3 + $0xec] sm:$0xf0] }
  0x42   : > { %v2395_v61 = vor.u32 %v2550_v58, %v2392_v60  ;;  %v2460_v4 = vld [vmem:[%s2853_s3 + $0xe4] sm:$0xf]  ;;  %v2032_v5 = vld [vmem:[%s2853_s3 + $0xf0] sm:$0xf0]  ;;  %v2038_v6 = vld [vmem:[%s2853_s3 + $0xe8] sm:$0xf]  ;;  %v3111_v17 = vor.u32 %v2462_v63, %v2030_v62 }
  0x43   : > { %1503 = vmatpush.bf16.msrb.mxu2 %v2331_v59  ;;  %v2463_v7 = vld [vmem:[%s2853_s3 + $0xf4] sm:$0xf0]  ;;  %v2461_v8 = vld [vmem:[%s2853_s3 + $0xec] sm:$0xf]  ;;  %v2040_v9 = vld [vmem:[%s2853_s3 + $0xf8] sm:$0xf0]  ;;  %v3116_v20 = vor.u32 %v2460_v4, %v2032_v5 }
  0x44   : > { %1592 = vmatpush.bf16.msrb.mxu3 %v2395_v61  ;;  %v2502_v10 = vld [vmem:[%s3503_s1 + $0x34] sm:$0xf]  ;;  %v2200_v11 = vld [vmem:[%s3503_s1 + $0x38] sm:$0xf0]  ;;  %v3118_v21 = vor.u32 %v2463_v7, %v2038_v6  ;;  %v3120_v23 = vor.u32 %v2461_v8, %v2040_v9  ;;  %v2046_v28 = vld [vmem:[%s2853_s3 + $0x100] sm:$0xf] }
  0x45   : > { %v2518_v16 = vld [vmem:[%s3503_s1 + $0xb4] sm:$0xf]  ;;  %v2203_v18 = vor.u32 %v2502_v10, %v2200_v11  ;;  %v2264_v19 = vld [vmem:[%s3503_s1 + $0xb8] sm:$0xf0]  ;;  %v2466_v29 = vld [vmem:[%s2853_s3 + $0x10c] sm:$0xf0] }
  0x46   : > { %v2267_v22 = vor.u32 %v2518_v16, %v2264_v19  ;;  %v2464_v30 = vld [vmem:[%s2853_s3 + $0x104] sm:$0xf]  ;;  %v2048_v31 = vld [vmem:[%s2853_s3 + $0x110] sm:$0xf0]  ;;  %v2054_v36 = vld [vmem:[%s2853_s3 + $0x108] sm:$0xf]  ;;  %v3134_v40 = vor.u32 %v2466_v29, %v2046_v28 }
  0x47   : > { %1325 = vmatpush.bf16.msrb.mxu0 %v2203_v18  ;;  %v2467_v37 = vld [vmem:[%s2853_s3 + $0x114] sm:$0xf0]  ;;  %v2465_v38 = vld [vmem:[%s2853_s3 + $0x10c] sm:$0xf]  ;;  %v2056_v39 = vld [vmem:[%s2853_s3 + $0x118] sm:$0xf0]  ;;  %v3136_v42 = vor.u32 %v2464_v30, %v2048_v31 }
  0x48   : > { %1414 = vmatpush.bf16.msrb.mxu1 %v2267_v22  ;;  %v3138_v43 = vor.u32 %v2467_v37, %v2054_v36  ;;  %v3140_v57 = vor.u32 %v2465_v38, %v2056_v39  ;;  %v2532_v59 = vld [vmem:[%s3503_s1 + $0x124] sm:$0xf]  ;;  %v2320_v60 = vld [vmem:[%s3503_s1 + $0x128] sm:$0xf0]  ;;  %v2062_v11 = vld [vmem:[%s2853_s3 + $0x120] sm:$0xf] }
  0x49   : > { %v2548_v61 = vld [vmem:[%s3503_s1 + $0x1a4] sm:$0xf]  ;;  %v2323_v63 = vor.u32 %v2532_v59, %v2320_v60  ;;  %v2384_v4 = vld [vmem:[%s3503_s1 + $0x1a8] sm:$0xf0]  ;;  %v2470_v16 = vld [vmem:[%s2853_s3 + $0x12c] sm:$0xf0] }
  0x4a   : > { %v2387_v8 = vor.u32 %v2548_v61, %v2384_v4  ;;  %v2468_v18 = vld [vmem:[%s2853_s3 + $0x124] sm:$0xf]  ;;  %v2064_v22 = vld [vmem:[%s2853_s3 + $0x130] sm:$0xf0]  ;;  %v2070_v28 = vld [vmem:[%s2853_s3 + $0x128] sm:$0xf] }
  0x4b   : > { %1504 = vmatpush.bf16.msrb.mxu2 %v2323_v63  ;;  %v2471_v29 = vld [vmem:[%s2853_s3 + $0x134] sm:$0xf0]  ;;  %v2469_v30 = vld [vmem:[%s2853_s3 + $0x12c] sm:$0xf]  ;;  %v2072_v31 = vld [vmem:[%s2853_s3 + $0x138] sm:$0xf0]  ;;  %v3188_v63 = vor.u32 %v2468_v18, %v2064_v22 }
  0x4c   : > { %1593 = vmatpush.bf16.msrb.mxu3 %v2387_v8  ;;  %v2500_v37 = vld [vmem:[%s3503_s1 + $0x24] sm:$0xf]  ;;  %v2192_v38 = vld [vmem:[%s3503_s1 + $0x28] sm:$0xf0]  ;;  %v3190_v4 = vor.u32 %v2471_v29, %v2070_v28  ;;  %v2078_v29 = vld [vmem:[%s2853_s3 + $0x140] sm:$0xf] }
  0x4d   : > { %v2516_v39 = vld [vmem:[%s3503_s1 + $0xa4] sm:$0xf]  ;;  %v2256_v59 = vld [vmem:[%s3503_s1 + $0xa8] sm:$0xf0] }
  0x4e   : > { %983 = vmatmul.bf16.gmra.mxu0 %v2942_v24 }
  0x4f   : > { %1072 = vmatmul.bf16.gmra.mxu1 %v2944_v25 }
  0x50   : > { %1161 = vmatmul.bf16.gmra.mxu2 %v2946_v26 }
  0x51   : > { %1250 = vmatmul.bf16.gmra.mxu3 %v2948_v27 }
  0x5e   : > { %988 = vmatmul.bf16.gmra.mxu0 %v2986_v49 }
  0x5f   : > { %1077 = vmatmul.bf16.gmra.mxu1 %v2988_v50 }
  0x60   : > { %1166 = vmatmul.bf16.gmra.mxu2 %v2990_v54 }
  0x61   : > { %1255 = vmatmul.bf16.gmra.mxu3 %v2992_v55 }
  0x6e   : > { %993 = vmatmul.bf16.gmra.mxu0 %v3006_v0 }
  0x6f   : > { %1082 = vmatmul.bf16.gmra.mxu1 %v3008_v1 }
  0x70   : > { %1171 = vmatmul.bf16.gmra.mxu2 %v3010_v2 }
  0x71   : > { %1260 = vmatmul.bf16.gmra.mxu3 %v3012_v3 }
  0x7e   : > { %998 = vmatmul.bf16.gmra.mxu0 %v3050_v32 }
  0x7f   : > { %1087 = vmatmul.bf16.gmra.mxu1 %v3052_v33 }
  0x80   : > { %1176 = vmatmul.bf16.gmra.mxu2 %v3054_v34 }
  0x81   : > { %1265 = vmatmul.bf16.gmra.mxu3 %v3056_v35 }
  0x8e   : > { %1003 = vmatmul.bf16.gmra.mxu0 %v3070_v44 }
  0x8f   : > { %1092 = vmatmul.bf16.gmra.mxu1 %v3072_v45 }
  0x90   : > { %1181 = vmatmul.bf16.gmra.mxu2 %v3074_v47 }
  0x91   : > { %1270 = vmatmul.bf16.gmra.mxu3 %v3076_v48 }
  0x9e   : > { %1008 = vmatmul.bf16.gmra.mxu0 %v3111_v17 }
  0x9f   : > { %1097 = vmatmul.bf16.gmra.mxu1 %v3116_v20 }
  0xa0   : > { %1186 = vmatmul.bf16.gmra.mxu2 %v3118_v21 }
  0xa1   : > { %1275 = vmatmul.bf16.gmra.mxu3 %v3120_v23 }
  0xab   : > { %v974_v41 = vpop.f32.mrf.mxu0 }
  0xac   : > { %v1063_v56 = vpop.f32.mrf.mxu1 }
  0xad   : > { %v1064_v58 = vadd.f32 %v1063_v56, %v974_v41  ;;  %v3183_v56 = vor.u32 %v2470_v16, %v2062_v11 }
  0xae   : > { %1013 = vmatmul.bf16.gmra.mxu0 %v3134_v40 }
  0xaf   : > { %1102 = vmatmul.bf16.gmra.mxu1 %v3136_v42 }
  0xb0   : > { %1191 = vmatmul.bf16.gmra.mxu2 %v3138_v43 }
  0xb1   : > { %1280 = vmatmul.bf16.gmra.mxu3 %v3140_v57 }
  0xb3   : > { %v1152_v62 = vpop.f32.mrf.mxu2  ;;  %v976_v7 = vpop.f32.mrf.mxu0 }
  0xb4   : > { %v1153_v5 = vadd.f32 %v1152_v62, %v1064_v58  ;;  %v1241_v6 = vpop.f32.mrf.mxu3  ;;  %v1065_v9 = vpop.f32.mrf.mxu1  ;;  %v2195_v58 = vor.u32 %v2500_v37, %v2192_v38  ;;  %v2080_v37 = vld [vmem:[%s2853_s3 + $0x150] sm:$0xf0]  ;;  %v2086_v38 = vld [vmem:[%s2853_s3 + $0x148] sm:$0xf] }
  0xb5   : > { %v1066_v36 = vadd.f32 %v1065_v9, %v976_v7  ;;  %v3192_v7 = vor.u32 %v2469_v30, %v2072_v31  ;;  %v2474_v31 = vld [vmem:[%s2853_s3 + $0x14c] sm:$0xf0] }
  0xb6   : > { %v1242_v10 = vadd.f32 %v1241_v6, %v1153_v5  ;;  %v2259_v5 = vor.u32 %v2516_v39, %v2256_v59  ;;  %1326 = vmatpush.bf16.msrb.mxu0 %v2195_v58  ;;  %v2475_v39 = vld [vmem:[%s2853_s3 + $0x154] sm:$0xf0]  ;;  %v2473_v58 = vld [vmem:[%s2853_s3 + $0x14c] sm:$0xf]  ;;  %v2088_v59 = vld [vmem:[%s2853_s3 + $0x158] sm:$0xf0] }
  0xb8   : > { %v1677_v19 = vmax.f32 %v1242_v10, 0.0  ;;  %1415 = vmatpush.bf16.msrb.mxu1 %v2259_v5 }
  0xba   : > { %1741 = vst [vmem:[%s3163_s26] sm:$0xff] %v1677_v19 }
  0xbb   : > { %v1154_v41 = vpop.f32.mrf.mxu2  ;;  %v979_v62 = vpop.f32.mrf.mxu0 }
  0xbc   : > { %v1155_v60 = vadd.f32 %v1154_v41, %v1066_v36  ;;  %v1243_v61 = vpop.f32.mrf.mxu3  ;;  %v1068_v6 = vpop.f32.mrf.mxu1  ;;  %v2472_v36 = vld [vmem:[%s2853_s3 + $0x144] sm:$0xf] }
  0xbd   : > { %v1069_v10 = vadd.f32 %v1068_v6, %v979_v62 }
  0xbe   : > { %v1244_v8 = vadd.f32 %v1243_v61, %v1155_v60  ;;  %1018 = vmatmul.bf16.gmra.mxu0 %v3183_v56  ;;  %v3208_v61 = vor.u32 %v2474_v31, %v2078_v29  ;;  %v2546_v31 = vld [vmem:[%s3503_s1 + $0x194] sm:$0xf] }
  0xbf   : > { %1107 = vmatmul.bf16.gmra.mxu1 %v3188_v63 }
  0xc0   : > { %v1679_v9 = vmax.f32 %v1244_v8, 0.0  ;;  %1196 = vmatmul.bf16.gmra.mxu2 %v3190_v4  ;;  %v3210_v8 = vor.u32 %v2472_v36, %v2080_v37  ;;  %v2376_v36 = vld [vmem:[%s3503_s1 + $0x198] sm:$0xf0] }
  0xc1   : > { %1285 = vmatmul.bf16.gmra.mxu3 %v3192_v7 }
  0xc2   : > { %1743 = vst [vmem:[%s3163_s26 + $0x10] sm:$0xff] %v1679_v9  ;;  %v3212_v9 = vor.u32 %v2475_v39, %v2086_v38 }
  0xc3   : > { %v1157_v11 = vpop.f32.mrf.mxu2  ;;  %v981_v19 = vpop.f32.mrf.mxu0 }
  0xc4   : > { %v1158_v16 = vadd.f32 %v1157_v11, %v1069_v10  ;;  %v1246_v18 = vpop.f32.mrf.mxu3  ;;  %v1070_v22 = vpop.f32.mrf.mxu1  ;;  %3523 = vst [vmem:[#allocation2_spill] sm:$0xff] %v3212_v9  ;;  %v3214_v11 = vor.u32 %v2473_v58, %v2088_v59 }
  0xc5   : > { %v1071_v41 = vadd.f32 %v1070_v22, %v981_v19  ;;  %v2530_v22 = vld [vmem:[%s3503_s1 + $0x114] sm:$0xf] }
  0xc6   : > { %v1247_v28 = vadd.f32 %v1246_v18, %v1158_v16  ;;  %3524 = vst [vmem:[#allocation3_spill] sm:$0xff] %v3214_v11 }
  0xc8   : > { %v1681_v30 = vmax.f32 %v1247_v28, 0.0  ;;  %v2312_v28 = vld [vmem:[%s3503_s1 + $0x118] sm:$0xf0] }
  0xca   : > { %1745 = vst [vmem:[%s3163_s26 + $0x20] sm:$0xff] %v1681_v30  ;;  %v2315_v30 = vor.u32 %v2530_v22, %v2312_v28  ;;  %v2477_v22 = vld [vmem:[%s2853_s3 + $0x16c] sm:$0xf]  ;;  %v2104_v28 = vld [vmem:[%s2853_s3 + $0x178] sm:$0xf0] }
  0xcb   : > { %v1159_v60 = vpop.f32.mrf.mxu2  ;;  %v984_v6 = vpop.f32.mrf.mxu0 }
  0xcc   : > { %v1160_v62 = vadd.f32 %v1159_v60, %v1071_v41  ;;  %v1248_v5 = vpop.f32.mrf.mxu3  ;;  %v1073_v10 = vpop.f32.mrf.mxu1  ;;  %v2379_v41 = vor.u32 %v2546_v31, %v2376_v36  ;;  %1505 = vmatpush.bf16.msrb.mxu2 %v2315_v30  ;;  %v2094_v60 = vld [vmem:[%s2853_s3 + $0x160] sm:$0xf]  ;;  %v2184_v30 = vld [vmem:[%s3503_s1 + $0x18] sm:$0xf0] }
  0xcd   : > { %v1074_v19 = vadd.f32 %v1073_v10, %v984_v6  ;;  %v2096_v10 = vld [vmem:[%s2853_s3 + $0x170] sm:$0xf0] }
  0xce   : > { %v1249_v16 = vadd.f32 %v1248_v5, %v1160_v62  ;;  %1023 = vmatmul.bf16.gmra.mxu0 %v3208_v61  ;;  %1594 = vmatpush.bf16.msrb.mxu3 %v2379_v41  ;;  %v2478_v62 = vld [vmem:[%s2853_s3 + $0x16c] sm:$0xf0]  ;;  %v2476_v5 = vld [vmem:[%s2853_s3 + $0x164] sm:$0xf] }
  0xcf   : > { %1112 = vmatmul.bf16.gmra.mxu1 %v3210_v8  ;;  %v3248_v36 = vor.u32 %v2478_v62, %v2094_v60  ;;  %v3260_v62 = vor.u32 %v2477_v22, %v2104_v28  ;;  %v2110_v28 = vld [vmem:[%s2853_s3 + $0x180] sm:$0xf] }
  0xd0   : > { %v1683_v18 = vmax.f32 %v1249_v16, 0.0  ;;  %1201 = vmatmul.bf16.gmra.mxu2 %v3212_v9  ;;  %v2102_v16 = vld [vmem:[%s2853_s3 + $0x168] sm:$0xf] }
  0xd1   : > { %1290 = vmatmul.bf16.gmra.mxu3 %v3214_v11  ;;  %3525 = vst [vmem:[#allocation4_spill] sm:$0xff] %v3248_v36 }
  0xd2   : > { %1747 = vst [vmem:[%s3163_s26 + $0x30] sm:$0xff] %v1683_v18  ;;  %v2479_v18 = vld [vmem:[%s2853_s3 + $0x174] sm:$0xf0] }
  0xd3   : > { %v1162_v29 = vpop.f32.mrf.mxu2  ;;  %v986_v39 = vpop.f32.mrf.mxu0  ;;  %v3258_v11 = vor.u32 %v2479_v18, %v2102_v16  ;;  %3528 = vst [vmem:[#allocation7_spill] sm:$0xff] %v3260_v62 }
  0xd4   : > { %v1163_v37 = vadd.f32 %v1162_v29, %v1074_v19  ;;  %v1251_v38 = vpop.f32.mrf.mxu3  ;;  %v1075_v58 = vpop.f32.mrf.mxu1  ;;  %v2498_v29 = vld [vmem:[%s3503_s1 + $0x14] sm:$0xf] }
  0xd5   : > { %v1076_v19 = vadd.f32 %v1075_v58, %v986_v39  ;;  %v2248_v39 = vld [vmem:[%s3503_s1 + $0x98] sm:$0xf0]  ;;  %3527 = vst [vmem:[#allocation6_spill] sm:$0xff] %v3258_v11 }
  0xd6   : > { %v1252_v59 = vadd.f32 %v1251_v38, %v1163_v37  ;;  %v2187_v37 = vor.u32 %v2498_v29, %v2184_v30  ;;  %v2514_v38 = vld [vmem:[%s3503_s1 + $0x94] sm:$0xf] }
  0xd7   : > { %v2251_v9 = vor.u32 %v2514_v38, %v2248_v39  ;;  %v2480_v38 = vld [vmem:[%s2853_s3 + $0x184] sm:$0xf]  ;;  %v2112_v39 = vld [vmem:[%s2853_s3 + $0x190] sm:$0xf0] }
  0xd8   : > { %v1685_v6 = vmax.f32 %v1252_v59, 0.0  ;;  %1327 = vmatpush.bf16.msrb.mxu0 %v2187_v37  ;;  %v2482_v37 = vld [vmem:[%s2853_s3 + $0x18c] sm:$0xf0] }
  0xd9   : > { %1416 = vmatpush.bf16.msrb.mxu1 %v2251_v9 }
  0xda   : > { %1749 = vst [vmem:[%s3163_s26 + $0x40] sm:$0xff] %v1685_v6  ;;  %v3256_v6 = vor.u32 %v2476_v5, %v2096_v10 }
  0xdb   : > { %v1164_v31 = vpop.f32.mrf.mxu2  ;;  %v989_v59 = vpop.f32.mrf.mxu0 }
  0xdc   : > { %v1165_v41 = vadd.f32 %v1164_v31, %v1076_v19  ;;  %v1253_v58 = vpop.f32.mrf.mxu3  ;;  %3526 = vst [vmem:[#allocation5_spill] sm:$0xff] %v3256_v6  ;;  %v1078_v60 = vpop.f32.mrf.mxu1 }
  0xdd   : > { %v1079_v30 = vadd.f32 %v1078_v60, %v989_v59  ;;  %v2481_v60 = vld [vmem:[%s2853_s3 + $0x18c] sm:$0xf] }
  0xde   : > { %v1254_v29 = vadd.f32 %v1253_v58, %v1165_v41  ;;  %1028 = vmatmul.bf16.gmra.mxu0 %v3248_v36  ;;  %v2118_v41 = vld [vmem:[%s2853_s3 + $0x188] sm:$0xf]  ;;  %v2483_v58 = vld [vmem:[%s2853_s3 + $0x194] sm:$0xf0] }
  0xdf   : > { %1117 = vmatmul.bf16.gmra.mxu1 %v3256_v6  ;;  %v3278_v6 = vor.u32 %v2480_v38, %v2112_v39  ;;  %v2368_v38 = vld [vmem:[%s3503_s1 + $0x188] sm:$0xf0] }
  0xe0   : > { %v1687_v19 = vmax.f32 %v1254_v29, 0.0  ;;  %1206 = vmatmul.bf16.gmra.mxu2 %v3258_v11  ;;  %v2120_v29 = vld [vmem:[%s2853_s3 + $0x198] sm:$0xf0] }
  0xe1   : > { %1295 = vmatmul.bf16.gmra.mxu3 %v3260_v62  ;;  %v3276_v62 = vor.u32 %v2482_v37, %v2110_v28  ;;  %3530 = vst [vmem:[#allocation9_spill] sm:$0xff] %v3278_v6  ;;  %v2528_v28 = vld [vmem:[%s3503_s1 + $0x104] sm:$0xf] }
  0xe2   : > { %1751 = vst [vmem:[%s3163_s26 + $0x50] sm:$0xff] %v1687_v19  ;;  %v2544_v37 = vld [vmem:[%s3503_s1 + $0x184] sm:$0xf] }
  0xe3   : > { %v1167_v5 = vpop.f32.mrf.mxu2  ;;  %v991_v16 = vpop.f32.mrf.mxu0  ;;  %3529 = vst [vmem:[#allocation8_spill] sm:$0xff] %v3276_v62 }
  0xe4   : > { %v1168_v9 = vadd.f32 %v1167_v5, %v1079_v30  ;;  %v1256_v10 = vpop.f32.mrf.mxu3  ;;  %v1080_v18 = vpop.f32.mrf.mxu1 }
  0xe5   : > { %v1081_v59 = vadd.f32 %v1080_v18, %v991_v16 }
  0xe6   : > { %v1257_v22 = vadd.f32 %v1256_v10, %v1168_v9  ;;  %v3280_v9 = vor.u32 %v2483_v58, %v2118_v41 }
  0xe8   : > { %v1689_v31 = vmax.f32 %v1257_v22, 0.0  ;;  %3531 = vst [vmem:[#allocation10_spill] sm:$0xff] %v3280_v9  ;;  %v3282_v22 = vor.u32 %v2481_v60, %v2120_v29 }
  0xea   : > { %1753 = vst [vmem:[%s3163_s26 + $0x60] sm:$0xff] %v1689_v31  ;;  %v2304_v31 = vld [vmem:[%s3503_s1 + $0x108] sm:$0xf0] }
  0xeb   : > { %v1169_v19 = vpop.f32.mrf.mxu2  ;;  %v994_v11 = vpop.f32.mrf.mxu0  ;;  %3532 = vst [vmem:[#allocation11_spill] sm:$0xff] %v3282_v22 }
  0xec   : > { %v1170_v30 = vadd.f32 %v1169_v19, %v1081_v59  ;;  %v1258_v5 = vpop.f32.mrf.mxu3  ;;  %v1083_v10 = vpop.f32.mrf.mxu1  ;;  %v2371_v59 = vor.u32 %v2544_v37, %v2368_v38  ;;  %v2126_v19 = vld [vmem:[%s2853_s3 + $0x1a0] sm:$0xf] }
  0xed   : > { %v1084_v18 = vadd.f32 %v1083_v10, %v994_v11  ;;  %v2307_v11 = vor.u32 %v2528_v28, %v2304_v31  ;;  %v2134_v28 = vld [vmem:[%s2853_s3 + $0x1a8] sm:$0xf]  ;;  %v2487_v31 = vld [vmem:[%s2853_s3 + $0x1b4] sm:$0xf0] }
  0xee   : > { %v1259_v36 = vadd.f32 %v1258_v5, %v1170_v30  ;;  %1033 = vmatmul.bf16.gmra.mxu0 %v3276_v62  ;;  %1595 = vmatpush.bf16.msrb.mxu3 %v2371_v59  ;;  %v2486_v30 = vld [vmem:[%s2853_s3 + $0x1ac] sm:$0xf0]  ;;  %v2484_v5 = vld [vmem:[%s2853_s3 + $0x1a4] sm:$0xf] }
  0xef   : > { %1122 = vmatmul.bf16.gmra.mxu1 %v3278_v6  ;;  %1506 = vmatpush.bf16.msrb.mxu2 %v2307_v11  ;;  %v2176_v11 = vld [vmem:[%s3503_s1 + $0x8] sm:$0xf0]  ;;  %v3316_v38 = vor.u32 %v2486_v30, %v2126_v19  ;;  %v3326_v6 = vor.u32 %v2487_v31, %v2134_v28  ;;  %v2142_v31 = vld [vmem:[%s2853_s3 + $0x1c0] sm:$0xf] }
  0xf0   : > { %v1691_v16 = vmax.f32 %v1259_v36, 0.0  ;;  %1211 = vmatmul.bf16.gmra.mxu2 %v3280_v9  ;;  %v2136_v9 = vld [vmem:[%s2853_s3 + $0x1b8] sm:$0xf0] }
  0xf1   : > { %1300 = vmatmul.bf16.gmra.mxu3 %v3282_v22  ;;  %v2485_v22 = vld [vmem:[%s2853_s3 + $0x1ac] sm:$0xf]  ;;  %3533 = vst [vmem:[#allocation12_spill] sm:$0xff] %v3316_v38 }
  0xf2   : > { %1755 = vst [vmem:[%s3163_s26 + $0x70] sm:$0xff] %v1691_v16  ;;  %v2128_v16 = vld [vmem:[%s2853_s3 + $0x1b0] sm:$0xf0]  ;;  %v3328_v30 = vor.u32 %v2485_v22, %v2136_v9 }
  0xf3   : > { %v1172_v36 = vpop.f32.mrf.mxu2  ;;  %v996_v58 = vpop.f32.mrf.mxu0  ;;  %3535 = vst [vmem:[#allocation14_spill] sm:$0xff] %v3326_v6 }
  0xf4   : > { %v1173_v39 = vadd.f32 %v1172_v36, %v1084_v18  ;;  %v1261_v41 = vpop.f32.mrf.mxu3  ;;  %v1085_v60 = vpop.f32.mrf.mxu1  ;;  %v2496_v36 = vld [vmem:[%s3503_s1 + $0x4] sm:$0xf]  ;;  %3536 = vst [vmem:[#allocation15_spill] sm:$0xff] %v3328_v30 }
  0xf5   : > { %v1086_v18 = vadd.f32 %v1085_v60, %v996_v58  ;;  %v2240_v58 = vld [vmem:[%s3503_s1 + $0x88] sm:$0xf0] }
  0xf6   : > { %v1262_v29 = vadd.f32 %v1261_v41, %v1173_v39  ;;  %v2179_v39 = vor.u32 %v2496_v36, %v2176_v11  ;;  %v2512_v41 = vld [vmem:[%s3503_s1 + $0x84] sm:$0xf] }
  0xf7   : > { %v2243_v62 = vor.u32 %v2512_v41, %v2240_v58  ;;  %v2488_v41 = vld [vmem:[%s2853_s3 + $0x1c4] sm:$0xf]  ;;  %v2144_v58 = vld [vmem:[%s2853_s3 + $0x1d0] sm:$0xf0] }
  0xf8   : > { %v1693_v10 = vmax.f32 %v1262_v29, 0.0  ;;  %1328 = vmatpush.bf16.msrb.mxu0 %v2179_v39  ;;  %v2490_v39 = vld [vmem:[%s2853_s3 + $0x1cc] sm:$0xf0] }
  0xf9   : > { %1417 = vmatpush.bf16.msrb.mxu1 %v2243_v62 }
  0xfa   : > { %1757 = vst [vmem:[%s3163_s26 + $0x80] sm:$0xff] %v1693_v10  ;;  %v3324_v10 = vor.u32 %v2484_v5, %v2128_v16 }
  0xfb   : > { %v1174_v37 = vpop.f32.mrf.mxu2  ;;  %v999_v29 = vpop.f32.mrf.mxu0 }
  0xfc   : > { %v1175_v59 = vadd.f32 %v1174_v37, %v1086_v18  ;;  %v1263_v60 = vpop.f32.mrf.mxu3  ;;  %3534 = vst [vmem:[#allocation13_spill] sm:$0xff] %v3324_v10  ;;  %v1088_v19 = vpop.f32.mrf.mxu1 }
  0xfd   : > { %v1089_v11 = vadd.f32 %v1088_v19, %v999_v29  ;;  %v2489_v19 = vld [vmem:[%s2853_s3 + $0x1cc] sm:$0xf] }
  0xfe   : > { %v1264_v36 = vadd.f32 %v1263_v60, %v1175_v59  ;;  %1038 = vmatmul.bf16.gmra.mxu0 %v3316_v38  ;;  %v2150_v59 = vld [vmem:[%s2853_s3 + $0x1c8] sm:$0xf]  ;;  %v2491_v60 = vld [vmem:[%s2853_s3 + $0x1d4] sm:$0xf0] }
  0xff   : > { %1127 = vmatmul.bf16.gmra.mxu1 %v3324_v10  ;;  %v3346_v10 = vor.u32 %v2488_v41, %v2144_v58 }
 0x100   : > { %v1695_v18 = vmax.f32 %v1264_v36, 0.0  ;;  %1216 = vmatmul.bf16.gmra.mxu2 %v3326_v6  ;;  %v2152_v36 = vld [vmem:[%s2853_s3 + $0x1d8] sm:$0xf0] }
 0x101   : > { %1305 = vmatmul.bf16.gmra.mxu3 %v3328_v30  ;;  %v3344_v30 = vor.u32 %v2490_v39, %v2142_v31  ;;  %3538 = vst [vmem:[#allocation17_spill] sm:$0xff] %v3346_v10 }
 0x102   : > { %1759 = vst [vmem:[%s3163_s26 + $0x90] sm:$0xff] %v1695_v18 }
 0x103   : > { %v1177_v9 = vpop.f32.mrf.mxu2  ;;  %v1001_v5 = vpop.f32.mrf.mxu0  ;;  %3537 = vst [vmem:[#allocation16_spill] sm:$0xff] %v3344_v30 }
 0x104   : > { %v1178_v62 = vadd.f32 %v1177_v9, %v1089_v11  ;;  %v1266_v22 = vpop.f32.mrf.mxu3  ;;  %v1090_v16 = vpop.f32.mrf.mxu1 }
 0x105   : > { %v1091_v29 = vadd.f32 %v1090_v16, %v1001_v5 }
 0x106   : > { %v1267_v28 = vadd.f32 %v1266_v22, %v1178_v62  ;;  %v3348_v62 = vor.u32 %v2491_v60, %v2150_v59  ;;  %v2158_v59 = vld [vmem:[%s2853_s3 + $0x1e0] sm:$0xf]  ;;  %v2494_v60 = vld [vmem:[%s2853_s3 + $0x1ec] sm:$0xf0] }
 0x108   : > { %v1697_v37 = vmax.f32 %v1267_v28, 0.0  ;;  %3539 = vst [vmem:[#allocation18_spill] sm:$0xff] %v3348_v62  ;;  %v3350_v28 = vor.u32 %v2489_v19, %v2152_v36  ;;  %v2160_v19 = vld [vmem:[%s2853_s3 + $0x1f0] sm:$0xf0]  ;;  %v2166_v36 = vld [vmem:[%s2853_s3 + $0x1e8] sm:$0xf] }
 0x10a   : > { %1761 = vst [vmem:[%s3163_s26 + $0xa0] sm:$0xff] %v1697_v37 }
 0x10b   : > { %v1179_v18 = vpop.f32.mrf.mxu2  ;;  %v1004_v6 = vpop.f32.mrf.mxu0  ;;  %3540 = vst [vmem:[#allocation19_spill] sm:$0xff] %v3350_v28 }
 0x10c   : > { %v1180_v11 = vadd.f32 %v1179_v18, %v1091_v29  ;;  %v1268_v9 = vpop.f32.mrf.mxu3  ;;  %v1093_v22 = vpop.f32.mrf.mxu1  ;;  %v2492_v29 = vld [vmem:[%s2853_s3 + $0x1e4] sm:$0xf]  ;;  %v2495_v18 = vld [vmem:[%s2853_s3 + $0x1f4] sm:$0xf0] }
 0x10d   : > { %v1094_v16 = vadd.f32 %v1093_v22, %v1004_v6  ;;  %v2168_v22 = vld [vmem:[%s2853_s3 + $0x1f8] sm:$0xf0] }
 0x10e   : > { %v1269_v38 = vadd.f32 %v1268_v9, %v1180_v11  ;;  %1043 = vmatmul.bf16.gmra.mxu0 %v3344_v30  ;;  %v2493_v9 = vld [vmem:[%s2853_s3 + $0x1ec] sm:$0xf] }
 0x10f   : > { %1132 = vmatmul.bf16.gmra.mxu1 %v3346_v10  ;;  %v3368_v10 = vor.u32 %v2492_v29, %v2160_v19 }
 0x110   : > { %v1699_v5 = vmax.f32 %v1269_v38, 0.0  ;;  %1221 = vmatmul.bf16.gmra.mxu2 %v3348_v62 }
 0x111   : > { %1310 = vmatmul.bf16.gmra.mxu3 %v3350_v28  ;;  %v3366_v28 = vor.u32 %v2494_v60, %v2158_v59 }
 0x112   : > { %1763 = vst [vmem:[%s3163_s26 + $0xb0] sm:$0xff] %v1699_v5 }
 0x113   : > { %v1182_v31 = vpop.f32.mrf.mxu2  ;;  %v1006_v41 = vpop.f32.mrf.mxu0 }
 0x114   : > { %v1183_v37 = vadd.f32 %v1182_v31, %v1094_v16  ;;  %v1271_v39 = vpop.f32.mrf.mxu3  ;;  %v1095_v58 = vpop.f32.mrf.mxu1 }
 0x115   : > { %v1096_v11 = vadd.f32 %v1095_v58, %v1006_v41 }
 0x116   : > { %v1272_v38 = vadd.f32 %v1271_v39, %v1183_v37  ;;  %v3370_v37 = vor.u32 %v2495_v18, %v2166_v36 }
 0x118   : > { %v1701_v6 = vmax.f32 %v1272_v38, 0.0  ;;  %v3372_v38 = vor.u32 %v2493_v9, %v2168_v22 }
 0x11a   : > { %1765 = vst [vmem:[%s3163_s26 + $0xc0] sm:$0xff] %v1701_v6 }
 0x11b   : > { %v1184_v5 = vpop.f32.mrf.mxu2  ;;  %v1009_v62 = vpop.f32.mrf.mxu0 }
 0x11c   : > { %v1185_v16 = vadd.f32 %v1184_v5, %v1096_v11  ;;  %v1273_v31 = vpop.f32.mrf.mxu3  ;;  %v1098_v39 = vpop.f32.mrf.mxu1 }
 0x11d   : > { %v1099_v58 = vadd.f32 %v1098_v39, %v1009_v62 }
 0x11e   : > { %v1274_v30 = vadd.f32 %v1273_v31, %v1185_v16  ;;  %1048 = vmatmul.bf16.gmra.mxu0 %v3366_v28 }
 0x11f   : > { %1137 = vmatmul.bf16.gmra.mxu1 %v3368_v10 }
 0x120   : > { %v1703_v41 = vmax.f32 %v1274_v30, 0.0  ;;  %1226 = vmatmul.bf16.gmra.mxu2 %v3370_v37 }
 0x121   : > { %1315 = vmatmul.bf16.gmra.mxu3 %v3372_v38 }
 0x122   : > { %1767 = vst [vmem:[%s3163_s26 + $0xd0] sm:$0xff] %v1703_v41 }
 0x123   : > { %v1187_v59 = vpop.f32.mrf.mxu2  ;;  %v1011_v29 = vpop.f32.mrf.mxu0 }
 0x124   : > { %v1188_v6 = vadd.f32 %v1187_v59, %v1099_v58  ;;  %v1276_v60 = vpop.f32.mrf.mxu3  ;;  %v1100_v19 = vpop.f32.mrf.mxu1 }
 0x125   : > { %v1101_v11 = vadd.f32 %v1100_v19, %v1011_v29 }
 0x126   : > { %v1277_v36 = vadd.f32 %v1276_v60, %v1188_v6 }
 0x128   : > { %v1705_v18 = vmax.f32 %v1277_v36, 0.0 }
 0x12a   : > { %1769 = vst [vmem:[%s3163_s26 + $0xe0] sm:$0xff] %v1705_v18 }
 0x12b   : > { %v1189_v9 = vpop.f32.mrf.mxu2  ;;  %v1014_v22 = vpop.f32.mrf.mxu0 }
 0x12c   : > { %v1190_v30 = vadd.f32 %v1189_v9, %v1101_v11  ;;  %v1278_v62 = vpop.f32.mrf.mxu3  ;;  %v1103_v5 = vpop.f32.mrf.mxu1 }
 0x12d   : > { %v1104_v39 = vadd.f32 %v1103_v5, %v1014_v22 }
 0x12e   : > { %v1279_v16 = vadd.f32 %v1278_v62, %v1190_v30  ;;  %1329 = vmatmul.bf16.vlgmr.msrb.gmra.mxu0 %v2873_v46 }
 0x12f   : > { %1418 = vmatmul.bf16.vlgmr.msrb.gmra.mxu1 %v2880_v51 }
 0x130   : > { %v1707_v31 = vmax.f32 %v1279_v16, 0.0  ;;  %1507 = vmatmul.bf16.vlgmr.msrb.gmra.mxu2 %v2882_v52 }
 0x131   : > { %1596 = vmatmul.bf16.vlgmr.msrb.gmra.mxu3 %v2884_v53 }
 0x132   : > { %1771 = vst [vmem:[%s3163_s26 + $0xf0] sm:$0xff] %v1707_v31 }
 0x133   : > { %v1192_v41 = vpop.f32.mrf.mxu2  ;;  %v1016_v6 = vpop.f32.mrf.mxu0 }
 0x134   : > { %v1193_v58 = vadd.f32 %v1192_v41, %v1104_v39  ;;  %v1281_v59 = vpop.f32.mrf.mxu3  ;;  %v1105_v60 = vpop.f32.mrf.mxu1 }
 0x135   : > { %v1106_v36 = vadd.f32 %v1105_v60, %v1016_v6 }
 0x136   : > { %v1282_v29 = vadd.f32 %v1281_v59, %v1193_v58 }
 0x138   : > { %v1709_v19 = vmax.f32 %v1282_v29, 0.0 }
 0x13a   : > { %1773 = vst [vmem:[%s3163_s26 + $0x100] sm:$0xff] %v1709_v19 }
 0x13b   : > { %v1194_v46 = vpop.f32.mrf.mxu2  ;;  %v1019_v9 = vpop.f32.mrf.mxu0 }
 0x13c   : > { %v1195_v18 = vadd.f32 %v1194_v46, %v1106_v36  ;;  %v1283_v11 = vpop.f32.mrf.mxu3  ;;  %v1108_v51 = vpop.f32.mrf.mxu1 }
 0x13d   : > { %v1109_v30 = vadd.f32 %v1108_v51, %v1019_v9 }
 0x13e   : > { %v1284_v52 = vadd.f32 %v1283_v11, %v1195_v18  ;;  %1334 = vmatmul.bf16.gmra.mxu0 %v2922_v12 }
 0x13f   : > { %1423 = vmatmul.bf16.gmra.mxu1 %v2924_v13 }
 0x140   : > { %v1711_v53 = vmax.f32 %v1284_v52, 0.0  ;;  %1512 = vmatmul.bf16.gmra.mxu2 %v2926_v14 }
 0x141   : > { %1601 = vmatmul.bf16.gmra.mxu3 %v2928_v15 }
 0x142   : > { %1775 = vst [vmem:[%s3163_s26 + $0x110] sm:$0xff] %v1711_v53 }
 0x143   : > { %v1197_v62 = vpop.f32.mrf.mxu2  ;;  %v1021_v16 = vpop.f32.mrf.mxu0 }
 0x144   : > { %v1198_v22 = vadd.f32 %v1197_v62, %v1109_v30  ;;  %v1286_v5 = vpop.f32.mrf.mxu3  ;;  %v1110_v31 = vpop.f32.mrf.mxu1 }
 0x145   : > { %v1111_v58 = vadd.f32 %v1110_v31, %v1021_v16 }
 0x146   : > { %v1287_v39 = vadd.f32 %v1286_v5, %v1198_v22 }
 0x148   : > { %v1713_v41 = vmax.f32 %v1287_v39, 0.0 }
 0x14a   : > { %1777 = vst [vmem:[%s3163_s26 + $0x120] sm:$0xff] %v1713_v41 }
 0x14b   : > { %v1199_v12 = vpop.f32.mrf.mxu2  ;;  %v1024_v60 = vpop.f32.mrf.mxu0 }
 0x14c   : > { %v1200_v59 = vadd.f32 %v1199_v12, %v1111_v58  ;;  %v1288_v6 = vpop.f32.mrf.mxu3  ;;  %v1113_v13 = vpop.f32.mrf.mxu1 }
 0x14d   : > { %v1114_v29 = vadd.f32 %v1113_v13, %v1024_v60 }
 0x14e   : > { %v1289_v14 = vadd.f32 %v1288_v6, %v1200_v59  ;;  %1339 = vmatmul.bf16.gmra.mxu0 %v2942_v24 }
 0x14f   : > { %1428 = vmatmul.bf16.gmra.mxu1 %v2944_v25 }
 0x150   : > { %v1715_v15 = vmax.f32 %v1289_v14, 0.0  ;;  %1517 = vmatmul.bf16.gmra.mxu2 %v2946_v26 }
 0x151   : > { %1606 = vmatmul.bf16.gmra.mxu3 %v2948_v27 }
 0x152   : > { %1779 = vst [vmem:[%s3163_s26 + $0x130] sm:$0xff] %v1715_v15 }
 0x153   : > { %v1202_v19 = vpop.f32.mrf.mxu2  ;;  %v1026_v18 = vpop.f32.mrf.mxu0 }
 0x154   : > { %v1203_v36 = vadd.f32 %v1202_v19, %v1114_v29  ;;  %v1291_v46 = vpop.f32.mrf.mxu3  ;;  %v1115_v11 = vpop.f32.mrf.mxu1 }
 0x155   : > { %v1116_v52 = vadd.f32 %v1115_v11, %v1026_v18 }
 0x156   : > { %v1292_v9 = vadd.f32 %v1291_v46, %v1203_v36 }
 0x158   : > { %v1717_v51 = vmax.f32 %v1292_v9, 0.0 }
 0x15a   : > { %1781 = vst [vmem:[%s3163_s26 + $0x140] sm:$0xff] %v1717_v51 }
 0x15b   : > { %v1204_v24 = vpop.f32.mrf.mxu2  ;;  %v1029_v62 = vpop.f32.mrf.mxu0 }
 0x15c   : > { %v1205_v53 = vadd.f32 %v1204_v24, %v1116_v52  ;;  %v1293_v30 = vpop.f32.mrf.mxu3  ;;  %v1118_v25 = vpop.f32.mrf.mxu1 }
 0x15d   : > { %v1119_v22 = vadd.f32 %v1118_v25, %v1029_v62 }
 0x15e   : > { %v1294_v26 = vadd.f32 %v1293_v30, %v1205_v53  ;;  %1344 = vmatmul.bf16.gmra.mxu0 %v2986_v49 }
 0x15f   : > { %1433 = vmatmul.bf16.gmra.mxu1 %v2988_v50 }
 0x160   : > { %v1719_v27 = vmax.f32 %v1294_v26, 0.0  ;;  %1522 = vmatmul.bf16.gmra.mxu2 %v2990_v54 }
 0x161   : > { %1611 = vmatmul.bf16.gmra.mxu3 %v2992_v55 }
 0x162   : > { %1783 = vst [vmem:[%s3163_s26 + $0x150] sm:$0xff] %v1719_v27 }
 0x163   : > { %v1207_v5 = vpop.f32.mrf.mxu2  ;;  %v1031_v39 = vpop.f32.mrf.mxu0 }
 0x164   : > { %v1208_v16 = vadd.f32 %v1207_v5, %v1119_v22  ;;  %v1296_v31 = vpop.f32.mrf.mxu3  ;;  %v1120_v41 = vpop.f32.mrf.mxu1 }
 0x165   : > { %v1121_v59 = vadd.f32 %v1120_v41, %v1031_v39 }
 0x166   : > { %v1297_v58 = vadd.f32 %v1296_v31, %v1208_v16 }
 0x168   : > { %v1721_v12 = vmax.f32 %v1297_v58, 0.0 }
 0x16a   : > { %1785 = vst [vmem:[%s3163_s26 + $0x160] sm:$0xff] %v1721_v12 }
 0x16b   : > { %v1209_v49 = vpop.f32.mrf.mxu2  ;;  %v1034_v13 = vpop.f32.mrf.mxu0 }
 0x16c   : > { %v1210_v6 = vadd.f32 %v1209_v49, %v1121_v59  ;;  %v1298_v60 = vpop.f32.mrf.mxu3  ;;  %v1123_v50 = vpop.f32.mrf.mxu1 }
 0x16d   : > { %v1124_v14 = vadd.f32 %v1123_v50, %v1034_v13 }
 0x16e   : > { %v1299_v54 = vadd.f32 %v1298_v60, %v1210_v6  ;;  %1349 = vmatmul.bf16.gmra.mxu0 %v3006_v0 }
 0x16f   : > { %1438 = vmatmul.bf16.gmra.mxu1 %v3008_v1 }
 0x170   : > { %v1723_v55 = vmax.f32 %v1299_v54, 0.0  ;;  %1527 = vmatmul.bf16.gmra.mxu2 %v3010_v2 }
 0x171   : > { %1616 = vmatmul.bf16.gmra.mxu3 %v3012_v3 }
 0x172   : > { %1787 = vst [vmem:[%s3163_s26 + $0x170] sm:$0xff] %v1723_v55 }
 0x173   : > { %v1212_v15 = vpop.f32.mrf.mxu2  ;;  %v1036_v36 = vpop.f32.mrf.mxu0 }
 0x174   : > { %v1213_v29 = vadd.f32 %v1212_v15, %v1124_v14  ;;  %v1301_v19 = vpop.f32.mrf.mxu3  ;;  %v1125_v46 = vpop.f32.mrf.mxu1 }
 0x175   : > { %v1126_v9 = vadd.f32 %v1125_v46, %v1036_v36 }
 0x176   : > { %v1302_v18 = vadd.f32 %v1301_v19, %v1213_v29 }
 0x178   : > { %v1725_v11 = vmax.f32 %v1302_v18, 0.0 }
 0x17a   : > { %1789 = vst [vmem:[%s3163_s26 + $0x180] sm:$0xff] %v1725_v11 }
 0x17b   : > { %v1214_v0 = vpop.f32.mrf.mxu2  ;;  %v1039_v24 = vpop.f32.mrf.mxu0 }
 0x17c   : > { %v1215_v51 = vadd.f32 %v1214_v0, %v1126_v9  ;;  %v1303_v52 = vpop.f32.mrf.mxu3  ;;  %v1128_v1 = vpop.f32.mrf.mxu1 }
 0x17d   : > { %v1129_v53 = vadd.f32 %v1128_v1, %v1039_v24 }
 0x17e   : > { %v1304_v2 = vadd.f32 %v1303_v52, %v1215_v51  ;;  %1354 = vmatmul.bf16.gmra.mxu0 %v3050_v32 }
 0x17f   : > { %1443 = vmatmul.bf16.gmra.mxu1 %v3052_v33 }
 0x180   : > { %v1727_v3 = vmax.f32 %v1304_v2, 0.0  ;;  %1532 = vmatmul.bf16.gmra.mxu2 %v3054_v34 }
 0x181   : > { %1621 = vmatmul.bf16.gmra.mxu3 %v3056_v35 }
 0x182   : > { %1791 = vst [vmem:[%s3163_s26 + $0x190] sm:$0xff] %v1727_v3 }
 0x183   : > { %v1217_v30 = vpop.f32.mrf.mxu2  ;;  %v1041_v26 = vpop.f32.mrf.mxu0 }
 0x184   : > { %v1218_v62 = vadd.f32 %v1217_v30, %v1129_v53  ;;  %v1306_v25 = vpop.f32.mrf.mxu3  ;;  %v1130_v27 = vpop.f32.mrf.mxu1 }
 0x185   : > { %v1131_v16 = vadd.f32 %v1130_v27, %v1041_v26 }
 0x186   : > { %v1307_v22 = vadd.f32 %v1306_v25, %v1218_v62 }
 0x188   : > { %v1729_v5 = vmax.f32 %v1307_v22, 0.0 }
 0x18a   : > { %1793 = vst [vmem:[%s3163_s26 + $0x1a0] sm:$0xff] %v1729_v5 }
 0x18b   : > { %v1219_v32 = vpop.f32.mrf.mxu2  ;;  %v1044_v41 = vpop.f32.mrf.mxu0 }
 0x18c   : > { %v1220_v31 = vadd.f32 %v1219_v32, %v1131_v16  ;;  %v1308_v39 = vpop.f32.mrf.mxu3  ;;  %v1133_v33 = vpop.f32.mrf.mxu1 }
 0x18d   : > { %v1134_v58 = vadd.f32 %v1133_v33, %v1044_v41 }
 0x18e   : > { %v1309_v34 = vadd.f32 %v1308_v39, %v1220_v31  ;;  %1359 = vmatmul.bf16.gmra.mxu0 %v3070_v44 }
 0x18f   : > { %1448 = vmatmul.bf16.gmra.mxu1 %v3072_v45 }
 0x190   : > { %v1731_v35 = vmax.f32 %v1309_v34, 0.0  ;;  %1537 = vmatmul.bf16.gmra.mxu2 %v3074_v47 }
 0x191   : > { %1626 = vmatmul.bf16.gmra.mxu3 %v3076_v48 }
 0x192   : > { %1795 = vst [vmem:[%s3163_s26 + $0x1b0] sm:$0xff] %v1731_v35 }
 0x193   : > { %v1222_v12 = vpop.f32.mrf.mxu2  ;;  %v1046_v6 = vpop.f32.mrf.mxu0 }
 0x194   : > { %v1223_v59 = vadd.f32 %v1222_v12, %v1134_v58  ;;  %v1311_v49 = vpop.f32.mrf.mxu3  ;;  %v1135_v60 = vpop.f32.mrf.mxu1 }
 0x195   : > { %v1136_v54 = vadd.f32 %v1135_v60, %v1046_v6 }
 0x196   : > { %v1312_v13 = vadd.f32 %v1311_v49, %v1223_v59 }
 0x198   : > { %v1733_v50 = vmax.f32 %v1312_v13, 0.0 }
 0x19a   : > { %1797 = vst [vmem:[%s3163_s26 + $0x1c0] sm:$0xff] %v1733_v50  ;;  %v3541_v50 = vld [vmem:[#allocation2_spill] sm:$0xff] }
 0x19b   : > { %v1224_v44 = vpop.f32.mrf.mxu2  ;;  %v1049_v15 = vpop.f32.mrf.mxu0 }
 0x19c   : > { %v1225_v55 = vadd.f32 %v1224_v44, %v1136_v54  ;;  %v1313_v14 = vpop.f32.mrf.mxu3  ;;  %v1138_v45 = vpop.f32.mrf.mxu1  ;;  %v3542_v54 = vld [vmem:[#allocation3_spill] sm:$0xff] }
 0x19d   : > { %v1139_v29 = vadd.f32 %v1138_v45, %v1049_v15 }
 0x19e   : > { %v1314_v47 = vadd.f32 %v1313_v14, %v1225_v55  ;;  %1364 = vmatmul.bf16.gmra.mxu0 %v3111_v17 }
 0x19f   : > { %1453 = vmatmul.bf16.gmra.mxu1 %v3116_v20 }
 0x1a0   : > { %v1735_v48 = vmax.f32 %v1314_v47, 0.0  ;;  %1542 = vmatmul.bf16.gmra.mxu2 %v3118_v21 }
 0x1a1   : > { %1631 = vmatmul.bf16.gmra.mxu3 %v3120_v23 }
 0x1a2   : > { %1799 = vst [vmem:[%s3163_s26 + $0x1d0] sm:$0xff] %v1735_v48 }
 0x1a3   : > { %v1227_v19 = vpop.f32.mrf.mxu2  ;;  %v1051_v18 = vpop.f32.mrf.mxu0 }
 0x1a4   : > { %v1228_v36 = vadd.f32 %v1227_v19, %v1139_v29  ;;  %v1316_v46 = vpop.f32.mrf.mxu3  ;;  %v1140_v11 = vpop.f32.mrf.mxu1 }
 0x1a5   : > { %v1141_v51 = vadd.f32 %v1140_v11, %v1051_v18  ;;  %v3543_v11 = vld [vmem:[#allocation4_spill] sm:$0xff] }
 0x1a6   : > { %v1317_v9 = vadd.f32 %v1316_v46, %v1228_v36 }
 0x1a8   : > { %v1737_v0 = vmax.f32 %v1317_v9, 0.0 }
 0x1aa   : > { %1801 = vst [vmem:[%s3163_s26 + $0x1e0] sm:$0xff] %v1737_v0 }
 0x1ab   : > { %v1229_v17 = vpop.f32.mrf.mxu2  ;;  %v1330_v1 = vpop.f32.mrf.mxu0 }
 0x1ac   : > { %v1230_v52 = vadd.f32 %v1229_v17, %v1141_v51  ;;  %v1318_v24 = vpop.f32.mrf.mxu3  ;;  %v1419_v20 = vpop.f32.mrf.mxu1  ;;  %v3544_v51 = vld [vmem:[#allocation5_spill] sm:$0xff]  ;;  %v3545_v17 = vld [vmem:[#allocation6_spill] sm:$0xff] }
 0x1ad   : > { %v1420_v2 = vadd.f32 %v1419_v20, %v1330_v1 }
 0x1ae   : > { %v1319_v21 = vadd.f32 %v1318_v24, %v1230_v52  ;;  %1369 = vmatmul.bf16.gmra.mxu0 %v3134_v40  ;;  %v3546_v52 = vld [vmem:[#allocation7_spill] sm:$0xff] }
 0x1af   : > { %1458 = vmatmul.bf16.gmra.mxu1 %v3136_v42 }
 0x1b0   : > { %v1739_v23 = vmax.f32 %v1319_v21, 0.0  ;;  %1547 = vmatmul.bf16.gmra.mxu2 %v3138_v43 }
 0x1b1   : > { %1636 = vmatmul.bf16.gmra.mxu3 %v3140_v57 }
 0x1b2   : > { %1803 = vst [vmem:[%s3163_s26 + $0x1f0] sm:$0xff] %v1739_v23 }
 0x1b3   : > { %v1508_v3 = vpop.f32.mrf.mxu2  ;;  %v1332_v62 = vpop.f32.mrf.mxu0 }
 0x1b4   : > { %v1509_v53 = vadd.f32 %v1508_v3, %v1420_v2  ;;  %v1597_v30 = vpop.f32.mrf.mxu3  ;;  %v1421_v25 = vpop.f32.mrf.mxu1 }
 0x1b5   : > { %v1422_v22 = vadd.f32 %v1421_v25, %v1332_v62 }
 0x1b6   : > { %v1598_v26 = vadd.f32 %v1597_v30, %v1509_v53 }
 0x1b8   : > { %v1678_v27 = vmax.f32 %v1598_v26, 0.0 }
 0x1ba   : > { %1742 = vst [vmem:[%s3163_s26 + $0x8] sm:$0xff] %v1678_v27 }
 0x1bb   : > { %v1510_v40 = vpop.f32.mrf.mxu2  ;;  %v1335_v32 = vpop.f32.mrf.mxu0 }
 0x1bc   : > { %v1511_v5 = vadd.f32 %v1510_v40, %v1422_v22  ;;  %v1599_v16 = vpop.f32.mrf.mxu3  ;;  %v1424_v42 = vpop.f32.mrf.mxu1  ;;  %v3547_v40 = vld [vmem:[#allocation8_spill] sm:$0xff] }
 0x1bd   : > { %v1425_v31 = vadd.f32 %v1424_v42, %v1335_v32  ;;  %v3548_v32 = vld [vmem:[#allocation9_spill] sm:$0xff]  ;;  %v3549_v42 = vld [vmem:[#allocation10_spill] sm:$0xff] }
 0x1be   : > { %v1600_v43 = vadd.f32 %v1599_v16, %v1511_v5  ;;  %1374 = vmatmul.bf16.gmra.mxu0 %v3183_v56 }
 0x1bf   : > { %1463 = vmatmul.bf16.gmra.mxu1 %v3188_v63 }
 0x1c0   : > { %v1680_v57 = vmax.f32 %v1600_v43, 0.0  ;;  %1552 = vmatmul.bf16.gmra.mxu2 %v3190_v4  ;;  %v3550_v43 = vld [vmem:[#allocation11_spill] sm:$0xff] }
 0x1c1   : > { %1641 = vmatmul.bf16.gmra.mxu3 %v3192_v7 }
 0x1c2   : > { %1744 = vst [vmem:[%s3163_s26 + $0x18] sm:$0xff] %v1680_v57 }
 0x1c3   : > { %v1513_v39 = vpop.f32.mrf.mxu2  ;;  %v1337_v34 = vpop.f32.mrf.mxu0 }
 0x1c4   : > { %v1514_v41 = vadd.f32 %v1513_v39, %v1425_v31  ;;  %v1602_v33 = vpop.f32.mrf.mxu3  ;;  %v1426_v35 = vpop.f32.mrf.mxu1 }
 0x1c5   : > { %v1427_v59 = vadd.f32 %v1426_v35, %v1337_v34 }
 0x1c6   : > { %v1603_v58 = vadd.f32 %v1602_v33, %v1514_v41 }
 0x1c8   : > { %v1682_v12 = vmax.f32 %v1603_v58, 0.0 }
 0x1ca   : > { %1746 = vst [vmem:[%s3163_s26 + $0x28] sm:$0xff] %v1682_v12 }
 0x1cb   : > { %v1515_v56 = vpop.f32.mrf.mxu2  ;;  %v1340_v60 = vpop.f32.mrf.mxu0 }
 0x1cc   : > { %v1516_v49 = vadd.f32 %v1515_v56, %v1427_v59  ;;  %v1604_v6 = vpop.f32.mrf.mxu3  ;;  %v1429_v63 = vpop.f32.mrf.mxu1 }
 0x1cd   : > { %v1430_v13 = vadd.f32 %v1429_v63, %v1340_v60  ;;  %v3551_v63 = vld [vmem:[#allocation12_spill] sm:$0xff] }
 0x1ce   : > { %v1605_v4 = vadd.f32 %v1604_v6, %v1516_v49  ;;  %1379 = vmatmul.bf16.gmra.mxu0 %v3208_v61 }
 0x1cf   : > { %1468 = vmatmul.bf16.gmra.mxu1 %v3210_v8 }
 0x1d0   : > { %v1684_v7 = vmax.f32 %v1605_v4, 0.0  ;;  %1557 = vmatmul.bf16.gmra.mxu2 %v3541_v50  ;;  %v3553_v50 = vld [vmem:[#allocation14_spill] sm:$0xff] }
 0x1d1   : > { %1646 = vmatmul.bf16.gmra.mxu3 %v3542_v54  ;;  %v3554_v54 = vld [vmem:[#allocation15_spill] sm:$0xff] }
 0x1d2   : > { %1748 = vst [vmem:[%s3163_s26 + $0x38] sm:$0xff] %v1684_v7 }
 0x1d3   : > { %v1518_v44 = vpop.f32.mrf.mxu2  ;;  %v1342_v15 = vpop.f32.mrf.mxu0 }
 0x1d4   : > { %v1519_v55 = vadd.f32 %v1518_v44, %v1430_v13  ;;  %v1607_v14 = vpop.f32.mrf.mxu3  ;;  %v1431_v45 = vpop.f32.mrf.mxu1  ;;  %v3552_v13 = vld [vmem:[#allocation13_spill] sm:$0xff] }
 0x1d5   : > { %v1432_v29 = vadd.f32 %v1431_v45, %v1342_v15 }
 0x1d6   : > { %v1608_v47 = vadd.f32 %v1607_v14, %v1519_v55 }
 0x1d8   : > { %v1686_v48 = vmax.f32 %v1608_v47, 0.0 }
 0x1da   : > { %1750 = vst [vmem:[%s3163_s26 + $0x48] sm:$0xff] %v1686_v48 }
 0x1db   : > { %v1520_v61 = vpop.f32.mrf.mxu2  ;;  %v1345_v46 = vpop.f32.mrf.mxu0 }
 0x1dc   : > { %v1521_v19 = vadd.f32 %v1520_v61, %v1432_v29  ;;  %v1609_v36 = vpop.f32.mrf.mxu3  ;;  %v1434_v8 = vpop.f32.mrf.mxu1 }
 0x1dd   : > { %v1435_v0 = vadd.f32 %v1434_v8, %v1345_v46 }
 0x1de   : > { %v1610_v18 = vadd.f32 %v1609_v36, %v1521_v19  ;;  %1384 = vmatmul.bf16.gmra.mxu0 %v3543_v11  ;;  %v3555_v11 = vld [vmem:[#allocation16_spill] sm:$0xff] }
 0x1df   : > { %1473 = vmatmul.bf16.gmra.mxu1 %v3544_v51  ;;  %v3556_v51 = vld [vmem:[#allocation17_spill] sm:$0xff] }
 0x1e0   : > { %v1688_v9 = vmax.f32 %v1610_v18, 0.0  ;;  %1562 = vmatmul.bf16.gmra.mxu2 %v3545_v17  ;;  %v3557_v17 = vld [vmem:[#allocation18_spill] sm:$0xff] }
 0x1e1   : > { %1651 = vmatmul.bf16.gmra.mxu3 %v3546_v52  ;;  %v3558_v52 = vld [vmem:[#allocation19_spill] sm:$0xff] }
 0x1e2   : > { %1752 = vst [vmem:[%s3163_s26 + $0x58] sm:$0xff] %v1688_v9 }
 0x1e3   : > { %v1523_v24 = vpop.f32.mrf.mxu2  ;;  %v1347_v21 = vpop.f32.mrf.mxu0 }
 0x1e4   : > { %v1524_v1 = vadd.f32 %v1523_v24, %v1435_v0  ;;  %v1612_v20 = vpop.f32.mrf.mxu3  ;;  %v1436_v23 = vpop.f32.mrf.mxu1 }
 0x1e5   : > { %v1437_v53 = vadd.f32 %v1436_v23, %v1347_v21 }
 0x1e6   : > { %v1613_v2 = vadd.f32 %v1612_v20, %v1524_v1 }
 0x1e8   : > { %v1690_v3 = vmax.f32 %v1613_v2, 0.0 }
 0x1ea   : > { %1754 = vst [vmem:[%s3163_s26 + $0x68] sm:$0xff] %v1690_v3 }
 0x1eb   : > { %v1525_v30 = vpop.f32.mrf.mxu2  ;;  %v1350_v26 = vpop.f32.mrf.mxu0 }
 0x1ec   : > { %v1526_v62 = vadd.f32 %v1525_v30, %v1437_v53  ;;  %v1614_v25 = vpop.f32.mrf.mxu3  ;;  %v1439_v27 = vpop.f32.mrf.mxu1 }
 0x1ed   : > { %v1440_v16 = vadd.f32 %v1439_v27, %v1350_v26 }
 0x1ee   : > { %v1615_v22 = vadd.f32 %v1614_v25, %v1526_v62  ;;  %1389 = vmatmul.bf16.gmra.mxu0 %v3547_v40 }
 0x1ef   : > { %1478 = vmatmul.bf16.gmra.mxu1 %v3548_v32 }
 0x1f0   : > { %v1692_v5 = vmax.f32 %v1615_v22, 0.0  ;;  %1567 = vmatmul.bf16.gmra.mxu2 %v3549_v42 }
 0x1f1   : > { %1656 = vmatmul.bf16.gmra.mxu3 %v3550_v43 }
 0x1f2   : > { %1756 = vst [vmem:[%s3163_s26 + $0x78] sm:$0xff] %v1692_v5 }
 0x1f3   : > { %v1528_v57 = vpop.f32.mrf.mxu2  ;;  %v1352_v41 = vpop.f32.mrf.mxu0 }
 0x1f4   : > { %v1529_v31 = vadd.f32 %v1528_v57, %v1440_v16  ;;  %v1617_v39 = vpop.f32.mrf.mxu3  ;;  %v1441_v33 = vpop.f32.mrf.mxu1 }
 0x1f5   : > { %v1442_v58 = vadd.f32 %v1441_v33, %v1352_v41 }
 0x1f6   : > { %v1618_v34 = vadd.f32 %v1617_v39, %v1529_v31 }
 0x1f8   : > { %v1694_v35 = vmax.f32 %v1618_v34, 0.0 }
 0x1fa   : > { %1758 = vst [vmem:[%s3163_s26 + $0x88] sm:$0xff] %v1694_v35 }
 0x1fb   : > { %v1530_v12 = vpop.f32.mrf.mxu2  ;;  %v1355_v49 = vpop.f32.mrf.mxu0 }
 0x1fc   : > { %v1531_v59 = vadd.f32 %v1530_v12, %v1442_v58  ;;  %v1619_v56 = vpop.f32.mrf.mxu3  ;;  %v1444_v6 = vpop.f32.mrf.mxu1 }
 0x1fd   : > { %v1445_v7 = vadd.f32 %v1444_v6, %v1355_v49 }
 0x1fe   : > { %v1620_v60 = vadd.f32 %v1619_v56, %v1531_v59  ;;  %1394 = vmatmul.bf16.gmra.mxu0 %v3551_v63 }
 0x1ff   : > { %1483 = vmatmul.bf16.gmra.mxu1 %v3552_v13 }
 0x200   : > { %v1696_v4 = vmax.f32 %v1620_v60, 0.0  ;;  %1572 = vmatmul.bf16.gmra.mxu2 %v3553_v50 }
 0x201   : > { %1661 = vmatmul.bf16.gmra.mxu3 %v3554_v54 }
 0x202   : > { %1760 = vst [vmem:[%s3163_s26 + $0x98] sm:$0xff] %v1696_v4 }
 0x203   : > { %v1533_v44 = vpop.f32.mrf.mxu2  ;;  %v1357_v15 = vpop.f32.mrf.mxu0 }
 0x204   : > { %v1534_v55 = vadd.f32 %v1533_v44, %v1445_v7  ;;  %v1622_v14 = vpop.f32.mrf.mxu3  ;;  %v1446_v45 = vpop.f32.mrf.mxu1 }
 0x205   : > { %v1447_v29 = vadd.f32 %v1446_v45, %v1357_v15 }
 0x206   : > { %v1623_v47 = vadd.f32 %v1622_v14, %v1534_v55 }
 0x208   : > { %v1698_v48 = vmax.f32 %v1623_v47, 0.0 }
 0x20a   : > { %1762 = vst [vmem:[%s3163_s26 + $0xa8] sm:$0xff] %v1698_v48 }
 0x20b   : > { %v1535_v61 = vpop.f32.mrf.mxu2  ;;  %v1360_v46 = vpop.f32.mrf.mxu0 }
 0x20c   : > { %v1536_v19 = vadd.f32 %v1535_v61, %v1447_v29  ;;  %v1624_v36 = vpop.f32.mrf.mxu3  ;;  %v1449_v8 = vpop.f32.mrf.mxu1 }
 0x20d   : > { %v1450_v0 = vadd.f32 %v1449_v8, %v1360_v46 }
 0x20e   : > { %v1625_v18 = vadd.f32 %v1624_v36, %v1536_v19  ;;  %1399 = vmatmul.bf16.gmra.mxu0 %v3555_v11 }
 0x20f   : > { %1488 = vmatmul.bf16.gmra.mxu1 %v3556_v51 }
 0x210   : > { %v1700_v9 = vmax.f32 %v1625_v18, 0.0  ;;  %1577 = vmatmul.bf16.gmra.mxu2 %v3557_v17 }
 0x211   : > { %1666 = vmatmul.bf16.gmra.mxu3 %v3558_v52 }
 0x212   : > { %1764 = vst [vmem:[%s3163_s26 + $0xb8] sm:$0xff] %v1700_v9 }
 0x213   : > { %v1538_v24 = vpop.f32.mrf.mxu2  ;;  %v1362_v21 = vpop.f32.mrf.mxu0 }
 0x214   : > { %v1539_v1 = vadd.f32 %v1538_v24, %v1450_v0  ;;  %v1627_v20 = vpop.f32.mrf.mxu3  ;;  %v1451_v23 = vpop.f32.mrf.mxu1 }
 0x215   : > { %v1452_v53 = vadd.f32 %v1451_v23, %v1362_v21 }
 0x216   : > { %v1628_v2 = vadd.f32 %v1627_v20, %v1539_v1 }
 0x218   : > { %v1702_v3 = vmax.f32 %v1628_v2, 0.0 }
 0x21a   : > { %1766 = vst [vmem:[%s3163_s26 + $0xc8] sm:$0xff] %v1702_v3 }
 0x21b   : > { %v1540_v30 = vpop.f32.mrf.mxu2  ;;  %v1365_v26 = vpop.f32.mrf.mxu0 }
 0x21c   : > { %v1541_v62 = vadd.f32 %v1540_v30, %v1452_v53  ;;  %v1629_v25 = vpop.f32.mrf.mxu3  ;;  %v1454_v27 = vpop.f32.mrf.mxu1 }
 0x21d   : > { %v1455_v5 = vadd.f32 %v1454_v27, %v1365_v26 }
 0x21e   : > { %v1630_v22 = vadd.f32 %v1629_v25, %v1541_v62  ;;  %1404 = vmatmul.bf16.gmra.mxu0 %v3366_v28 }
 0x21f   : > { %1493 = vmatmul.bf16.gmra.mxu1 %v3368_v10 }
 0x220   : > { %v1704_v40 = vmax.f32 %v1630_v22, 0.0  ;;  %1582 = vmatmul.bf16.gmra.mxu2 %v3370_v37 }
 0x221   : > { %1671 = vmatmul.bf16.gmra.mxu3 %v3372_v38 }
 0x222   : > { %1768 = vst [vmem:[%s3163_s26 + $0xd8] sm:$0xff] %v1704_v40 }
 0x223   : > { %v1543_v16 = vpop.f32.mrf.mxu2  ;;  %v1367_v43 = vpop.f32.mrf.mxu0 }
 0x224   : > { %v1544_v32 = vadd.f32 %v1543_v16, %v1455_v5  ;;  %v1632_v42 = vpop.f32.mrf.mxu3  ;;  %v1456_v57 = vpop.f32.mrf.mxu1 }
 0x225   : > { %v1457_v41 = vadd.f32 %v1456_v57, %v1367_v43 }
 0x226   : > { %v1633_v31 = vadd.f32 %v1632_v42, %v1544_v32 }
 0x228   : > { %v1706_v39 = vmax.f32 %v1633_v31, 0.0 }
 0x22a   : > { %1770 = vst [vmem:[%s3163_s26 + $0xe8] sm:$0xff] %v1706_v39 }
 0x22b   : > { %v1545_v28 = vpop.f32.mrf.mxu2  ;;  %v1370_v10 = vpop.f32.mrf.mxu0 }
 0x22c   : > { %v1546_v33 = vadd.f32 %v1545_v28, %v1457_v41  ;;  %v1634_v34 = vpop.f32.mrf.mxu3  ;;  %v1459_v35 = vpop.f32.mrf.mxu1 }
 0x22d   : > { %v1460_v38 = vadd.f32 %v1459_v35, %v1370_v10 }
 0x22e   : > { %v1635_v37 = vadd.f32 %v1634_v34, %v1546_v33 }
 0x230   : > { %v1708_v58 = vmax.f32 %v1635_v37, 0.0 }
 0x232   : > { %1772 = vst [vmem:[%s3163_s26 + $0xf8] sm:$0xff] %v1708_v58 }
 0x233   : > { %v1548_v12 = vpop.f32.mrf.mxu2  ;;  %v1372_v49 = vpop.f32.mrf.mxu0 }
 0x234   : > { %v1549_v59 = vadd.f32 %v1548_v12, %v1460_v38  ;;  %v1637_v56 = vpop.f32.mrf.mxu3  ;;  %v1461_v6 = vpop.f32.mrf.mxu1 }
 0x235   : > { %v1462_v4 = vadd.f32 %v1461_v6, %v1372_v49 }
 0x236   : > { %v1638_v60 = vadd.f32 %v1637_v56, %v1549_v59 }
 0x238   : > { %v1710_v63 = vmax.f32 %v1638_v60, 0.0 }
 0x23a   : > { %1774 = vst [vmem:[%s3163_s26 + $0x108] sm:$0xff] %v1710_v63 }
 0x23b   : > { %v1550_v7 = vpop.f32.mrf.mxu2  ;;  %v1375_v54 = vpop.f32.mrf.mxu0 }
 0x23c   : > { %v1551_v13 = vadd.f32 %v1550_v7, %v1462_v4  ;;  %v1639_v50 = vpop.f32.mrf.mxu3  ;;  %v1464_v44 = vpop.f32.mrf.mxu1 }
 0x23d   : > { %v1465_v15 = vadd.f32 %v1464_v44, %v1375_v54 }
 0x23e   : > { %v1640_v55 = vadd.f32 %v1639_v50, %v1551_v13 }
 0x240   : > { %v1712_v14 = vmax.f32 %v1640_v55, 0.0 }
 0x242   : > { %1776 = vst [vmem:[%s3163_s26 + $0x118] sm:$0xff] %v1712_v14 }
 0x243   : > { %v1553_v45 = vpop.f32.mrf.mxu2  ;;  %v1377_v29 = vpop.f32.mrf.mxu0 }
 0x244   : > { %v1554_v47 = vadd.f32 %v1553_v45, %v1465_v15  ;;  %v1642_v48 = vpop.f32.mrf.mxu3  ;;  %v1466_v61 = vpop.f32.mrf.mxu1 }
 0x245   : > { %v1467_v46 = vadd.f32 %v1466_v61, %v1377_v29 }
 0x246   : > { %v1643_v19 = vadd.f32 %v1642_v48, %v1554_v47 }
 0x248   : > { %v1714_v36 = vmax.f32 %v1643_v19, 0.0 }
 0x24a   : > { %1778 = vst [vmem:[%s3163_s26 + $0x128] sm:$0xff] %v1714_v36 }
 0x24b   : > { %v1555_v8 = vpop.f32.mrf.mxu2  ;;  %v1380_v9 = vpop.f32.mrf.mxu0 }
 0x24c   : > { %v1556_v18 = vadd.f32 %v1555_v8, %v1467_v46  ;;  %v1644_v11 = vpop.f32.mrf.mxu3  ;;  %v1469_v0 = vpop.f32.mrf.mxu1 }
 0x24d   : > { %v1470_v52 = vadd.f32 %v1469_v0, %v1380_v9 }
 0x24e   : > { %v1645_v51 = vadd.f32 %v1644_v11, %v1556_v18 }
 0x250   : > { %v1716_v17 = vmax.f32 %v1645_v51, 0.0 }
 0x252   : > { %1780 = vst [vmem:[%s3163_s26 + $0x138] sm:$0xff] %v1716_v17 }
 0x253   : > { %v1558_v24 = vpop.f32.mrf.mxu2  ;;  %v1382_v21 = vpop.f32.mrf.mxu0 }
 0x254   : > { %v1559_v1 = vadd.f32 %v1558_v24, %v1470_v52  ;;  %v1647_v20 = vpop.f32.mrf.mxu3  ;;  %v1471_v23 = vpop.f32.mrf.mxu1 }
 0x255   : > { %v1472_v53 = vadd.f32 %v1471_v23, %v1382_v21 }
 0x256   : > { %v1648_v2 = vadd.f32 %v1647_v20, %v1559_v1 }
 0x258   : > { %v1718_v3 = vmax.f32 %v1648_v2, 0.0 }
 0x25a   : > { %1782 = vst [vmem:[%s3163_s26 + $0x148] sm:$0xff] %v1718_v3 }
 0x25b   : > { %v1560_v30 = vpop.f32.mrf.mxu2  ;;  %v1385_v26 = vpop.f32.mrf.mxu0 }
 0x25c   : > { %v1561_v62 = vadd.f32 %v1560_v30, %v1472_v53  ;;  %v1649_v25 = vpop.f32.mrf.mxu3  ;;  %v1474_v27 = vpop.f32.mrf.mxu1 }
 0x25d   : > { %v1475_v5 = vadd.f32 %v1474_v27, %v1385_v26 }
 0x25e   : > { %v1650_v22 = vadd.f32 %v1649_v25, %v1561_v62 }
 0x260   : > { %v1720_v40 = vmax.f32 %v1650_v22, 0.0 }
 0x262   : > { %1784 = vst [vmem:[%s3163_s26 + $0x158] sm:$0xff] %v1720_v40 }
 0x263   : > { %v1563_v16 = vpop.f32.mrf.mxu2  ;;  %v1387_v43 = vpop.f32.mrf.mxu0 }
 0x264   : > { %v1564_v32 = vadd.f32 %v1563_v16, %v1475_v5  ;;  %v1652_v42 = vpop.f32.mrf.mxu3  ;;  %v1476_v57 = vpop.f32.mrf.mxu1 }
 0x265   : > { %v1477_v41 = vadd.f32 %v1476_v57, %v1387_v43 }
 0x266   : > { %v1653_v31 = vadd.f32 %v1652_v42, %v1564_v32 }
 0x268   : > { %v1722_v39 = vmax.f32 %v1653_v31, 0.0 }
 0x26a   : > { %1786 = vst [vmem:[%s3163_s26 + $0x168] sm:$0xff] %v1722_v39 }
 0x26b   : > { %v1565_v28 = vpop.f32.mrf.mxu2  ;;  %v1390_v10 = vpop.f32.mrf.mxu0 }
 0x26c   : > { %v1566_v33 = vadd.f32 %v1565_v28, %v1477_v41  ;;  %v1654_v34 = vpop.f32.mrf.mxu3  ;;  %v1479_v35 = vpop.f32.mrf.mxu1 }
 0x26d   : > { %v1480_v38 = vadd.f32 %v1479_v35, %v1390_v10 }
 0x26e   : > { %v1655_v37 = vadd.f32 %v1654_v34, %v1566_v33 }
 0x270   : > { %v1724_v58 = vmax.f32 %v1655_v37, 0.0 }
 0x272   : > { %1788 = vst [vmem:[%s3163_s26 + $0x178] sm:$0xff] %v1724_v58 }
 0x273   : > { %v1568_v12 = vpop.f32.mrf.mxu2  ;;  %v1392_v49 = vpop.f32.mrf.mxu0 }
 0x274   : > { %v1569_v59 = vadd.f32 %v1568_v12, %v1480_v38  ;;  %v1657_v56 = vpop.f32.mrf.mxu3  ;;  %v1481_v6 = vpop.f32.mrf.mxu1 }
 0x275   : > { %v1482_v4 = vadd.f32 %v1481_v6, %v1392_v49 }
 0x276   : > { %v1658_v60 = vadd.f32 %v1657_v56, %v1569_v59 }
 0x278   : > { %v1726_v63 = vmax.f32 %v1658_v60, 0.0 }
 0x27a   : > { %1790 = vst [vmem:[%s3163_s26 + $0x188] sm:$0xff] %v1726_v63 }
 0x27b   : > { %v1570_v7 = vpop.f32.mrf.mxu2  ;;  %v1395_v54 = vpop.f32.mrf.mxu0 }
 0x27c   : > { %v1571_v13 = vadd.f32 %v1570_v7, %v1482_v4  ;;  %v1659_v50 = vpop.f32.mrf.mxu3  ;;  %v1484_v44 = vpop.f32.mrf.mxu1 }
 0x27d   : > { %v1485_v15 = vadd.f32 %v1484_v44, %v1395_v54 }
 0x27e   : > { %v1660_v55 = vadd.f32 %v1659_v50, %v1571_v13 }
 0x280   : > { %v1728_v14 = vmax.f32 %v1660_v55, 0.0 }
 0x282   : > { %1792 = vst [vmem:[%s3163_s26 + $0x198] sm:$0xff] %v1728_v14 }
 0x283   : > { %v1573_v45 = vpop.f32.mrf.mxu2  ;;  %v1397_v29 = vpop.f32.mrf.mxu0 }
 0x284   : > { %v1574_v47 = vadd.f32 %v1573_v45, %v1485_v15  ;;  %v1662_v48 = vpop.f32.mrf.mxu3  ;;  %v1486_v61 = vpop.f32.mrf.mxu1 }
 0x285   : > { %v1487_v46 = vadd.f32 %v1486_v61, %v1397_v29 }
 0x286   : > { %v1663_v19 = vadd.f32 %v1662_v48, %v1574_v47 }
 0x288   : > { %v1730_v36 = vmax.f32 %v1663_v19, 0.0 }
 0x28a   : > { %1794 = vst [vmem:[%s3163_s26 + $0x1a8] sm:$0xff] %v1730_v36 }
 0x28b   : > { %v1575_v8 = vpop.f32.mrf.mxu2  ;;  %v1400_v9 = vpop.f32.mrf.mxu0 }
 0x28c   : > { %v1576_v18 = vadd.f32 %v1575_v8, %v1487_v46  ;;  %v1664_v11 = vpop.f32.mrf.mxu3  ;;  %v1489_v0 = vpop.f32.mrf.mxu1 }
 0x28d   : > { %v1490_v52 = vadd.f32 %v1489_v0, %v1400_v9 }
 0x28e   : > { %v1665_v51 = vadd.f32 %v1664_v11, %v1576_v18 }
 0x290   : > { %v1732_v17 = vmax.f32 %v1665_v51, 0.0 }
 0x292   : > { %1796 = vst [vmem:[%s3163_s26 + $0x1b8] sm:$0xff] %v1732_v17 }
 0x293   : > { %v1578_v24 = vpop.f32.mrf.mxu2  ;;  %v1402_v21 = vpop.f32.mrf.mxu0 }
 0x294   : > { %v1579_v1 = vadd.f32 %v1578_v24, %v1490_v52  ;;  %v1667_v20 = vpop.f32.mrf.mxu3  ;;  %v1491_v23 = vpop.f32.mrf.mxu1 }
 0x295   : > { %v1492_v53 = vadd.f32 %v1491_v23, %v1402_v21 }
 0x296   : > { %v1668_v2 = vadd.f32 %v1667_v20, %v1579_v1 }
 0x298   : > { %v1734_v3 = vmax.f32 %v1668_v2, 0.0 }
 0x29a   : > { %1798 = vst [vmem:[%s3163_s26 + $0x1c8] sm:$0xff] %v1734_v3 }
 0x29b   : > { %v1580_v30 = vpop.f32.mrf.mxu2  ;;  %v1405_v26 = vpop.f32.mrf.mxu0 }
 0x29c   : > { %v1581_v62 = vadd.f32 %v1580_v30, %v1492_v53  ;;  %v1669_v25 = vpop.f32.mrf.mxu3  ;;  %v1494_v27 = vpop.f32.mrf.mxu1 }
 0x29d   : > { %v1495_v5 = vadd.f32 %v1494_v27, %v1405_v26 }
 0x29e   : > { %v1670_v22 = vadd.f32 %v1669_v25, %v1581_v62 }
 0x2a0   : > { %v1736_v40 = vmax.f32 %v1670_v22, 0.0 }
 0x2a2   : > { %1800 = vst [vmem:[%s3163_s26 + $0x1d8] sm:$0xff] %v1736_v40 }
 0x2a3   : > { %v1583_v16 = vpop.f32.mrf.mxu2  ;;  %v1407_v57 = vpop.f32.mrf.mxu0 }
 0x2a4   : > { %v1584_v32 = vadd.f32 %v1583_v16, %v1495_v5  ;;  %v1672_v42 = vpop.f32.mrf.mxu3  ;;  %v1496_v31 = vpop.f32.mrf.mxu1 }
 0x2a5   : > { %v1497_v41 = vadd.f32 %v1496_v31, %v1407_v57 }
 0x2a6   : > { %v1673_v43 = vadd.f32 %v1672_v42, %v1584_v32 }
 0x2a8   : > { %v1738_v39 = vmax.f32 %v1673_v43, 0.0 }
 0x2aa   : > { %1802 = vst [vmem:[%s3163_s26 + $0x1e8] sm:$0xff] %v1738_v39 }
 0x2ab   : > { %v1585_v28 = vpop.f32.mrf.mxu2 }
 0x2ac   : > { %v1586_v33 = vadd.f32 %v1585_v28, %v1497_v41  ;;  %v1674_v34 = vpop.f32.mrf.mxu3 }
 0x2ae   : > { %v1675_v10 = vadd.f32 %v1674_v34, %v1586_v33 }
 0x2b0   : > { %v1740_v35 = vmax.f32 %v1675_v10, 0.0 }
 0x2b2   : > { %1804 = vst [vmem:[%s3163_s26 + $0x1f8] sm:$0xff] %v1740_v35 }
 0x2b3 PF: > { %s12_s11 = sadd.s32 1, %s2606_s11   ;;  %s3559_s9 = smov %s2602_s10 }
 0x2b4   : > { %p9_p5 = scmp.ge.s32.totalorder %s12_s11, 5   ;;  %s3560_s10 = smov %s3562_s12 }
 0x2b6   :  { %11 = sbr.rel (!%p9_p5) target bundleno = 2 (0x2), region = 61 }

// kernel: generator_forward.7
= control target key start
LH: loop header
LB: loop body
LE: loop exit
PB: predicated region body
PF: predicated region fallthrough
CT: control target
= control target key end

     0   :  { %s1018_s9 = smov 0   ;;  %s1020_s10 = smov 0   ;;  %s1240_s0 = inlined_call_operand.vmem [shape: bf16[16,256], index: 0, kind: input, shape index: {}]   ;;  %s1241_s1 = inlined_call_operand.vmem [shape: bf16[256,2304], index: 1, kind: input, shape index: {}]   ;;  %s1242_s2 = inlined_call_operand.vmem [shape: f32[16,2304], index: 2, kind: output, shape index: {}]  }
   0x1   :  { %s1022_s11 = smov 0   ;;  %s1024_s12 = smov 0  }
   0x2   :  { %s1026_s13 = smov 0  }
   0x3 LB: > { %s21_s14 = sadd.s32 1, %s997_s12  ;;  %s727_s15 = sadd.s32 4294967295, %s1001_s13   ;;  %s1001_s13 = sphi %s1026_s13, %s12_s13   ;;  %s997_s12 = sphi %s1024_s12, %s1247_s12   ;;  %s993_s11 = sphi %s1022_s11, %s1246_s11   ;;  %s989_s10 = sphi %s1020_s10, %s1245_s10   ;;  %s985_s9 = sphi %s1018_s9, %s1244_s9  }
   0x4   : > { %p22_p0 = scmp.ge.s32.totalorder %s21_s14, 9  ;;  %p64_p1 = scmp.ne.s32.totalorder %s989_s10, %s985_s9 }
   0x5   : > { %p65_p2 = scmp.eq.s32.totalorder %s1001_s13, 0  ;;  %p96_p4 = scmp.eq.s32.totalorder %s727_s15, 8 }
   0x6   : > { %s1249_s14 = smov (%p22_p0, %s21_s14), 0  ;;  %s57_s17 = sadd.s32 1, %s989_s10 }
   0x7   : > { %p66_p3 = por %p65_p2, %p64_p1  ;;  %s54_s16 = ssub.s32 %s997_s12, %s1249_s14 }
   0x8   : > { %p55_p5 = scmp.eq.s32.totalorder %s54_s16, 0  ;;  %p1053_p6 = por %p96_p4, %p64_p1 }
   0x9   : > { %p731_p7 = scmp.ge.s32.totalorder %s1001_s13, 9 }
   0xa   : > { %s1058_s19 = scalar_select %p55_p5, %s989_s10, %s57_s17  }
   0xb   : > { %128 = sbr.rel (%p731_p7) target bundleno = 52 (0x34), region = 20 }
  0x10   : > { %131 = sbr.rel (!%p66_p3) target bundleno = 52 (0x34), region = 24  ;;  %s133_s20 = sand.u32 (%p66_p3), 1, %s989_s10  }
  0x11   : > { %s879_s21 = sshll.u32 (%p66_p3), %s997_s12, 3  ;;  %s732_s22 = sshll.u32 (%p66_p3), %s133_s20, 8 }
  0x12   : > { %s1066_s25 = scalar_lea.vmem (%p66_p3), %s1241_s1, %s879_s21  ;;  %s1071_s26 = scalar_lea.vmem (%p66_p3), [#allocation2], %s732_s22 }
  0x13   : > { %v229_v0 = vld [vmem:[%s1066_s25] sm:$0xff] (%p66_p3)  ;;  %v231_v1 = vld [vmem:[%s1066_s25 + $0x48] sm:$0xff] (%p66_p3)  ;;  %v233_v2 = vld [vmem:[%s1066_s25 + $0x90] sm:$0xff] (%p66_p3) }
  0x14   : > { %230 = vst [vmem:[%s1071_s26] sm:$0xff] (%p66_p3), %v229_v0  ;;  %v235_v3 = vld [vmem:[%s1066_s25 + $0xd8] sm:$0xff] (%p66_p3)  ;;  %v237_v4 = vld [vmem:[%s1066_s25 + $0x120] sm:$0xff] (%p66_p3)  ;;  %v239_v5 = vld [vmem:[%s1066_s25 + $0x168] sm:$0xff] (%p66_p3) }
  0x15   : > { %232 = vst [vmem:[%s1071_s26 + $0x8] sm:$0xff] %v231_v1  ;;  %v241_v6 = vld [vmem:[%s1066_s25 + $0x1b0] sm:$0xff]  ;;  %v243_v7 = vld [vmem:[%s1066_s25 + $0x1f8] sm:$0xff]  ;;  %v245_v8 = vld [vmem:[%s1066_s25 + $0x240] sm:$0xff] }
  0x16   : > { %234 = vst [vmem:[%s1071_s26 + $0x10] sm:$0xff] %v233_v2  ;;  %v247_v9 = vld [vmem:[%s1066_s25 + $0x288] sm:$0xff]  ;;  %v249_v10 = vld [vmem:[%s1066_s25 + $0x2d0] sm:$0xff]  ;;  %v251_v11 = vld [vmem:[%s1066_s25 + $0x318] sm:$0xff] }
  0x17   : > { %236 = vst [vmem:[%s1071_s26 + $0x18] sm:$0xff] %v235_v3  ;;  %v253_v12 = vld [vmem:[%s1066_s25 + $0x360] sm:$0xff]  ;;  %v255_v13 = vld [vmem:[%s1066_s25 + $0x3a8] sm:$0xff]  ;;  %v257_v14 = vld [vmem:[%s1066_s25 + $0x3f0] sm:$0xff] }
  0x18   : > { %238 = vst [vmem:[%s1071_s26 + $0x20] sm:$0xff] %v237_v4  ;;  %v259_v15 = vld [vmem:[%s1066_s25 + $0x438] sm:$0xff]  ;;  %v261_v16 = vld [vmem:[%s1066_s25 + $0x480] sm:$0xff]  ;;  %v263_v17 = vld [vmem:[%s1066_s25 + $0x4c8] sm:$0xff] }
  0x19   : > { %240 = vst [vmem:[%s1071_s26 + $0x28] sm:$0xff] %v239_v5  ;;  %v265_v18 = vld [vmem:[%s1066_s25 + $0x510] sm:$0xff]  ;;  %v267_v19 = vld [vmem:[%s1066_s25 + $0x558] sm:$0xff]  ;;  %v269_v20 = vld [vmem:[%s1066_s25 + $0x5a0] sm:$0xff] }
  0x1a   : > { %242 = vst [vmem:[%s1071_s26 + $0x30] sm:$0xff] %v241_v6  ;;  %v271_v21 = vld [vmem:[%s1066_s25 + $0x5e8] sm:$0xff]  ;;  %v273_v22 = vld [vmem:[%s1066_s25 + $0x630] sm:$0xff]  ;;  %v275_v23 = vld [vmem:[%s1066_s25 + $0x678] sm:$0xff] }
  0x1b   : > { %244 = vst [vmem:[%s1071_s26 + $0x38] sm:$0xff] %v243_v7  ;;  %v277_v24 = vld [vmem:[%s1066_s25 + $0x6c0] sm:$0xff]  ;;  %v279_v25 = vld [vmem:[%s1066_s25 + $0x708] sm:$0xff]  ;;  %v281_v26 = vld [vmem:[%s1066_s25 + $0x750] sm:$0xff] }
  0x1c   : > { %246 = vst [vmem:[%s1071_s26 + $0x40] sm:$0xff] %v245_v8  ;;  %v283_v27 = vld [vmem:[%s1066_s25 + $0x798] sm:$0xff]  ;;  %v285_v28 = vld [vmem:[%s1066_s25 + $0x7e0] sm:$0xff]  ;;  %v287_v29 = vld [vmem:[%s1066_s25 + $0x828] sm:$0xff] }
  0x1d   : > { %248 = vst [vmem:[%s1071_s26 + $0x48] sm:$0xff] %v247_v9  ;;  %v289_v30 = vld [vmem:[%s1066_s25 + $0x870] sm:$0xff]  ;;  %v291_v31 = vld [vmem:[%s1066_s25 + $0x8b8] sm:$0xff] }
  0x1e   : > { %250 = vst [vmem:[%s1071_s26 + $0x50] sm:$0xff] %v249_v10 }
  0x1f   : > { %252 = vst [vmem:[%s1071_s26 + $0x58] sm:$0xff] %v251_v11 }
  0x20   : > { %254 = vst [vmem:[%s1071_s26 + $0x60] sm:$0xff] %v253_v12 }
  0x21   : > { %256 = vst [vmem:[%s1071_s26 + $0x68] sm:$0xff] %v255_v13 }
  0x22   : > { %258 = vst [vmem:[%s1071_s26 + $0x70] sm:$0xff] %v257_v14 }
  0x23   : > { %260 = vst [vmem:[%s1071_s26 + $0x78] sm:$0xff] %v259_v15 }
  0x24   : > { %262 = vst [vmem:[%s1071_s26 + $0x80] sm:$0xff] %v261_v16 }
  0x25   : > { %264 = vst [vmem:[%s1071_s26 + $0x88] sm:$0xff] %v263_v17 }
  0x26   : > { %266 = vst [vmem:[%s1071_s26 + $0x90] sm:$0xff] %v265_v18 }
  0x27   : > { %268 = vst [vmem:[%s1071_s26 + $0x98] sm:$0xff] %v267_v19 }
  0x28   : > { %270 = vst [vmem:[%s1071_s26 + $0xa0] sm:$0xff] %v269_v20 }
  0x29   : > { %272 = vst [vmem:[%s1071_s26 + $0xa8] sm:$0xff] %v271_v21 }
  0x2a   : > { %274 = vst [vmem:[%s1071_s26 + $0xb0] sm:$0xff] %v273_v22 }
  0x2b   : > { %276 = vst [vmem:[%s1071_s26 + $0xb8] sm:$0xff] %v275_v23 }
  0x2c   : > { %278 = vst [vmem:[%s1071_s26 + $0xc0] sm:$0xff] %v277_v24 }
  0x2d   : > { %280 = vst [vmem:[%s1071_s26 + $0xc8] sm:$0xff] %v279_v25 }
  0x2e   : > { %282 = vst [vmem:[%s1071_s26 + $0xd0] sm:$0xff] %v281_v26 }
  0x2f   : > { %284 = vst [vmem:[%s1071_s26 + $0xd8] sm:$0xff] %v283_v27 }
  0x30   : > { %286 = vst [vmem:[%s1071_s26 + $0xe0] sm:$0xff] %v285_v28 }
  0x31   : > { %288 = vst [vmem:[%s1071_s26 + $0xe8] sm:$0xff] %v287_v29 }
  0x32   : > { %290 = vst [vmem:[%s1071_s26 + $0xf0] sm:$0xff] %v289_v30 }
  0x33   : > { %292 = vst [vmem:[%s1071_s26 + $0xf8] sm:$0xff] %v291_v31 }
  0x34 PF: > { %p735_p8 = scmp.ge.s32.totalorder %s1001_s13, 1  ;;  %p297_p9 = scmp.lt.s32.totalorder %s1001_s13, 10 }
  0x36   : > { %p298_p10 = pnand %p735_p8, %p297_p9 }
  0x37   : > { %s304_s27 = sand.u32 (!%p298_p10), 1, %s985_s9  }
  0x38   : > { %301 = sbr.rel (%p298_p10) target bundleno = 255 (0xff), region = 62  ;;  %s736_s28 = sshll.u32 (!%p298_p10), %s304_s27, 8 }
  0x39   : > { %s1139_s29 = scalar_lea.vmem (!%p298_p10), [#allocation2], %s736_s28  ;;  %s737_s16 = sshll.u32 (!%p298_p10), %s304_s27, 5 }
  0x3a   : > { %s329_s17 = scalar_lea.vmem (!%p298_p10), [#allocation3], %s737_s16 }
  0x3d   : > { %v804_v32 = vld [vmem:[%s1139_s29 + $0x70] sm:$0xf]  ;;  %v897_v33 = vld [vmem:[%s1139_s29 + $0x74] sm:$0xf0]  ;;  %v896_v37 = vld [vmem:[%s1139_s29 + $0x74] sm:$0xf] }
  0x3e   : > { %v868_v34 = vld [vmem:[%s1139_s29 + $0xf0] sm:$0xf]  ;;  %v805_v35 = vor.u32 %v897_v33, %v804_v32  ;;  %v913_v36 = vld [vmem:[%s1139_s29 + $0xf4] sm:$0xf0]  ;;  %v806_v38 = vld [vmem:[%s1139_s29 + $0x78] sm:$0xf0] }
  0x3f   : > { %v869_v39 = vor.u32 %v913_v36, %v868_v34  ;;  %v809_v40 = vor.u32 %v896_v37, %v806_v38  ;;  %v912_v41 = vld [vmem:[%s1139_s29 + $0xf4] sm:$0xf]  ;;  %v870_v42 = vld [vmem:[%s1139_s29 + $0xf8] sm:$0xf0]  ;;  %v796_v43 = vld [vmem:[%s1139_s29 + $0x60] sm:$0xf] }
  0x40   : > { %544 = vmatpush.bf16.msra.mxu0 %v805_v35  ;;  %v873_v44 = vor.u32 %v912_v41, %v870_v42  ;;  %v895_v45 = vld [vmem:[%s1139_s29 + $0x64] sm:$0xf0]  ;;  %v860_v46 = vld [vmem:[%s1139_s29 + $0xe0] sm:$0xf]  ;;  %v894_v50 = vld [vmem:[%s1139_s29 + $0x64] sm:$0xf] }
  0x41   : > { %v911_v47 = vld [vmem:[%s1139_s29 + $0xe4] sm:$0xf0]  ;;  %558 = vmatpush.bf16.msra.mxu1 %v869_v39  ;;  %572 = vmatpush.bf16.msra.mxu2 %v809_v40  ;;  %v797_v48 = vor.u32 %v895_v45, %v796_v43  ;;  %v798_v51 = vld [vmem:[%s1139_s29 + $0x68] sm:$0xf0]  ;;  %v910_v52 = vld [vmem:[%s1139_s29 + $0xe4] sm:$0xf] }
  0x42   : > { %v861_v49 = vor.u32 %v911_v47, %v860_v46  ;;  %586 = vmatpush.bf16.msra.mxu3 %v873_v44  ;;  %v801_v53 = vor.u32 %v894_v50, %v798_v51  ;;  %v862_v54 = vld [vmem:[%s1139_s29 + $0xe8] sm:$0xf0]  ;;  %v788_v55 = vld [vmem:[%s1139_s29 + $0x50] sm:$0xf]  ;;  %v893_v56 = vld [vmem:[%s1139_s29 + $0x54] sm:$0xf0] }
  0x43   : > { %v865_v57 = vor.u32 %v910_v52, %v862_v54  ;;  %v852_v58 = vld [vmem:[%s1139_s29 + $0xd0] sm:$0xf]  ;;  %v909_v59 = vld [vmem:[%s1139_s29 + $0xd4] sm:$0xf0]  ;;  %v892_v60 = vld [vmem:[%s1139_s29 + $0x54] sm:$0xf]  ;;  %v789_v61 = vor.u32 %v893_v56, %v788_v55 }
  0x44   : > { %545 = vmatpush.bf16.msra.mxu0 %v797_v48  ;;  %v790_v62 = vld [vmem:[%s1139_s29 + $0x58] sm:$0xf0]  ;;  %v908_v63 = vld [vmem:[%s1139_s29 + $0xd4] sm:$0xf]  ;;  %v853_v1 = vor.u32 %v909_v59, %v852_v58  ;;  %v780_v3 = vld [vmem:[%s1139_s29 + $0x40] sm:$0xf] }
  0x45   : > { %v854_v0 = vld [vmem:[%s1139_s29 + $0xd8] sm:$0xf0]  ;;  %559 = vmatpush.bf16.msra.mxu1 %v861_v49  ;;  %573 = vmatpush.bf16.msra.mxu2 %v801_v53  ;;  %v793_v2 = vor.u32 %v892_v60, %v790_v62  ;;  %v891_v4 = vld [vmem:[%s1139_s29 + $0x44] sm:$0xf0]  ;;  %v844_v5 = vld [vmem:[%s1139_s29 + $0xc0] sm:$0xf] }
  0x46   : > { %587 = vmatpush.bf16.msra.mxu3 %v865_v57  ;;  %v857_v6 = vor.u32 %v908_v63, %v854_v0  ;;  %v907_v7 = vld [vmem:[%s1139_s29 + $0xc4] sm:$0xf0]  ;;  %v890_v8 = vld [vmem:[%s1139_s29 + $0x44] sm:$0xf]  ;;  %v782_v9 = vld [vmem:[%s1139_s29 + $0x48] sm:$0xf0]  ;;  %v781_v12 = vor.u32 %v891_v4, %v780_v3 }
  0x47   : > { %v906_v10 = vld [vmem:[%s1139_s29 + $0xc4] sm:$0xf]  ;;  %v846_v11 = vld [vmem:[%s1139_s29 + $0xc8] sm:$0xf0]  ;;  %v845_v13 = vor.u32 %v907_v7, %v844_v5  ;;  %v785_v14 = vor.u32 %v890_v8, %v782_v9  ;;  %v772_v15 = vld [vmem:[%s1139_s29 + $0x30] sm:$0xf] }
  0x48   : > { %546 = vmatpush.bf16.msra.mxu0 %v789_v61  ;;  %v889_v16 = vld [vmem:[%s1139_s29 + $0x34] sm:$0xf0]  ;;  %v836_v17 = vld [vmem:[%s1139_s29 + $0xb0] sm:$0xf]  ;;  %v849_v18 = vor.u32 %v906_v10, %v846_v11  ;;  %v888_v20 = vld [vmem:[%s1139_s29 + $0x34] sm:$0xf] }
  0x49   : > { %560 = vmatpush.bf16.msra.mxu1 %v853_v1  ;;  %574 = vmatpush.bf16.msra.mxu2 %v793_v2  ;;  %v905_v19 = vld [vmem:[%s1139_s29 + $0xb4] sm:$0xf0]  ;;  %v774_v21 = vld [vmem:[%s1139_s29 + $0x38] sm:$0xf0]  ;;  %v904_v22 = vld [vmem:[%s1139_s29 + $0xb4] sm:$0xf]  ;;  %v773_v24 = vor.u32 %v889_v16, %v772_v15 }
  0x4a   : > { %588 = vmatpush.bf16.msra.mxu3 %v857_v6  ;;  %v838_v23 = vld [vmem:[%s1139_s29 + $0xb8] sm:$0xf0]  ;;  %v837_v25 = vor.u32 %v905_v19, %v836_v17  ;;  %v777_v26 = vor.u32 %v888_v20, %v774_v21  ;;  %v764_v27 = vld [vmem:[%s1139_s29 + $0x20] sm:$0xf]  ;;  %v887_v28 = vld [vmem:[%s1139_s29 + $0x24] sm:$0xf0] }
  0x4b   : > { %v828_v29 = vld [vmem:[%s1139_s29 + $0xa0] sm:$0xf]  ;;  %v841_v30 = vor.u32 %v904_v22, %v838_v23  ;;  %v903_v31 = vld [vmem:[%s1139_s29 + $0xa4] sm:$0xf0]  ;;  %v886_v32 = vld [vmem:[%s1139_s29 + $0x24] sm:$0xf]  ;;  %v765_v36 = vor.u32 %v887_v28, %v764_v27 }
  0x4c   : > { %547 = vmatpush.bf16.msra.mxu0 %v781_v12  ;;  %v766_v33 = vld [vmem:[%s1139_s29 + $0x28] sm:$0xf0]  ;;  %v902_v34 = vld [vmem:[%s1139_s29 + $0xa4] sm:$0xf]  ;;  %v829_v37 = vor.u32 %v903_v31, %v828_v29  ;;  %v756_v39 = vld [vmem:[%s1139_s29 + $0x10] sm:$0xf] }
  0x4d   : > { %561 = vmatpush.bf16.msra.mxu1 %v845_v13  ;;  %575 = vmatpush.bf16.msra.mxu2 %v785_v14  ;;  %v830_v35 = vld [vmem:[%s1139_s29 + $0xa8] sm:$0xf0]  ;;  %v769_v38 = vor.u32 %v886_v32, %v766_v33  ;;  %v885_v40 = vld [vmem:[%s1139_s29 + $0x14] sm:$0xf0]  ;;  %v820_v41 = vld [vmem:[%s1139_s29 + $0x90] sm:$0xf] }
  0x4e   : > { %589 = vmatpush.bf16.msra.mxu3 %v849_v18  ;;  %v833_v42 = vor.u32 %v902_v34, %v830_v35  ;;  %v901_v43 = vld [vmem:[%s1139_s29 + $0x94] sm:$0xf0]  ;;  %v884_v44 = vld [vmem:[%s1139_s29 + $0x14] sm:$0xf]  ;;  %v758_v45 = vld [vmem:[%s1139_s29 + $0x18] sm:$0xf0]  ;;  %v757_v48 = vor.u32 %v885_v40, %v756_v39 }
  0x4f   : > { %v900_v46 = vld [vmem:[%s1139_s29 + $0x94] sm:$0xf]  ;;  %v822_v47 = vld [vmem:[%s1139_s29 + $0x98] sm:$0xf0]  ;;  %v821_v49 = vor.u32 %v901_v43, %v820_v41  ;;  %v761_v50 = vor.u32 %v884_v44, %v758_v45  ;;  %v748_v51 = vld [vmem:[%s1139_s29] sm:$0xf] }
  0x50   : > { %548 = vmatpush.bf16.msra.mxu0 %v773_v24  ;;  %v883_v52 = vld [vmem:[%s1139_s29 + $0x4] sm:$0xf0]  ;;  %v812_v53 = vld [vmem:[%s1139_s29 + $0x80] sm:$0xf]  ;;  %v825_v54 = vor.u32 %v900_v46, %v822_v47  ;;  %v882_v56 = vld [vmem:[%s1139_s29 + $0x4] sm:$0xf] }
  0x51   : > { %562 = vmatpush.bf16.msra.mxu1 %v837_v25  ;;  %576 = vmatpush.bf16.msra.mxu2 %v777_v26  ;;  %v899_v55 = vld [vmem:[%s1139_s29 + $0x84] sm:$0xf0]  ;;  %v750_v57 = vld [vmem:[%s1139_s29 + $0x8] sm:$0xf0]  ;;  %v898_v58 = vld [vmem:[%s1139_s29 + $0x84] sm:$0xf]  ;;  %v749_v60 = vor.u32 %v883_v52, %v748_v51 }
  0x52   : > { %590 = vmatpush.bf16.msra.mxu3 %v841_v30  ;;  %v814_v59 = vld [vmem:[%s1139_s29 + $0x88] sm:$0xf0]  ;;  %v740_v61 = vld [vmem:[%s1240_s0] sm:$0xf]  ;;  %v881_v62 = vld [vmem:[%s1240_s0 + $0x4] sm:$0xf0]  ;;  %v813_v63 = vor.u32 %v899_v55, %v812_v53  ;;  %v753_v0 = vor.u32 %v882_v56, %v750_v57 }
  0x53   : > { %v880_v1 = vld [vmem:[%s1240_s0 + $0x4] sm:$0xf]  ;;  %v742_v2 = vld [vmem:[%s1240_s0 + $0x8] sm:$0xf0]  ;;  %v817_v3 = vor.u32 %v898_v58, %v814_v59  ;;  %v741_v4 = vor.u32 %v881_v62, %v740_v61  ;;  %s914_s9 = sshll.u32 (%p1053_p6), %s993_s11, 4 }
  0x54   : > { %549 = vmatpush.bf16.msra.mxu0 %v765_v36  ;;  %v745_v5 = vor.u32 %v880_v1, %v742_v2  ;;  %s620_s22 = scalar_lea.vmem (%p1053_p6), %s1242_s2, %s914_s9 }
  0x55   : > { %563 = vmatpush.bf16.msra.mxu1 %v829_v37  ;;  %577 = vmatpush.bf16.msra.mxu2 %v769_v38 }
  0x56   : > { %591 = vmatpush.bf16.msra.mxu3 %v833_v42 }
  0x58   : > { %550 = vmatpush.bf16.msra.mxu0 %v757_v48 }
  0x59   : > { %564 = vmatpush.bf16.msra.mxu1 %v821_v49  ;;  %578 = vmatpush.bf16.msra.mxu2 %v761_v50 }
  0x5a   : > { %592 = vmatpush.bf16.msra.mxu3 %v825_v54 }
  0x5c   : > { %551 = vmatpush.bf16.msra.mxu0 %v749_v60 }
  0x5d   : > { %565 = vmatpush.bf16.msra.mxu1 %v813_v63  ;;  %579 = vmatpush.bf16.msra.mxu2 %v753_v0 }
  0x5e   : > { %593 = vmatpush.bf16.msra.mxu3 %v817_v3 }
  0x5f   : > { %552 = vmatmul.bf16.vlgmr.msra.gmra.mxu0 %v741_v4 }
  0x60   : > { %566 = vmatmul.bf16.vlgmr.msra.gmra.mxu1 %v745_v5  ;;  %580 = vmatmul.bf16.vlgmr.msra.gmra.mxu2 %v741_v4 }
  0x61   : > { %594 = vmatmul.bf16.vlgmr.msra.gmra.mxu3 %v745_v5 }
  0xdc   : > { %v553_v6 = vpop.f32.mrf.mxu0 }
  0xdd   : > { %v567_v7 = vpop.f32.mrf.mxu1 }
  0xde   : > { %v568_v8 = vadd.f32 %v567_v7, %v553_v6 }
  0xe0   : > { %955 = vtanh.f32 %v568_v8 }
  0xe3   : > { %v581_v9 = vpop.f32.mrf.mxu2 }
  0xe4   : > { %v595_v10 = vpop.f32.mrf.mxu3  ;;  %v555_v11 = vpop.f32.mrf.mxu0 }
  0xe5   : > { %v596_v12 = vadd.f32 %v595_v10, %v581_v9  ;;  %v569_v13 = vpop.f32.mrf.mxu1 }
  0xe6   : > { %v956_v14 = vpop.eup %955  ;;  %v570_v15 = vadd.f32 %v569_v13, %v555_v11 }
  0xe7   : > { %604 = vst [vmem:[%s329_s17] sm:$0xff] %v956_v14  ;;  %957 = vtanh.f32 %v596_v12 }
  0xe8   : > { %959 = vtanh.f32 %v570_v15 }
  0xeb   : > { %v583_v16 = vpop.f32.mrf.mxu2 }
  0xec   : > { %v597_v17 = vpop.f32.mrf.mxu3 }
  0xed   : > { %v958_v18 = vpop.eup %957  ;;  %v598_v19 = vadd.f32 %v597_v17, %v583_v16 }
  0xee   : > { %v960_v20 = vpop.eup %959  ;;  %605 = vst [vmem:[%s329_s17 + $0x8] sm:$0xff] %v958_v18  ;;  %v633_v22 = vld [vmem:[%s329_s17] sm:$0xff] (%p1053_p6) }
  0xef   : > { %606 = vst [vmem:[%s329_s17 + $0x10] sm:$0xff] %v960_v20  ;;  %961 = vtanh.f32 %v598_v19 }
  0xf0   : > { %634 = vst [vmem:[%s620_s22] sm:$0xff] (%p1053_p6), %v633_v22 }
  0xf2   : > { %614 = sbr.rel (!%p1053_p6) target bundleno = 255 (0xff), region = 70 }
  0xf5   : > { %v962_v21 = vpop.eup %961  ;;  %v635_v23 = vld [vmem:[%s329_s17 + $0x8] sm:$0xff] (%p1053_p6) }
  0xf6   : > { %607 = vst [vmem:[%s329_s17 + $0x18] sm:$0xff] %v962_v21  ;;  %v637_v24 = vld [vmem:[%s329_s17 + $0x10] sm:$0xff] (%p1053_p6) }
  0xf7   : > { %636 = vst [vmem:[%s620_s22 + $0x8] sm:$0xff] %v635_v23 }
  0xf8   : > { %638 = vst [vmem:[%s620_s22 + $0x90] sm:$0xff] %v637_v24 }
  0xfd   : > { %v639_v25 = vld [vmem:[%s329_s17 + $0x18] sm:$0xff] }
  0xfe   : > { %640 = vst [vmem:[%s620_s22 + $0x98] sm:$0xff] %v639_v25 }
  0xff PF: > { %s12_s13 = sadd.s32 1, %s1001_s13   ;;  %s1244_s9 = smov %s989_s10 }
 0x100   : > { %p9_p11 = scmp.ge.s32.totalorder %s12_s13, 11   ;;  %s1245_s10 = smov %s1058_s19 }
 0x101   : > { %s1246_s11 = smov %s997_s12  ;;  %s1247_s12 = smov %s1249_s14 }
 0x102   :  { %11 = sbr.rel (!%p9_p11) target bundleno = 3 (0x3), region = 127 }

</bundles_post_ra>
